<compile_context>
chip_gen: v5e
topology: v5e:2x2
jax: 0.10.0
libtpu: 0.0.40
codegen_flags: <defaults>
</compile_context>

<pallas_src>
import math

import jax
import jax.numpy as jnp
from jax.experimental import pallas as pl
from jax.experimental.pallas import tpu as pltpu

# ----------------------------- config (small synthetic shapes) ---------------
DIM_IN = 4          # cfg "dim_in" (original 256)
H = W = 16          # feature map spatial size
ROI_SIZE = 4        # cfg.FAST_RCNN.ROI_XFORM_RESOLUTION (original 7)
CROP_SIZE = 4       # cfg.VCOCO.PART_CROP_SIZE (original 5)
HIDDEN = 32         # cfg.VCOCO.MLP_HEAD_DIM (original 256)
HM = 8              # cfg.KRCNN.HEATMAP_SIZE (original 64)
PART_NUM = 17
NUM_ACTIONS = 24    # interaction_num_action_classes = action_mask.sum()
SPATIAL_SCALE = 1.0

NUM_HUMANS = 3
NUM_OBJECTS = 3
NUM_INTERACTIONS = 4

C2 = DIM_IN + 2                          # feature channels + 2 coord channels
PART_FEAT = C2 * CROP_SIZE * CROP_SIZE   # flattened per-part feature size
POSECFG = 3 * HM * HM                    # pose-config vector length
ROI_FEAT = DIM_IN * ROI_SIZE * ROI_SIZE  # flattened ROI feature size
POSE_FC1_OUT = 1024
POSE_FC2_OUT = 2 * HIDDEN


def _round_up(x, m):
    return ((x + m - 1) // m) * m


def _full_spec(shape):
    nd = len(shape)
    return pl.BlockSpec(shape, lambda *_: (0,) * nd)


def _stable_sigmoid(x):
    # numerically stable sigmoid (tanh goes to the EUP, never overflows)
    return 0.5 * (jnp.tanh(0.5 * x) + 1.0)


# ====================== the single fused PMFNet head kernel ==================
def _pmfnet_kernel(x3_ref, pose_ref, parts_ref,
                   fc1w_ref, fc1b_ref,
                   m1w_ref, m1b_ref, m2w_ref, m2b_ref,
                   fc3w_ref, fc3b_ref, fc4w_ref, fc4b_ref,
                   p1w_ref, p1b_ref, p2w_ref, p2b_ref,
                   iw_ref, ib_ref, sw_ref, sb_ref,
                   o_ref):
    f32, bf16 = jnp.float32, jnp.bfloat16
    mp = pose_ref.shape[0]

    def dense(x, w_ref, b_ref, relu=True):
        y = jnp.dot(x, w_ref[...], preferred_element_type=f32) + b_ref[...]
        return jnp.maximum(y, 0.0) if relu else y

    # ---- human / object / union fc1 (three small MXU dots, stay in VMEM) ----
    hou = []
    for i in range(3):
        y = jnp.dot(x3_ref[i], fc1w_ref[i],
                    preferred_element_type=f32) + fc1b_ref[i]
        hou.append(jnp.maximum(y, 0.0))                       # (mp, HIDDEN) f32

    # ---- semantic attention: sigmoid(mlp2(relu(mlp1(poseconfig)))) ----------
    pose = pose_ref[...]                                      # (mp, POSECFG) bf16
    h1 = dense(pose, m1w_ref, m1b_ref)
    atten = _stable_sigmoid(
        dense(h1.astype(bf16), m2w_ref, m2b_ref, relu=False))  # (mp, 17) f32

    # ---- pose "line" branch: relu(fc4(relu(fc3(poseconfig)))) ---------------
    h3 = dense(pose, fc3w_ref, fc3b_ref)
    line = dense(h3.astype(bf16), fc4w_ref, fc4b_ref)          # (mp, HIDDEN) f32

    # ---- pose_fc1 with attention fused in (unrolled loop over 18 parts) -----
    atten_bf = atten.astype(bf16)
    acc = jnp.broadcast_to(p1b_ref[...],
                           (mp, p1w_ref.shape[2])).astype(f32)  # bias init
    for p in range(PART_NUM + 1):
        xp = parts_ref[p]                                      # (mp, PART_FEAT) bf16
        if p < PART_NUM:
            xp = xp * atten_bf[:, p:p + 1]                     # bf16 row scale
        acc = acc + jnp.dot(xp, p1w_ref[p], preferred_element_type=f32)
    pose_v = jnp.maximum(acc, 0.0)                             # (mp, 1024) f32

    # ---- pose_fc2 ------------------------------------------------------------
    pv2 = dense(pose_v.astype(bf16), p2w_ref, p2b_ref)         # (mp, 2*HIDDEN)

    # ---- interaction_fc1 with segmented K (the concat never materializes) ----
    hd = HIDDEN
    wi = iw_ref[...]                                           # (6*HIDDEN, HIDDEN) bf16
    acc2 = jnp.dot(hou[0].astype(bf16), wi[0:hd], preferred_element_type=f32)
    acc2 += jnp.dot(hou[1].astype(bf16), wi[hd:2 * hd],
                    preferred_element_type=f32)
    acc2 += jnp.dot(hou[2].astype(bf16), wi[2 * hd:3 * hd],
                    preferred_element_type=f32)
    acc2 += jnp.dot(pv2.astype(bf16), wi[3 * hd:5 * hd],
                    preferred_element_type=f32)
    acc2 += jnp.dot(line.astype(bf16), wi[5 * hd:6 * hd],
                    preferred_element_type=f32)
    xi = jnp.maximum(acc2 + ib_ref[...], 0.0)                  # (mp, HIDDEN)

    # ---- interaction_action_score --------------------------------------------
    o_ref[...] = (jnp.dot(xi.astype(bf16), sw_ref[...],
                          preferred_element_type=f32) + sb_ref[...])


def pmfnet_fused(x3, posecfg, x_parts, dp):
    """One pallas_call for the whole post-RoIAlign head.

    x3:      (3, mp, ROI_FEAT)  bf16  gathered human/object/union ROI features
    posecfg: (mp, POSECFG)      bf16
    x_parts: (18, mp, PART_FEAT) bf16 part crops (part 17 = object crop)
    """
    mp = posecfg.shape[0]
    args = (x3, posecfg, x_parts,
            dp["fc1_w"], dp["fc1_b"],
            dp["mlp1_w"], dp["mlp1_b"], dp["mlp2_w"], dp["mlp2_b"],
            dp["fc3_w"], dp["fc3_b"], dp["fc4_w"], dp["fc4_b"],
            dp["pose1_w"], dp["pose1_b"], dp["pose2_w"], dp["pose2_b"],
            dp["inter_w"], dp["inter_b"], dp["score_w"], dp["score_b"])
    return pl.pallas_call(
        _pmfnet_kernel,
        out_shape=jax.ShapeDtypeStruct((mp, NUM_ACTIONS), jnp.float32),
        grid=(1,),
        in_specs=[_full_spec(a.shape) for a in args],
        out_specs=_full_spec((mp, NUM_ACTIONS)),
        compiler_params=pltpu.CompilerParams(
            dimension_semantics=("arbitrary",),
            vmem_limit_bytes=32 * 1024 * 1024),
    )(*args)


# ----------------------------- RoIAlign glue (plain JAX) ---------------------
# TODO(synk): exact Detectron RoIAlign / roi_xform_func is an external dep; this
# is a standard bilinear RoIAlign (sampling_ratio=2) used as glue, not in Pallas.
def roi_align(feat, boxes, resolution, spatial_scale, sampling_ratio=2):
    """feat: (B,C,H,W), boxes: (R,5) [batch_idx,x1,y1,x2,y2] -> (R,C,res,res)."""
    B, C, Hf, Wf = feat.shape
    b_idx = boxes[:, 0].astype(jnp.int32)
    x1 = boxes[:, 1] * spatial_scale
    y1 = boxes[:, 2] * spatial_scale
    x2 = boxes[:, 3] * spatial_scale
    y2 = boxes[:, 4] * spatial_scale
    roi_w = jnp.maximum(x2 - x1, 1.0)
    roi_h = jnp.maximum(y2 - y1, 1.0)
    bin_w = roi_w / resolution
    bin_h = roi_h / resolution
    s = sampling_ratio
    grid = (jnp.arange(resolution * s, dtype=jnp.float32) + 0.5) / s
    ys = y1[:, None] + grid[None, :] * bin_h[:, None]
    xs = x1[:, None] + grid[None, :] * bin_w[:, None]
    imgs = feat[b_idx]

    def sample_roi(img, ys_r, xs_r):
        y = jnp.clip(ys_r, 0.0, Hf - 1.0)
        x = jnp.clip(xs_r, 0.0, Wf - 1.0)
        y0 = jnp.floor(y).astype(jnp.int32)
        x0 = jnp.floor(x).astype(jnp.int32)
        y1i = jnp.minimum(y0 + 1, Hf - 1)
        x1i = jnp.minimum(x0 + 1, Wf - 1)
        ly = y - y0.astype(jnp.float32)
        lx = x - x0.astype(jnp.float32)

        def gather(yi, xi):
            return img[:, yi, :][:, :, xi]

        v00 = gather(y0, x0)
        v01 = gather(y0, x1i)
        v10 = gather(y1i, x0)
        v11 = gather(y1i, x1i)
        wy = ly[:, None]
        wx = lx[None, :]
        val = (v00 * (1 - wy) * (1 - wx) + v01 * (1 - wy) * wx
               + v10 * wy * (1 - wx) + v11 * wy * wx)
        val = val.reshape(C, resolution, s, resolution, s).mean(axis=(2, 4))
        return val

    return jax.vmap(sample_roi)(imgs, ys, xs)


# ----------------------------- parameter init --------------------------------
def dense_init(key, fan_in, fan_out):
    kw, kb = jax.random.split(key)
    w = jax.random.normal(kw, (fan_in, fan_out), jnp.float32) / math.sqrt(fan_in)
    b = jax.random.normal(kb, (fan_out,), jnp.float32) * 0.01
    return w, b


def init_params(key):
    keys = jax.random.split(key, 12)
    p = {}
    p["human_fc1"] = dense_init(keys[0], ROI_FEAT, HIDDEN)
    p["object_fc1"] = dense_init(keys[1], ROI_FEAT, HIDDEN)
    p["union_fc1"] = dense_init(keys[2], ROI_FEAT, HIDDEN)
    p["mlp1"] = dense_init(keys[3], POSECFG, 64)
    p["mlp2"] = dense_init(keys[4], 64, PART_NUM)
    p["pose_fc1"] = dense_init(keys[5], (PART_NUM + 1) * PART_FEAT, POSE_FC1_OUT)
    p["pose_fc2"] = dense_init(keys[6], POSE_FC1_OUT, POSE_FC2_OUT)
    p["pose_fc3"] = dense_init(keys[7], POSECFG, 512)
    p["pose_fc4"] = dense_init(keys[8], 512, HIDDEN)
    p["interaction_fc1"] = dense_init(keys[9], 6 * HIDDEN, HIDDEN)
    p["interaction_action_score"] = dense_init(keys[10], HIDDEN, NUM_ACTIONS)
    return p


def prepare_params(p):
    """Cast weights to bf16 once (halves weight DMA, enables bf16 MXU path),
    reshape bias to (1, N) f32, pre-reshape pose_fc1 weight per-part."""
    def bf(w):
        return w.astype(jnp.bfloat16)

    def rb(b):
        return b.reshape(1, -1).astype(jnp.float32)

    dp = {}
    dp["fc1_w"] = jnp.stack([bf(p["human_fc1"][0]), bf(p["object_fc1"][0]),
                             bf(p["union_fc1"][0])])
    dp["fc1_b"] = jnp.stack([rb(p["human_fc1"][1]), rb(p["object_fc1"][1]),
                             rb(p["union_fc1"][1])])
    dp["mlp1_w"], dp["mlp1_b"] = bf(p["mlp1"][0]), rb(p["mlp1"][1])
    dp["mlp2_w"], dp["mlp2_b"] = bf(p["mlp2"][0]), rb(p["mlp2"][1])
    dp["fc3_w"], dp["fc3_b"] = bf(p["pose_fc3"][0]), rb(p["pose_fc3"][1])
    dp["fc4_w"], dp["fc4_b"] = bf(p["pose_fc4"][0]), rb(p["pose_fc4"][1])
    dp["pose1_w"] = bf(p["pose_fc1"][0]).reshape(PART_NUM + 1, PART_FEAT,
                                                 POSE_FC1_OUT)
    dp["pose1_b"] = rb(p["pose_fc1"][1])
    dp["pose2_w"], dp["pose2_b"] = bf(p["pose_fc2"][0]), rb(p["pose_fc2"][1])
    dp["inter_w"], dp["inter_b"] = (bf(p["interaction_fc1"][0]),
                                    rb(p["interaction_fc1"][1]))
    dp["score_w"], dp["score_b"] = (bf(p["interaction_action_score"][0]),
                                    rb(p["interaction_action_score"][1]))
    return dp


# ----------------------------- forward ---------------------------------------
def pmfnet_forward(dp, x, hoi_blob):
    B, C, Hf, Wf = x.shape
    ih = hoi_blob["interaction_human_inds"]
    io = hoi_blob["interaction_object_inds"]
    part_boxes = hoi_blob["part_boxes"]
    flag = hoi_blob["flag"]
    kps = hoi_blob["poseconfig"]
    nh = hoi_blob["human_boxes"].shape[0]
    no = hoi_blob["object_boxes"].shape[0]
    ni = ih.shape[0]
    mp = _round_up(ni, 8)                     # pad rows once to sublane multiple

    def pad_rows(a):
        return jnp.pad(a, ((0, mp - ni),) + ((0, 0),) * (a.ndim - 1))

    # coordinate channels
    coord_x, coord_y = jnp.meshgrid(jnp.arange(Wf, dtype=jnp.float32),
                                    jnp.arange(Hf, dtype=jnp.float32))
    coords = jnp.stack((coord_x, coord_y), axis=0)
    x_new = jnp.concatenate([x, coords[None]], axis=1)          # (1, C+2, H, W)

    # -------- batched RoIAlign: one call per (feature, resolution) pair ------
    # TODO(synk): gathers/pads/transposes below could move behind
    # PrefetchScalarGridSpec row-gather index_maps in a follow-up.
    boxes_roi = jnp.concatenate([hoi_blob["human_boxes"],
                                 hoi_blob["object_boxes"],
                                 hoi_blob["union_boxes"]], axis=0)
    feats_roi = roi_align(x, boxes_roi, ROI_SIZE, SPATIAL_SCALE)
    x_human = feats_roi[:nh].reshape(nh, -1)
    x_object = feats_roi[nh:nh + no].reshape(no, -1)
    x_union = feats_roi[nh + no:].reshape(ni, -1)

    boxes_crop = jnp.concatenate([hoi_blob["object_boxes"],
                                  part_boxes.reshape(-1, 5)], axis=0)
    feats_crop = roi_align(x_new, boxes_crop, CROP_SIZE, SPATIAL_SCALE)
    x_object2_all = feats_crop[:no]
    part_feats = feats_crop[no:].reshape(nh, PART_NUM, C2, CROP_SIZE, CROP_SIZE)
    part_feats = part_feats * (flag > 0).astype(part_feats.dtype)[:, :, None,
                                                                  None, None]

    # -------- gather / pad the per-interaction inputs (JAX glue) -------------
    x3 = jnp.stack([pad_rows(x_human[ih]), pad_rows(x_object[io]),
                    pad_rows(x_union)]).astype(jnp.bfloat16)     # (3, mp, K)
    posecfg = pad_rows(kps.reshape(ni, -1)).astype(jnp.bfloat16)  # (mp, POSECFG)

    # part crops + relative coordinates
    x_pose = part_feats[ih]                                      # (ni,17,C2,cs,cs)
    x_obj2 = x_object2_all[:, None][io]                          # (ni,1,C2,cs,cs)
    cc = CROP_SIZE // 2
    center = x_obj2[:, :, -2:, cc:cc + 1, cc:cc + 1]
    x_pose = x_pose.at[:, :, -2:].add(-center)
    x_obj2 = x_obj2.at[:, :, -2:].add(-center)
    x_pose18 = jnp.concatenate([x_pose, x_obj2], axis=1)         # (ni,18,C2,cs,cs)
    x_pose18 = pad_rows(x_pose18.reshape(ni, PART_NUM + 1, PART_FEAT))
    x_parts = jnp.transpose(x_pose18, (1, 0, 2)).astype(jnp.bfloat16)  # (18,mp,F)

    # -------- single fused Pallas kernel for the whole head ------------------
    score = pmfnet_fused(x3, posecfg, x_parts, dp)               # (mp, 24) f32

    interaction_action_score = score[:ni]
    # matches reference: affinity branch is a zeros stub in PMFNet_Final_bak
    interaction_affinity_score = jnp.zeros((ni, 2), jnp.float32)
    return interaction_action_score, interaction_affinity_score


# ----------------------------- example inputs --------------------------------
def make_boxes(key, n):
    k1, k2 = jax.random.split(key)
    xy1 = jax.random.uniform(k1, (n, 2), minval=0.0, maxval=W / 2)
    wh = jax.random.uniform(k2, (n, 2), minval=2.0, maxval=W / 2 - 1)
    xy2 = jnp.minimum(xy1 + wh, float(W - 1))
    return jnp.concatenate([jnp.zeros((n, 1), jnp.float32), xy1, xy2], axis=1)


if __name__ == "__main__":
    root = jax.random.PRNGKey(0)
    kp, kx, kh, ko, ku, kpb, kf, kps = jax.random.split(root, 8)

    params = prepare_params(init_params(kp))
    x = jax.random.normal(kx, (1, DIM_IN, H, W), jnp.float32)

    hoi_blob = {
        "human_boxes": make_boxes(kh, NUM_HUMANS),
        "object_boxes": make_boxes(ko, NUM_OBJECTS),
        "union_boxes": make_boxes(ku, NUM_INTERACTIONS),
        "part_boxes": make_boxes(kpb, NUM_HUMANS * PART_NUM).reshape(
            NUM_HUMANS, PART_NUM, 5),
        "flag": (jax.random.uniform(kf, (NUM_HUMANS, PART_NUM)) > 0.3
                 ).astype(jnp.int32),
        "poseconfig": jax.random.normal(kps, (NUM_INTERACTIONS, 3, HM, HM),
                                        jnp.float32),
        "interaction_human_inds": jnp.array([0, 1, 2, 0], jnp.int32),
        "interaction_object_inds": jnp.array([0, 1, 2, 1], jnp.int32),
    }

    forward = jax.jit(pmfnet_forward)
    action_score, affinity_score = forward(params, x, hoi_blob)
    jax.block_until_ready((action_score, affinity_score))
    assert action_score.shape == (NUM_INTERACTIONS, NUM_ACTIONS)
    assert affinity_score.shape == (NUM_INTERACTIONS, 2)
    print("KERNEL_OK")
</pallas_src>

<mosaic_0001>
module attributes {stable_mosaic.version = 11 : i64} {
  func.func @_pmfnet_kernel(%arg0: i32, %arg1: memref<3x8x64xbf16, #tpu.memory_space<vmem>>, %arg2: memref<8x192xbf16, #tpu.memory_space<vmem>>, %arg3: memref<18x8x96xbf16, #tpu.memory_space<vmem>>, %arg4: memref<3x64x32xbf16, #tpu.memory_space<vmem>>, %arg5: memref<3x1x32xf32, #tpu.memory_space<vmem>>, %arg6: memref<192x64xbf16, #tpu.memory_space<vmem>>, %arg7: memref<1x64xf32, #tpu.memory_space<vmem>>, %arg8: memref<64x17xbf16, #tpu.memory_space<vmem>>, %arg9: memref<1x17xf32, #tpu.memory_space<vmem>>, %arg10: memref<192x512xbf16, #tpu.memory_space<vmem>>, %arg11: memref<1x512xf32, #tpu.memory_space<vmem>>, %arg12: memref<512x32xbf16, #tpu.memory_space<vmem>>, %arg13: memref<1x32xf32, #tpu.memory_space<vmem>>, %arg14: memref<18x96x1024xbf16, #tpu.memory_space<vmem>>, %arg15: memref<1x1024xf32, #tpu.memory_space<vmem>>, %arg16: memref<1024x64xbf16, #tpu.memory_space<vmem>>, %arg17: memref<1x64xf32, #tpu.memory_space<vmem>>, %arg18: memref<192x32xbf16, #tpu.memory_space<vmem>>, %arg19: memref<1x32xf32, #tpu.memory_space<vmem>>, %arg20: memref<32x24xbf16, #tpu.memory_space<vmem>>, %arg21: memref<1x24xf32, #tpu.memory_space<vmem>>, %arg22: memref<8x24xf32, #tpu.memory_space<vmem>>) attributes {dimension_semantics = [#tpu.dimension_semantics<arbitrary>], iteration_bounds = array<i64: 1>, scalar_prefetch = 0 : i64, scratch_operands = 0 : i64, tpu.core_type = #tpu.core_type<tc>, window_params = [{pipeline_mode = #tpu.pipeline_mode<synchronous>, transform_indices = @transform_0, window_bounds = array<i64: 3, 8, 64>}, {pipeline_mode = #tpu.pipeline_mode<synchronous>, transform_indices = @transform_1, window_bounds = array<i64: 8, 192>}, {pipeline_mode = #tpu.pipeline_mode<synchronous>, transform_indices = @transform_2, window_bounds = array<i64: 18, 8, 96>}, {pipeline_mode = #tpu.pipeline_mode<synchronous>, transform_indices = @transform_3, window_bounds = array<i64: 3, 64, 32>}, {pipeline_mode = #tpu.pipeline_mode<synchronous>, transform_indices = @transform_4, window_bounds = array<i64: 3, 1, 32>}, {pipeline_mode = #tpu.pipeline_mode<synchronous>, transform_indices = @transform_5, window_bounds = array<i64: 192, 64>}, {pipeline_mode = #tpu.pipeline_mode<synchronous>, transform_indices = @transform_6, window_bounds = array<i64: 1, 64>}, {pipeline_mode = #tpu.pipeline_mode<synchronous>, transform_indices = @transform_7, window_bounds = array<i64: 64, 17>}, {pipeline_mode = #tpu.pipeline_mode<synchronous>, transform_indices = @transform_8, window_bounds = array<i64: 1, 17>}, {pipeline_mode = #tpu.pipeline_mode<synchronous>, transform_indices = @transform_9, window_bounds = array<i64: 192, 512>}, {pipeline_mode = #tpu.pipeline_mode<synchronous>, transform_indices = @transform_10, window_bounds = array<i64: 1, 512>}, {pipeline_mode = #tpu.pipeline_mode<synchronous>, transform_indices = @transform_11, window_bounds = array<i64: 512, 32>}, {pipeline_mode = #tpu.pipeline_mode<synchronous>, transform_indices = @transform_12, window_bounds = array<i64: 1, 32>}, {pipeline_mode = #tpu.pipeline_mode<synchronous>, transform_indices = @transform_13, window_bounds = array<i64: 18, 96, 1024>}, {pipeline_mode = #tpu.pipeline_mode<synchronous>, transform_indices = @transform_14, window_bounds = array<i64: 1, 1024>}, {pipeline_mode = #tpu.pipeline_mode<synchronous>, transform_indices = @transform_15, window_bounds = array<i64: 1024, 64>}, {pipeline_mode = #tpu.pipeline_mode<synchronous>, transform_indices = @transform_16, window_bounds = array<i64: 1, 64>}, {pipeline_mode = #tpu.pipeline_mode<synchronous>, transform_indices = @transform_17, window_bounds = array<i64: 192, 32>}, {pipeline_mode = #tpu.pipeline_mode<synchronous>, transform_indices = @transform_18, window_bounds = array<i64: 1, 32>}, {pipeline_mode = #tpu.pipeline_mode<synchronous>, transform_indices = @transform_19, window_bounds = array<i64: 32, 24>}, {pipeline_mode = #tpu.pipeline_mode<synchronous>, transform_indices = @transform_20, window_bounds = array<i64: 1, 24>}, {pipeline_mode = #tpu.pipeline_mode<synchronous>, transform_indices = @transform_21, window_bounds = array<i64: 8, 24>}]} {
    %c0 = arith.constant 0 : index
    %c0_0 = arith.constant 0 : index
    %c0_1 = arith.constant 0 : index
    %0 = vector.load %arg1[%c0, %c0_0, %c0_1] : memref<3x8x64xbf16, #tpu.memory_space<vmem>>, vector<1x8x64xbf16>
    %1 = vector.shape_cast %0 : vector<1x8x64xbf16> to vector<8x64xbf16>
    %c0_2 = arith.constant 0 : index
    %c0_3 = arith.constant 0 : index
    %c0_4 = arith.constant 0 : index
    %2 = vector.load %arg4[%c0_2, %c0_3, %c0_4] : memref<3x64x32xbf16, #tpu.memory_space<vmem>>, vector<1x64x32xbf16>
    %3 = vector.shape_cast %2 : vector<1x64x32xbf16> to vector<64x32xbf16>
    %cst = arith.constant dense<0.000000e+00> : vector<8x32xf32>
    %4 = tpu.matmul %1, %3, %cst {dimension_numbers = #tpu.dot_dimension_numbers<[1], [0], [0], [1], [0, 0, 1, 1], [], []>} : vector<8x64xbf16>, vector<64x32xbf16>, vector<8x32xf32> -> vector<8x32xf32>
    %c0_5 = arith.constant 0 : index
    %c0_6 = arith.constant 0 : index
    %c0_7 = arith.constant 0 : index
    %5 = vector.load %arg5[%c0_5, %c0_6, %c0_7] : memref<3x1x32xf32, #tpu.memory_space<vmem>>, vector<1x1x32xf32>
    %6 = vector.shape_cast %5 : vector<1x1x32xf32> to vector<1x32xf32>
    %7 = vector.broadcast %6 : vector<1x32xf32> to vector<8x32xf32>
    %8 = arith.addf %4, %7 : vector<8x32xf32>
    %cst_8 = arith.constant 0.000000e+00 : f32
    %9 = vector.broadcast %cst_8 : f32 to vector<8x32xf32>
    %10 = arith.maximumf %8, %9 : vector<8x32xf32>
    %c1 = arith.constant 1 : index
    %c0_9 = arith.constant 0 : index
    %c0_10 = arith.constant 0 : index
    %11 = vector.load %arg1[%c1, %c0_9, %c0_10] : memref<3x8x64xbf16, #tpu.memory_space<vmem>>, vector<1x8x64xbf16>
    %12 = vector.shape_cast %11 : vector<1x8x64xbf16> to vector<8x64xbf16>
    %c1_11 = arith.constant 1 : index
    %c0_12 = arith.constant 0 : index
    %c0_13 = arith.constant 0 : index
    %13 = vector.load %arg4[%c1_11, %c0_12, %c0_13] : memref<3x64x32xbf16, #tpu.memory_space<vmem>>, vector<1x64x32xbf16>
    %14 = vector.shape_cast %13 : vector<1x64x32xbf16> to vector<64x32xbf16>
    %cst_14 = arith.constant dense<0.000000e+00> : vector<8x32xf32>
    %15 = tpu.matmul %12, %14, %cst_14 {dimension_numbers = #tpu.dot_dimension_numbers<[1], [0], [0], [1], [0, 0, 1, 1], [], []>} : vector<8x64xbf16>, vector<64x32xbf16>, vector<8x32xf32> -> vector<8x32xf32>
    %c1_15 = arith.constant 1 : index
    %c0_16 = arith.constant 0 : index
    %c0_17 = arith.constant 0 : index
    %16 = vector.load %arg5[%c1_15, %c0_16, %c0_17] : memref<3x1x32xf32, #tpu.memory_space<vmem>>, vector<1x1x32xf32>
    %17 = vector.shape_cast %16 : vector<1x1x32xf32> to vector<1x32xf32>
    %18 = vector.broadcast %17 : vector<1x32xf32> to vector<8x32xf32>
    %19 = arith.addf %15, %18 : vector<8x32xf32>
    %cst_18 = arith.constant 0.000000e+00 : f32
    %20 = vector.broadcast %cst_18 : f32 to vector<8x32xf32>
    %21 = arith.maximumf %19, %20 : vector<8x32xf32>
    %c2 = arith.constant 2 : index
    %c0_19 = arith.constant 0 : index
    %c0_20 = arith.constant 0 : index
    %22 = vector.load %arg1[%c2, %c0_19, %c0_20] : memref<3x8x64xbf16, #tpu.memory_space<vmem>>, vector<1x8x64xbf16>
    %23 = vector.shape_cast %22 : vector<1x8x64xbf16> to vector<8x64xbf16>
    %c2_21 = arith.constant 2 : index
    %c0_22 = arith.constant 0 : index
    %c0_23 = arith.constant 0 : index
    %24 = vector.load %arg4[%c2_21, %c0_22, %c0_23] : memref<3x64x32xbf16, #tpu.memory_space<vmem>>, vector<1x64x32xbf16>
    %25 = vector.shape_cast %24 : vector<1x64x32xbf16> to vector<64x32xbf16>
    %cst_24 = arith.constant dense<0.000000e+00> : vector<8x32xf32>
    %26 = tpu.matmul %23, %25, %cst_24 {dimension_numbers = #tpu.dot_dimension_numbers<[1], [0], [0], [1], [0, 0, 1, 1], [], []>} : vector<8x64xbf16>, vector<64x32xbf16>, vector<8x32xf32> -> vector<8x32xf32>
    %c2_25 = arith.constant 2 : index
    %c0_26 = arith.constant 0 : index
    %c0_27 = arith.constant 0 : index
    %27 = vector.load %arg5[%c2_25, %c0_26, %c0_27] : memref<3x1x32xf32, #tpu.memory_space<vmem>>, vector<1x1x32xf32>
    %28 = vector.shape_cast %27 : vector<1x1x32xf32> to vector<1x32xf32>
    %29 = vector.broadcast %28 : vector<1x32xf32> to vector<8x32xf32>
    %30 = arith.addf %26, %29 : vector<8x32xf32>
    %cst_28 = arith.constant 0.000000e+00 : f32
    %31 = vector.broadcast %cst_28 : f32 to vector<8x32xf32>
    %32 = arith.maximumf %30, %31 : vector<8x32xf32>
    %c0_29 = arith.constant 0 : index
    %c0_30 = arith.constant 0 : index
    %33 = vector.load %arg2[%c0_29, %c0_30] : memref<8x192xbf16, #tpu.memory_space<vmem>>, vector<8x192xbf16>
    %c0_31 = arith.constant 0 : index
    %c0_32 = arith.constant 0 : index
    %34 = vector.load %arg6[%c0_31, %c0_32] : memref<192x64xbf16, #tpu.memory_space<vmem>>, vector<192x64xbf16>
    %cst_33 = arith.constant dense<0.000000e+00> : vector<8x64xf32>
    %35 = tpu.matmul %33, %34, %cst_33 {dimension_numbers = #tpu.dot_dimension_numbers<[1], [0], [0], [1], [0, 0, 1, 1], [], []>} : vector<8x192xbf16>, vector<192x64xbf16>, vector<8x64xf32> -> vector<8x64xf32>
    %c0_34 = arith.constant 0 : index
    %c0_35 = arith.constant 0 : index
    %36 = vector.load %arg7[%c0_34, %c0_35] : memref<1x64xf32, #tpu.memory_space<vmem>>, vector<1x64xf32>
    %37 = vector.broadcast %36 : vector<1x64xf32> to vector<8x64xf32>
    %38 = arith.addf %35, %37 : vector<8x64xf32>
    %cst_36 = arith.constant 0.000000e+00 : f32
    %39 = vector.broadcast %cst_36 : f32 to vector<8x64xf32>
    %40 = arith.maximumf %38, %39 : vector<8x64xf32>
    %41 = arith.truncf %40 : vector<8x64xf32> to vector<8x64xbf16>
    %c0_37 = arith.constant 0 : index
    %c0_38 = arith.constant 0 : index
    %42 = vector.load %arg8[%c0_37, %c0_38] : memref<64x17xbf16, #tpu.memory_space<vmem>>, vector<64x17xbf16>
    %cst_39 = arith.constant dense<0.000000e+00> : vector<8x17xf32>
    %43 = tpu.matmul %41, %42, %cst_39 {dimension_numbers = #tpu.dot_dimension_numbers<[1], [0], [0], [1], [0, 0, 1, 1], [], []>} : vector<8x64xbf16>, vector<64x17xbf16>, vector<8x17xf32> -> vector<8x17xf32>
    %c0_40 = arith.constant 0 : index
    %c0_41 = arith.constant 0 : index
    %44 = vector.load %arg9[%c0_40, %c0_41] : memref<1x17xf32, #tpu.memory_space<vmem>>, vector<1x17xf32>
    %45 = vector.broadcast %44 : vector<1x17xf32> to vector<8x17xf32>
    %46 = arith.addf %43, %45 : vector<8x17xf32>
    %cst_42 = arith.constant 5.000000e-01 : f32
    %47 = vector.broadcast %cst_42 : f32 to vector<8x17xf32>
    %48 = arith.mulf %47, %46 : vector<8x17xf32>
    %49 = math.tanh %48 : vector<8x17xf32>
    %cst_43 = arith.constant 1.000000e+00 : f32
    %50 = vector.broadcast %cst_43 : f32 to vector<8x17xf32>
    %51 = arith.addf %49, %50 : vector<8x17xf32>
    %cst_44 = arith.constant 5.000000e-01 : f32
    %52 = vector.broadcast %cst_44 : f32 to vector<8x17xf32>
    %53 = arith.mulf %52, %51 : vector<8x17xf32>
    %c0_45 = arith.constant 0 : index
    %c0_46 = arith.constant 0 : index
    %54 = vector.load %arg10[%c0_45, %c0_46] : memref<192x512xbf16, #tpu.memory_space<vmem>>, vector<192x512xbf16>
    %cst_47 = arith.constant dense<0.000000e+00> : vector<8x512xf32>
    %55 = tpu.matmul %33, %54, %cst_47 {dimension_numbers = #tpu.dot_dimension_numbers<[1], [0], [0], [1], [0, 0, 1, 1], [], []>} : vector<8x192xbf16>, vector<192x512xbf16>, vector<8x512xf32> -> vector<8x512xf32>
    %c0_48 = arith.constant 0 : index
    %c0_49 = arith.constant 0 : index
    %56 = vector.load %arg11[%c0_48, %c0_49] : memref<1x512xf32, #tpu.memory_space<vmem>>, vector<1x512xf32>
    %57 = vector.broadcast %56 : vector<1x512xf32> to vector<8x512xf32>
    %58 = arith.addf %55, %57 : vector<8x512xf32>
    %cst_50 = arith.constant 0.000000e+00 : f32
    %59 = vector.broadcast %cst_50 : f32 to vector<8x512xf32>
    %60 = arith.maximumf %58, %59 : vector<8x512xf32>
    %61 = arith.truncf %60 : vector<8x512xf32> to vector<8x512xbf16>
    %c0_51 = arith.constant 0 : index
    %c0_52 = arith.constant 0 : index
    %62 = vector.load %arg12[%c0_51, %c0_52] : memref<512x32xbf16, #tpu.memory_space<vmem>>, vector<512x32xbf16>
    %cst_53 = arith.constant dense<0.000000e+00> : vector<8x32xf32>
    %63 = tpu.matmul %61, %62, %cst_53 {dimension_numbers = #tpu.dot_dimension_numbers<[1], [0], [0], [1], [0, 0, 1, 1], [], []>} : vector<8x512xbf16>, vector<512x32xbf16>, vector<8x32xf32> -> vector<8x32xf32>
    %c0_54 = arith.constant 0 : index
    %c0_55 = arith.constant 0 : index
    %64 = vector.load %arg13[%c0_54, %c0_55] : memref<1x32xf32, #tpu.memory_space<vmem>>, vector<1x32xf32>
    %65 = vector.broadcast %64 : vector<1x32xf32> to vector<8x32xf32>
    %66 = arith.addf %63, %65 : vector<8x32xf32>
    %cst_56 = arith.constant 0.000000e+00 : f32
    %67 = vector.broadcast %cst_56 : f32 to vector<8x32xf32>
    %68 = arith.maximumf %66, %67 : vector<8x32xf32>
    %69 = arith.truncf %53 : vector<8x17xf32> to vector<8x17xbf16>
    %c0_57 = arith.constant 0 : index
    %c0_58 = arith.constant 0 : index
    %70 = vector.load %arg15[%c0_57, %c0_58] : memref<1x1024xf32, #tpu.memory_space<vmem>>, vector<1x1024xf32>
    %71 = vector.shape_cast %70 : vector<1x1024xf32> to vector<1x1024xf32>
    %72 = vector.broadcast %71 : vector<1x1024xf32> to vector<8x1024xf32>
    %c0_59 = arith.constant 0 : index
    %c0_60 = arith.constant 0 : index
    %c0_61 = arith.constant 0 : index
    %73 = vector.load %arg3[%c0_59, %c0_60, %c0_61] : memref<18x8x96xbf16, #tpu.memory_space<vmem>>, vector<1x8x96xbf16>
    %74 = vector.shape_cast %73 : vector<1x8x96xbf16> to vector<8x96xbf16>
    %75 = vector.extract_strided_slice %69 {offsets = [0, 0], sizes = [8, 1], strides = [1, 1]} : vector<8x17xbf16> to vector<8x1xbf16>
    %76 = vector.broadcast %75 : vector<8x1xbf16> to vector<8x96xbf16>
    %77 = arith.mulf %74, %76 : vector<8x96xbf16>
    %c0_62 = arith.constant 0 : index
    %c0_63 = arith.constant 0 : index
    %c0_64 = arith.constant 0 : index
    %78 = vector.load %arg14[%c0_62, %c0_63, %c0_64] : memref<18x96x1024xbf16, #tpu.memory_space<vmem>>, vector<1x96x1024xbf16>
    %79 = vector.shape_cast %78 : vector<1x96x1024xbf16> to vector<96x1024xbf16>
    %cst_65 = arith.constant dense<0.000000e+00> : vector<8x1024xf32>
    %80 = tpu.matmul %77, %79, %cst_65 {dimension_numbers = #tpu.dot_dimension_numbers<[1], [0], [0], [1], [0, 0, 1, 1], [], []>} : vector<8x96xbf16>, vector<96x1024xbf16>, vector<8x1024xf32> -> vector<8x1024xf32>
    %81 = arith.addf %72, %80 : vector<8x1024xf32>
    %c1_66 = arith.constant 1 : index
    %c0_67 = arith.constant 0 : index
    %c0_68 = arith.constant 0 : index
    %82 = vector.load %arg3[%c1_66, %c0_67, %c0_68] : memref<18x8x96xbf16, #tpu.memory_space<vmem>>, vector<1x8x96xbf16>
    %83 = vector.shape_cast %82 : vector<1x8x96xbf16> to vector<8x96xbf16>
    %84 = vector.extract_strided_slice %69 {offsets = [0, 1], sizes = [8, 1], strides = [1, 1]} : vector<8x17xbf16> to vector<8x1xbf16>
    %85 = vector.broadcast %84 : vector<8x1xbf16> to vector<8x96xbf16>
    %86 = arith.mulf %83, %85 : vector<8x96xbf16>
    %c1_69 = arith.constant 1 : index
    %c0_70 = arith.constant 0 : index
    %c0_71 = arith.constant 0 : index
    %87 = vector.load %arg14[%c1_69, %c0_70, %c0_71] : memref<18x96x1024xbf16, #tpu.memory_space<vmem>>, vector<1x96x1024xbf16>
    %88 = vector.shape_cast %87 : vector<1x96x1024xbf16> to vector<96x1024xbf16>
    %cst_72 = arith.constant dense<0.000000e+00> : vector<8x1024xf32>
    %89 = tpu.matmul %86, %88, %cst_72 {dimension_numbers = #tpu.dot_dimension_numbers<[1], [0], [0], [1], [0, 0, 1, 1], [], []>} : vector<8x96xbf16>, vector<96x1024xbf16>, vector<8x1024xf32> -> vector<8x1024xf32>
    %90 = arith.addf %81, %89 : vector<8x1024xf32>
    %c2_73 = arith.constant 2 : index
    %c0_74 = arith.constant 0 : index
    %c0_75 = arith.constant 0 : index
    %91 = vector.load %arg3[%c2_73, %c0_74, %c0_75] : memref<18x8x96xbf16, #tpu.memory_space<vmem>>, vector<1x8x96xbf16>
    %92 = vector.shape_cast %91 : vector<1x8x96xbf16> to vector<8x96xbf16>
    %93 = vector.extract_strided_slice %69 {offsets = [0, 2], sizes = [8, 1], strides = [1, 1]} : vector<8x17xbf16> to vector<8x1xbf16>
    %94 = vector.broadcast %93 : vector<8x1xbf16> to vector<8x96xbf16>
    %95 = arith.mulf %92, %94 : vector<8x96xbf16>
    %c2_76 = arith.constant 2 : index
    %c0_77 = arith.constant 0 : index
    %c0_78 = arith.constant 0 : index
    %96 = vector.load %arg14[%c2_76, %c0_77, %c0_78] : memref<18x96x1024xbf16, #tpu.memory_space<vmem>>, vector<1x96x1024xbf16>
    %97 = vector.shape_cast %96 : vector<1x96x1024xbf16> to vector<96x1024xbf16>
    %cst_79 = arith.constant dense<0.000000e+00> : vector<8x1024xf32>
    %98 = tpu.matmul %95, %97, %cst_79 {dimension_numbers = #tpu.dot_dimension_numbers<[1], [0], [0], [1], [0, 0, 1, 1], [], []>} : vector<8x96xbf16>, vector<96x1024xbf16>, vector<8x1024xf32> -> vector<8x1024xf32>
    %99 = arith.addf %90, %98 : vector<8x1024xf32>
    %c3 = arith.constant 3 : index
    %c0_80 = arith.constant 0 : index
    %c0_81 = arith.constant 0 : index
    %100 = vector.load %arg3[%c3, %c0_80, %c0_81] : memref<18x8x96xbf16, #tpu.memory_space<vmem>>, vector<1x8x96xbf16>
    %101 = vector.shape_cast %100 : vector<1x8x96xbf16> to vector<8x96xbf16>
    %102 = vector.extract_strided_slice %69 {offsets = [0, 3], sizes = [8, 1], strides = [1, 1]} : vector<8x17xbf16> to vector<8x1xbf16>
    %103 = vector.broadcast %102 : vector<8x1xbf16> to vector<8x96xbf16>
    %104 = arith.mulf %101, %103 : vector<8x96xbf16>
    %c3_82 = arith.constant 3 : index
    %c0_83 = arith.constant 0 : index
    %c0_84 = arith.constant 0 : index
    %105 = vector.load %arg14[%c3_82, %c0_83, %c0_84] : memref<18x96x1024xbf16, #tpu.memory_space<vmem>>, vector<1x96x1024xbf16>
    %106 = vector.shape_cast %105 : vector<1x96x1024xbf16> to vector<96x1024xbf16>
    %cst_85 = arith.constant dense<0.000000e+00> : vector<8x1024xf32>
    %107 = tpu.matmul %104, %106, %cst_85 {dimension_numbers = #tpu.dot_dimension_numbers<[1], [0], [0], [1], [0, 0, 1, 1], [], []>} : vector<8x96xbf16>, vector<96x1024xbf16>, vector<8x1024xf32> -> vector<8x1024xf32>
    %108 = arith.addf %99, %107 : vector<8x1024xf32>
    %c4 = arith.constant 4 : index
    %c0_86 = arith.constant 0 : index
    %c0_87 = arith.constant 0 : index
    %109 = vector.load %arg3[%c4, %c0_86, %c0_87] : memref<18x8x96xbf16, #tpu.memory_space<vmem>>, vector<1x8x96xbf16>
    %110 = vector.shape_cast %109 : vector<1x8x96xbf16> to vector<8x96xbf16>
    %111 = vector.extract_strided_slice %69 {offsets = [0, 4], sizes = [8, 1], strides = [1, 1]} : vector<8x17xbf16> to vector<8x1xbf16>
    %112 = vector.broadcast %111 : vector<8x1xbf16> to vector<8x96xbf16>
    %113 = arith.mulf %110, %112 : vector<8x96xbf16>
    %c4_88 = arith.constant 4 : index
    %c0_89 = arith.constant 0 : index
    %c0_90 = arith.constant 0 : index
    %114 = vector.load %arg14[%c4_88, %c0_89, %c0_90] : memref<18x96x1024xbf16, #tpu.memory_space<vmem>>, vector<1x96x1024xbf16>
    %115 = vector.shape_cast %114 : vector<1x96x1024xbf16> to vector<96x1024xbf16>
    %cst_91 = arith.constant dense<0.000000e+00> : vector<8x1024xf32>
    %116 = tpu.matmul %113, %115, %cst_91 {dimension_numbers = #tpu.dot_dimension_numbers<[1], [0], [0], [1], [0, 0, 1, 1], [], []>} : vector<8x96xbf16>, vector<96x1024xbf16>, vector<8x1024xf32> -> vector<8x1024xf32>
    %117 = arith.addf %108, %116 : vector<8x1024xf32>
    %c5 = arith.constant 5 : index
    %c0_92 = arith.constant 0 : index
    %c0_93 = arith.constant 0 : index
    %118 = vector.load %arg3[%c5, %c0_92, %c0_93] : memref<18x8x96xbf16, #tpu.memory_space<vmem>>, vector<1x8x96xbf16>
    %119 = vector.shape_cast %118 : vector<1x8x96xbf16> to vector<8x96xbf16>
    %120 = vector.extract_strided_slice %69 {offsets = [0, 5], sizes = [8, 1], strides = [1, 1]} : vector<8x17xbf16> to vector<8x1xbf16>
    %121 = vector.broadcast %120 : vector<8x1xbf16> to vector<8x96xbf16>
    %122 = arith.mulf %119, %121 : vector<8x96xbf16>
    %c5_94 = arith.constant 5 : index
    %c0_95 = arith.constant 0 : index
    %c0_96 = arith.constant 0 : index
    %123 = vector.load %arg14[%c5_94, %c0_95, %c0_96] : memref<18x96x1024xbf16, #tpu.memory_space<vmem>>, vector<1x96x1024xbf16>
    %124 = vector.shape_cast %123 : vector<1x96x1024xbf16> to vector<96x1024xbf16>
    %cst_97 = arith.constant dense<0.000000e+00> : vector<8x1024xf32>
    %125 = tpu.matmul %122, %124, %cst_97 {dimension_numbers = #tpu.dot_dimension_numbers<[1], [0], [0], [1], [0, 0, 1, 1], [], []>} : vector<8x96xbf16>, vector<96x1024xbf16>, vector<8x1024xf32> -> vector<8x1024xf32>
    %126 = arith.addf %117, %125 : vector<8x1024xf32>
    %c6 = arith.constant 6 : index
    %c0_98 = arith.constant 0 : index
    %c0_99 = arith.constant 0 : index
    %127 = vector.load %arg3[%c6, %c0_98, %c0_99] : memref<18x8x96xbf16, #tpu.memory_space<vmem>>, vector<1x8x96xbf16>
    %128 = vector.shape_cast %127 : vector<1x8x96xbf16> to vector<8x96xbf16>
    %129 = vector.extract_strided_slice %69 {offsets = [0, 6], sizes = [8, 1], strides = [1, 1]} : vector<8x17xbf16> to vector<8x1xbf16>
    %130 = vector.broadcast %129 : vector<8x1xbf16> to vector<8x96xbf16>
    %131 = arith.mulf %128, %130 : vector<8x96xbf16>
    %c6_100 = arith.constant 6 : index
    %c0_101 = arith.constant 0 : index
    %c0_102 = arith.constant 0 : index
    %132 = vector.load %arg14[%c6_100, %c0_101, %c0_102] : memref<18x96x1024xbf16, #tpu.memory_space<vmem>>, vector<1x96x1024xbf16>
    %133 = vector.shape_cast %132 : vector<1x96x1024xbf16> to vector<96x1024xbf16>
    %cst_103 = arith.constant dense<0.000000e+00> : vector<8x1024xf32>
    %134 = tpu.matmul %131, %133, %cst_103 {dimension_numbers = #tpu.dot_dimension_numbers<[1], [0], [0], [1], [0, 0, 1, 1], [], []>} : vector<8x96xbf16>, vector<96x1024xbf16>, vector<8x1024xf32> -> vector<8x1024xf32>
    %135 = arith.addf %126, %134 : vector<8x1024xf32>
    %c7 = arith.constant 7 : index
    %c0_104 = arith.constant 0 : index
    %c0_105 = arith.constant 0 : index
    %136 = vector.load %arg3[%c7, %c0_104, %c0_105] : memref<18x8x96xbf16, #tpu.memory_space<vmem>>, vector<1x8x96xbf16>
    %137 = vector.shape_cast %136 : vector<1x8x96xbf16> to vector<8x96xbf16>
    %138 = vector.extract_strided_slice %69 {offsets = [0, 7], sizes = [8, 1], strides = [1, 1]} : vector<8x17xbf16> to vector<8x1xbf16>
    %139 = vector.broadcast %138 : vector<8x1xbf16> to vector<8x96xbf16>
    %140 = arith.mulf %137, %139 : vector<8x96xbf16>
    %c7_106 = arith.constant 7 : index
    %c0_107 = arith.constant 0 : index
    %c0_108 = arith.constant 0 : index
    %141 = vector.load %arg14[%c7_106, %c0_107, %c0_108] : memref<18x96x1024xbf16, #tpu.memory_space<vmem>>, vector<1x96x1024xbf16>
    %142 = vector.shape_cast %141 : vector<1x96x1024xbf16> to vector<96x1024xbf16>
    %cst_109 = arith.constant dense<0.000000e+00> : vector<8x1024xf32>
    %143 = tpu.matmul %140, %142, %cst_109 {dimension_numbers = #tpu.dot_dimension_numbers<[1], [0], [0], [1], [0, 0, 1, 1], [], []>} : vector<8x96xbf16>, vector<96x1024xbf16>, vector<8x1024xf32> -> vector<8x1024xf32>
    %144 = arith.addf %135, %143 : vector<8x1024xf32>
    %c8 = arith.constant 8 : index
    %c0_110 = arith.constant 0 : index
    %c0_111 = arith.constant 0 : index
    %145 = vector.load %arg3[%c8, %c0_110, %c0_111] : memref<18x8x96xbf16, #tpu.memory_space<vmem>>, vector<1x8x96xbf16>
    %146 = vector.shape_cast %145 : vector<1x8x96xbf16> to vector<8x96xbf16>
    %147 = vector.extract_strided_slice %69 {offsets = [0, 8], sizes = [8, 1], strides = [1, 1]} : vector<8x17xbf16> to vector<8x1xbf16>
    %148 = vector.broadcast %147 : vector<8x1xbf16> to vector<8x96xbf16>
    %149 = arith.mulf %146, %148 : vector<8x96xbf16>
    %c8_112 = arith.constant 8 : index
    %c0_113 = arith.constant 0 : index
    %c0_114 = arith.constant 0 : index
    %150 = vector.load %arg14[%c8_112, %c0_113, %c0_114] : memref<18x96x1024xbf16, #tpu.memory_space<vmem>>, vector<1x96x1024xbf16>
    %151 = vector.shape_cast %150 : vector<1x96x1024xbf16> to vector<96x1024xbf16>
    %cst_115 = arith.constant dense<0.000000e+00> : vector<8x1024xf32>
    %152 = tpu.matmul %149, %151, %cst_115 {dimension_numbers = #tpu.dot_dimension_numbers<[1], [0], [0], [1], [0, 0, 1, 1], [], []>} : vector<8x96xbf16>, vector<96x1024xbf16>, vector<8x1024xf32> -> vector<8x1024xf32>
    %153 = arith.addf %144, %152 : vector<8x1024xf32>
    %c9 = arith.constant 9 : index
    %c0_116 = arith.constant 0 : index
    %c0_117 = arith.constant 0 : index
    %154 = vector.load %arg3[%c9, %c0_116, %c0_117] : memref<18x8x96xbf16, #tpu.memory_space<vmem>>, vector<1x8x96xbf16>
    %155 = vector.shape_cast %154 : vector<1x8x96xbf16> to vector<8x96xbf16>
    %156 = vector.extract_strided_slice %69 {offsets = [0, 9], sizes = [8, 1], strides = [1, 1]} : vector<8x17xbf16> to vector<8x1xbf16>
    %157 = vector.broadcast %156 : vector<8x1xbf16> to vector<8x96xbf16>
    %158 = arith.mulf %155, %157 : vector<8x96xbf16>
    %c9_118 = arith.constant 9 : index
    %c0_119 = arith.constant 0 : index
    %c0_120 = arith.constant 0 : index
    %159 = vector.load %arg14[%c9_118, %c0_119, %c0_120] : memref<18x96x1024xbf16, #tpu.memory_space<vmem>>, vector<1x96x1024xbf16>
    %160 = vector.shape_cast %159 : vector<1x96x1024xbf16> to vector<96x1024xbf16>
    %cst_121 = arith.constant dense<0.000000e+00> : vector<8x1024xf32>
    %161 = tpu.matmul %158, %160, %cst_121 {dimension_numbers = #tpu.dot_dimension_numbers<[1], [0], [0], [1], [0, 0, 1, 1], [], []>} : vector<8x96xbf16>, vector<96x1024xbf16>, vector<8x1024xf32> -> vector<8x1024xf32>
    %162 = arith.addf %153, %161 : vector<8x1024xf32>
    %c10 = arith.constant 10 : index
    %c0_122 = arith.constant 0 : index
    %c0_123 = arith.constant 0 : index
    %163 = vector.load %arg3[%c10, %c0_122, %c0_123] : memref<18x8x96xbf16, #tpu.memory_space<vmem>>, vector<1x8x96xbf16>
    %164 = vector.shape_cast %163 : vector<1x8x96xbf16> to vector<8x96xbf16>
    %165 = vector.extract_strided_slice %69 {offsets = [0, 10], sizes = [8, 1], strides = [1, 1]} : vector<8x17xbf16> to vector<8x1xbf16>
    %166 = vector.broadcast %165 : vector<8x1xbf16> to vector<8x96xbf16>
    %167 = arith.mulf %164, %166 : vector<8x96xbf16>
    %c10_124 = arith.constant 10 : index
    %c0_125 = arith.constant 0 : index
    %c0_126 = arith.constant 0 : index
    %168 = vector.load %arg14[%c10_124, %c0_125, %c0_126] : memref<18x96x1024xbf16, #tpu.memory_space<vmem>>, vector<1x96x1024xbf16>
    %169 = vector.shape_cast %168 : vector<1x96x1024xbf16> to vector<96x1024xbf16>
    %cst_127 = arith.constant dense<0.000000e+00> : vector<8x1024xf32>
    %170 = tpu.matmul %167, %169, %cst_127 {dimension_numbers = #tpu.dot_dimension_numbers<[1], [0], [0], [1], [0, 0, 1, 1], [], []>} : vector<8x96xbf16>, vector<96x1024xbf16>, vector<8x1024xf32> -> vector<8x1024xf32>
    %171 = arith.addf %162, %170 : vector<8x1024xf32>
    %c11 = arith.constant 11 : index
    %c0_128 = arith.constant 0 : index
    %c0_129 = arith.constant 0 : index
    %172 = vector.load %arg3[%c11, %c0_128, %c0_129] : memref<18x8x96xbf16, #tpu.memory_space<vmem>>, vector<1x8x96xbf16>
    %173 = vector.shape_cast %172 : vector<1x8x96xbf16> to vector<8x96xbf16>
    %174 = vector.extract_strided_slice %69 {offsets = [0, 11], sizes = [8, 1], strides = [1, 1]} : vector<8x17xbf16> to vector<8x1xbf16>
    %175 = vector.broadcast %174 : vector<8x1xbf16> to vector<8x96xbf16>
    %176 = arith.mulf %173, %175 : vector<8x96xbf16>
    %c11_130 = arith.constant 11 : index
    %c0_131 = arith.constant 0 : index
    %c0_132 = arith.constant 0 : index
    %177 = vector.load %arg14[%c11_130, %c0_131, %c0_132] : memref<18x96x1024xbf16, #tpu.memory_space<vmem>>, vector<1x96x1024xbf16>
    %178 = vector.shape_cast %177 : vector<1x96x1024xbf16> to vector<96x1024xbf16>
    %cst_133 = arith.constant dense<0.000000e+00> : vector<8x1024xf32>
    %179 = tpu.matmul %176, %178, %cst_133 {dimension_numbers = #tpu.dot_dimension_numbers<[1], [0], [0], [1], [0, 0, 1, 1], [], []>} : vector<8x96xbf16>, vector<96x1024xbf16>, vector<8x1024xf32> -> vector<8x1024xf32>
    %180 = arith.addf %171, %179 : vector<8x1024xf32>
    %c12 = arith.constant 12 : index
    %c0_134 = arith.constant 0 : index
    %c0_135 = arith.constant 0 : index
    %181 = vector.load %arg3[%c12, %c0_134, %c0_135] : memref<18x8x96xbf16, #tpu.memory_space<vmem>>, vector<1x8x96xbf16>
    %182 = vector.shape_cast %181 : vector<1x8x96xbf16> to vector<8x96xbf16>
    %183 = vector.extract_strided_slice %69 {offsets = [0, 12], sizes = [8, 1], strides = [1, 1]} : vector<8x17xbf16> to vector<8x1xbf16>
    %184 = vector.broadcast %183 : vector<8x1xbf16> to vector<8x96xbf16>
    %185 = arith.mulf %182, %184 : vector<8x96xbf16>
    %c12_136 = arith.constant 12 : index
    %c0_137 = arith.constant 0 : index
    %c0_138 = arith.constant 0 : index
    %186 = vector.load %arg14[%c12_136, %c0_137, %c0_138] : memref<18x96x1024xbf16, #tpu.memory_space<vmem>>, vector<1x96x1024xbf16>
    %187 = vector.shape_cast %186 : vector<1x96x1024xbf16> to vector<96x1024xbf16>
    %cst_139 = arith.constant dense<0.000000e+00> : vector<8x1024xf32>
    %188 = tpu.matmul %185, %187, %cst_139 {dimension_numbers = #tpu.dot_dimension_numbers<[1], [0], [0], [1], [0, 0, 1, 1], [], []>} : vector<8x96xbf16>, vector<96x1024xbf16>, vector<8x1024xf32> -> vector<8x1024xf32>
    %189 = arith.addf %180, %188 : vector<8x1024xf32>
    %c13 = arith.constant 13 : index
    %c0_140 = arith.constant 0 : index
    %c0_141 = arith.constant 0 : index
    %190 = vector.load %arg3[%c13, %c0_140, %c0_141] : memref<18x8x96xbf16, #tpu.memory_space<vmem>>, vector<1x8x96xbf16>
    %191 = vector.shape_cast %190 : vector<1x8x96xbf16> to vector<8x96xbf16>
    %192 = vector.extract_strided_slice %69 {offsets = [0, 13], sizes = [8, 1], strides = [1, 1]} : vector<8x17xbf16> to vector<8x1xbf16>
    %193 = vector.broadcast %192 : vector<8x1xbf16> to vector<8x96xbf16>
    %194 = arith.mulf %191, %193 : vector<8x96xbf16>
    %c13_142 = arith.constant 13 : index
    %c0_143 = arith.constant 0 : index
    %c0_144 = arith.constant 0 : index
    %195 = vector.load %arg14[%c13_142, %c0_143, %c0_144] : memref<18x96x1024xbf16, #tpu.memory_space<vmem>>, vector<1x96x1024xbf16>
    %196 = vector.shape_cast %195 : vector<1x96x1024xbf16> to vector<96x1024xbf16>
    %cst_145 = arith.constant dense<0.000000e+00> : vector<8x1024xf32>
    %197 = tpu.matmul %194, %196, %cst_145 {dimension_numbers = #tpu.dot_dimension_numbers<[1], [0], [0], [1], [0, 0, 1, 1], [], []>} : vector<8x96xbf16>, vector<96x1024xbf16>, vector<8x1024xf32> -> vector<8x1024xf32>
    %198 = arith.addf %189, %197 : vector<8x1024xf32>
    %c14 = arith.constant 14 : index
    %c0_146 = arith.constant 0 : index
    %c0_147 = arith.constant 0 : index
    %199 = vector.load %arg3[%c14, %c0_146, %c0_147] : memref<18x8x96xbf16, #tpu.memory_space<vmem>>, vector<1x8x96xbf16>
    %200 = vector.shape_cast %199 : vector<1x8x96xbf16> to vector<8x96xbf16>
    %201 = vector.extract_strided_slice %69 {offsets = [0, 14], sizes = [8, 1], strides = [1, 1]} : vector<8x17xbf16> to vector<8x1xbf16>
    %202 = vector.broadcast %201 : vector<8x1xbf16> to vector<8x96xbf16>
    %203 = arith.mulf %200, %202 : vector<8x96xbf16>
    %c14_148 = arith.constant 14 : index
    %c0_149 = arith.constant 0 : index
    %c0_150 = arith.constant 0 : index
    %204 = vector.load %arg14[%c14_148, %c0_149, %c0_150] : memref<18x96x1024xbf16, #tpu.memory_space<vmem>>, vector<1x96x1024xbf16>
    %205 = vector.shape_cast %204 : vector<1x96x1024xbf16> to vector<96x1024xbf16>
    %cst_151 = arith.constant dense<0.000000e+00> : vector<8x1024xf32>
    %206 = tpu.matmul %203, %205, %cst_151 {dimension_numbers = #tpu.dot_dimension_numbers<[1], [0], [0], [1], [0, 0, 1, 1], [], []>} : vector<8x96xbf16>, vector<96x1024xbf16>, vector<8x1024xf32> -> vector<8x1024xf32>
    %207 = arith.addf %198, %206 : vector<8x1024xf32>
    %c15 = arith.constant 15 : index
    %c0_152 = arith.constant 0 : index
    %c0_153 = arith.constant 0 : index
    %208 = vector.load %arg3[%c15, %c0_152, %c0_153] : memref<18x8x96xbf16, #tpu.memory_space<vmem>>, vector<1x8x96xbf16>
    %209 = vector.shape_cast %208 : vector<1x8x96xbf16> to vector<8x96xbf16>
    %210 = vector.extract_strided_slice %69 {offsets = [0, 15], sizes = [8, 1], strides = [1, 1]} : vector<8x17xbf16> to vector<8x1xbf16>
    %211 = vector.broadcast %210 : vector<8x1xbf16> to vector<8x96xbf16>
    %212 = arith.mulf %209, %211 : vector<8x96xbf16>
    %c15_154 = arith.constant 15 : index
    %c0_155 = arith.constant 0 : index
    %c0_156 = arith.constant 0 : index
    %213 = vector.load %arg14[%c15_154, %c0_155, %c0_156] : memref<18x96x1024xbf16, #tpu.memory_space<vmem>>, vector<1x96x1024xbf16>
    %214 = vector.shape_cast %213 : vector<1x96x1024xbf16> to vector<96x1024xbf16>
    %cst_157 = arith.constant dense<0.000000e+00> : vector<8x1024xf32>
    %215 = tpu.matmul %212, %214, %cst_157 {dimension_numbers = #tpu.dot_dimension_numbers<[1], [0], [0], [1], [0, 0, 1, 1], [], []>} : vector<8x96xbf16>, vector<96x1024xbf16>, vector<8x1024xf32> -> vector<8x1024xf32>
    %216 = arith.addf %207, %215 : vector<8x1024xf32>
    %c16 = arith.constant 16 : index
    %c0_158 = arith.constant 0 : index
    %c0_159 = arith.constant 0 : index
    %217 = vector.load %arg3[%c16, %c0_158, %c0_159] : memref<18x8x96xbf16, #tpu.memory_space<vmem>>, vector<1x8x96xbf16>
    %218 = vector.shape_cast %217 : vector<1x8x96xbf16> to vector<8x96xbf16>
    %219 = vector.extract_strided_slice %69 {offsets = [0, 16], sizes = [8, 1], strides = [1, 1]} : vector<8x17xbf16> to vector<8x1xbf16>
    %220 = vector.broadcast %219 : vector<8x1xbf16> to vector<8x96xbf16>
    %221 = arith.mulf %218, %220 : vector<8x96xbf16>
    %c16_160 = arith.constant 16 : index
    %c0_161 = arith.constant 0 : index
    %c0_162 = arith.constant 0 : index
    %222 = vector.load %arg14[%c16_160, %c0_161, %c0_162] : memref<18x96x1024xbf16, #tpu.memory_space<vmem>>, vector<1x96x1024xbf16>
    %223 = vector.shape_cast %222 : vector<1x96x1024xbf16> to vector<96x1024xbf16>
    %cst_163 = arith.constant dense<0.000000e+00> : vector<8x1024xf32>
    %224 = tpu.matmul %221, %223, %cst_163 {dimension_numbers = #tpu.dot_dimension_numbers<[1], [0], [0], [1], [0, 0, 1, 1], [], []>} : vector<8x96xbf16>, vector<96x1024xbf16>, vector<8x1024xf32> -> vector<8x1024xf32>
    %225 = arith.addf %216, %224 : vector<8x1024xf32>
    %c17 = arith.constant 17 : index
    %c0_164 = arith.constant 0 : index
    %c0_165 = arith.constant 0 : index
    %226 = vector.load %arg3[%c17, %c0_164, %c0_165] : memref<18x8x96xbf16, #tpu.memory_space<vmem>>, vector<1x8x96xbf16>
    %227 = vector.shape_cast %226 : vector<1x8x96xbf16> to vector<8x96xbf16>
    %c17_166 = arith.constant 17 : index
    %c0_167 = arith.constant 0 : index
    %c0_168 = arith.constant 0 : index
    %228 = vector.load %arg14[%c17_166, %c0_167, %c0_168] : memref<18x96x1024xbf16, #tpu.memory_space<vmem>>, vector<1x96x1024xbf16>
    %229 = vector.shape_cast %228 : vector<1x96x1024xbf16> to vector<96x1024xbf16>
    %cst_169 = arith.constant dense<0.000000e+00> : vector<8x1024xf32>
    %230 = tpu.matmul %227, %229, %cst_169 {dimension_numbers = #tpu.dot_dimension_numbers<[1], [0], [0], [1], [0, 0, 1, 1], [], []>} : vector<8x96xbf16>, vector<96x1024xbf16>, vector<8x1024xf32> -> vector<8x1024xf32>
    %231 = arith.addf %225, %230 : vector<8x1024xf32>
    %cst_170 = arith.constant 0.000000e+00 : f32
    %232 = vector.broadcast %cst_170 : f32 to vector<8x1024xf32>
    %233 = arith.maximumf %231, %232 : vector<8x1024xf32>
    %234 = arith.truncf %233 : vector<8x1024xf32> to vector<8x1024xbf16>
    %c0_171 = arith.constant 0 : index
    %c0_172 = arith.constant 0 : index
    %235 = vector.load %arg16[%c0_171, %c0_172] : memref<1024x64xbf16, #tpu.memory_space<vmem>>, vector<1024x64xbf16>
    %cst_173 = arith.constant dense<0.000000e+00> : vector<8x64xf32>
    %236 = tpu.matmul %234, %235, %cst_173 {dimension_numbers = #tpu.dot_dimension_numbers<[1], [0], [0], [1], [0, 0, 1, 1], [], []>} : vector<8x1024xbf16>, vector<1024x64xbf16>, vector<8x64xf32> -> vector<8x64xf32>
    %c0_174 = arith.constant 0 : index
    %c0_175 = arith.constant 0 : index
    %237 = vector.load %arg17[%c0_174, %c0_175] : memref<1x64xf32, #tpu.memory_space<vmem>>, vector<1x64xf32>
    %238 = vector.broadcast %237 : vector<1x64xf32> to vector<8x64xf32>
    %239 = arith.addf %236, %238 : vector<8x64xf32>
    %cst_176 = arith.constant 0.000000e+00 : f32
    %240 = vector.broadcast %cst_176 : f32 to vector<8x64xf32>
    %241 = arith.maximumf %239, %240 : vector<8x64xf32>
    %c0_177 = arith.constant 0 : index
    %c0_178 = arith.constant 0 : index
    %242 = vector.load %arg18[%c0_177, %c0_178] : memref<192x32xbf16, #tpu.memory_space<vmem>>, vector<192x32xbf16>
    %243 = arith.truncf %10 : vector<8x32xf32> to vector<8x32xbf16>
    %244 = vector.extract_strided_slice %242 {offsets = [0, 0], sizes = [32, 32], strides = [1, 1]} : vector<192x32xbf16> to vector<32x32xbf16>
    %cst_179 = arith.constant dense<0.000000e+00> : vector<8x32xf32>
    %245 = tpu.matmul %243, %244, %cst_179 {dimension_numbers = #tpu.dot_dimension_numbers<[1], [0], [0], [1], [0, 0, 1, 1], [], []>} : vector<8x32xbf16>, vector<32x32xbf16>, vector<8x32xf32> -> vector<8x32xf32>
    %246 = arith.truncf %21 : vector<8x32xf32> to vector<8x32xbf16>
    %247 = vector.extract_strided_slice %242 {offsets = [32, 0], sizes = [32, 32], strides = [1, 1]} : vector<192x32xbf16> to vector<32x32xbf16>
    %cst_180 = arith.constant dense<0.000000e+00> : vector<8x32xf32>
    %248 = tpu.matmul %246, %247, %cst_180 {dimension_numbers = #tpu.dot_dimension_numbers<[1], [0], [0], [1], [0, 0, 1, 1], [], []>} : vector<8x32xbf16>, vector<32x32xbf16>, vector<8x32xf32> -> vector<8x32xf32>
    %249 = arith.addf %245, %248 : vector<8x32xf32>
    %250 = arith.truncf %32 : vector<8x32xf32> to vector<8x32xbf16>
    %251 = vector.extract_strided_slice %242 {offsets = [64, 0], sizes = [32, 32], strides = [1, 1]} : vector<192x32xbf16> to vector<32x32xbf16>
    %cst_181 = arith.constant dense<0.000000e+00> : vector<8x32xf32>
    %252 = tpu.matmul %250, %251, %cst_181 {dimension_numbers = #tpu.dot_dimension_numbers<[1], [0], [0], [1], [0, 0, 1, 1], [], []>} : vector<8x32xbf16>, vector<32x32xbf16>, vector<8x32xf32> -> vector<8x32xf32>
    %253 = arith.addf %249, %252 : vector<8x32xf32>
    %254 = arith.truncf %241 : vector<8x64xf32> to vector<8x64xbf16>
    %255 = vector.extract_strided_slice %242 {offsets = [96, 0], sizes = [64, 32], strides = [1, 1]} : vector<192x32xbf16> to vector<64x32xbf16>
    %cst_182 = arith.constant dense<0.000000e+00> : vector<8x32xf32>
    %256 = tpu.matmul %254, %255, %cst_182 {dimension_numbers = #tpu.dot_dimension_numbers<[1], [0], [0], [1], [0, 0, 1, 1], [], []>} : vector<8x64xbf16>, vector<64x32xbf16>, vector<8x32xf32> -> vector<8x32xf32>
    %257 = arith.addf %253, %256 : vector<8x32xf32>
    %258 = arith.truncf %68 : vector<8x32xf32> to vector<8x32xbf16>
    %259 = vector.extract_strided_slice %242 {offsets = [160, 0], sizes = [32, 32], strides = [1, 1]} : vector<192x32xbf16> to vector<32x32xbf16>
    %cst_183 = arith.constant dense<0.000000e+00> : vector<8x32xf32>
    %260 = tpu.matmul %258, %259, %cst_183 {dimension_numbers = #tpu.dot_dimension_numbers<[1], [0], [0], [1], [0, 0, 1, 1], [], []>} : vector<8x32xbf16>, vector<32x32xbf16>, vector<8x32xf32> -> vector<8x32xf32>
    %261 = arith.addf %257, %260 : vector<8x32xf32>
    %c0_184 = arith.constant 0 : index
    %c0_185 = arith.constant 0 : index
    %262 = vector.load %arg19[%c0_184, %c0_185] : memref<1x32xf32, #tpu.memory_space<vmem>>, vector<1x32xf32>
    %263 = vector.broadcast %262 : vector<1x32xf32> to vector<8x32xf32>
    %264 = arith.addf %261, %263 : vector<8x32xf32>
    %cst_186 = arith.constant 0.000000e+00 : f32
    %265 = vector.broadcast %cst_186 : f32 to vector<8x32xf32>
    %266 = arith.maximumf %264, %265 : vector<8x32xf32>
    %267 = arith.truncf %266 : vector<8x32xf32> to vector<8x32xbf16>
    %c0_187 = arith.constant 0 : index
    %c0_188 = arith.constant 0 : index
    %268 = vector.load %arg20[%c0_187, %c0_188] : memref<32x24xbf16, #tpu.memory_space<vmem>>, vector<32x24xbf16>
    %cst_189 = arith.constant dense<0.000000e+00> : vector<8x24xf32>
    %269 = tpu.matmul %267, %268, %cst_189 {dimension_numbers = #tpu.dot_dimension_numbers<[1], [0], [0], [1], [0, 0, 1, 1], [], []>} : vector<8x32xbf16>, vector<32x24xbf16>, vector<8x24xf32> -> vector<8x24xf32>
    %c0_190 = arith.constant 0 : index
    %c0_191 = arith.constant 0 : index
    %270 = vector.load %arg21[%c0_190, %c0_191] : memref<1x24xf32, #tpu.memory_space<vmem>>, vector<1x24xf32>
    %271 = vector.broadcast %270 : vector<1x24xf32> to vector<8x24xf32>
    %272 = arith.addf %269, %271 : vector<8x24xf32>
    %c0_192 = arith.constant 0 : index
    %c0_193 = arith.constant 0 : index
    %273 = vector.load %arg22[%c0_192, %c0_193] : memref<8x24xf32, #tpu.memory_space<vmem>>, vector<8x24xf32>
    tpu.vector_store %arg22[%c0_192, %c0_193], %272 {strides = array<i32>} : memref<8x24xf32, #tpu.memory_space<vmem>>, vector<8x24xf32>,
    return
  }
  func.func @transform_0(%arg0: i32) -> (i32, i32, i32) {
    %c0_i32 = arith.constant 0 : i32
    %c0_i32_0 = arith.constant 0 : i32
    %c0_i32_1 = arith.constant 0 : i32
    %c0_i32_2 = arith.constant 0 : i32
    return %c0_i32, %c0_i32_0, %c0_i32_1 : i32, i32, i32
  }
  func.func @transform_1(%arg0: i32) -> (i32, i32) {
    %c0_i32 = arith.constant 0 : i32
    %c0_i32_0 = arith.constant 0 : i32
    %c0_i32_1 = arith.constant 0 : i32
    return %c0_i32, %c0_i32_0 : i32, i32
  }
  func.func @transform_2(%arg0: i32) -> (i32, i32, i32) {
    %c0_i32 = arith.constant 0 : i32
    %c0_i32_0 = arith.constant 0 : i32
    %c0_i32_1 = arith.constant 0 : i32
    %c0_i32_2 = arith.constant 0 : i32
    return %c0_i32, %c0_i32_0, %c0_i32_1 : i32, i32, i32
  }
  func.func @transform_3(%arg0: i32) -> (i32, i32, i32) {
    %c0_i32 = arith.constant 0 : i32
    %c0_i32_0 = arith.constant 0 : i32
    %c0_i32_1 = arith.constant 0 : i32
    %c0_i32_2 = arith.constant 0 : i32
    return %c0_i32, %c0_i32_0, %c0_i32_1 : i32, i32, i32
  }
  func.func @transform_4(%arg0: i32) -> (i32, i32, i32) {
    %c0_i32 = arith.constant 0 : i32
    %c0_i32_0 = arith.constant 0 : i32
    %c0_i32_1 = arith.constant 0 : i32
    %c0_i32_2 = arith.constant 0 : i32
    return %c0_i32, %c0_i32_0, %c0_i32_1 : i32, i32, i32
  }
  func.func @transform_5(%arg0: i32) -> (i32, i32) {
    %c0_i32 = arith.constant 0 : i32
    %c0_i32_0 = arith.constant 0 : i32
    %c0_i32_1 = arith.constant 0 : i32
    return %c0_i32, %c0_i32_0 : i32, i32
  }
  func.func @transform_6(%arg0: i32) -> (i32, i32) {
    %c0_i32 = arith.constant 0 : i32
    %c0_i32_0 = arith.constant 0 : i32
    %c0_i32_1 = arith.constant 0 : i32
    return %c0_i32, %c0_i32_0 : i32, i32
  }
  func.func @transform_7(%arg0: i32) -> (i32, i32) {
    %c0_i32 = arith.constant 0 : i32
    %c0_i32_0 = arith.constant 0 : i32
    %c0_i32_1 = arith.constant 0 : i32
    return %c0_i32, %c0_i32_0 : i32, i32
  }
  func.func @transform_8(%arg0: i32) -> (i32, i32) {
    %c0_i32 = arith.constant 0 : i32
    %c0_i32_0 = arith.constant 0 : i32
    %c0_i32_1 = arith.constant 0 : i32
    return %c0_i32, %c0_i32_0 : i32, i32
  }
  func.func @transform_9(%arg0: i32) -> (i32, i32) {
    %c0_i32 = arith.constant 0 : i32
    %c0_i32_0 = arith.constant 0 : i32
    %c0_i32_1 = arith.constant 0 : i32
    return %c0_i32, %c0_i32_0 : i32, i32
  }
  func.func @transform_10(%arg0: i32) -> (i32, i32) {
    %c0_i32 = arith.constant 0 : i32
    %c0_i32_0 = arith.constant 0 : i32
    %c0_i32_1 = arith.constant 0 : i32
    return %c0_i32, %c0_i32_0 : i32, i32
  }
  func.func @transform_11(%arg0: i32) -> (i32, i32) {
    %c0_i32 = arith.constant 0 : i32
    %c0_i32_0 = arith.constant 0 : i32
    %c0_i32_1 = arith.constant 0 : i32
    return %c0_i32, %c0_i32_0 : i32, i32
  }
  func.func @transform_12(%arg0: i32) -> (i32, i32) {
    %c0_i32 = arith.constant 0 : i32
    %c0_i32_0 = arith.constant 0 : i32
    %c0_i32_1 = arith.constant 0 : i32
    return %c0_i32, %c0_i32_0 : i32, i32
  }
  func.func @transform_13(%arg0: i32) -> (i32, i32, i32) {
    %c0_i32 = arith.constant 0 : i32
    %c0_i32_0 = arith.constant 0 : i32
    %c0_i32_1 = arith.constant 0 : i32
    %c0_i32_2 = arith.constant 0 : i32
    return %c0_i32, %c0_i32_0, %c0_i32_1 : i32, i32, i32
  }
  func.func @transform_14(%arg0: i32) -> (i32, i32) {
    %c0_i32 = arith.constant 0 : i32
    %c0_i32_0 = arith.constant 0 : i32
    %c0_i32_1 = arith.constant 0 : i32
    return %c0_i32, %c0_i32_0 : i32, i32
  }
  func.func @transform_15(%arg0: i32) -> (i32, i32) {
    %c0_i32 = arith.constant 0 : i32
    %c0_i32_0 = arith.constant 0 : i32
    %c0_i32_1 = arith.constant 0 : i32
    return %c0_i32, %c0_i32_0 : i32, i32
  }
  func.func @transform_16(%arg0: i32) -> (i32, i32) {
    %c0_i32 = arith.constant 0 : i32
    %c0_i32_0 = arith.constant 0 : i32
    %c0_i32_1 = arith.constant 0 : i32
    return %c0_i32, %c0_i32_0 : i32, i32
  }
  func.func @transform_17(%arg0: i32) -> (i32, i32) {
    %c0_i32 = arith.constant 0 : i32
    %c0_i32_0 = arith.constant 0 : i32
    %c0_i32_1 = arith.constant 0 : i32
    return %c0_i32, %c0_i32_0 : i32, i32
  }
  func.func @transform_18(%arg0: i32) -> (i32, i32) {
    %c0_i32 = arith.constant 0 : i32
    %c0_i32_0 = arith.constant 0 : i32
    %c0_i32_1 = arith.constant 0 : i32
    return %c0_i32, %c0_i32_0 : i32, i32
  }
  func.func @transform_19(%arg0: i32) -> (i32, i32) {
    %c0_i32 = arith.constant 0 : i32
    %c0_i32_0 = arith.constant 0 : i32
    %c0_i32_1 = arith.constant 0 : i32
    return %c0_i32, %c0_i32_0 : i32, i32
  }
  func.func @transform_20(%arg0: i32) -> (i32, i32) {
    %c0_i32 = arith.constant 0 : i32
    %c0_i32_0 = arith.constant 0 : i32
    %c0_i32_1 = arith.constant 0 : i32
    return %c0_i32, %c0_i32_0 : i32, i32
  }
  func.func @transform_21(%arg0: i32) -> (i32, i32) {
    %c0_i32 = arith.constant 0 : i32
    %c0_i32_0 = arith.constant 0 : i32
    %c0_i32_1 = arith.constant 0 : i32
    return %c0_i32, %c0_i32_0 : i32, i32
  }
}

</mosaic_0001>

<bundles_post_ra>
// kernel: pmfnet_forward.1
= control target key start
LH: loop header
LB: loop body
LE: loop exit
PB: predicated region body
PF: predicated region fallthrough
CT: control target
= control target key end

     0   :  { %vm106_vm0 = vcmask 523264   ;;  %vm1476_vm1 = vcmask 785408   ;;  %vm9361_vm2 = vcmask 261120   ;;  %vm9551_vm3 = vcmask 195584   ;;  %s22809_s3 = inlined_call_operand.vmem [shape: bf16[3,64,32], index: 3, kind: input, shape index: {}]   ;;  %s22810_s5 = inlined_call_operand.vmem [shape: bf16[192,64], index: 5, kind: input, shape index: {}]   ;;  %s22811_s4 = inlined_call_operand.vmem [shape: f32[3,1,32], index: 4, kind: input, shape index: {}]   ;;  %s22812_s0 = inlined_call_operand.vmem [shape: bf16[3,8,64], index: 0, kind: input, shape index: {}]   ;;  %s22813_s1 = inlined_call_operand.vmem [shape: bf16[8,192], index: 1, kind: input, shape index: {}]   ;;  %s22814_s6 = inlined_call_operand.vmem [shape: f32[1,64], index: 6, kind: input, shape index: {}]   ;;  %s22815_s7 = inlined_call_operand.vmem [shape: bf16[64,17], index: 7, kind: input, shape index: {}]   ;;  %s22816_s8 = inlined_call_operand.vmem [shape: f32[1,17], index: 8, kind: input, shape index: {}]   ;;  %s22817_s9 = inlined_call_operand.vmem [shape: bf16[192,512], index: 9, kind: input, shape index: {}]   ;;  %s22818_s11 = inlined_call_operand.vmem [shape: bf16[512,32], index: 11, kind: input, shape index: {}]   ;;  %s22819_s10 = inlined_call_operand.vmem [shape: f32[1,512], index: 10, kind: input, shape index: {}]   ;;  %s22820_s13 = inlined_call_operand.vmem [shape: bf16[18,96,1024], index: 13, kind: input, shape index: {}]   ;;  %s22821_s12 = inlined_call_operand.vmem [shape: f32[1,32], index: 12, kind: input, shape index: {}]   ;;  %s22822_s2 = inlined_call_operand.vmem [shape: bf16[18,8,96], index: 2, kind: input, shape index: {}]   ;;  %s22823_s14 = inlined_call_operand.vmem [shape: f32[1,1024], index: 14, kind: input, shape index: {}]   ;;  %s22824_s15 = inlined_call_operand.vmem [shape: bf16[1024,64], index: 15, kind: input, shape index: {}]   ;;  %s22825_s17 = inlined_call_operand.vmem [shape: bf16[192,32], index: 17, kind: input, shape index: {}]   ;;  %s22826_s16 = inlined_call_operand.vmem [shape: f32[1,64], index: 16, kind: input, shape index: {}]   ;;  %s22827_s18 = inlined_call_operand.vmem [shape: f32[1,32], index: 18, kind: input, shape index: {}]   ;;  %s22828_s19 = inlined_call_operand.vmem [shape: bf16[32,24], index: 19, kind: input, shape index: {}]   ;;  %s22829_s20 = inlined_call_operand.vmem [shape: f32[1,24], index: 20, kind: input, shape index: {}]   ;;  %s22830_s21 = inlined_call_operand.vmem [shape: f32[8,24], index: 21, kind: output, shape index: {}]  }
   0x1   :  { %22836 = sst [smem:[#allocation2_spill]] %s22809_s3  ;;  %v14796_v27 = vld [vmem:[%s22815_s7 + $0x18] sm:$0xff]  ;;  %v14795_v28 = vld [vmem:[%s22815_s7 + $0x10] sm:$0xff]  ;;  %v14794_v29 = vld [vmem:[%s22815_s7 + $0x8] sm:$0xff] }
   0x2   :  { %22837 = sst [smem:[#allocation3_spill]] %s22810_s5  ;;  %v14793_v30 = vld [vmem:[%s22815_s7] sm:$0xff]  ;;  %v9874_v34 = vld [vmem:[%s22817_s9 + $0x170] sm:$0xf0]  ;;  %v14843_v49 = vld [vmem:[%s22817_s9 + $0x16c] sm:$0xf0] }
   0x3   :  { %22838 = sst [smem:[#allocation4_spill]] %s22811_s4  ;;  %v14841_v33 = vld [vmem:[%s22817_s9 + $0x164] sm:$0xf]  ;;  %v9858_v38 = vld [vmem:[%s22817_s9 + $0x150] sm:$0xf0] }
   0x4   :  { %22839 = sst [smem:[#allocation5_spill]] %s22812_s0  ;;  %v9877_v36 = vor.u32 %v14841_v33, %v9874_v34  ;;  %v14837_v37 = vld [vmem:[%s22817_s9 + $0x144] sm:$0xf]  ;;  %v9810_v40 = vld [vmem:[%s22817_s9 + $0xf0] sm:$0xf0] }
   0x5   :  { %22840 = sst [smem:[#allocation6_spill]] %s22813_s1  ;;  %v14825_v39 = vld [vmem:[%s22817_s9 + $0xe4] sm:$0xf]  ;;  %v9861_v42 = vor.u32 %v14837_v37, %v9858_v38  ;;  %v9842_v45 = vld [vmem:[%s22817_s9 + $0x130] sm:$0xf0] }
   0x6   :  { %22841 = sst [smem:[#allocation7_spill]] %s22814_s6  ;;  %v9813_v43 = vor.u32 %v14825_v39, %v9810_v40  ;;  %v14833_v44 = vld [vmem:[%s22817_s9 + $0x124] sm:$0xf]  ;;  %v9794_v47 = vld [vmem:[%s22817_s9 + $0xd0] sm:$0xf0] }
   0x7   :  { %22842 = sst [smem:[#allocation8_spill]] %s22825_s17  ;;  %v14821_v46 = vld [vmem:[%s22817_s9 + $0xc4] sm:$0xf]  ;;  %v9872_v48 = vld [vmem:[%s22817_s9 + $0x160] sm:$0xf]  ;;  %v9845_v55 = vor.u32 %v14833_v44, %v9842_v45 }
   0x8   :  { %s22843_s26 = sld [smem:[#allocation2_spill]]  ;;  %v9808_v50 = vld [vmem:[%s22817_s9 + $0xe0] sm:$0xf]  ;;  %v9797_v51 = vor.u32 %v14821_v46, %v9794_v47  ;;  %v9873_v52 = vor.u32 %v14843_v49, %v9872_v48  ;;  %v14827_v54 = vld [vmem:[%s22817_s9 + $0xec] sm:$0xf0] }
   0x9   :  { %s22844_s17 = sld [smem:[#allocation3_spill]]  ;;  %v14817_v56 = vld [vmem:[%s22817_s9 + $0xa4] sm:$0xf]  ;;  %v9778_v57 = vld [vmem:[%s22817_s9 + $0xb0] sm:$0xf0] }
   0xa   :  { %s22845_s22 = sld [smem:[#allocation5_spill]]  ;;  %v14829_v59 = vld [vmem:[%s22817_s9 + $0x104] sm:$0xf]  ;;  %v9826_v60 = vld [vmem:[%s22817_s9 + $0x110] sm:$0xf0]  ;;  %v9781_v62 = vor.u32 %v14817_v56, %v9778_v57 }
   0xb   :  { %s22846_s6 = sld [smem:[#allocation6_spill]]  ;;  %v9856_v61 = vld [vmem:[%s22817_s9 + $0x140] sm:$0xf]  ;;  %v14826_v63 = vld [vmem:[%s22817_s9 + $0xec] sm:$0xf] }
   0xc   :  { %s22847_s30 = sld [smem:[#allocation7_spill]]  ;;  %v14818_v33 = vld [vmem:[%s22817_s9 + $0xac] sm:$0xf]  ;;  %v9786_v34 = vld [vmem:[%s22817_s9 + $0xb8] sm:$0xf0] }
   0xd   :  { %v9760_v37 = vld [vmem:[%s22817_s9 + $0x80] sm:$0xf]  ;;  %v14805_v39 = vld [vmem:[%s22817_s9 + $0x44] sm:$0xf]  ;;  %v9730_v40 = vld [vmem:[%s22817_s9 + $0x50] sm:$0xf0]  ;;  %v9789_v44 = vor.u32 %v14818_v33, %v9786_v34 }
   0xe   :  { %v14772_v0 = vld [vmem:[%s22843_s26 + $0x18] sm:$0xff]  ;;  %v14771_v2 = vld [vmem:[%s22843_s26 + $0x10] sm:$0xff]  ;;  %v14770_v4 = vld [vmem:[%s22843_s26 + $0x8] sm:$0xff]  ;;  %v9733_v45 = vor.u32 %v14805_v39, %v9730_v40 }
   0xf   :  { %v14788_v1 = vld [vmem:[%s22844_s17 + $0x38] sm:$0xff]  ;;  %114 = vmatpush.bf16.msra.mxu0 %v14772_v0  ;;  %v14787_v3 = vld [vmem:[%s22844_s17 + $0x30] sm:$0xff]  ;;  %v14786_v5 = vld [vmem:[%s22844_s17 + $0x28] sm:$0xff] }
  0x10   :  { %348 = vmatpush.bf16.msra.mxu3 %v14788_v1  ;;  %v14776_v6 = vld [vmem:[%s22843_s26 + $0x38] sm:$0xff]  ;;  %v14775_v7 = vld [vmem:[%s22843_s26 + $0x30] sm:$0xff]  ;;  %v14769_v8 = vld [vmem:[%s22843_s26] sm:$0xff] }
  0x11   :  { %171 = vmatpush.bf16.msra.mxu1 %v14776_v6  ;;  %v14785_v9 = vld [vmem:[%s22844_s17 + $0x20] sm:$0xff]  ;;  %v14792_v10 = vld [vmem:[%s22844_s17 + $0x58] sm:$0xff]  ;;  %v14791_v13 = vld [vmem:[%s22844_s17 + $0x50] sm:$0xff] }
  0x12   :  { %v69_v11 = vld [vmem:[%s22845_s22] sm:$0xf]  ;;  %v14784_v12 = vld [vmem:[%s22844_s17 + $0x18] sm:$0xff]  ;;  %v14783_v14 = vld [vmem:[%s22844_s17 + $0x10] sm:$0xff] }
  0x13   :  { %115 = vmatpush.bf16.msra.mxu0 %v14771_v2  ;;  %v14790_v15 = vld [vmem:[%s22844_s17 + $0x48] sm:$0xff]  ;;  %v238_v17 = vld [vmem:[%s22846_s6] sm:$0xff]  ;;  %v14780_v31 = vld [vmem:[%s22843_s26 + $0x58] sm:$0xff]  ;;  %v9809_v2 = vor.u32 %v14827_v54, %v9808_v50 }
  0x14   :  { %349 = vmatpush.bf16.msra.mxu3 %v14787_v3  ;;  %v14782_v16 = vld [vmem:[%s22844_s17 + $0x8] sm:$0xff]  ;;  %v14789_v18 = vld [vmem:[%s22844_s17 + $0x40] sm:$0xff]  ;;  %v268_v19 = vunpack.c.l.b16 %v238_v17  ;;  %v269_v20 = vunpack.c.h.b16 %v238_v17  ;;  %228 = vmatpush.bf16.msra.mxu2 %v14780_v31  ;;  %v14779_v35 = vld [vmem:[%s22843_s26 + $0x50] sm:$0xff] }
  0x15   :  { %172 = vmatpush.bf16.msra.mxu1 %v14775_v7  ;;  %v14781_v21 = vld [vmem:[%s22844_s17] sm:$0xff]  ;;  %v14774_v24 = vld [vmem:[%s22843_s26 + $0x28] sm:$0xff]  ;;  %v9818_v0 = vld [vmem:[%s22817_s9 + $0xf8] sm:$0xf0] }
  0x16   :  { %v16055_v22 = vpack.c.b16 %v268_v19, %v268_v19  ;;  %v16057_v23 = vpack.c.b16 %v269_v20, %v269_v20  ;;  %v14773_v25 = vld [vmem:[%s22843_s26 + $0x20] sm:$0xff]  ;;  %v14778_v41 = vld [vmem:[%s22843_s26 + $0x48] sm:$0xff]  ;;  %v14839_v1 = vld [vmem:[%s22817_s9 + $0x14c] sm:$0xf0] }
  0x17   :  { %116 = vmatpush.bf16.msra.mxu0 %v14770_v4  ;;  %v9574_v26 = vld [vmem:[%s22845_s22 + $0x4] sm:$0xf]  ;;  %v9857_v3 = vor.u32 %v14839_v1, %v9856_v61  ;;  %v9792_v6 = vld [vmem:[%s22817_s9 + $0xc0] sm:$0xf]  ;;  %v14823_v7 = vld [vmem:[%s22817_s9 + $0xcc] sm:$0xf0] }
  0x18   :  { %350 = vmatpush.bf16.msra.mxu3 %v14786_v5  ;;  %229 = vmatpush.bf16.msra.mxu2 %v14779_v35  ;;  %v14777_v53 = vld [vmem:[%s22843_s26 + $0x40] sm:$0xff]  ;;  %v9762_v5 = vld [vmem:[%s22817_s9 + $0x90] sm:$0xf0]  ;;  %v14814_v46 = vld [vmem:[%s22817_s9 + $0x8c] sm:$0xf]  ;;  %s22849_s26 = sld [smem:[#allocation4_spill]] }
  0x19   :  { %173 = vmatpush.bf16.msra.mxu1 %v14774_v24  ;;  %v14813_v4 = vld [vmem:[%s22817_s9 + $0x84] sm:$0xf]  ;;  %v9746_v19 = vld [vmem:[%s22817_s9 + $0x70] sm:$0xf0]  ;;  %v9824_v20 = vld [vmem:[%s22817_s9 + $0x100] sm:$0xf] }
  0x1a   :  { %v14809_v17 = vld [vmem:[%s22817_s9 + $0x64] sm:$0xf]  ;;  %v9776_v24 = vld [vmem:[%s22817_s9 + $0xa0] sm:$0xf]  ;;  %v9770_v47 = vld [vmem:[%s22817_s9 + $0x98] sm:$0xf0] }
  0x1b   :  { %117 = vmatpush.bf16.msra.mxu0 %v14769_v8  ;;  %v9829_v8 = vor.u32 %v14829_v59, %v9826_v60  ;;  %v9749_v31 = vor.u32 %v14809_v17, %v9746_v19  ;;  %v9744_v50 = vld [vmem:[%s22817_s9 + $0x60] sm:$0xf]  ;;  %v9784_v56 = vld [vmem:[%s22817_s9 + $0xa8] sm:$0xf]  ;;  %v14820_v57 = vld [vmem:[%s22817_s9 + $0xb4] sm:$0xf0]  ;;  %v9773_v59 = vor.u32 %v14814_v46, %v9770_v47 }
  0x1c   :  { %351 = vmatpush.bf16.msra.mxu3 %v14785_v9  ;;  %230 = vmatpush.bf16.msra.mxu2 %v14778_v41  ;;  %v9840_v9 = vld [vmem:[%s22817_s9 + $0x120] sm:$0xf]  ;;  %v14815_v41 = vld [vmem:[%s22817_s9 + $0x8c] sm:$0xf0]  ;;  %v14808_v39 = vld [vmem:[%s22817_s9 + $0x54] sm:$0xf0] }
  0x1d   :  { %174 = vmatpush.bf16.msra.mxu1 %v14773_v25  ;;  %v14819_v25 = vld [vmem:[%s22817_s9 + $0xac] sm:$0xf0]  ;;  %v9761_v49 = vor.u32 %v14815_v41, %v9760_v37  ;;  %v9728_v61 = vld [vmem:[%s22817_s9 + $0x40] sm:$0xf]  ;;  %v14844_v40 = vld [vmem:[%s22817_s9 + $0x174] sm:$0xf0] }
  0x1e   :  { %9573 = vmatmul.msk.bf16.vlgmr.msra.gmra.mxu0 %vm106_vm0, %v69_v11  ;;  %v14822_v11 = vld [vmem:[%s22817_s9 + $0xcc] sm:$0xf]  ;;  %v9696_v33 = vld [vmem:[%s22817_s9] sm:$0xf]  ;;  %v14799_v34 = vld [vmem:[%s22817_s9 + $0xc] sm:$0xf0] }
  0x1f   :  { %365 = vmatpush.bf16.msrb.mxu0 %v14792_v10  ;;  %v9821_v10 = vor.u32 %v14826_v63, %v9818_v0  ;;  %v14810_v63 = vld [vmem:[%s22817_s9 + $0x6c] sm:$0xf]  ;;  %v9754_v0 = vld [vmem:[%s22817_s9 + $0x78] sm:$0xf0]  ;;  %v9697_v46 = vor.u32 %v14799_v34, %v9696_v33  ;;  %v14867_v34 = vld [vmem:[%s22818_s11 + $0xb0] sm:$0xff] }
  0x20   :  { %352 = vmatpush.bf16.msra.mxu3 %v14784_v12  ;;  %9600 = vmatmul.msk.bf16.vlgmr.msra.gmra.mxu1 %vm106_vm0, %v9574_v26  ;;  %v14835_v12 = vld [vmem:[%s22817_s9 + $0x12c] sm:$0xf0]  ;;  %v9816_v26 = vld [vmem:[%s22817_s9 + $0xe8] sm:$0xf] }
  0x21   :  { %419 = vmatpush.bf16.msrb.mxu1 %v14796_v27  ;;  %231 = vmatpush.bf16.msra.mxu2 %v14777_v53  ;;  %v9714_v53 = vld [vmem:[%s22817_s9 + $0x30] sm:$0xf0] }
  0x23   :  { %366 = vmatpush.bf16.msrb.mxu0 %v14791_v13  ;;  %v9765_v13 = vor.u32 %v14813_v4, %v9762_v5  ;;  %v14797_v4 = vld [vmem:[%s22817_s9 + $0x4] sm:$0xf]  ;;  %v9698_v5 = vld [vmem:[%s22817_s9 + $0x10] sm:$0xf0] }
  0x24   :  { %353 = vmatpush.bf16.msra.mxu3 %v14783_v14  ;;  %v9802_v14 = vld [vmem:[%s22817_s9 + $0xd8] sm:$0xf0] }
  0x25   :  { %420 = vmatpush.bf16.msrb.mxu1 %v14795_v28  ;;  %730 = vmatpush.bf16.msrb.mxu2 %v9809_v2  ;;  %v9805_v28 = vor.u32 %v14822_v11, %v9802_v14  ;;  %v14807_v2 = vld [vmem:[%s22817_s9 + $0x4c] sm:$0xf0]  ;;  %v9882_v11 = vld [vmem:[%s22817_s9 + $0x178] sm:$0xf0]  ;;  %v14806_v14 = vld [vmem:[%s22817_s9 + $0x4c] sm:$0xf] }
  0x26   :  { %v9729_v17 = vor.u32 %v14807_v2, %v9728_v61  ;;  %v9848_v61 = vld [vmem:[%s22817_s9 + $0x128] sm:$0xf] }
  0x27   :  { %367 = vmatpush.bf16.msrb.mxu0 %v14790_v15  ;;  %v9601_v15 = vld [vmem:[%s22845_s22 + $0x8] sm:$0xf] }
  0x28   :  { %354 = vmatpush.bf16.msra.mxu3 %v14782_v16  ;;  %v9841_v16 = vor.u32 %v14835_v12, %v9840_v9  ;;  %9627 = vmatmul.msk.bf16.vlgmr.msra.gmra.mxu2 %vm106_vm0, %v9601_v15  ;;  %v9757_v9 = vor.u32 %v14810_v63, %v9754_v0  ;;  %v9738_v15 = vld [vmem:[%s22817_s9 + $0x58] sm:$0xf0]  ;;  %v9832_v2 = vld [vmem:[%s22817_s9 + $0x108] sm:$0xf] }
  0x29   :  { %421 = vmatpush.bf16.msrb.mxu1 %v14794_v29  ;;  %v14828_v29 = vld [vmem:[%s22817_s9 + $0xf4] sm:$0xf0] }
  0x2a   :  { %v9817_v38 = vor.u32 %v14828_v29, %v9816_v26  ;;  %v9741_v26 = vor.u32 %v14806_v14, %v9738_v15  ;;  %v14802_v29 = vld [vmem:[%s22817_s9 + $0x2c] sm:$0xf] }
  0x2b   :  { %368 = vmatpush.bf16.msrb.mxu0 %v14789_v18  ;;  %v9793_v18 = vor.u32 %v14823_v7, %v9792_v6  ;;  %v9768_v7 = vld [vmem:[%s22817_s9 + $0x88] sm:$0xf] }
  0x2c   :  { %355 = vmatpush.bf16.msra.mxu3 %v14781_v21  ;;  %v14831_v21 = vld [vmem:[%s22817_s9 + $0x10c] sm:$0xf0] }
  0x2d   :  { %422 = vmatpush.bf16.msrb.mxu1 %v14793_v30  ;;  %v15856_v30 = vld [vmem:[%s22847_s30] ss:$0 sm:$0xff]  ;;  %v9825_v35 = vor.u32 %v14831_v21, %v9824_v20  ;;  %731 = vmatpush.bf16.msrb.mxu2 %v9793_v18  ;;  %v14803_v20 = vld [vmem:[%s22817_s9 + $0x2c] sm:$0xf0] }
  0x2e   :  { %9676 = vmatmul.msk.bf16.vlgmr.msrb.gmra.mxu0 %vm106_vm0, %v16057_v23  ;;  %v9712_v18 = vld [vmem:[%s22817_s9 + $0x20] sm:$0xf] }
  0x2f   :  { %356 = vmatmul.bf16.vlgmr.msra.gmra.mxu3 %v16055_v22  ;;  %747 = vmatpush.bf16.msra.mxu0 %v9873_v52  ;;  %v14801_v52 = vld [vmem:[%s22817_s9 + $0x24] sm:$0xf] }
  0x30   :  { %773 = vmatpush.bf16.msrb.mxu3 %v9877_v36  ;;  %v9777_v36 = vor.u32 %v14819_v25, %v9776_v24  ;;  %v9752_v24 = vld [vmem:[%s22817_s9 + $0x68] sm:$0xf]  ;;  %v14812_v25 = vld [vmem:[%s22817_s9 + $0x74] sm:$0xf0] }
  0x31   :  { %756 = vmatpush.bf16.msra.mxu1 %v9813_v43  ;;  %v14824_v43 = vld [vmem:[%s22817_s9 + $0xd4] sm:$0xf0] }
  0x32   :  { %732 = vmatpush.bf16.msrb.mxu2 %v9777_v36  ;;  %v9880_v36 = vld [vmem:[%s22817_s9 + $0x168] sm:$0xf] }
  0x33   :  { %748 = vmatpush.bf16.msra.mxu0 %v9857_v3  ;;  %v9785_v3 = vor.u32 %v14820_v57, %v9784_v56  ;;  %v9834_v56 = vld [vmem:[%s22817_s9 + $0x118] sm:$0xf0] }
  0x34   :  { %774 = vmatpush.bf16.msrb.mxu3 %v9861_v42  ;;  %v9800_v42 = vld [vmem:[%s22817_s9 + $0xc8] sm:$0xf] }
  0x35   :  { %757 = vmatpush.bf16.msra.mxu1 %v9797_v51  ;;  %v9801_v51 = vor.u32 %v14824_v43, %v9800_v42  ;;  %v14834_v42 = vld [vmem:[%s22817_s9 + $0x12c] sm:$0xf]  ;;  %v9850_v43 = vld [vmem:[%s22817_s9 + $0x138] sm:$0xf0] }
  0x36   :  { %733 = vmatpush.bf16.msrb.mxu2 %v9761_v49  ;;  %v9853_v49 = vor.u32 %v14834_v42, %v9850_v43  ;;  %v15876_v42 = vmov 9   ;;  %v14866_v43 = vld [vmem:[%s22818_s11 + $0xa8] sm:$0xff] }
  0x37   :  { %749 = vmatpush.bf16.msra.mxu0 %v9841_v16 }
  0x38   :  { %775 = vmatpush.bf16.msrb.mxu3 %v9845_v55  ;;  %v14811_v55 = vld [vmem:[%s22817_s9 + $0x6c] sm:$0xf0] }
  0x39   :  { %758 = vmatpush.bf16.msra.mxu1 %v9781_v62  ;;  %v9717_v62 = vor.u32 %v14801_v52, %v9714_v53  ;;  %v9745_v1 = vor.u32 %v14811_v55, %v9744_v50  ;;  %v9720_v50 = vld [vmem:[%s22817_s9 + $0x28] sm:$0xf]  ;;  %v14840_v53 = vld [vmem:[%s22817_s9 + $0x154] sm:$0xf0]  ;;  %v14830_v55 = vld [vmem:[%s22817_s9 + $0x10c] sm:$0xf] }
  0x3a   :  { %v9864_v52 = vld [vmem:[%s22817_s9 + $0x148] sm:$0xf]  ;;  %v9837_v63 = vor.u32 %v14830_v55, %v9834_v56  ;;  %v14848_v55 = vld [vmem:[%s22818_s11 + $0x18] sm:$0xff] }
  0x3b   :  { %750 = vmatpush.bf16.msra.mxu0 %v9825_v35  ;;  %734 = vmatpush.bf16.msrb.mxu2 %v9745_v1  ;;  %v9753_v35 = vor.u32 %v14812_v25, %v9752_v24  ;;  %v14860_v24 = vld [vmem:[%s22818_s11 + $0x78] sm:$0xff]  ;;  %v15872_v25 = vmov 7  }
  0x3c   :  { %776 = vmatpush.bf16.msrb.mxu3 %v9829_v8  ;;  %v14816_v8 = vld [vmem:[%s22817_s9 + $0x94] sm:$0xf0] }
  0x3d   :  { %759 = vmatpush.bf16.msra.mxu1 %v9765_v13  ;;  %v9701_v13 = vor.u32 %v14797_v4, %v9698_v5  ;;  %v9769_v19 = vor.u32 %v14816_v8, %v9768_v7  ;;  %v15866_v7 = vmov 4   ;;  %v15867_v8 = vmov 2   ;;  %v14856_v56 = vld [vmem:[%s22818_s11 + $0x58] sm:$0xff] }
  0x3e   :  { %9886 = vmatmul.msk.bf16.vlgmr.msra.gmra.mxu0 %vm106_vm0, %v16057_v23  ;;  %15841 = vset.pattern.permute.xlu2 %v15866_v7 }
  0x3f   :  { %9887 = vmatmul.msk.bf16.vlgmr.msrb.gmra.mxu3 %vm106_vm0, %v16057_v23  ;;  %782 = vmatpush.bf16.msrb.mxu0 %v9817_v38  ;;  %v9736_v38 = vld [vmem:[%s22817_s9 + $0x48] sm:$0xf] }
  0x40   :  { %808 = vmatpush.bf16.msra.mxu3 %v9821_v10  ;;  %v14842_v10 = vld [vmem:[%s22817_s9 + $0x16c] sm:$0xf]  ;;  %735 = vmatpush.bf16.msrb.mxu2 %v9729_v17  ;;  %v9737_v47 = vor.u32 %v14808_v39, %v9736_v38  ;;  %v15869_v17 = vmov 5  }
  0x41   :  { %760 = vmatpush.bf16.msra.mxu1 %v9749_v31  ;;  %v9885_v21 = vor.u32 %v14842_v10, %v9882_v11  ;;  %v9713_v31 = vor.u32 %v14803_v20, %v9712_v18  ;;  %15839 = vset.pattern.permute.xlu1 %v15867_v8  ;;  %v15870_v18 = vmov 3   ;;  %v14852_v20 = vld [vmem:[%s22818_s11 + $0x38] sm:$0xff]  ;;  %v14850_v39 = vld [vmem:[%s22818_s11 + $0x28] sm:$0xff] }
  0x43   :  { %783 = vmatpush.bf16.msrb.mxu0 %v9801_v51  ;;  %v14804_v51 = vld [vmem:[%s22817_s9 + $0x34] sm:$0xf0] }
  0x44   :  { %809 = vmatpush.bf16.msra.mxu3 %v9805_v28  ;;  %v9866_v28 = vld [vmem:[%s22817_s9 + $0x158] sm:$0xf0]  ;;  %736 = vmatpush.bf16.msrb.mxu2 %v9713_v31  ;;  %v9721_v57 = vor.u32 %v14804_v51, %v9720_v50  ;;  %v14859_v31 = vld [vmem:[%s22818_s11 + $0x70] sm:$0xff] }
  0x45   :  { %761 = vmatpush.bf16.msra.mxu1 %v9733_v45  ;;  %v9706_v45 = vld [vmem:[%s22817_s9 + $0x18] sm:$0xf0] }
  0x47   :  { %784 = vmatpush.bf16.msrb.mxu0 %v9785_v3  ;;  %v14832_v3 = vld [vmem:[%s22817_s9 + $0x114] sm:$0xf0] }
  0x48   :  { %810 = vmatpush.bf16.msra.mxu3 %v9789_v44  ;;  %v14798_v44 = vld [vmem:[%s22817_s9 + $0xc] sm:$0xf]  ;;  %737 = vmatpush.bf16.msrb.mxu2 %v9697_v46  ;;  %v9833_v4 = vor.u32 %v14832_v3, %v9832_v2  ;;  %v14849_v46 = vld [vmem:[%s22818_s11 + $0x20] sm:$0xff] }
  0x49   :  { %762 = vmatpush.bf16.msra.mxu1 %v9717_v62  ;;  %v14836_v62 = vld [vmem:[%s22817_s9 + $0x134] sm:$0xf0] }
  0x4a   :  { %v9849_v1 = vor.u32 %v14836_v62, %v9848_v61  ;;  %v15879_v61 = vmov 11  }
  0x4b   :  { %785 = vmatpush.bf16.msrb.mxu0 %v9769_v19  ;;  %738 = vmatmul.bf16.vlgmr.msrb.gmra.mxu2 %v16055_v22  ;;  %v15871_v19 = vmov 1  }
  0x4c   :  { %811 = vmatpush.bf16.msra.mxu3 %v9773_v59  ;;  %v9704_v59 = vld [vmem:[%s22817_s9 + $0x8] sm:$0xf] }
  0x4d   :  { %763 = vmatpush.bf16.msra.mxu1 %v9701_v13 }
  0x4f   :  { %786 = vmatpush.bf16.msrb.mxu0 %v9753_v35  ;;  %v14875_v35 = vld [vmem:[%s22818_s11 + $0xf0] sm:$0xff] }
  0x50   :  { %812 = vmatpush.bf16.msra.mxu3 %v9757_v9  ;;  %v15868_v9 = vmov 0  }
  0x51   :  { %15837 = vset.pattern.permute.xlu0 %v15868_v9 }
  0x53   :  { %787 = vmatpush.bf16.msrb.mxu0 %v9737_v47  ;;  %v14857_v47 = vld [vmem:[%s22818_s11 + $0x60] sm:$0xff] }
  0x54   :  { %813 = vmatpush.bf16.msra.mxu3 %v9741_v26  ;;  %v14868_v26 = vld [vmem:[%s22818_s11 + $0xb8] sm:$0xff] }
  0x57   :  { %788 = vmatpush.bf16.msrb.mxu0 %v9721_v57  ;;  %v14864_v57 = vld [vmem:[%s22818_s11 + $0x98] sm:$0xff] }
  0x9b   :  { %v16087_v32 = vpop.f32.mrf.mxu0 }
  0x9d   :  { %v16406_v5 = vpop.f32.mrf.mxu1 }
  0xa3   :  { %v121_v58 = vpop.f32.mrf.mxu0 }
  0xab   :  { %v370_v27 = vpop.f32.mrf.mxu0 }
  0xb2   :  { %v357_v48 = vpop.f32.mrf.mxu3 }
  0xb3   :  { %v358_v54 = vadd.f32 %v15856_v30, %v357_v48  ;;  %v372_v58 = vpop.f32.mrf.mxu0  ;;  %v9722_v30 = vld [vmem:[%s22817_s9 + $0x38] sm:$0xf0]  ;;  %v9881_v48 = vor.u32 %v14844_v40, %v9880_v36  ;;  %v14858_v40 = vld [vmem:[%s22818_s11 + $0x68] sm:$0xff] }
  0xb4   :  { %v9725_v41 = vor.u32 %v14802_v29, %v9722_v30  ;;  %v9865_v58 = vor.u32 %v14840_v53, %v9864_v52  ;;  %v15874_v29 = vmov 8   ;;  %v14851_v30 = vld [vmem:[%s22818_s11 + $0x30] sm:$0xff]  ;;  %v480_v53 = vld [vmem:[%s22819_s10] sm:$0xf] }
  0xb5   :  { %v371_v60 = vadd.f32 %v370_v27, %v358_v54  ;;  %v14838_v27 = vld [vmem:[%s22817_s9 + $0x14c] sm:$0xf]  ;;  %v9709_v54 = vor.u32 %v14798_v44, %v9706_v45  ;;  %799 = vmatpush.bf16.msra.mxu2 %v9881_v48  ;;  %v15877_v45 = vmov 13   ;;  %v14865_v48 = vld [vmem:[%s22818_s11 + $0xa0] sm:$0xff]  ;;  %v483_v62 = vperm.slane %v480_v53, 1 }
  0xb6   :  { %v9869_v37 = vor.u32 %v14838_v27, %v9866_v28  ;;  %814 = vmatpush.bf16.msra.mxu3 %v9725_v41  ;;  %v14876_v27 = vld [vmem:[%s22818_s11 + $0xf8] sm:$0xff]  ;;  %v15873_v28 = vmov 6   ;;  %v15875_v41 = vmov 10   ;;  %v14874_v44 = vld [vmem:[%s22818_s11 + $0xe8] sm:$0xff]  ;;  %v484_v9 = vperm.slane %v480_v53, 2 }
  0xb7   :  { %v374_v6 = vmax.f32 %v371_v60, 0.0  ;;  %v14800_v60 = vld [vmem:[%s22817_s9 + $0x14] sm:$0xf0] }
  0xb8   :  { %v9705_v0 = vor.u32 %v14800_v60, %v9704_v59  ;;  %v14872_v59 = vld [vmem:[%s22818_s11 + $0xd8] sm:$0xff]  ;;  %v482_v60 = vperm.slane %v480_v53, 0 }
  0xb9   :  { %v375_v12 = vpack.c.bf16 %v374_v6, %v374_v6  ;;  %800 = vmatpush.bf16.msra.mxu2 %v9865_v58  ;;  %v178_v6 = vpop.f32.mrf.mxu1  ;;  %v15878_v58 = vmov 12  }
  0xba   :  { %v359_v16 = vpop.f32.mrf.mxu3  ;;  %815 = vmatpush.bf16.msra.mxu3 %v9709_v54  ;;  %789 = vmatpush.bf16.msrb.mxu0 %v9705_v0  ;;  %v14855_v0 = vld [vmem:[%s22818_s11 + $0x50] sm:$0xff]  ;;  %v485_v6 = vperm.slane %v480_v53, 3 }
  0xbb   :  { %9693 = vmatmul.msk.bf16.vlgmr.msrb.gmra.mxu1 %vm106_vm0, %v375_v12  ;;  %v16452_v38 = vpop.f32.mrf.mxu0 }
  0xbc   :  { %825 = vmatpush.bf16.msrb.mxu1 %v9885_v21  ;;  %v16422_v21 = vpop.f32.mrf.mxu2 }
  0xbd   :  { %816 = vmatmul.bf16.vlgmr.msra.gmra.mxu3 %v16055_v22  ;;  %801 = vmatpush.bf16.msra.mxu2 %v9849_v1  ;;  %v14863_v1 = vld [vmem:[%s22818_s11 + $0x90] sm:$0xff] }
  0xbe   :  { %790 = vmatmul.bf16.vlgmr.msrb.gmra.mxu0 %v16055_v22  ;;  %1141 = vmatpush.bf16.msrb.mxu3 %v14876_v27  ;;  %v10180_v27 = vld [vmem:[%s22820_s13 + $0x140] sm:$0xf] }
  0xbf   :  { %1115 = vmatpush.bf16.msra.mxu0 %v14860_v24  ;;  %v14845_v24 = vld [vmem:[%s22818_s11] sm:$0xff] }
  0xc0   :  { %826 = vmatpush.bf16.msrb.mxu1 %v9869_v37 }
  0xc1   :  { %802 = vmatpush.bf16.msra.mxu2 %v9833_v4  ;;  %v14871_v4 = vld [vmem:[%s22818_s11 + $0xd0] sm:$0xff] }
  0xc2   :  { %v16448_v36 = vpop.f32.mrf.mxu3  ;;  %1142 = vmatpush.bf16.msrb.mxu3 %v14875_v35 }
  0xc3   :  { %1116 = vmatpush.bf16.msra.mxu0 %v14859_v31  ;;  %v754_v54 = vpop.f32.mrf.mxu0  ;;  %v10188_v31 = vld [vmem:[%s22820_s13 + $0x148] sm:$0xf] }
  0xc4   :  { %827 = vmatpush.bf16.msrb.mxu1 %v9853_v49  ;;  %9888 = vmatmul.msk.bf16.vlgmr.msra.gmra.mxu2 %vm106_vm0, %v16057_v23  ;;  %v235_v33 = vpop.f32.mrf.mxu2  ;;  %v14873_v49 = vld [vmem:[%s22818_s11 + $0xe0] sm:$0xff] }
  0xc5   :  { %1102 = vmatpush.bf16.msrb.mxu2 %v14852_v20  ;;  %v14870_v20 = vld [vmem:[%s22818_s11 + $0xc8] sm:$0xff] }
  0xc6   :  { %1143 = vmatpush.bf16.msrb.mxu3 %v14874_v44  ;;  %v14922_v33 = vld [vmem:[%s22820_s13 + $0x164] sm:$0xf0]  ;;  %v14869_v44 = vld [vmem:[%s22818_s11 + $0xc0] sm:$0xff] }
  0xc7   :  { %1117 = vmatpush.bf16.msra.mxu0 %v14858_v40 }
  0xc8   :  { %828 = vmatpush.bf16.msrb.mxu1 %v9837_v63  ;;  %v14847_v63 = vld [vmem:[%s22818_s11 + $0x10] sm:$0xff] }
  0xc9   :  { %1103 = vmatpush.bf16.msrb.mxu2 %v14851_v30  ;;  %v10182_v30 = vld [vmem:[%s22820_s13 + $0x160] sm:$0xf0] }
  0xca   :  { %v780_v51 = vpop.f32.mrf.mxu3  ;;  %1144 = vmatpush.bf16.msrb.mxu3 %v14873_v49  ;;  %v10189_v49 = vor.u32 %v14922_v33, %v10188_v31  ;;  %v10052_v31 = vld [vmem:[%s22820_s13 + $0x40] sm:$0xf] }
  0xcb   :  { %764 = vmatmul.bf16.vlgmr.msra.gmra.mxu1 %v16055_v22  ;;  %v15858_v22 = vld [vmem:[%s22816_s8] ss:$0 sm:$0xff]  ;;  %1118 = vmatpush.bf16.msra.mxu0 %v14857_v47  ;;  %v14909_v51 = vld [vmem:[%s22820_s13 + $0x104] sm:$0xf] }
  0xcc   :  { %1128 = vmatpush.bf16.msra.mxu1 %v14868_v26  ;;  %v14853_v26 = vld [vmem:[%s22818_s11 + $0x40] sm:$0xff] }
  0xcd   :  { %1104 = vmatpush.bf16.msrb.mxu2 %v14850_v39  ;;  %v10190_v39 = vld [vmem:[%s22820_s13 + $0x168] sm:$0xf0]  ;;  %v14889_v33 = vld [vmem:[%s22820_s13 + $0x5c] sm:$0xf0] }
  0xce   :  { %v739_v50 = vpop.f32.mrf.mxu2  ;;  %1145 = vmatpush.bf16.msrb.mxu3 %v14872_v59  ;;  %v14910_v59 = vld [vmem:[%s22820_s13 + $0x10c] sm:$0xf] }
  0xcf   :  { %1119 = vmatpush.bf16.msra.mxu0 %v14856_v56  ;;  %v740_v3 = vadd.f32 %v739_v50, %v482_v60  ;;  %v14913_v50 = vld [vmem:[%s22820_s13 + $0x11c] sm:$0xf0]  ;;  %v14914_v56 = vld [vmem:[%s22820_s13 + $0x124] sm:$0xf0]  ;;  %v10158_v60 = vld [vmem:[%s22820_s13 + $0x128] sm:$0xf0] }
  0xd0   :  { %1129 = vmatpush.bf16.msra.mxu1 %v14867_v34 }
  0xd1   :  { %1105 = vmatpush.bf16.msrb.mxu2 %v14849_v46  ;;  %v10148_v46 = vld [vmem:[%s22820_s13 + $0x100] sm:$0xf] }
  0xd2   :  { %1146 = vmatpush.bf16.msrb.mxu3 %v14871_v4 }
  0xd3   :  { %1120 = vmatpush.bf16.msra.mxu0 %v14855_v0 }
  0xd4   :  { %1130 = vmatpush.bf16.msra.mxu1 %v14866_v43 }
  0xd5   :  { %1106 = vmatpush.bf16.msrb.mxu2 %v14848_v55  ;;  %v10156_v55 = vld [vmem:[%s22820_s13 + $0x108] sm:$0xf] }
  0xd6   :  { %v741_v2 = vpop.f32.mrf.mxu2  ;;  %1147 = vmatpush.bf16.msrb.mxu3 %v14870_v20  ;;  %v10157_v0 = vor.u32 %v14914_v56, %v10156_v55  ;;  %v10086_v20 = vld [vmem:[%s22820_s13 + $0xa0] sm:$0xf0]  ;;  %v10196_v55 = vld [vmem:[%s22820_s13 + $0x150] sm:$0xf] }
  0xd7   :  { %v14905_v2 = vld [vmem:[%s22820_s13 + $0xdc] sm:$0xf0] }
  0xd8   :  { %1131 = vmatpush.bf16.msra.mxu1 %v14865_v48 }
  0xd9   :  { %1107 = vmatpush.bf16.msrb.mxu2 %v14847_v63 }
  0xda   :  { %1148 = vmatpush.bf16.msrb.mxu3 %v14869_v44  ;;  %v10020_v44 = vld [vmem:[%s22820_s13] sm:$0xf] }
  0xdb   :  { %9889 = vmatmul.msk.bf16.vlgmr.msrb.gmra.mxu1 %vm106_vm0, %v16057_v23 }
  0xdc   :  { %1132 = vmatpush.bf16.msra.mxu1 %v14864_v57 }
  0xe0   :  { %1133 = vmatpush.bf16.msra.mxu1 %v14863_v1  ;;  %v10116_v1 = vld [vmem:[%s22820_s13 + $0xc0] sm:$0xf] }
 0x138   :  { %v424_v10 = vpop.f32.mrf.mxu1 }
 0x139   :  { %v425_v11 = vadd.f32 %v15858_v22, %v424_v10  ;;  %v15880_v22 = vmov 16  }
 0x13b   :  { %v428_v12 = vmul.f32 0.5, %v425_v11  ;;  %v791_v11 = vpop.f32.mrf.mxu0 }
 0x13d   :  { %15864 = vtanh.f32 %v428_v12  ;;  %v14846_v12 = vld [vmem:[%s22818_s11 + $0x8] sm:$0xff] }
 0x13e   :  { %1108 = vmatpush.bf16.msrb.mxu2 %v14846_v12  ;;  %v10126_v12 = vld [vmem:[%s22820_s13 + $0xe8] sm:$0xf0] }
 0x140   :  { %v426_v13 = vpop.f32.mrf.mxu1  ;;  %v817_v7 = vpop.f32.mrf.mxu3 }
 0x141   :  { %v753_v13 = vadd.f32 %v16452_v38, %v740_v3  ;;  %v14918_v38 = vld [vmem:[%s22820_s13 + $0x14c] sm:$0xf]  ;;  %v14901_v3 = vld [vmem:[%s22820_s13 + $0xc4] sm:$0xf] }
 0x142   :  { %1109 = vmatpush.bf16.msrb.mxu2 %v14845_v24  ;;  %v10193_v53 = vor.u32 %v14918_v38, %v10190_v39  ;;  %v10092_v24 = vld [vmem:[%s22820_s13 + $0x88] sm:$0xf] }
 0x143   :  { %v15865_v14 = vpop.eup %15864  ;;  %v834_v35 = vmax.f32 %v753_v13, 0.0  ;;  %v793_v47 = vpop.f32.mrf.mxu0  ;;  %v10117_v13 = vor.u32 %v14905_v2, %v10116_v1  ;;  %v14890_v38 = vld [vmem:[%s22820_s13 + $0x64] sm:$0xf0]  ;;  %v10206_v2 = vld [vmem:[%s22820_s13 + $0x178] sm:$0xf0] }
 0x144   :  { %v430_v23 = vadd.f32 1.0, %v15865_v14  ;;  %v14854_v14 = vld [vmem:[%s22818_s11 + $0x48] sm:$0xff]  ;;  %1521 = vmatpush.bf16.msra.mxu3 %v10193_v53 }
 0x145   :  { %1121 = vmatpush.bf16.msra.mxu0 %v14854_v14  ;;  %v838_v57 = vpack.c.bf16 %v834_v35, %v834_v35  ;;  %v10053_v35 = vor.u32 %v14889_v33, %v10052_v31  ;;  %v14878_v53 = vld [vmem:[%s22820_s13 + $0xc] sm:$0xf]  ;;  %v14899_v31 = vld [vmem:[%s22820_s13 + $0xac] sm:$0xf0]  ;;  %v14895_v33 = vld [vmem:[%s22820_s13 + $0x94] sm:$0xf] }
 0x146   :  { %v431_v15 = vmul.f32 0.5, %v430_v23  ;;  %v14862_v23 = vld [vmem:[%s22818_s11 + $0x88] sm:$0xff] }
 0x147   :  { %v804_v34 = vpop.f32.mrf.mxu2  ;;  %1134 = vmatpush.bf16.msra.mxu1 %v14862_v23  ;;  %1110 = vmatmul.bf16.vlgmr.msrb.gmra.mxu2 %v838_v57  ;;  %v14923_v57 = vld [vmem:[%s22820_s13 + $0x16c] sm:$0xf0] }
 0x148   :  { %v16411_v16 = vpack.c.bf16 %v431_v15, %v431_v15  ;;  %v16450_v37 = vpop.f32.mrf.mxu1  ;;  %v818_v15 = vadd.f32 %v817_v7, %v485_v6  ;;  %v10161_v6 = vor.u32 %v14910_v59, %v10158_v60  ;;  %v10118_v7 = vld [vmem:[%s22820_s13 + $0xe0] sm:$0xf0]  ;;  %v10198_v59 = vld [vmem:[%s22820_s13 + $0x170] sm:$0xf0]  ;;  %v10197_v60 = vor.u32 %v14923_v57, %v10196_v55  ;;  %v10036_v55 = vld [vmem:[%s22820_s13 + $0x10] sm:$0xf] }
 0x149   :  { %v766_v10 = vadd.f32 %v16450_v37, %v483_v62  ;;  %1122 = vmatpush.bf16.msra.mxu0 %v14853_v26  ;;  %v10149_v62 = vor.u32 %v14913_v50, %v10148_v46  ;;  %v10121_v14 = vor.u32 %v14901_v3, %v10118_v7  ;;  %v14877_v46 = vld [vmem:[%s22820_s13 + $0x4] sm:$0xf]  ;;  %v14882_v50 = vld [vmem:[%s22820_s13 + $0x24] sm:$0xf0]  ;;  %v10164_v3 = vld [vmem:[%s22820_s13 + $0x110] sm:$0xf] }
 0x14a   :  { %2849 = vperm.xlu2 %15841, %v16411_v16   ;;  %2013 = vperm.xlu1 %15839, %v16411_v16   ;;  %v14911_v7 = vld [vmem:[%s22820_s13 + $0x114] sm:$0xf] }
 0x14b   :  { %1177 = vperm.xlu0 %15837, %v16411_v16   ;;  %1522 = vmatpush.bf16.msra.mxu3 %v10161_v6  ;;  %v14879_v57 = vld [vmem:[%s22820_s13 + $0x14] sm:$0xf] }
 0x150   :  { %v767_v52 = vpop.f32.mrf.mxu1 }
 0x151   :  { %v10150_v52 = vld [vmem:[%s22820_s13 + $0x120] sm:$0xf0] }
 0x152   :  { %15842 = vset.pattern.permute.xlu2 %v15869_v17  ;;  %15840 = vset.pattern.permute.xlu1 %v15870_v18  ;;  %v792_v17 = vadd.f32 %v791_v11, %v484_v9  ;;  %v15881_v18 = vmov 15   ;;  %v10153_v63 = vor.u32 %v14909_v51, %v10150_v52  ;;  %v14906_v9 = vld [vmem:[%s22820_s13 + $0xe4] sm:$0xf0] }
 0x153   :  { %15838 = vset.pattern.permute.xlu0 %v15871_v19  ;;  %3267 = vperm.xlu2 %15842, %v16411_v16   ;;  %v779_v19 = vadd.f32 %v16448_v36, %v766_v10  ;;  %v14861_v36 = vld [vmem:[%s22818_s11 + $0x80] sm:$0xff]  ;;  %v806_v10 = vpop.f32.mrf.mxu2 }
 0x154   :  { %2431 = vperm.xlu1 %15840, %v16411_v16   ;;  %1595 = vperm.xlu0 %15838, %v16411_v16   ;;  %v805_v40 = vadd.f32 %v804_v34, %v792_v17  ;;  %v14897_v17 = vld [vmem:[%s22820_s13 + $0x9c] sm:$0xf0]  ;;  %v14885_v34 = vld [vmem:[%s22820_s13 + $0x44] sm:$0xf] }
 0x155   :  { %v835_v43 = vmax.f32 %v779_v19, 0.0  ;;  %1135 = vmatpush.bf16.msra.mxu1 %v14861_v36  ;;  %v10054_v36 = vld [vmem:[%s22820_s13 + $0x60] sm:$0xf0] }
 0x156   :  { %v836_v54 = vmax.f32 %v805_v40, 0.0  ;;  %v10057_v39 = vor.u32 %v14885_v34, %v10054_v36  ;;  %v10102_v34 = vld [vmem:[%s22820_s13 + $0xb0] sm:$0xf0]  ;;  %v14900_v36 = vld [vmem:[%s22820_s13 + $0xb4] sm:$0xf0] }
 0x158   :  { %v830_v8 = vpop.f32.mrf.mxu1  ;;  %v840_v4 = vpack.c.bf16 %v836_v54, %v836_v54  ;;  %v10030_v54 = vld [vmem:[%s22820_s13 + $0x28] sm:$0xf0] }
 0x159   :  { %v831_v37 = vadd.f32 %v830_v8, %v818_v15  ;;  %1508 = vmatpush.bf16.msrb.mxu1 %v10189_v49  ;;  %v10124_v8 = vld [vmem:[%s22820_s13 + $0xc8] sm:$0xf]  ;;  %v10033_v56 = vor.u32 %v14878_v53, %v10030_v54 }
 0x15a   :  { %v10125_v23 = vor.u32 %v14906_v9, %v10124_v8  ;;  %1136 = vmatmul.bf16.vlgmr.msra.gmra.mxu1 %v840_v4  ;;  %v10028_v49 = vld [vmem:[%s22820_s13 + $0x8] sm:$0xf]  ;;  %v14915_v4 = vld [vmem:[%s22820_s13 + $0x12c] sm:$0xf0]  ;;  %v10166_v8 = vld [vmem:[%s22820_s13 + $0x130] sm:$0xf0] }
 0x15b   :  { %15844 = vset.pattern.permute.xlu2 %v15872_v25  ;;  %v15882_v25 = vmov 14   ;;  %v10029_v52 = vor.u32 %v14882_v50, %v10028_v49  ;;  %v10172_v9 = vld [vmem:[%s22820_s13 + $0x118] sm:$0xf]  ;;  %v10165_v10 = vor.u32 %v14915_v4, %v10164_v3  ;;  %v14888_v50 = vld [vmem:[%s22820_s13 + $0x5c] sm:$0xf] }
 0x15c   :  { %15843 = vset.pattern.permute.xlu1 %v15873_v28  ;;  %15845 = vset.pattern.permute.xlu0 %v15874_v29  ;;  %v14921_v28 = vld [vmem:[%s22820_s13 + $0x15c] sm:$0xf0]  ;;  %v14917_v29 = vld [vmem:[%s22820_s13 + $0x144] sm:$0xf]  ;;  %v14892_v49 = vld [vmem:[%s22820_s13 + $0x74] sm:$0xf0] }
 0x15d   :  { %4103 = vperm.xlu2 %15844, %v16411_v16   ;;  %3685 = vperm.xlu1 %15843, %v16411_v16   ;;  %v10185_v48 = vor.u32 %v14917_v29, %v10182_v30  ;;  %v10094_v29 = vld [vmem:[%s22820_s13 + $0xa8] sm:$0xf0]  ;;  %v15883_v3 = vmov 839922192  }
 0x15e   :  { %4521 = vperm.xlu0 %15845, %v16411_v16   ;;  %1509 = vmatpush.bf16.msrb.mxu1 %v10157_v0  ;;  %v14920_v0 = vld [vmem:[%s22820_s13 + $0x15c] sm:$0xf]  ;;  %v1181_v4 = vunpack.c.l.s4 %v15883_v3  ;;  %v10303_v3 = vld [vmem:[%s22820_s13 + $0x1e0] sm:$0xf0] }
 0x15f   :  { %1495 = vmatpush.bf16.msrb.mxu0 %v10185_v48  ;;  %v10022_v48 = vld [vmem:[%s22820_s13 + $0x20] sm:$0xf0]  ;;  %v10209_v6 = vor.u32 %v14920_v0, %v10206_v2 }
 0x160   :  { %v10025_v51 = vor.u32 %v14877_v46, %v10022_v48  ;;  %v10070_v46 = vld [vmem:[%s22820_s13 + $0x70] sm:$0xf0] }
 0x162   :  { %1510 = vmatpush.bf16.msrb.mxu1 %v10125_v23 }
 0x163   :  { %1496 = vmatpush.bf16.msrb.mxu0 %v10153_v63  ;;  %v14924_v63 = vld [vmem:[%s22820_s13 + $0x174] sm:$0xf0] }
 0x165   :  { %15847 = vset.pattern.permute.xlu2 %v15875_v41  ;;  %15846 = vset.pattern.permute.xlu1 %v15876_v42  ;;  %v819_v41 = vpop.f32.mrf.mxu3  ;;  %v832_v42 = vpop.f32.mrf.mxu1 }
 0x166   :  { %15850 = vset.pattern.permute.xlu0 %v15877_v45  ;;  %5357 = vperm.xlu2 %15847, %v16411_v16   ;;  %v10181_v45 = vor.u32 %v14921_v28, %v10180_v27  ;;  %v14894_v28 = vld [vmem:[%s22820_s13 + $0x8c] sm:$0xf] }
 0x167   :  { %4939 = vperm.xlu1 %15846, %v16411_v16   ;;  %6611 = vperm.xlu0 %15850, %v16411_v16   ;;  %v10097_v30 = vor.u32 %v14894_v28, %v10094_v29  ;;  %v14886_v41 = vld [vmem:[%s22820_s13 + $0x4c] sm:$0xf] }
 0x168   :  { %1482 = vmatpush.bf16.msra.mxu2 %v10181_v45  ;;  %1497 = vmatpush.bf16.msrb.mxu0 %v10121_v14  ;;  %v10062_v42 = vld [vmem:[%s22820_s13 + $0x68] sm:$0xf0]  ;;  %v14881_v45 = vld [vmem:[%s22820_s13 + $0x1c] sm:$0xf0] }
 0x169   :  { %v10021_v47 = vor.u32 %v14881_v45, %v10020_v44  ;;  %v14891_v44 = vld [vmem:[%s22820_s13 + $0x6c] sm:$0xf0]  ;;  %v14887_v45 = vld [vmem:[%s22820_s13 + $0x54] sm:$0xf] }
 0x16c   :  { %1483 = vmatpush.bf16.msra.mxu2 %v10149_v62  ;;  %v10204_v62 = vld [vmem:[%s22820_s13 + $0x158] sm:$0xf] }
 0x16d   :  { %v10205_v1 = vor.u32 %v14924_v63, %v10204_v62  ;;  %v14880_v62 = vld [vmem:[%s22820_s13 + $0x1c] sm:$0xf] }
 0x16e   :  { %15849 = vset.pattern.permute.xlu2 %v15878_v58  ;;  %v837_v58 = vmax.f32 %v831_v37, 0.0  ;;  %v10060_v37 = vld [vmem:[%s22820_s13 + $0x48] sm:$0xf]  ;;  %v10046_v63 = vld [vmem:[%s22820_s13 + $0x38] sm:$0xf0] }
 0x16f   :  { %15848 = vset.pattern.permute.xlu1 %v15879_v61  ;;  %6193 = vperm.xlu2 %15849, %v16411_v16   ;;  %v839_v61 = vpack.c.bf16 %v835_v43, %v835_v43  ;;  %v10061_v40 = vor.u32 %v14890_v38, %v10060_v37  ;;  %v10065_v43 = vor.u32 %v14886_v41, %v10062_v42  ;;  %v14896_v38 = vld [vmem:[%s22820_s13 + $0x9c] sm:$0xf] }
 0x170   :  { %5775 = vperm.xlu1 %15848, %v16411_v16   ;;  %15854 = vset.pattern.permute.xlu0 %v15880_v22  ;;  %v841_v11 = vpack.c.bf16 %v837_v58, %v837_v58  ;;  %v14919_v58 = vld [vmem:[%s22820_s13 + $0x154] sm:$0xf]  ;;  %v10049_v2 = vor.u32 %v14880_v62, %v10046_v63  ;;  %v10301_v62 = vld [vmem:[%s22820_s13 + $0x1c0] sm:$0xf] }
 0x171   :  { %1123 = vmatmul.bf16.vlgmr.msra.gmra.mxu0 %v839_v61  ;;  %1484 = vmatpush.bf16.msra.mxu2 %v10117_v13  ;;  %v10201_v61 = vor.u32 %v14919_v58, %v10198_v59  ;;  %v10169_v13 = vor.u32 %v14911_v7, %v10166_v8  ;;  %v10038_v58 = vld [vmem:[%s22820_s13 + $0x30] sm:$0xf0]  ;;  %v10044_v59 = vld [vmem:[%s22820_s13 + $0x18] sm:$0xf]  ;;  %v16835_v7 = vunpack.c.0.s8 %v1181_v4  ;;  %v14937_v63 = vld [vmem:[%s22820_s13 + $0x1dc] sm:$0xf0] }
 0x172   :  { %1149 = vmatmul.bf16.vlgmr.msrb.gmra.mxu3 %v841_v11  ;;  %v14916_v11 = vld [vmem:[%s22820_s13 + $0x134] sm:$0xf0]  ;;  %v10041_v0 = vor.u32 %v14879_v57, %v10038_v58  ;;  %v14946_v57 = vld [vmem:[%s22820_s13 + $0x224] sm:$0xf0]  ;;  %v14942_v58 = vld [vmem:[%s22820_s13 + $0x20c] sm:$0xf] }
 0x173   :  { %v10173_v14 = vor.u32 %v14916_v11, %v10172_v9  ;;  %v10309_v4 = vld [vmem:[%s22820_s13 + $0x1c8] sm:$0xf] }
 0x177   :  { %15852 = vset.pattern.permute.xlu2 %v15881_v18  ;;  %v14893_v18 = vld [vmem:[%s22820_s13 + $0x84] sm:$0xf] }
 0x178   :  { %15851 = vset.pattern.permute.xlu1 %v15882_v25  ;;  %7447 = vperm.xlu2 %15852, %v16411_v16   ;;  %v14898_v25 = vld [vmem:[%s22820_s13 + $0xa4] sm:$0xf0]  ;;  %v10089_v26 = vor.u32 %v14893_v18, %v10086_v20  ;;  %v10134_v18 = vld [vmem:[%s22820_s13 + $0xf0] sm:$0xf0]  ;;  %v14908_v20 = vld [vmem:[%s22820_s13 + $0xf4] sm:$0xf0] }
 0x179   :  { %7029 = vperm.xlu1 %15851, %v16411_v16   ;;  %v10093_v27 = vor.u32 %v14898_v25, %v10092_v24  ;;  %v14904_v25 = vld [vmem:[%s22820_s13 + $0xdc] sm:$0xf] }
 0x17a   :  { %1498 = vmatpush.bf16.msrb.mxu0 %v10089_v26  ;;  %v10142_v26 = vld [vmem:[%s22820_s13 + $0xf8] sm:$0xf0] }
 0x17b   :  { %1511 = vmatpush.bf16.msrb.mxu1 %v10093_v27  ;;  %v10145_v29 = vor.u32 %v14904_v25, %v10142_v26  ;;  %v10397_v25 = vld [vmem:[%s22820_s13 + $0x280] sm:$0xf] }
 0x17c   :  { %v14961_v26 = vld [vmem:[%s22820_s13 + $0x29c] sm:$0xf0] }
 0x17e   :  { %1499 = vmatpush.bf16.msrb.mxu0 %v10057_v39  ;;  %v10110_v39 = vld [vmem:[%s22820_s13 + $0xb8] sm:$0xf0] }
 0x17f   :  { %1512 = vmatpush.bf16.msrb.mxu1 %v10061_v40  ;;  %v10105_v40 = vor.u32 %v14895_v33, %v10102_v34  ;;  %v10113_v42 = vor.u32 %v14896_v38, %v10110_v39  ;;  %v14962_v33 = vld [vmem:[%s22820_s13 + $0x2a4] sm:$0xf0]  ;;  %v14958_v34 = vld [vmem:[%s22820_s13 + $0x28c] sm:$0xf]  ;;  %v10365_v38 = vld [vmem:[%s22820_s13 + $0x240] sm:$0xf] }
 0x180   :  { %v14953_v39 = vld [vmem:[%s22820_s13 + $0x25c] sm:$0xf0] }
 0x181   :  { %15853 = vset.pattern.permute.xlu1 %v15880_v22  ;;  %v14902_v22 = vld [vmem:[%s22820_s13 + $0xcc] sm:$0xf] }
 0x182   :  { %7865 = vperm.xlu1 %15853, %v16411_v16   ;;  %v10129_v15 = vor.u32 %v14902_v22, %v10126_v12  ;;  %v10084_v16 = vld [vmem:[%s22820_s13 + $0x80] sm:$0xf]  ;;  %1500 = vmatpush.bf16.msrb.mxu0 %v10025_v51  ;;  %v14912_v22 = vld [vmem:[%s22820_s13 + $0x11c] sm:$0xf] }
 0x183   :  { %v10085_v19 = vor.u32 %v14897_v17, %v10084_v16  ;;  %1513 = vmatpush.bf16.msrb.mxu1 %v10029_v52  ;;  %v10174_v12 = vld [vmem:[%s22820_s13 + $0x138] sm:$0xf0]  ;;  %v14907_v16 = vld [vmem:[%s22820_s13 + $0xec] sm:$0xf0]  ;;  %v14903_v17 = vld [vmem:[%s22820_s13 + $0xd4] sm:$0xf]  ;;  %v10073_v52 = vor.u32 %v14887_v45, %v10070_v46 }
 0x184   :  { %1523 = vmatpush.bf16.msra.mxu3 %v10129_v15  ;;  %v10177_v23 = vor.u32 %v14912_v22, %v10174_v12  ;;  %v10132_v15 = vld [vmem:[%s22820_s13 + $0xd0] sm:$0xf]  ;;  %v10137_v27 = vor.u32 %v14903_v17, %v10134_v18  ;;  %v10078_v51 = vld [vmem:[%s22820_s13 + $0x78] sm:$0xf0]  ;;  %v10429_v22 = vld [vmem:[%s22820_s13 + $0x2c0] sm:$0xf] }
 0x185   :  { %1485 = vmatpush.bf16.msra.mxu2 %v10085_v19  ;;  %v10140_v19 = vld [vmem:[%s22820_s13 + $0xd8] sm:$0xf]  ;;  %v10133_v24 = vor.u32 %v14907_v16, %v10132_v15  ;;  %v10081_v54 = vor.u32 %v14888_v50, %v10078_v51  ;;  %v14969_v12 = vld [vmem:[%s22820_s13 + $0x2dc] sm:$0xf0]  ;;  %v14970_v16 = vld [vmem:[%s22820_s13 + $0x2e4] sm:$0xf0] }
 0x186   :  { %1547 = vmatpush.bf16.msra.mxu0 %v10201_v61  ;;  %v10141_v28 = vor.u32 %v14908_v20, %v10140_v19  ;;  %v14884_v61 = vld [vmem:[%s22820_s13 + $0x34] sm:$0xf0]  ;;  %v14966_v17 = vld [vmem:[%s22820_s13 + $0x2cc] sm:$0xf]  ;;  %v10430_v20 = vor.u32 %v14969_v12, %v10429_v22  ;;  %v14954_v45 = vld [vmem:[%s22820_s13 + $0x264] sm:$0xf0]  ;;  %v10302_v22 = vor.u32 %v14937_v63, %v10301_v62 }
 0x187   :  { %1560 = vmatpush.bf16.msra.mxu1 %v10205_v1  ;;  %v10045_v1 = vor.u32 %v14884_v61, %v10044_v59  ;;  %v10439_v18 = vld [vmem:[%s22820_s13 + $0x2e8] sm:$0xf0]  ;;  %v10333_v50 = vld [vmem:[%s22820_s13 + $0x200] sm:$0xf]  ;;  %v14952_v62 = vld [vmem:[%s22820_s13 + $0x25c] sm:$0xf] }
 0x188   :  { %1524 = vmatpush.bf16.msra.mxu3 %v10097_v30  ;;  %v10100_v30 = vld [vmem:[%s22820_s13 + $0x90] sm:$0xf]  ;;  %v14950_v46 = vld [vmem:[%s22820_s13 + $0x24c] sm:$0xf]  ;;  %v14945_v51 = vld [vmem:[%s22820_s13 + $0x21c] sm:$0xf0] }
 0x189   :  { %1486 = vmatpush.bf16.msra.mxu2 %v10053_v35  ;;  %v10108_v35 = vld [vmem:[%s22820_s13 + $0x98] sm:$0xf]  ;;  %v10101_v37 = vor.u32 %v14899_v31, %v10100_v30  ;;  %v10399_v30 = vld [vmem:[%s22820_s13 + $0x2a0] sm:$0xf0]  ;;  %v10405_v31 = vld [vmem:[%s22820_s13 + $0x288] sm:$0xf] }
 0x18a   :  { %1548 = vmatpush.bf16.msra.mxu0 %v10169_v13  ;;  %v10109_v41 = vor.u32 %v14900_v36, %v10108_v35  ;;  %v14965_v13 = vld [vmem:[%s22820_s13 + $0x2c4] sm:$0xf]  ;;  %v10407_v35 = vld [vmem:[%s22820_s13 + $0x2a8] sm:$0xf0]  ;;  %v10398_v36 = vor.u32 %v14961_v26, %v10397_v25  ;;  %v10445_v25 = vld [vmem:[%s22820_s13 + $0x2d0] sm:$0xf] }
 0x18b   :  { %1561 = vmatpush.bf16.msra.mxu1 %v10173_v14  ;;  %v10431_v14 = vld [vmem:[%s22820_s13 + $0x2e0] sm:$0xf0]  ;;  %v10343_v59 = vld [vmem:[%s22820_s13 + $0x228] sm:$0xf0]  ;;  %v14971_v26 = vld [vmem:[%s22820_s13 + $0x2ec] sm:$0xf0] }
 0x18c   :  { %1525 = vmatpush.bf16.msra.mxu3 %v10065_v43  ;;  %v10068_v43 = vld [vmem:[%s22820_s13 + $0x50] sm:$0xf]  ;;  %v10391_v63 = vld [vmem:[%s22820_s13 + $0x278] sm:$0xf0] }
 0x18d   :  { %1487 = vmatpush.bf16.msra.mxu2 %v10021_v47  ;;  %v10076_v47 = vld [vmem:[%s22820_s13 + $0x58] sm:$0xf]  ;;  %v10069_v48 = vor.u32 %v14891_v44, %v10068_v43  ;;  %v10367_v43 = vld [vmem:[%s22820_s13 + $0x260] sm:$0xf0]  ;;  %v10373_v44 = vld [vmem:[%s22820_s13 + $0x248] sm:$0xf] }
 0x18e   :  { %1549 = vmatpush.bf16.msra.mxu0 %v10137_v27  ;;  %v10077_v53 = vor.u32 %v14892_v49, %v10076_v47  ;;  %v10375_v47 = vld [vmem:[%s22820_s13 + $0x268] sm:$0xf0] }
 0x18f   :  { %1562 = vmatpush.bf16.msra.mxu1 %v10141_v28  ;;  %v10442_v28 = vor.u32 %v14966_v17, %v10439_v18  ;;  %v10277_v17 = vld [vmem:[%s22820_s13 + $0x188] sm:$0xf] }
 0x190   :  { %1526 = vmatpush.bf16.msra.mxu3 %v10033_v56  ;;  %v14883_v56 = vld [vmem:[%s22820_s13 + $0x2c] sm:$0xf0]  ;;  %v14930_v18 = vld [vmem:[%s22820_s13 + $0x1a4] sm:$0xf0] }
 0x191   :  { %1534 = vmatpush.bf16.msrb.mxu2 %v10197_v60  ;;  %v10037_v60 = vor.u32 %v14883_v56, %v10036_v55  ;;  %v10335_v55 = vld [vmem:[%s22820_s13 + $0x220] sm:$0xf0]  ;;  %v10341_v56 = vld [vmem:[%s22820_s13 + $0x208] sm:$0xf] }
 0x192   :  { %1550 = vmatpush.bf16.msra.mxu0 %v10105_v40  ;;  %v10406_v40 = vor.u32 %v14962_v33, %v10405_v31 }
 0x193   :  { %1563 = vmatpush.bf16.msra.mxu1 %v10109_v41  ;;  %v10410_v41 = vor.u32 %v14958_v34, %v10407_v35  ;;  %v14968_v34 = vld [vmem:[%s22820_s13 + $0x2dc] sm:$0xf] }
 0x194   :  { %1573 = vmatpush.bf16.msrb.mxu3 %v10209_v6  ;;  %v16833_v6 = vld [vmem:[%s22822_s2] sm:$0xff]   ;;  %v10455_v35 = vld [vmem:[%s22820_s13 + $0x2f8] sm:$0xf0] }
 0x195   :  { %1535 = vmatpush.bf16.msrb.mxu2 %v10165_v10  ;;  %v1184_v9 = vunpack.c.l.bf16 %v16833_v6 }
 0x196   :  { %1551 = vmatpush.bf16.msra.mxu0 %v10073_v52  ;;  %v10374_v52 = vor.u32 %v14954_v45, %v10373_v44  ;;  %v10458_v44 = vor.u32 %v14968_v34, %v10455_v35  ;;  %v14959_v45 = vld [vmem:[%s22820_s13 + $0x294] sm:$0xf]  ;;  %v14931_v34 = vld [vmem:[%s22820_s13 + $0x1ac] sm:$0xf0] }
 0x197   :  { %1564 = vmatpush.bf16.msra.mxu1 %v10077_v53  ;;  %v10378_v53 = vor.u32 %v14950_v46, %v10375_v47  ;;  %v10415_v46 = vld [vmem:[%s22820_s13 + $0x2b0] sm:$0xf0]  ;;  %v10421_v47 = vld [vmem:[%s22820_s13 + $0x298] sm:$0xf] }
 0x198   :  { %1574 = vmatpush.bf16.msrb.mxu3 %v10177_v23  ;;  %v10437_v23 = vld [vmem:[%s22820_s13 + $0x2c8] sm:$0xf]  ;;  %v14927_v35 = vld [vmem:[%s22820_s13 + $0x194] sm:$0xf] }
 0x199   :  { %1536 = vmatpush.bf16.msrb.mxu2 %v10133_v24  ;;  %v10434_v24 = vor.u32 %v14965_v13, %v10431_v14  ;;  %v10438_v27 = vor.u32 %v14970_v16, %v10437_v23  ;;  %v14929_v13 = vld [vmem:[%s22820_s13 + $0x19c] sm:$0xf0]  ;;  %v14925_v14 = vld [vmem:[%s22820_s13 + $0x184] sm:$0xf] }
 0x19a   :  { %1552 = vmatpush.bf16.msra.mxu0 %v10041_v0  ;;  %v10342_v0 = vor.u32 %v14946_v57, %v10341_v56  ;;  %v10271_v23 = vld [vmem:[%s22820_s13 + $0x1a0] sm:$0xf0]  ;;  %v14955_v56 = vld [vmem:[%s22820_s13 + $0x26c] sm:$0xf0] }
 0x19b   :  { %1565 = vmatpush.bf16.msra.mxu1 %v10045_v1  ;;  %v10346_v1 = vor.u32 %v14942_v58, %v10343_v59  ;;  %v10274_v33 = vor.u32 %v14925_v14, %v10271_v23  ;;  %v10383_v59 = vld [vmem:[%s22820_s13 + $0x270] sm:$0xf0]  ;;  %v10359_v14 = vld [vmem:[%s22820_s13 + $0x238] sm:$0xf0] }
 0x19c   :  { %1575 = vmatpush.bf16.msrb.mxu3 %v10145_v29  ;;  %v14957_v29 = vld [vmem:[%s22820_s13 + $0x284] sm:$0xf] }
 0x19d   :  { %1537 = vmatpush.bf16.msrb.mxu2 %v10101_v37  ;;  %v10402_v37 = vor.u32 %v14957_v29, %v10399_v30  ;;  %v10447_v29 = vld [vmem:[%s22820_s13 + $0x2f0] sm:$0xf0]  ;;  %v10453_v30 = vld [vmem:[%s22820_s13 + $0x2d8] sm:$0xf] }
 0x1a0   :  { %1576 = vmatpush.bf16.msrb.mxu3 %v10113_v42  ;;  %v14949_v42 = vld [vmem:[%s22820_s13 + $0x244] sm:$0xf] }
 0x1a1   :  { %1538 = vmatpush.bf16.msrb.mxu2 %v10069_v48  ;;  %v10366_v48 = vor.u32 %v14953_v39, %v10365_v38  ;;  %v10370_v49 = vor.u32 %v14949_v42, %v10367_v43  ;;  %v10446_v39 = vor.u32 %v14971_v26, %v10445_v25  ;;  %v14963_v42 = vld [vmem:[%s22820_s13 + $0x2ac] sm:$0xf0]  ;;  %v14935_v25 = vld [vmem:[%s22820_s13 + $0x1d4] sm:$0xf] }
 0x1a2   :  { %v10319_v26 = vld [vmem:[%s22820_s13 + $0x1f0] sm:$0xf0] }
 0x1a4   :  { %1577 = vmatpush.bf16.msrb.mxu3 %v10081_v54  ;;  %v14941_v54 = vld [vmem:[%s22820_s13 + $0x204] sm:$0xf] }
 0x1a5   :  { %1539 = vmatpush.bf16.msrb.mxu2 %v10037_v60  ;;  %v10334_v60 = vor.u32 %v14945_v51, %v10333_v50  ;;  %v10338_v61 = vor.u32 %v14941_v54, %v10335_v55  ;;  %v10423_v50 = vld [vmem:[%s22820_s13 + $0x2b8] sm:$0xf0]  ;;  %v1602_v51 = vunpack.c.h.bf16 %v16833_v6  ;;  %v10418_v54 = vor.u32 %v14959_v45, %v10415_v46  ;;  %v10381_v55 = vld [vmem:[%s22820_s13 + $0x250] sm:$0xf]  ;;  %v14951_v6 = vld [vmem:[%s22820_s13 + $0x254] sm:$0xf] }
 0x1a6   :  { %v15013_v45 = vld [vmem:[%s22820_s13 + $0x444] sm:$0xf] }
 0x1a7   :  { %v10680_v46 = vld [vmem:[%s22820_s13 + $0x460] sm:$0xf0] }
 0x1a8   :  { %1578 = vmatpush.bf16.msrb.mxu3 %v10049_v2  ;;  %v14933_v2 = vld [vmem:[%s22820_s13 + $0x1c4] sm:$0xf] }
 0x1a9   :  { %v10306_v12 = vor.u32 %v14933_v2, %v10303_v3  ;;  %v10386_v2 = vor.u32 %v14951_v6, %v10383_v59  ;;  %v10349_v3 = vld [vmem:[%s22820_s13 + $0x210] sm:$0xf] }
 0x1bd   :  { %v1178_v8 = vpop.permute.xlu0 %1177 }
 0x1be   :  { %v1183_v10 = vperm.slane %v1178_v8, %v16835_v7  ;;  %v14938_v8 = vld [vmem:[%s22820_s13 + $0x1e4] sm:$0xf0] }
 0x1c0   :  { %v1185_v11 = vunpack.c.l.bf16 %v1183_v10  ;;  %v10311_v10 = vld [vmem:[%s22820_s13 + $0x1e8] sm:$0xf0] }
 0x1c2   :  { %v1186_v15 = vmul.f32 %v1185_v11, %v1184_v9  ;;  %v14934_v9 = vld [vmem:[%s22820_s13 + $0x1cc] sm:$0xf]  ;;  %v10269_v11 = vld [vmem:[%s22820_s13 + $0x180] sm:$0xf] }
 0x1c3   :  { %v10314_v16 = vor.u32 %v14934_v9, %v10311_v10  ;;  %v10270_v31 = vor.u32 %v14929_v13, %v10269_v11  ;;  %v10394_v9 = vor.u32 %v14952_v62, %v10391_v63  ;;  %v14943_v10 = vld [vmem:[%s22820_s13 + $0x214] sm:$0xf]  ;;  %v14944_v13 = vld [vmem:[%s22820_s13 + $0x21c] sm:$0xf]  ;;  %v10654_v62 = vld [vmem:[%s22820_s13 + $0x408] sm:$0xf] }
 0x1c4   :  { %v16863_v19 = vpack.c.bf16 %v1186_v15, %v1186_v15  ;;  %v10310_v15 = vor.u32 %v14938_v8, %v10309_v4  ;;  %v14947_v4 = vld [vmem:[%s22820_s13 + $0x22c] sm:$0xf0]  ;;  %v10351_v11 = vld [vmem:[%s22820_s13 + $0x230] sm:$0xf0]  ;;  %v15010_v63 = vld [vmem:[%s22820_s13 + $0x424] sm:$0xf0] }
 0x1c6   :  { %10210 = vmatmul.msk.bf16.vlgmr.msra.gmra.mxu2 %vm1476_vm1, %v16863_v19  ;;  %10211 = vmatmul.msk.bf16.vlgmr.msrb.gmra.mxu0 %vm1476_vm1, %v16863_v19 }
 0x1c7   :  { %10212 = vmatmul.msk.bf16.vlgmr.msrb.gmra.mxu1 %vm1476_vm1, %v16863_v19  ;;  %10213 = vmatmul.msk.bf16.vlgmr.msra.gmra.mxu3 %vm1476_vm1, %v16863_v19 }
 0x1c8   :  { %1900 = vmatpush.bf16.msra.mxu2 %v10430_v20  ;;  %1913 = vmatpush.bf16.msrb.mxu0 %v10434_v24  ;;  %v14926_v20 = vld [vmem:[%s22820_s13 + $0x18c] sm:$0xf] }
 0x1c9   :  { %1926 = vmatpush.bf16.msrb.mxu1 %v10438_v27  ;;  %1939 = vmatpush.bf16.msra.mxu3 %v10442_v28  ;;  %v10279_v24 = vld [vmem:[%s22820_s13 + $0x1a8] sm:$0xf0]  ;;  %v1596_v27 = vpop.permute.xlu0 %1595  ;;  %v14967_v28 = vld [vmem:[%s22820_s13 + $0x2d4] sm:$0xf] }
 0x1ca   :  { %v1601_v38 = vperm.slane %v1596_v27, %v16835_v7  ;;  %v10325_v27 = vld [vmem:[%s22820_s13 + $0x1d8] sm:$0xf] }
 0x1cc   :  { %1901 = vmatpush.bf16.msra.mxu2 %v10398_v36  ;;  %1914 = vmatpush.bf16.msrb.mxu0 %v10402_v37  ;;  %v10278_v36 = vor.u32 %v14930_v18, %v10277_v17  ;;  %v10282_v37 = vor.u32 %v14926_v20, %v10279_v24  ;;  %v10317_v17 = vld [vmem:[%s22820_s13 + $0x1d0] sm:$0xf]  ;;  %v10362_v24 = vor.u32 %v14944_v13, %v10359_v14  ;;  %v15002_v13 = vld [vmem:[%s22820_s13 + $0x3e4] sm:$0xf0]  ;;  %v14998_v14 = vld [vmem:[%s22820_s13 + $0x3cc] sm:$0xf] }
 0x1cd   :  { %1927 = vmatpush.bf16.msrb.mxu1 %v10406_v40  ;;  %1940 = vmatpush.bf16.msra.mxu3 %v10410_v41  ;;  %v10450_v40 = vor.u32 %v14967_v28, %v10447_v29  ;;  %v10413_v41 = vld [vmem:[%s22820_s13 + $0x290] sm:$0xf]  ;;  %v14940_v28 = vld [vmem:[%s22820_s13 + $0x1f4] sm:$0xf0]  ;;  %v14936_v29 = vld [vmem:[%s22820_s13 + $0x1dc] sm:$0xf] }
 0x1ce   :  { %v14939_v18 = vld [vmem:[%s22820_s13 + $0x1ec] sm:$0xf0] }
 0x1d0   :  { %1902 = vmatpush.bf16.msra.mxu2 %v10366_v48  ;;  %1915 = vmatpush.bf16.msrb.mxu0 %v10370_v49  ;;  %v14964_v48 = vld [vmem:[%s22820_s13 + $0x2b4] sm:$0xf0]  ;;  %v14960_v49 = vld [vmem:[%s22820_s13 + $0x29c] sm:$0xf] }
 0x1d1   :  { %1928 = vmatpush.bf16.msrb.mxu1 %v10374_v52  ;;  %1941 = vmatpush.bf16.msra.mxu3 %v10378_v53  ;;  %v1603_v52 = vunpack.c.l.bf16 %v1601_v38  ;;  %v10414_v53 = vor.u32 %v14963_v42, %v10413_v41  ;;  %v10422_v57 = vor.u32 %v14964_v48, %v10421_v47  ;;  %v10426_v58 = vor.u32 %v14960_v49, %v10423_v50  ;;  %v14928_v41 = vld [vmem:[%s22820_s13 + $0x19c] sm:$0xf]  ;;  %v10686_v47 = vld [vmem:[%s22820_s13 + $0x448] sm:$0xf] }
 0x1d2   :  { %v10295_v42 = vld [vmem:[%s22820_s13 + $0x1b8] sm:$0xf0]  ;;  %v15018_v50 = vld [vmem:[%s22820_s13 + $0x464] sm:$0xf0] }
 0x1d3   :  { %v10687_v6 = vor.u32 %v15018_v50, %v10686_v47  ;;  %v14973_v50 = vld [vmem:[%s22820_s13 + $0x304] sm:$0xf] }
 0x1d4   :  { %1903 = vmatpush.bf16.msra.mxu2 %v10334_v60  ;;  %1916 = vmatpush.bf16.msrb.mxu0 %v10338_v61  ;;  %v10389_v60 = vld [vmem:[%s22820_s13 + $0x258] sm:$0xf] }
 0x1d5   :  { %1929 = vmatpush.bf16.msrb.mxu1 %v10342_v0  ;;  %1942 = vmatpush.bf16.msra.mxu3 %v10346_v1  ;;  %v14956_v61 = vld [vmem:[%s22820_s13 + $0x274] sm:$0xf0]  ;;  %v1604_v0 = vmul.f32 %v1603_v52, %v1602_v51  ;;  %v10382_v1 = vor.u32 %v14955_v56, %v10381_v55  ;;  %v15014_v51 = vld [vmem:[%s22820_s13 + $0x44c] sm:$0xf]  ;;  %v10683_v56 = vor.u32 %v15013_v45, %v10680_v46  ;;  %v10518_v46 = vld [vmem:[%s22820_s13 + $0x300] sm:$0xf] }
 0x1d6   :  { %10214 = vmatmul.msk.bf16.vlgmr.msrb.gmra.mxu2 %vm1476_vm1, %v16863_v19  ;;  %10215 = vmatmul.msk.bf16.vlgmr.msra.gmra.mxu0 %vm1476_vm1, %v16863_v19  ;;  %v10390_v8 = vor.u32 %v14956_v61, %v10389_v60  ;;  %v10688_v52 = vld [vmem:[%s22820_s13 + $0x468] sm:$0xf0]  ;;  %v15005_v60 = vld [vmem:[%s22820_s13 + $0x404] sm:$0xf] }
 0x1d7   :  { %10216 = vmatmul.msk.bf16.vlgmr.msra.gmra.mxu1 %vm1476_vm1, %v16863_v19  ;;  %10217 = vmatmul.msk.bf16.vlgmr.msrb.gmra.mxu3 %vm1476_vm1, %v16863_v19  ;;  %v14972_v19 = vld [vmem:[%s22820_s13 + $0x2f4] sm:$0xf0]  ;;  %v17099_v23 = vpack.c.bf16 %v1604_v0, %v1604_v0  ;;  %v10691_v59 = vor.u32 %v15014_v51, %v10688_v52  ;;  %v10648_v61 = vld [vmem:[%s22820_s13 + $0x420] sm:$0xf0]  ;;  %v15006_v0 = vld [vmem:[%s22820_s13 + $0x40c] sm:$0xf] }
 0x1d8   :  { %1904 = vmatpush.bf16.msra.mxu2 %v10302_v22  ;;  %1917 = vmatpush.bf16.msrb.mxu0 %v10306_v12  ;;  %v10454_v43 = vor.u32 %v14972_v19, %v10453_v30  ;;  %v10357_v22 = vld [vmem:[%s22820_s13 + $0x218] sm:$0xf]  ;;  %v10327_v30 = vld [vmem:[%s22820_s13 + $0x1f8] sm:$0xf0]  ;;  %v10322_v19 = vor.u32 %v14935_v25, %v10319_v26  ;;  %v14989_v26 = vld [vmem:[%s22820_s13 + $0x384] sm:$0xf] }
 0x1d9   :  { %1930 = vmatpush.bf16.msrb.mxu1 %v10310_v15  ;;  %1943 = vmatpush.bf16.msra.mxu3 %v10314_v16  ;;  %v14948_v12 = vld [vmem:[%s22820_s13 + $0x234] sm:$0xf0]  ;;  %v10350_v15 = vor.u32 %v14947_v4, %v10349_v3  ;;  %v10354_v16 = vor.u32 %v14943_v10, %v10351_v11  ;;  %v10330_v38 = vor.u32 %v14936_v29, %v10327_v30  ;;  %v10614_v4 = vld [vmem:[%s22820_s13 + $0x3c0] sm:$0xf]  ;;  %v14997_v11 = vld [vmem:[%s22820_s13 + $0x3c4] sm:$0xf] }
 0x1da   :  { %v10358_v20 = vor.u32 %v14948_v12, %v10357_v22  ;;  %v10651_v3 = vor.u32 %v15005_v60, %v10648_v61  ;;  %v10616_v22 = vld [vmem:[%s22820_s13 + $0x3e0] sm:$0xf0]  ;;  %v10622_v12 = vld [vmem:[%s22820_s13 + $0x3c8] sm:$0xf]  ;;  %v14990_v30 = vld [vmem:[%s22820_s13 + $0x38c] sm:$0xf] }
 0x1db   :  { %v14994_v29 = vld [vmem:[%s22820_s13 + $0x3a4] sm:$0xf0]  ;;  %v10520_v51 = vld [vmem:[%s22820_s13 + $0x320] sm:$0xf0]  ;;  %v10694_v60 = vld [vmem:[%s22820_s13 + $0x450] sm:$0xf] }
 0x1dc   :  { %1905 = vmatpush.bf16.msra.mxu2 %v10270_v31  ;;  %1918 = vmatpush.bf16.msrb.mxu0 %v10274_v33  ;;  %v10285_v31 = vld [vmem:[%s22820_s13 + $0x190] sm:$0xf]  ;;  %v10318_v33 = vor.u32 %v14939_v18, %v10317_v17  ;;  %v10619_v17 = vor.u32 %v14997_v11, %v10616_v22  ;;  %v10582_v18 = vld [vmem:[%s22820_s13 + $0x380] sm:$0xf]  ;;  %v17289_v45 = vld [vmem:[%s22822_s2 + $0x8] sm:$0xff]   ;;  %v1111_v22 = vpop.f32.mrf.mxu2 }
 0x1dd   :  { %1931 = vmatpush.bf16.msrb.mxu1 %v10278_v36  ;;  %1944 = vmatpush.bf16.msra.mxu3 %v10282_v37  ;;  %v10287_v36 = vld [vmem:[%s22820_s13 + $0x1b0] sm:$0xf0]  ;;  %v10326_v37 = vor.u32 %v14940_v28, %v10325_v27  ;;  %v10286_v48 = vor.u32 %v14931_v34, %v10285_v31  ;;  %v10584_v27 = vld [vmem:[%s22820_s13 + $0x3a0] sm:$0xf0]  ;;  %v10590_v28 = vld [vmem:[%s22820_s13 + $0x388] sm:$0xf] }
 0x1de   :  { %v10290_v49 = vor.u32 %v14927_v35, %v10287_v36  ;;  %v10592_v31 = vld [vmem:[%s22820_s13 + $0x3a8] sm:$0xf0]  ;;  %v10587_v34 = vor.u32 %v14989_v26, %v10584_v27  ;;  %v10550_v35 = vld [vmem:[%s22820_s13 + $0x340] sm:$0xf]  ;;  %v15019_v61 = vld [vmem:[%s22820_s13 + $0x46c] sm:$0xf0] }
 0x1df   :  { %v14985_v36 = vld [vmem:[%s22820_s13 + $0x35c] sm:$0xf0]  ;;  %v15012_v27 = vld [vmem:[%s22820_s13 + $0x434] sm:$0xf0] }
 0x1e0   :  { %1952 = vmatpush.bf16.msrb.mxu2 %v10446_v39  ;;  %1965 = vmatpush.bf16.msra.mxu0 %v10450_v40  ;;  %v10293_v39 = vld [vmem:[%s22820_s13 + $0x198] sm:$0xf]  ;;  %v10551_v47 = vor.u32 %v14985_v36, %v10550_v35  ;;  %v15860_v11 = vld [vmem:[%s22821_s12] ss:$0 sm:$0xff]  ;;  %s22848_s12 = sld [smem:[#allocation8_spill]] }
 0x1e1   :  { %1978 = vmatpush.bf16.msra.mxu1 %v10454_v43  ;;  %1991 = vmatpush.bf16.msrb.mxu3 %v10458_v44  ;;  %v14932_v40 = vld [vmem:[%s22820_s13 + $0x1b4] sm:$0xf0]  ;;  %v10678_v43 = vld [vmem:[%s22820_s13 + $0x440] sm:$0xf]  ;;  %v1112_v26 = vadd.f32 %v15860_v11, %v1111_v22  ;;  %v14984_v22 = vld [vmem:[%s22820_s13 + $0x35c] sm:$0xf] }
 0x1e2   :  { %v15017_v44 = vld [vmem:[%s22820_s13 + $0x45c] sm:$0xf0]  ;;  %v14988_v11 = vld [vmem:[%s22820_s13 + $0x374] sm:$0xf0] }
 0x1e3   :  { %v10679_v55 = vor.u32 %v15017_v44, %v10678_v43  ;;  %v14982_v43 = vld [vmem:[%s22820_s13 + $0x34c] sm:$0xf] }
 0x1e4   :  { %1953 = vmatpush.bf16.msrb.mxu2 %v10414_v53  ;;  %1966 = vmatpush.bf16.msra.mxu0 %v10418_v54  ;;  %v10294_v53 = vor.u32 %v14932_v40, %v10293_v39  ;;  %v10298_v54 = vor.u32 %v14928_v41, %v10295_v42  ;;  %v10552_v39 = vld [vmem:[%s22820_s13 + $0x360] sm:$0xf0]  ;;  %v10558_v40 = vld [vmem:[%s22820_s13 + $0x348] sm:$0xf]  ;;  %v10560_v44 = vld [vmem:[%s22820_s13 + $0x368] sm:$0xf0] }
 0x1e5   :  { %1979 = vmatpush.bf16.msra.mxu1 %v10422_v57  ;;  %1992 = vmatpush.bf16.msrb.mxu3 %v10426_v58  ;;  %v10646_v57 = vld [vmem:[%s22820_s13 + $0x400] sm:$0xf]  ;;  %v14986_v42 = vld [vmem:[%s22820_s13 + $0x364] sm:$0xf0] }
 0x1e6   :  { %10459 = vmatmul.msk.bf16.vlgmr.msra.gmra.mxu2 %vm1476_vm1, %v17099_v23  ;;  %10460 = vmatmul.msk.bf16.vlgmr.msrb.gmra.mxu0 %vm1476_vm1, %v17099_v23  ;;  %v15009_v58 = vld [vmem:[%s22820_s13 + $0x41c] sm:$0xf0] }
 0x1e7   :  { %10461 = vmatmul.msk.bf16.vlgmr.msrb.gmra.mxu1 %vm1476_vm1, %v17099_v23  ;;  %10462 = vmatmul.msk.bf16.vlgmr.msra.gmra.mxu3 %vm1476_vm1, %v17099_v23 }
 0x1e8   :  { %1954 = vmatpush.bf16.msrb.mxu2 %v10382_v1  ;;  %1967 = vmatpush.bf16.msra.mxu0 %v10386_v2  ;;  %v10656_v1 = vld [vmem:[%s22820_s13 + $0x428] sm:$0xf0]  ;;  %v10647_v2 = vor.u32 %v15009_v58, %v10646_v57  ;;  %v2020_v58 = vunpack.c.l.bf16 %v17289_v45 }
 0x1e9   :  { %1980 = vmatpush.bf16.msra.mxu1 %v10390_v8  ;;  %1993 = vmatpush.bf16.msrb.mxu3 %v10394_v9  ;;  %v15001_v8 = vld [vmem:[%s22820_s13 + $0x3dc] sm:$0xf0]  ;;  %v10655_v9 = vor.u32 %v15010_v63, %v10654_v62  ;;  %v10659_v10 = vor.u32 %v15006_v0, %v10656_v1  ;;  %v14974_v57 = vld [vmem:[%s22820_s13 + $0x30c] sm:$0xf]  ;;  %v15015_v62 = vld [vmem:[%s22820_s13 + $0x454] sm:$0xf] }
 0x1ea   :  { %v10696_v63 = vld [vmem:[%s22820_s13 + $0x470] sm:$0xf0]  ;;  %v10702_v0 = vld [vmem:[%s22820_s13 + $0x458] sm:$0xf] }
 0x1ec   :  { %1955 = vmatpush.bf16.msrb.mxu2 %v10350_v15  ;;  %1968 = vmatpush.bf16.msra.mxu0 %v10354_v16  ;;  %v10624_v15 = vld [vmem:[%s22820_s13 + $0x3e8] sm:$0xf0]  ;;  %v10615_v16 = vor.u32 %v15001_v8, %v10614_v4  ;;  %v15016_v4 = vld [vmem:[%s22820_s13 + $0x45c] sm:$0xf] }
 0x1ed   :  { %1981 = vmatpush.bf16.msra.mxu1 %v10358_v20  ;;  %1994 = vmatpush.bf16.msrb.mxu3 %v10362_v24  ;;  %v14993_v20 = vld [vmem:[%s22820_s13 + $0x39c] sm:$0xf0]  ;;  %v10623_v24 = vor.u32 %v15002_v13, %v10622_v12  ;;  %v10627_v25 = vor.u32 %v14998_v14, %v10624_v15  ;;  %v10704_v8 = vld [vmem:[%s22820_s13 + $0x478] sm:$0xf0]  ;;  %v10695_v13 = vor.u32 %v15019_v61, %v10694_v60  ;;  %v10662_v15 = vld [vmem:[%s22820_s13 + $0x410] sm:$0xf] }
 0x1ee   :  { %v1124_v52 = vpop.f32.mrf.mxu0  ;;  %v10699_v14 = vor.u32 %v15015_v62, %v10696_v63  ;;  %v10608_v60 = vld [vmem:[%s22820_s13 + $0x3b8] sm:$0xf0] }
 0x1f0   :  { %1956 = vmatpush.bf16.msrb.mxu2 %v10318_v33  ;;  %1969 = vmatpush.bf16.msra.mxu0 %v10322_v19  ;;  %v2014_v33 = vpop.permute.xlu1 %2013  ;;  %v10583_v19 = vor.u32 %v14993_v20, %v10582_v18  ;;  %v10707_v18 = vor.u32 %v15016_v4, %v10704_v8  ;;  %v15007_v20 = vld [vmem:[%s22820_s13 + $0x414] sm:$0xf] }
 0x1f1   :  { %1982 = vmatpush.bf16.msra.mxu1 %v10326_v37  ;;  %1995 = vmatpush.bf16.msrb.mxu3 %v10330_v38  ;;  %v10591_v37 = vor.u32 %v14994_v29, %v10590_v28  ;;  %v10595_v38 = vor.u32 %v14990_v30, %v10592_v31  ;;  %v2019_v41 = vperm.slane %v2014_v33, %v16835_v7  ;;  %v15008_v28 = vld [vmem:[%s22820_s13 + $0x41c] sm:$0xf]  ;;  %v1137_v33 = vpop.f32.mrf.mxu1  ;;  %v14983_v8 = vld [vmem:[%s22820_s13 + $0x354] sm:$0xf] }
 0x1f2   :  { %v10672_v29 = vld [vmem:[%s22820_s13 + $0x438] sm:$0xf0]  ;;  %v1125_v31 = vadd.f32 %v1124_v52, %v1112_v26  ;;  %v10598_v52 = vld [vmem:[%s22820_s13 + $0x390] sm:$0xf]  ;;  %v14980_v26 = vld [vmem:[%s22820_s13 + $0x334] sm:$0xf0] }
 0x1f4   :  { %1957 = vmatpush.bf16.msrb.mxu2 %v10286_v48  ;;  %1970 = vmatpush.bf16.msra.mxu0 %v10290_v49  ;;  %v14977_v49 = vld [vmem:[%s22820_s13 + $0x31c] sm:$0xf0] }
 0x1f5   :  { %1983 = vmatpush.bf16.msra.mxu1 %v10294_v53  ;;  %1996 = vmatpush.bf16.msrb.mxu3 %v10298_v54  ;;  %v10559_v53 = vor.u32 %v14986_v42, %v10558_v40  ;;  %v10563_v54 = vor.u32 %v14982_v43, %v10560_v44  ;;  %v10519_v1 = vor.u32 %v14977_v49, %v10518_v46  ;;  %v14999_v40 = vld [vmem:[%s22820_s13 + $0x3d4] sm:$0xf]  ;;  %v10638_v42 = vld [vmem:[%s22820_s13 + $0x3d8] sm:$0xf]  ;;  %v15000_v46 = vld [vmem:[%s22820_s13 + $0x3dc] sm:$0xf]  ;;  %v1113_v49 = vpop.f32.mrf.mxu2 }
 0x1f6   :  { %v1126_v30 = vpop.f32.mrf.mxu0  ;;  %v1138_v43 = vadd.f32 %v1137_v33, %v1125_v31  ;;  %v15004_v44 = vld [vmem:[%s22820_s13 + $0x3f4] sm:$0xf0]  ;;  %v15061_v31 = vld [vmem:[%s22820_s13 + $0x5c4] sm:$0xf] }
 0x1f7   :  { %10463 = vmatmul.msk.bf16.vlgmr.msrb.gmra.mxu2 %vm1476_vm1, %v17099_v23  ;;  %10464 = vmatmul.msk.bf16.vlgmr.msra.gmra.mxu0 %vm1476_vm1, %v17099_v23  ;;  %v15065_v30 = vld [vmem:[%s22820_s13 + $0x5dc] sm:$0xf0]  ;;  %v10929_v33 = vld [vmem:[%s22820_s13 + $0x5e0] sm:$0xf0] }
 0x1f8   :  { %2318 = vmatpush.bf16.msra.mxu2 %v10679_v55  ;;  %2331 = vmatpush.bf16.msrb.mxu0 %v10683_v56  ;;  %v10526_v55 = vld [vmem:[%s22820_s13 + $0x308] sm:$0xf]  ;;  %v15053_v49 = vld [vmem:[%s22820_s13 + $0x584] sm:$0xf] }
 0x1f9   :  { %2344 = vmatpush.bf16.msrb.mxu1 %v10687_v6  ;;  %2357 = vmatpush.bf16.msra.mxu3 %v10691_v59  ;;  %v14978_v56 = vld [vmem:[%s22820_s13 + $0x324] sm:$0xf0]  ;;  %v2021_v6 = vunpack.c.l.bf16 %v2019_v41  ;;  %v10528_v59 = vld [vmem:[%s22820_s13 + $0x328] sm:$0xf0]  ;;  %v10632_v41 = vld [vmem:[%s22820_s13 + $0x3f0] sm:$0xf0]  ;;  %v1139_v62 = vpop.f32.mrf.mxu1 }
 0x1fa   :  { %10465 = vmatmul.msk.bf16.vlgmr.msra.gmra.mxu1 %vm1476_vm1, %v17099_v23  ;;  %10466 = vmatmul.msk.bf16.vlgmr.msrb.gmra.mxu3 %vm1476_vm1, %v17099_v23  ;;  %v14981_v23 = vld [vmem:[%s22820_s13 + $0x344] sm:$0xf]  ;;  %v10871_v62 = vld [vmem:[%s22820_s13 + $0x548] sm:$0xf] }
 0x1fb   :  { %v10555_v48 = vor.u32 %v14981_v23, %v10552_v39  ;;  %v2022_v12 = vmul.f32 %v2021_v6, %v2020_v58  ;;  %v10675_v39 = vor.u32 %v15008_v28, %v10672_v29  ;;  %v10606_v58 = vld [vmem:[%s22820_s13 + $0x398] sm:$0xf]  ;;  %v10544_v28 = vld [vmem:[%s22820_s13 + $0x338] sm:$0xf0]  ;;  %v10927_v29 = vld [vmem:[%s22820_s13 + $0x5c0] sm:$0xf] }
 0x1fc   :  { %2319 = vmatpush.bf16.msra.mxu2 %v10647_v2  ;;  %2332 = vmatpush.bf16.msrb.mxu0 %v10651_v3  ;;  %v10523_v2 = vor.u32 %v14973_v50, %v10520_v51  ;;  %v15020_v3 = vld [vmem:[%s22820_s13 + $0x474] sm:$0xf0]  ;;  %v10635_v51 = vor.u32 %v14999_v40, %v10632_v41  ;;  %v10928_v41 = vor.u32 %v15065_v30, %v10927_v29  ;;  %v15034_v30 = vld [vmem:[%s22820_s13 + $0x4e4] sm:$0xf0] }
 0x1fd   :  { %2345 = vmatpush.bf16.msrb.mxu1 %v10655_v9  ;;  %2358 = vmatpush.bf16.msra.mxu3 %v10659_v10  ;;  %v10527_v9 = vor.u32 %v14978_v56, %v10526_v55  ;;  %v10531_v10 = vor.u32 %v14974_v57, %v10528_v59  ;;  %v14991_v56 = vld [vmem:[%s22820_s13 + $0x394] sm:$0xf]  ;;  %v14996_v6 = vld [vmem:[%s22820_s13 + $0x3b4] sm:$0xf0]  ;;  %v14992_v59 = vld [vmem:[%s22820_s13 + $0x39c] sm:$0xf] }
 0x1fe   :  { %v10600_v57 = vld [vmem:[%s22820_s13 + $0x3b0] sm:$0xf0]  ;;  %v10611_v4 = vor.u32 %v14992_v59, %v10608_v60  ;;  %v15045_v60 = vld [vmem:[%s22820_s13 + $0x544] sm:$0xf] }
 0x200   :  { %2320 = vmatpush.bf16.msra.mxu2 %v10615_v16  ;;  %2333 = vmatpush.bf16.msrb.mxu0 %v10619_v17  ;;  %v15011_v16 = vld [vmem:[%s22820_s13 + $0x42c] sm:$0xf0]  ;;  %v10703_v17 = vor.u32 %v15020_v3, %v10702_v0  ;;  %v10603_v0 = vor.u32 %v14991_v56, %v10600_v57  ;;  %v10607_v3 = vor.u32 %v14996_v6, %v10606_v58  ;;  %v10863_v57 = vld [vmem:[%s22820_s13 + $0x540] sm:$0xf] }
 0x201   :  { %2346 = vmatpush.bf16.msrb.mxu1 %v10623_v24  ;;  %2359 = vmatpush.bf16.msra.mxu3 %v10627_v25  ;;  %v10664_v24 = vld [vmem:[%s22820_s13 + $0x430] sm:$0xf0]  ;;  %v10670_v25 = vld [vmem:[%s22820_s13 + $0x418] sm:$0xf]  ;;  %v10663_v35 = vor.u32 %v15011_v16, %v10662_v15  ;;  %v14979_v16 = vld [vmem:[%s22820_s13 + $0x32c] sm:$0xf0] }
 0x202   :  { %v10667_v36 = vor.u32 %v15007_v20, %v10664_v24  ;;  %v10671_v23 = vor.u32 %v15012_v27, %v10670_v25  ;;  %v10542_v25 = vld [vmem:[%s22820_s13 + $0x318] sm:$0xf]  ;;  %v14976_v27 = vld [vmem:[%s22820_s13 + $0x31c] sm:$0xf]  ;;  %v15049_v58 = vld [vmem:[%s22820_s13 + $0x55c] sm:$0xf0] }
 0x203   :  { %v10547_v40 = vor.u32 %v14976_v27, %v10544_v28  ;;  %v10801_v27 = vld [vmem:[%s22820_s13 + $0x4e0] sm:$0xf0]  ;;  %v10807_v28 = vld [vmem:[%s22820_s13 + $0x4c8] sm:$0xf] }
 0x204   :  { %2321 = vmatpush.bf16.msra.mxu2 %v10583_v19  ;;  %2334 = vmatpush.bf16.msrb.mxu0 %v10587_v34  ;;  %v1150_v19 = vpop.f32.mrf.mxu3  ;;  %v17367_v34 = vpack.c.bf16 %v2022_v12, %v2022_v12  ;;  %v10576_v12 = vld [vmem:[%s22820_s13 + $0x378] sm:$0xf0] }
 0x205   :  { %2347 = vmatpush.bf16.msrb.mxu1 %v10591_v37  ;;  %2360 = vmatpush.bf16.msra.mxu3 %v10595_v38  ;;  %v10630_v37 = vld [vmem:[%s22820_s13 + $0x3d0] sm:$0xf]  ;;  %v10579_v24 = vor.u32 %v14984_v22, %v10576_v12  ;;  %v10839_v22 = vld [vmem:[%s22820_s13 + $0x508] sm:$0xf] }
 0x206   :  { %v15003_v38 = vld [vmem:[%s22820_s13 + $0x3ec] sm:$0xf0]  ;;  %v15042_v12 = vld [vmem:[%s22820_s13 + $0x524] sm:$0xf0] }
 0x207   :  { %v10631_v50 = vor.u32 %v15003_v38, %v10630_v37  ;;  %v15066_v37 = vld [vmem:[%s22820_s13 + $0x5e4] sm:$0xf0]  ;;  %v15062_v38 = vld [vmem:[%s22820_s13 + $0x5cc] sm:$0xf] }
 0x208   :  { %2322 = vmatpush.bf16.msra.mxu2 %v10551_v47  ;;  %2335 = vmatpush.bf16.msrb.mxu0 %v10555_v48  ;;  %v10640_v47 = vld [vmem:[%s22820_s13 + $0x3f8] sm:$0xf0]  ;;  %v17401_v48 = vadd.f32 %v1150_v19, %v1138_v43  ;;  %v10935_v19 = vld [vmem:[%s22820_s13 + $0x5c8] sm:$0xf]  ;;  %v10895_v43 = vld [vmem:[%s22820_s13 + $0x580] sm:$0xf] }
 0x209   :  { %2348 = vmatpush.bf16.msrb.mxu1 %v10559_v53  ;;  %2361 = vmatpush.bf16.msra.mxu3 %v10563_v54  ;;  %v14995_v53 = vld [vmem:[%s22820_s13 + $0x3ac] sm:$0xf0]  ;;  %v10639_v54 = vor.u32 %v15004_v44, %v10638_v42  ;;  %v10643_v55 = vor.u32 %v15000_v46, %v10640_v47  ;;  %v10932_v42 = vor.u32 %v15061_v31, %v10929_v33  ;;  %v15057_v44 = vld [vmem:[%s22820_s13 + $0x59c] sm:$0xf0]  ;;  %v15030_v31 = vld [vmem:[%s22820_s13 + $0x4cc] sm:$0xf] }
 0x20a   :  { %v10599_v63 = vor.u32 %v14995_v53, %v10598_v52  ;;  %v10936_v46 = vor.u32 %v15066_v37, %v10935_v19  ;;  %v15058_v52 = vld [vmem:[%s22820_s13 + $0x5a4] sm:$0xf0]  ;;  %v15054_v53 = vld [vmem:[%s22820_s13 + $0x58c] sm:$0xf]  ;;  %v10767_v19 = vld [vmem:[%s22820_s13 + $0x480] sm:$0xf] }
 0x20b   :  { %v10809_v33 = vld [vmem:[%s22820_s13 + $0x4e8] sm:$0xf0]  ;;  %v15025_v37 = vld [vmem:[%s22820_s13 + $0x49c] sm:$0xf0] }
 0x20c   :  { %2323 = vmatpush.bf16.msra.mxu2 %v10519_v1  ;;  %2336 = vmatpush.bf16.msrb.mxu0 %v10523_v2  ;;  %v1152_v61 = vpop.f32.mrf.mxu3  ;;  %v10566_v1 = vld [vmem:[%s22820_s13 + $0x350] sm:$0xf] }
 0x20d   :  { %2349 = vmatpush.bf16.msrb.mxu1 %v10527_v9  ;;  %2362 = vmatpush.bf16.msra.mxu3 %v10531_v10  ;;  %v14987_v2 = vld [vmem:[%s22820_s13 + $0x36c] sm:$0xf0]  ;;  %v10568_v9 = vld [vmem:[%s22820_s13 + $0x370] sm:$0xf0]  ;;  %v10574_v10 = vld [vmem:[%s22820_s13 + $0x358] sm:$0xf] }
 0x20e   :  { %v10571_v15 = vor.u32 %v14983_v8, %v10568_v9  ;;  %v10575_v20 = vor.u32 %v14988_v11, %v10574_v10  ;;  %v10865_v61 = vld [vmem:[%s22820_s13 + $0x560] sm:$0xf0]  ;;  %v15041_v8 = vld [vmem:[%s22820_s13 + $0x51c] sm:$0xf0] }
 0x20f   :  { %10708 = vmatmul.msk.bf16.vlgmr.msra.gmra.mxu2 %vm1476_vm1, %v17367_v34  ;;  %10709 = vmatmul.msk.bf16.vlgmr.msrb.gmra.mxu0 %vm1476_vm1, %v17367_v34  ;;  %v10833_v11 = vld [vmem:[%s22820_s13 + $0x520] sm:$0xf0] }
 0x210   :  { %2370 = vmatpush.bf16.msrb.mxu2 %v10695_v13  ;;  %2383 = vmatpush.bf16.msra.mxu0 %v10699_v14  ;;  %v10534_v13 = vld [vmem:[%s22820_s13 + $0x310] sm:$0xf]  ;;  %v10567_v14 = vor.u32 %v14987_v2, %v10566_v1  ;;  %v10873_v1 = vld [vmem:[%s22820_s13 + $0x568] sm:$0xf0]  ;;  %v10864_v2 = vor.u32 %v15049_v58, %v10863_v57  ;;  %v10953_v57 = vld [vmem:[%s22820_s13 + $0x5f8] sm:$0xf0] }
 0x211   :  { %2396 = vmatpush.bf16.msra.mxu1 %v10703_v17  ;;  %2409 = vmatpush.bf16.msrb.mxu3 %v10707_v18  ;;  %v14975_v17 = vld [vmem:[%s22820_s13 + $0x314] sm:$0xf] }
 0x212   :  { %10710 = vmatmul.msk.bf16.vlgmr.msrb.gmra.mxu1 %vm1476_vm1, %v17367_v34  ;;  %10711 = vmatmul.msk.bf16.vlgmr.msra.gmra.mxu3 %vm1476_vm1, %v17367_v34  ;;  %v10536_v18 = vld [vmem:[%s22820_s13 + $0x330] sm:$0xf0] }
 0x214   :  { %2371 = vmatpush.bf16.msrb.mxu2 %v10663_v35  ;;  %2384 = vmatpush.bf16.msra.mxu0 %v10667_v36  ;;  %v10535_v35 = vor.u32 %v14979_v16, %v10534_v13  ;;  %v10539_v36 = vor.u32 %v14975_v17, %v10536_v18  ;;  %v15038_v13 = vld [vmem:[%s22820_s13 + $0x50c] sm:$0xf]  ;;  %v10799_v18 = vld [vmem:[%s22820_s13 + $0x4c0] sm:$0xf] }
 0x215   :  { %2397 = vmatpush.bf16.msra.mxu1 %v10671_v23  ;;  %2410 = vmatpush.bf16.msrb.mxu3 %v10675_v39  ;;  %v10937_v23 = vld [vmem:[%s22820_s13 + $0x5e8] sm:$0xf0]  ;;  %v10543_v39 = vor.u32 %v14980_v26, %v10542_v25  ;;  %v15029_v26 = vld [vmem:[%s22820_s13 + $0x4c4] sm:$0xf] }
 0x216   :  { %v10940_v47 = vor.u32 %v15062_v38, %v10937_v23  ;;  %v15021_v38 = vld [vmem:[%s22820_s13 + $0x484] sm:$0xf] }
 0x217   :  { %v10769_v23 = vld [vmem:[%s22820_s13 + $0x4a0] sm:$0xf0] }
 0x218   :  { %2372 = vmatpush.bf16.msrb.mxu2 %v10631_v50  ;;  %2385 = vmatpush.bf16.msra.mxu0 %v10635_v51  ;;  %v10897_v50 = vld [vmem:[%s22820_s13 + $0x5a0] sm:$0xf0]  ;;  %v10903_v51 = vld [vmem:[%s22820_s13 + $0x588] sm:$0xf] }
 0x219   :  { %2398 = vmatpush.bf16.msra.mxu1 %v10639_v54  ;;  %2411 = vmatpush.bf16.msrb.mxu3 %v10643_v55  ;;  %v10905_v54 = vld [vmem:[%s22820_s13 + $0x5a8] sm:$0xf0]  ;;  %v10896_v55 = vor.u32 %v15057_v44, %v10895_v43  ;;  %v10900_v56 = vor.u32 %v15053_v49, %v10897_v50  ;;  %v10904_v6 = vor.u32 %v15058_v52, %v10903_v51  ;;  %v2438_v44 = vunpack.c.h.bf16 %v17289_v45  ;;  %v10943_v49 = vld [vmem:[%s22820_s13 + $0x5d0] sm:$0xf]  ;;  %v15063_v51 = vld [vmem:[%s22820_s13 + $0x5d4] sm:$0xf] }
 0x21a   :  { %v10908_v59 = vor.u32 %v15054_v53, %v10905_v54  ;;  %v15022_v43 = vld [vmem:[%s22820_s13 + $0x48c] sm:$0xf]  ;;  %v15067_v50 = vld [vmem:[%s22820_s13 + $0x5ec] sm:$0xf0]  ;;  %v10945_v45 = vld [vmem:[%s22820_s13 + $0x5f0] sm:$0xf0]  ;;  %v10768_v53 = vor.u32 %v15025_v37, %v10767_v19  ;;  %v10772_v54 = vor.u32 %v15021_v38, %v10769_v23 }
 0x21b   :  { %v10951_v52 = vld [vmem:[%s22820_s13 + $0x5d8] sm:$0xf]  ;;  %v10849_v19 = vld [vmem:[%s22820_s13 + $0x530] sm:$0xf0]  ;;  %v15040_v37 = vld [vmem:[%s22820_s13 + $0x51c] sm:$0xf] }
 0x21c   :  { %2373 = vmatpush.bf16.msrb.mxu2 %v10599_v63  ;;  %2386 = vmatpush.bf16.msra.mxu0 %v10603_v0  ;;  %v15050_v63 = vld [vmem:[%s22820_s13 + $0x564] sm:$0xf0]  ;;  %v15046_v0 = vld [vmem:[%s22820_s13 + $0x54c] sm:$0xf]  ;;  %v10857_v38 = vld [vmem:[%s22820_s13 + $0x538] sm:$0xf0] }
 0x21d   :  { %2399 = vmatpush.bf16.msra.mxu1 %v10607_v3  ;;  %2412 = vmatpush.bf16.msrb.mxu3 %v10611_v4  ;;  %v10868_v3 = vor.u32 %v15045_v60, %v10865_v61  ;;  %v10831_v4 = vld [vmem:[%s22820_s13 + $0x500] sm:$0xf]  ;;  %v10872_v9 = vor.u32 %v15050_v63, %v10871_v62  ;;  %v10876_v10 = vor.u32 %v15046_v0, %v10873_v1  ;;  %v10911_v62 = vld [vmem:[%s22820_s13 + $0x590] sm:$0xf] }
 0x21e   :  { %v10832_v16 = vor.u32 %v15041_v8, %v10831_v4  ;;  %v10944_v60 = vor.u32 %v15067_v50, %v10943_v49  ;;  %v10948_v61 = vor.u32 %v15063_v51, %v10945_v45  ;;  %v15059_v63 = vld [vmem:[%s22820_s13 + $0x5ac] sm:$0xf0]  ;;  %v10919_v4 = vld [vmem:[%s22820_s13 + $0x598] sm:$0xf]  ;;  %v15032_v50 = vld [vmem:[%s22820_s13 + $0x4dc] sm:$0xf] }
 0x21f   :  { %v15060_v8 = vld [vmem:[%s22820_s13 + $0x5b4] sm:$0xf0]  ;;  %v10825_v51 = vld [vmem:[%s22820_s13 + $0x4f8] sm:$0xf0]  ;;  %v10783_v45 = vld [vmem:[%s22820_s13 + $0x490] sm:$0xf] }
 0x220   :  { %2374 = vmatpush.bf16.msrb.mxu2 %v10567_v14  ;;  %2387 = vmatpush.bf16.msra.mxu0 %v10571_v15  ;;  %v10841_v14 = vld [vmem:[%s22820_s13 + $0x528] sm:$0xf0]  ;;  %v2432_v15 = vpop.permute.xlu1 %2431  ;;  %v15036_v49 = vld [vmem:[%s22820_s13 + $0x4f4] sm:$0xf0] }
 0x221   :  { %2400 = vmatpush.bf16.msra.mxu1 %v10575_v20  ;;  %2413 = vmatpush.bf16.msrb.mxu3 %v10579_v24  ;;  %v15033_v20 = vld [vmem:[%s22820_s13 + $0x4dc] sm:$0xf0]  ;;  %v10840_v24 = vor.u32 %v15042_v12, %v10839_v22  ;;  %v10844_v25 = vor.u32 %v15038_v13, %v10841_v14  ;;  %v2437_v29 = vperm.slane %v2432_v15, %v16835_v7  ;;  %v10879_v12 = vld [vmem:[%s22820_s13 + $0x550] sm:$0xf] }
 0x222   :  { %v15051_v13 = vld [vmem:[%s22820_s13 + $0x56c] sm:$0xf0]  ;;  %v10920_v14 = vor.u32 %v15060_v8, %v10919_v4  ;;  %v11184_v4 = vld [vmem:[%s22820_s13 + $0x748] sm:$0xf] }
 0x224   :  { %2375 = vmatpush.bf16.msrb.mxu2 %v10535_v35  ;;  %2388 = vmatpush.bf16.msra.mxu0 %v10539_v36  ;;  %v10800_v35 = vor.u32 %v15033_v20, %v10799_v18  ;;  %v10804_v36 = vor.u32 %v15029_v26, %v10801_v27  ;;  %v10887_v18 = vld [vmem:[%s22820_s13 + $0x558] sm:$0xf]  ;;  %v10880_v26 = vor.u32 %v15051_v13, %v10879_v12 }
 0x225   :  { %2401 = vmatpush.bf16.msra.mxu1 %v10543_v39  ;;  %2414 = vmatpush.bf16.msrb.mxu3 %v10547_v40  ;;  %v10808_v39 = vor.u32 %v15034_v30, %v10807_v28  ;;  %v10812_v40 = vor.u32 %v15030_v31, %v10809_v33  ;;  %v15052_v20 = vld [vmem:[%s22820_s13 + $0x574] sm:$0xf0]  ;;  %v10847_v28 = vld [vmem:[%s22820_s13 + $0x510] sm:$0xf]  ;;  %v15039_v33 = vld [vmem:[%s22820_s13 + $0x514] sm:$0xf] }
 0x226   :  { %v10888_v30 = vor.u32 %v15052_v20, %v10887_v18 }
 0x227   :  { %10712 = vmatmul.msk.bf16.vlgmr.msrb.gmra.mxu2 %vm1476_vm1, %v17367_v34  ;;  %10713 = vmatmul.msk.bf16.vlgmr.msra.gmra.mxu0 %vm1476_vm1, %v17367_v34 }
 0x228   :  { %2736 = vmatpush.bf16.msra.mxu2 %v10928_v41  ;;  %2749 = vmatpush.bf16.msrb.mxu0 %v10932_v42  ;;  %v10775_v41 = vld [vmem:[%s22820_s13 + $0x488] sm:$0xf] }
 0x229   :  { %2762 = vmatpush.bf16.msrb.mxu1 %v10936_v46  ;;  %2775 = vmatpush.bf16.msra.mxu3 %v10940_v47  ;;  %v15026_v42 = vld [vmem:[%s22820_s13 + $0x4a4] sm:$0xf0]  ;;  %v2439_v46 = vunpack.c.l.bf16 %v2437_v29  ;;  %v10777_v47 = vld [vmem:[%s22820_s13 + $0x4a8] sm:$0xf0]  ;;  %v15043_v29 = vld [vmem:[%s22820_s13 + $0x52c] sm:$0xf0] }
 0x22a   :  { %10714 = vmatmul.msk.bf16.vlgmr.msra.gmra.mxu1 %vm1476_vm1, %v17367_v34  ;;  %10715 = vmatmul.msk.bf16.vlgmr.msrb.gmra.mxu3 %vm1476_vm1, %v17367_v34  ;;  %v15037_v34 = vld [vmem:[%s22820_s13 + $0x504] sm:$0xf]  ;;  %v10776_v58 = vor.u32 %v15026_v42, %v10775_v41  ;;  %v10848_v23 = vor.u32 %v15043_v29, %v10847_v28  ;;  %v15035_v41 = vld [vmem:[%s22820_s13 + $0x4ec] sm:$0xf0]  ;;  %v15106_v28 = vld [vmem:[%s22820_s13 + $0x724] sm:$0xf0] }
 0x22b   :  { %v10836_v17 = vor.u32 %v15037_v34, %v10833_v11  ;;  %v10912_v11 = vor.u32 %v15059_v63, %v10911_v62  ;;  %v10793_v63 = vld [vmem:[%s22820_s13 + $0x4b8] sm:$0xf0]  ;;  %v15102_v29 = vld [vmem:[%s22820_s13 + $0x70c] sm:$0xf] }
 0x22c   :  { %2737 = vmatpush.bf16.msra.mxu2 %v10896_v55  ;;  %2750 = vmatpush.bf16.msrb.mxu0 %v10900_v56  ;;  %v15068_v55 = vld [vmem:[%s22820_s13 + $0x5f4] sm:$0xf0]  ;;  %v15064_v56 = vld [vmem:[%s22820_s13 + $0x5dc] sm:$0xf] }
 0x22d   :  { %2763 = vmatpush.bf16.msrb.mxu1 %v10904_v6  ;;  %2776 = vmatpush.bf16.msra.mxu3 %v10908_v59  ;;  %v10780_v6 = vor.u32 %v15022_v43, %v10777_v47  ;;  %v2440_v59 = vmul.f32 %v2439_v46, %v2438_v44  ;;  %v10952_v0 = vor.u32 %v15068_v55, %v10951_v52  ;;  %v15031_v44 = vld [vmem:[%s22820_s13 + $0x4d4] sm:$0xf]  ;;  %v10823_v47 = vld [vmem:[%s22820_s13 + $0x4d8] sm:$0xf] }
 0x22e   :  { %v10956_v1 = vor.u32 %v15064_v56, %v10953_v57  ;;  %v10860_v43 = vor.u32 %v15040_v37, %v10857_v38  ;;  %v10817_v46 = vld [vmem:[%s22820_s13 + $0x4f0] sm:$0xf0]  ;;  %v10824_v57 = vor.u32 %v15036_v49, %v10823_v47  ;;  %v11112_v37 = vld [vmem:[%s22820_s13 + $0x6c0] sm:$0xf] }
 0x22f   :  { %v17677_v34 = vpack.c.bf16 %v2440_v59, %v2440_v59  ;;  %v15023_v55 = vld [vmem:[%s22820_s13 + $0x494] sm:$0xf]  ;;  %v10791_v59 = vld [vmem:[%s22820_s13 + $0x498] sm:$0xf]  ;;  %v15097_v38 = vld [vmem:[%s22820_s13 + $0x6dc] sm:$0xf0] }
 0x230   :  { %2738 = vmatpush.bf16.msra.mxu2 %v10864_v2  ;;  %2751 = vmatpush.bf16.msrb.mxu0 %v10868_v3  ;;  %v15055_v2 = vld [vmem:[%s22820_s13 + $0x594] sm:$0xf]  ;;  %v11113_v47 = vor.u32 %v15097_v38, %v11112_v37  ;;  %v11026_v38 = vld [vmem:[%s22820_s13 + $0x628] sm:$0xf0] }
 0x231   :  { %2764 = vmatpush.bf16.msrb.mxu1 %v10872_v9  ;;  %2777 = vmatpush.bf16.msra.mxu3 %v10876_v10  ;;  %v10913_v3 = vld [vmem:[%s22820_s13 + $0x5b0] sm:$0xf0]  ;;  %v15056_v9 = vld [vmem:[%s22820_s13 + $0x59c] sm:$0xf] }
 0x232   :  { %v10921_v10 = vld [vmem:[%s22820_s13 + $0x5b8] sm:$0xf0]  ;;  %v10916_v22 = vor.u32 %v15055_v2, %v10913_v3  ;;  %v10785_v56 = vld [vmem:[%s22820_s13 + $0x4b0] sm:$0xf0]  ;;  %v15109_v2 = vld [vmem:[%s22820_s13 + $0x744] sm:$0xf] }
 0x233   :  { %v10924_v15 = vor.u32 %v15056_v9, %v10921_v10  ;;  %v11178_v3 = vld [vmem:[%s22820_s13 + $0x760] sm:$0xf0]  ;;  %v10788_v9 = vor.u32 %v15023_v55, %v10785_v56  ;;  %v15114_v10 = vld [vmem:[%s22820_s13 + $0x764] sm:$0xf0] }
 0x234   :  { %2739 = vmatpush.bf16.msra.mxu2 %v10832_v16  ;;  %2752 = vmatpush.bf16.msrb.mxu0 %v10836_v17  ;;  %v15047_v16 = vld [vmem:[%s22820_s13 + $0x554] sm:$0xf]  ;;  %v11185_v18 = vor.u32 %v15114_v10, %v11184_v4  ;;  %v15090_v56 = vld [vmem:[%s22820_s13 + $0x6a4] sm:$0xf0]  ;;  %v11050_v10 = vld [vmem:[%s22820_s13 + $0x660] sm:$0xf0] }
 0x235   :  { %2765 = vmatpush.bf16.msrb.mxu1 %v10840_v24  ;;  %2778 = vmatpush.bf16.msra.mxu3 %v10844_v25  ;;  %v10881_v17 = vld [vmem:[%s22820_s13 + $0x570] sm:$0xf0]  ;;  %v15048_v24 = vld [vmem:[%s22820_s13 + $0x55c] sm:$0xf] }
 0x236   :  { %v10889_v25 = vld [vmem:[%s22820_s13 + $0x578] sm:$0xf0]  ;;  %v10884_v27 = vor.u32 %v15047_v16, %v10881_v17  ;;  %v11144_v16 = vld [vmem:[%s22820_s13 + $0x700] sm:$0xf] }
 0x237   :  { %v10892_v31 = vor.u32 %v15048_v24, %v10889_v25  ;;  %v15105_v17 = vld [vmem:[%s22820_s13 + $0x71c] sm:$0xf0]  ;;  %v15101_v24 = vld [vmem:[%s22820_s13 + $0x704] sm:$0xf] }
 0x238   :  { %2740 = vmatpush.bf16.msra.mxu2 %v10800_v35  ;;  %2753 = vmatpush.bf16.msrb.mxu0 %v10804_v36  ;;  %v10855_v35 = vld [vmem:[%s22820_s13 + $0x518] sm:$0xf]  ;;  %v11146_v25 = vld [vmem:[%s22820_s13 + $0x720] sm:$0xf0] }
 0x239   :  { %2766 = vmatpush.bf16.msrb.mxu1 %v10808_v39  ;;  %2779 = vmatpush.bf16.msra.mxu3 %v10812_v40  ;;  %v15044_v36 = vld [vmem:[%s22820_s13 + $0x534] sm:$0xf0]  ;;  %v10852_v39 = vor.u32 %v15039_v33, %v10849_v19  ;;  %v10815_v40 = vld [vmem:[%s22820_s13 + $0x4d0] sm:$0xf]  ;;  %v11145_v19 = vor.u32 %v15105_v17, %v11144_v16  ;;  %v11016_v16 = vld [vmem:[%s22820_s13 + $0x600] sm:$0xf] }
 0x23a   :  { %v10856_v42 = vor.u32 %v15044_v36, %v10855_v35  ;;  %v10816_v52 = vor.u32 %v15035_v41, %v10815_v40  ;;  %v11149_v35 = vor.u32 %v15101_v24, %v11146_v25  ;;  %v15093_v40 = vld [vmem:[%s22820_s13 + $0x6c4] sm:$0xf] }
 0x23b   :  { %v11114_v41 = vld [vmem:[%s22820_s13 + $0x6e0] sm:$0xf0] }
 0x23c   :  { %2741 = vmatpush.bf16.msra.mxu2 %v10768_v53  ;;  %2754 = vmatpush.bf16.msrb.mxu0 %v10772_v54  ;;  %v10820_v53 = vor.u32 %v15031_v44, %v10817_v46  ;;  %v15027_v54 = vld [vmem:[%s22820_s13 + $0x4ac] sm:$0xf0]  ;;  %v15094_v44 = vld [vmem:[%s22820_s13 + $0x6cc] sm:$0xf]  ;;  %v11117_v49 = vor.u32 %v15093_v40, %v11114_v41  ;;  %v15069_v24 = vld [vmem:[%s22820_s13 + $0x604] sm:$0xf] }
 0x23d   :  { %2767 = vmatpush.bf16.msrb.mxu1 %v10776_v58  ;;  %2780 = vmatpush.bf16.msra.mxu3 %v10780_v6  ;;  %v10828_v58 = vor.u32 %v15032_v50, %v10825_v51  ;;  %v10784_v8 = vor.u32 %v15027_v54, %v10783_v45  ;;  %v11122_v46 = vld [vmem:[%s22820_s13 + $0x6e8] sm:$0xf0]  ;;  %v11080_v50 = vld [vmem:[%s22820_s13 + $0x680] sm:$0xf]  ;;  %v11088_v54 = vld [vmem:[%s22820_s13 + $0x688] sm:$0xf] }
 0x23e   :  { %v15089_v51 = vld [vmem:[%s22820_s13 + $0x69c] sm:$0xf0]  ;;  %v11089_v4 = vor.u32 %v15090_v56, %v11088_v54  ;;  %v11018_v25 = vld [vmem:[%s22820_s13 + $0x620] sm:$0xf0]  ;;  %v15115_v40 = vld [vmem:[%s22820_s13 + $0x76c] sm:$0xf0] }
 0x23f   :  { %10957 = vmatmul.msk.bf16.vlgmr.msra.gmra.mxu2 %vm1476_vm1, %v17677_v34  ;;  %10958 = vmatmul.msk.bf16.vlgmr.msrb.gmra.mxu0 %vm1476_vm1, %v17677_v34  ;;  %v15111_v41 = vld [vmem:[%s22820_s13 + $0x754] sm:$0xf] }
 0x240   :  { %2788 = vmatpush.bf16.msrb.mxu2 %v10944_v60  ;;  %2801 = vmatpush.bf16.msra.mxu0 %v10948_v61  ;;  %v15028_v60 = vld [vmem:[%s22820_s13 + $0x4b4] sm:$0xf0]  ;;  %v15024_v61 = vld [vmem:[%s22820_s13 + $0x49c] sm:$0xf] }
 0x241   :  { %2814 = vmatpush.bf16.msra.mxu1 %v10952_v0  ;;  %2827 = vmatpush.bf16.msrb.mxu3 %v10956_v1  ;;  %v11176_v0 = vld [vmem:[%s22820_s13 + $0x740] sm:$0xf]  ;;  %v10792_v12 = vor.u32 %v15028_v60, %v10791_v59  ;;  %v10796_v13 = vor.u32 %v15024_v61, %v10793_v63  ;;  %v2850_v60 = vpop.permute.xlu2 %2849  ;;  %v11081_v63 = vor.u32 %v15089_v51, %v11080_v50  ;;  %v15112_v50 = vld [vmem:[%s22820_s13 + $0x75c] sm:$0xf] }
 0x242   :  { %10959 = vmatmul.msk.bf16.vlgmr.msrb.gmra.mxu1 %vm1476_vm1, %v17677_v34  ;;  %10960 = vmatmul.msk.bf16.vlgmr.msra.gmra.mxu3 %vm1476_vm1, %v17677_v34  ;;  %v15113_v1 = vld [vmem:[%s22820_s13 + $0x75c] sm:$0xf0]  ;;  %v11202_v51 = vld [vmem:[%s22820_s13 + $0x778] sm:$0xf0] }
 0x243   :  { %v17771_v6 = vpop.f32.mrf.mxu0 }
 0x244   :  { %2789 = vmatpush.bf16.msrb.mxu2 %v10912_v11  ;;  %2802 = vmatpush.bf16.msra.mxu0 %v10916_v22  ;;  %v17782_v62 = vpop.f32.mrf.mxu1  ;;  %v15110_v11 = vld [vmem:[%s22820_s13 + $0x74c] sm:$0xf] }
 0x245   :  { %2815 = vmatpush.bf16.msra.mxu1 %v10920_v14  ;;  %2828 = vmatpush.bf16.msrb.mxu3 %v10924_v15  ;;  %v11186_v22 = vld [vmem:[%s22820_s13 + $0x768] sm:$0xf0]  ;;  %v11177_v14 = vor.u32 %v15113_v1, %v11176_v0  ;;  %v11181_v15 = vor.u32 %v15109_v2, %v11178_v3  ;;  %v11048_v2 = vld [vmem:[%s22820_s13 + $0x640] sm:$0xf] }
 0x246   :  { %v11189_v20 = vor.u32 %v15110_v11, %v11186_v22  ;;  %v15081_v3 = vld [vmem:[%s22820_s13 + $0x65c] sm:$0xf0]  ;;  %v11056_v11 = vld [vmem:[%s22820_s13 + $0x648] sm:$0xf]  ;;  %v2855_v22 = vperm.slane %v2850_v60, %v16835_v7  ;;  %v11205_v60 = vor.u32 %v15112_v50, %v11202_v51  ;;  %v11104_v50 = vld [vmem:[%s22820_s13 + $0x698] sm:$0xf] }
 0x247   :  { %v11049_v17 = vor.u32 %v15081_v3, %v11048_v2  ;;  %v11168_v2 = vld [vmem:[%s22820_s13 + $0x718] sm:$0xf] }
 0x248   :  { %2790 = vmatpush.bf16.msrb.mxu2 %v10880_v26  ;;  %2803 = vmatpush.bf16.msra.mxu0 %v10884_v27  ;;  %v11152_v26 = vld [vmem:[%s22820_s13 + $0x708] sm:$0xf]  ;;  %v2857_v37 = vunpack.c.l.bf16 %v2855_v22  ;;  %v15108_v3 = vld [vmem:[%s22820_s13 + $0x734] sm:$0xf0] }
 0x249   :  { %2816 = vmatpush.bf16.msra.mxu1 %v10888_v30  ;;  %2829 = vmatpush.bf16.msrb.mxu3 %v10892_v31  ;;  %v17826_v27 = vpop.f32.mrf.mxu2  ;;  %v11154_v30 = vld [vmem:[%s22820_s13 + $0x728] sm:$0xf0]  ;;  %v15092_v51 = vld [vmem:[%s22820_s13 + $0x6b4] sm:$0xf0] }
 0x24a   :  { %v17837_v31 = vpop.f32.mrf.mxu3 }
 0x24b   :  { %v1504_v33 = vpop.f32.mrf.mxu0 }
 0x24c   :  { %2791 = vmatpush.bf16.msrb.mxu2 %v10848_v23  ;;  %2804 = vmatpush.bf16.msra.mxu0 %v10852_v39  ;;  %v1517_v36 = vpop.f32.mrf.mxu1  ;;  %v11153_v23 = vor.u32 %v15106_v28, %v11152_v26  ;;  %v11157_v39 = vor.u32 %v15102_v29, %v11154_v30  ;;  %v17944_v26 = vld [vmem:[%s22823_s14] sm:$0xff]  ;;  %v11024_v30 = vld [vmem:[%s22820_s13 + $0x608] sm:$0xf] }
 0x24d   :  { %2817 = vmatpush.bf16.msra.mxu1 %v10856_v42  ;;  %2830 = vmatpush.bf16.msrb.mxu3 %v10860_v43  ;;  %v11120_v42 = vld [vmem:[%s22820_s13 + $0x6c8] sm:$0xf]  ;;  %v1159_v54 = vperm.slane %v17944_v26, 1 }
 0x24e   :  { %v15098_v43 = vld [vmem:[%s22820_s13 + $0x6e4] sm:$0xf0] }
 0x24f   :  { %v11121_v45 = vor.u32 %v15098_v43, %v11120_v42  ;;  %v15074_v33 = vld [vmem:[%s22820_s13 + $0x624] sm:$0xf0]  ;;  %v11194_v42 = vld [vmem:[%s22820_s13 + $0x770] sm:$0xf0]  ;;  %v11200_v43 = vld [vmem:[%s22820_s13 + $0x758] sm:$0xf] }
 0x250   :  { %2792 = vmatpush.bf16.msrb.mxu2 %v10816_v52  ;;  %2805 = vmatpush.bf16.msra.mxu0 %v10820_v53  ;;  %v11125_v52 = vor.u32 %v15094_v44, %v11122_v46  ;;  %v11082_v53 = vld [vmem:[%s22820_s13 + $0x6a0] sm:$0xf0]  ;;  %v11197_v56 = vor.u32 %v15111_v41, %v11194_v42  ;;  %v15091_v42 = vld [vmem:[%s22820_s13 + $0x6ac] sm:$0xf0] }
 0x251   :  { %2818 = vmatpush.bf16.msra.mxu1 %v10824_v57  ;;  %2831 = vmatpush.bf16.msrb.mxu3 %v10828_v58  ;;  %v1491_v55 = vpop.f32.mrf.mxu2  ;;  %v15086_v57 = vld [vmem:[%s22820_s13 + $0x68c] sm:$0xf] }
 0x252   :  { %v11090_v58 = vld [vmem:[%s22820_s13 + $0x6a8] sm:$0xf0]  ;;  %v1530_v59 = vpop.f32.mrf.mxu3 }
 0x253   :  { %v17895_v61 = vpop.f32.mrf.mxu0 }
 0x254   :  { %2793 = vmatpush.bf16.msrb.mxu2 %v10784_v8  ;;  %2806 = vmatpush.bf16.msra.mxu0 %v10788_v9  ;;  %v17897_v1 = vpop.f32.mrf.mxu1  ;;  %v11093_v8 = vor.u32 %v15086_v57, %v11090_v58  ;;  %v15077_v9 = vld [vmem:[%s22820_s13 + $0x644] sm:$0xf]  ;;  %v11160_v57 = vld [vmem:[%s22820_s13 + $0x710] sm:$0xf] }
 0x255   :  { %2819 = vmatpush.bf16.msra.mxu1 %v10792_v12  ;;  %2832 = vmatpush.bf16.msrb.mxu3 %v10796_v13  ;;  %v15082_v12 = vld [vmem:[%s22820_s13 + $0x664] sm:$0xf0]  ;;  %v15078_v13 = vld [vmem:[%s22820_s13 + $0x64c] sm:$0xf]  ;;  %v15107_v58 = vld [vmem:[%s22820_s13 + $0x72c] sm:$0xf0] }
 0x256   :  { %v11057_v28 = vor.u32 %v15082_v12, %v11056_v11  ;;  %v11161_v22 = vor.u32 %v15107_v58, %v11160_v57  ;;  %v11105_v58 = vor.u32 %v15092_v51, %v11104_v50 }
 0x257   :  { %10961 = vmatmul.msk.bf16.vlgmr.msrb.gmra.mxu2 %vm1476_vm1, %v17677_v34  ;;  %10962 = vmatmul.msk.bf16.vlgmr.msra.gmra.mxu0 %vm1476_vm1, %v17677_v34 }
 0x258   :  { %3154 = vmatpush.bf16.msra.mxu2 %v11177_v14  ;;  %3167 = vmatpush.bf16.msrb.mxu0 %v11181_v15  ;;  %v11058_v14 = vld [vmem:[%s22820_s13 + $0x668] sm:$0xf0]  ;;  %v17927_v15 = vld [vmem:[%s22822_s2 + $0x10] sm:$0xff]  }
 0x259   :  { %3180 = vmatpush.bf16.msrb.mxu1 %v11185_v18  ;;  %3193 = vmatpush.bf16.msra.mxu3 %v11189_v20  ;;  %v11053_v18 = vor.u32 %v15077_v9, %v11050_v10  ;;  %v15073_v20 = vld [vmem:[%s22820_s13 + $0x61c] sm:$0xf0]  ;;  %v11061_v29 = vor.u32 %v15078_v13, %v11058_v14  ;;  %v2856_v36 = vunpack.c.l.bf16 %v17927_v15  ;;  %v1160_v9 = vperm.slane %v17944_v26, 2  ;;  %v11128_v14 = vld [vmem:[%s22820_s13 + $0x6d0] sm:$0xf] }
 0x25a   :  { %10963 = vmatmul.msk.bf16.vlgmr.msra.gmra.mxu1 %vm1476_vm1, %v17677_v34  ;;  %10964 = vmatmul.msk.bf16.vlgmr.msrb.gmra.mxu3 %vm1476_vm1, %v17677_v34  ;;  %v15085_v34 = vld [vmem:[%s22820_s13 + $0x684] sm:$0xf]  ;;  %v11017_v46 = vor.u32 %v15073_v20, %v11016_v16  ;;  %v15099_v16 = vld [vmem:[%s22820_s13 + $0x6ec] sm:$0xf0]  ;;  %v15095_v20 = vld [vmem:[%s22820_s13 + $0x6d4] sm:$0xf] }
 0x25b   :  { %v11085_v0 = vor.u32 %v15085_v34, %v11082_v53  ;;  %v1556_v44 = vpop.f32.mrf.mxu0  ;;  %v2858_v53 = vmul.f32 %v2857_v37, %v2856_v36  ;;  %v1161_v37 = vperm.slane %v17944_v26, 3 }
 0x25c   :  { %3155 = vmatpush.bf16.msra.mxu2 %v11145_v19  ;;  %3168 = vmatpush.bf16.msrb.mxu0 %v11149_v35  ;;  %v15070_v19 = vld [vmem:[%s22820_s13 + $0x60c] sm:$0xf]  ;;  %v17955_v35 = vpop.f32.mrf.mxu2 }
 0x25d   :  { %3181 = vmatpush.bf16.msrb.mxu1 %v11153_v23  ;;  %3194 = vmatpush.bf16.msra.mxu3 %v11157_v39  ;;  %v17961_v23 = vpop.f32.mrf.mxu3  ;;  %v11192_v39 = vld [vmem:[%s22820_s13 + $0x750] sm:$0xf]  ;;  %v11029_v34 = vor.u32 %v15070_v19, %v11026_v38  ;;  %v18013_v11 = vpack.c.bf16 %v2858_v53, %v2858_v53  ;;  %v1158_v19 = vperm.slane %v17944_v26, 0  ;;  %v11129_v38 = vor.u32 %v15099_v16, %v11128_v14 }
 0x25e   :  { %v11193_v55 = vor.u32 %v15115_v40, %v11192_v39  ;;  %v1587_v57 = vadd.f32 %v17837_v31, %v1161_v37  ;;  %v11427_v37 = vld [vmem:[%s22820_s13 + $0x8e0] sm:$0xf0] }
 0x260   :  { %3156 = vmatpush.bf16.msra.mxu2 %v11113_v47  ;;  %3169 = vmatpush.bf16.msrb.mxu0 %v11117_v49  ;;  %v11021_v47 = vor.u32 %v15069_v24, %v11018_v25  ;;  %v15116_v49 = vld [vmem:[%s22820_s13 + $0x774] sm:$0xf0]  ;;  %v11130_v24 = vld [vmem:[%s22820_s13 + $0x6f0] sm:$0xf0] }
 0x261   :  { %3182 = vmatpush.bf16.msrb.mxu1 %v11121_v45  ;;  %3195 = vmatpush.bf16.msra.mxu3 %v11125_v52  ;;  %v1569_v45 = vpop.f32.mrf.mxu1  ;;  %v11025_v52 = vor.u32 %v15074_v33, %v11024_v30  ;;  %v11201_v59 = vor.u32 %v15116_v49, %v11200_v43  ;;  %v11136_v25 = vld [vmem:[%s22820_s13 + $0x6d8] sm:$0xf]  ;;  %v15096_v30 = vld [vmem:[%s22820_s13 + $0x6dc] sm:$0xf]  ;;  %v11133_v39 = vor.u32 %v15095_v20, %v11130_v24  ;;  %v11098_v49 = vld [vmem:[%s22820_s13 + $0x6b0] sm:$0xf0] }
 0x262   :  { %v11138_v33 = vld [vmem:[%s22820_s13 + $0x6f8] sm:$0xf0]  ;;  %v11034_v20 = vld [vmem:[%s22820_s13 + $0x630] sm:$0xf0] }
 0x263   :  { %v1920_v36 = vpop.f32.mrf.mxu0  ;;  %v11141_v44 = vor.u32 %v15096_v30, %v11138_v33  ;;  %v15088_v45 = vld [vmem:[%s22820_s13 + $0x69c] sm:$0xf] }
 0x264   :  { %3157 = vmatpush.bf16.msra.mxu2 %v11081_v63  ;;  %3170 = vmatpush.bf16.msrb.mxu0 %v11085_v0  ;;  %v15103_v63 = vld [vmem:[%s22820_s13 + $0x714] sm:$0xf]  ;;  %v1543_v10 = vpop.f32.mrf.mxu2  ;;  %v15072_v30 = vld [vmem:[%s22820_s13 + $0x61c] sm:$0xf] }
 0x265   :  { %3183 = vmatpush.bf16.msrb.mxu1 %v11089_v4  ;;  %3196 = vmatpush.bf16.msra.mxu3 %v11093_v8  ;;  %v11162_v0 = vld [vmem:[%s22820_s13 + $0x730] sm:$0xf0]  ;;  %v15104_v4 = vld [vmem:[%s22820_s13 + $0x71c] sm:$0xf]  ;;  %v1582_v13 = vpop.f32.mrf.mxu3 }
 0x266   :  { %v11170_v8 = vld [vmem:[%s22820_s13 + $0x738] sm:$0xf0]  ;;  %v11165_v12 = vor.u32 %v15103_v63, %v11162_v0  ;;  %v11066_v63 = vld [vmem:[%s22820_s13 + $0x670] sm:$0xf0]  ;;  %v11072_v0 = vld [vmem:[%s22820_s13 + $0x658] sm:$0xf] }
 0x267   :  { %v11042_v33 = vld [vmem:[%s22820_s13 + $0x638] sm:$0xf0] }
 0x268   :  { %3158 = vmatpush.bf16.msra.mxu2 %v11049_v17  ;;  %3171 = vmatpush.bf16.msrb.mxu0 %v11053_v18  ;;  %v11169_v17 = vor.u32 %v15108_v3, %v11168_v2  ;;  %v11173_v18 = vor.u32 %v15104_v4, %v11170_v8  ;;  %v15084_v3 = vld [vmem:[%s22820_s13 + $0x674] sm:$0xf0]  ;;  %v15080_v4 = vld [vmem:[%s22820_s13 + $0x65c] sm:$0xf] }
 0x269   :  { %3184 = vmatpush.bf16.msrb.mxu1 %v11057_v28  ;;  %3197 = vmatpush.bf16.msra.mxu3 %v11061_v29  ;;  %v1585_v28 = vadd.f32 %v17771_v6, %v1159_v54  ;;  %v15100_v29 = vld [vmem:[%s22820_s13 + $0x6f4] sm:$0xf0]  ;;  %v1586_v6 = vadd.f32 %v17782_v62, %v1160_v9  ;;  %v1933_v41 = vpop.f32.mrf.mxu1  ;;  %v11096_v62 = vld [vmem:[%s22820_s13 + $0x690] sm:$0xf]  ;;  %v11074_v8 = vld [vmem:[%s22820_s13 + $0x678] sm:$0xf0]  ;;  %v11073_v24 = vor.u32 %v15084_v3, %v11072_v0 }
 0x26a   :  { %v11137_v43 = vor.u32 %v15100_v29, %v11136_v25  ;;  %v11097_v53 = vor.u32 %v15091_v42, %v11096_v62  ;;  %v1163_v9 = vperm.slane %v17944_v26, 5  ;;  %v11077_v25 = vor.u32 %v15080_v4, %v11074_v8  ;;  %v15076_v29 = vld [vmem:[%s22820_s13 + $0x634] sm:$0xf0]  ;;  %v15162_v62 = vld [vmem:[%s22820_s13 + $0x8e4] sm:$0xf0] }
 0x26b   :  { %v18051_v40 = vadd.f32 %v1920_v36, %v1585_v28  ;;  %v11040_v28 = vld [vmem:[%s22820_s13 + $0x618] sm:$0xf]  ;;  %v15157_v36 = vld [vmem:[%s22820_s13 + $0x8c4] sm:$0xf]  ;;  %v15158_v42 = vld [vmem:[%s22820_s13 + $0x8cc] sm:$0xf] }
 0x26c   :  { %3159 = vmatpush.bf16.msra.mxu2 %v11017_v46  ;;  %3172 = vmatpush.bf16.msrb.mxu0 %v11021_v47  ;;  %v18059_v46 = vadd.f32 %v1933_v41, %v1586_v6  ;;  %v15087_v47 = vld [vmem:[%s22820_s13 + $0x694] sm:$0xf]  ;;  %v11425_v6 = vld [vmem:[%s22820_s13 + $0x8c0] sm:$0xf]  ;;  %v1165_v3 = vperm.slane %v17944_v26, 7 }
 0x26d   :  { %3185 = vmatpush.bf16.msrb.mxu1 %v11025_v52  ;;  %3198 = vmatpush.bf16.msra.mxu3 %v11029_v34  ;;  %v11106_v52 = vld [vmem:[%s22820_s13 + $0x6b8] sm:$0xf0]  ;;  %v1584_v34 = vadd.f32 %v17826_v27, %v1158_v19  ;;  %v11101_v54 = vor.u32 %v15087_v47, %v11098_v49  ;;  %v15079_v27 = vld [vmem:[%s22820_s13 + $0x654] sm:$0xf]  ;;  %v1946_v31 = vpop.f32.mrf.mxu3  ;;  %v15161_v19 = vld [vmem:[%s22820_s13 + $0x8dc] sm:$0xf0]  ;;  %v11041_v47 = vor.u32 %v15076_v29, %v11040_v28 }
 0x26e   :  { %v18108_v10 = vadd.f32 %v1946_v31, %v1587_v57  ;;  %v11069_v14 = vor.u32 %v15079_v27, %v11066_v63  ;;  %v11045_v49 = vor.u32 %v15072_v30, %v11042_v33  ;;  %v11426_v51 = vor.u32 %v15161_v19, %v11425_v6  ;;  %v11395_v57 = vld [vmem:[%s22820_s13 + $0x8a0] sm:$0xf0]  ;;  %v15150_v27 = vld [vmem:[%s22820_s13 + $0x88c] sm:$0xf]  ;;  %v11329_v33 = vld [vmem:[%s22820_s13 + $0x800] sm:$0xf] }
 0x26f   :  { %11206 = vmatmul.msk.bf16.vlgmr.msra.gmra.mxu2 %vm1476_vm1, %v18013_v11  ;;  %11207 = vmatmul.msk.bf16.vlgmr.msrb.gmra.mxu0 %vm1476_vm1, %v18013_v11  ;;  %v11403_v63 = vld [vmem:[%s22820_s13 + $0x8a8] sm:$0xf0]  ;;  %v1162_v31 = vperm.slane %v17944_v26, 4  ;;  %v15137_v6 = vld [vmem:[%s22820_s13 + $0x81c] sm:$0xf0]  ;;  %v1591_v19 = vadd.f32 %v17961_v23, %v1165_v3 }
 0x270   :  { %3206 = vmatpush.bf16.msrb.mxu2 %v11193_v55  ;;  %3219 = vmatpush.bf16.msra.mxu0 %v11197_v56  ;;  %v11064_v55 = vld [vmem:[%s22820_s13 + $0x650] sm:$0xf]  ;;  %v15117_v3 = vld [vmem:[%s22820_s13 + $0x784] sm:$0xf] }
 0x271   :  { %3232 = vmatpush.bf16.msra.mxu1 %v11201_v59  ;;  %3245 = vmatpush.bf16.msrb.mxu3 %v11205_v60  ;;  %v15083_v56 = vld [vmem:[%s22820_s13 + $0x66c] sm:$0xf0]  ;;  %v11109_v59 = vor.u32 %v15088_v45, %v11106_v52  ;;  %v1907_v60 = vpop.f32.mrf.mxu2  ;;  %v1935_v16 = vpop.f32.mrf.mxu1  ;;  %v11430_v45 = vor.u32 %v15157_v36, %v11427_v37  ;;  %v1588_v28 = vadd.f32 %v17955_v35, %v1162_v31  ;;  %v15133_v35 = vld [vmem:[%s22820_s13 + $0x804] sm:$0xf] }
 0x272   :  { %11208 = vmatmul.msk.bf16.vlgmr.msrb.gmra.mxu1 %vm1476_vm1, %v18013_v11  ;;  %11209 = vmatmul.msk.bf16.vlgmr.msra.gmra.mxu3 %vm1476_vm1, %v18013_v11  ;;  %v18096_v2 = vadd.f32 %v1907_v60, %v1584_v34  ;;  %v11065_v13 = vor.u32 %v15083_v56, %v11064_v55  ;;  %v11393_v34 = vld [vmem:[%s22820_s13 + $0x880] sm:$0xf]  ;;  %v15149_v56 = vld [vmem:[%s22820_s13 + $0x884] sm:$0xf]  ;;  %v15154_v60 = vld [vmem:[%s22820_s13 + $0x8a4] sm:$0xf0] }
 0x273   :  { %v11398_v8 = vor.u32 %v15149_v56, %v11395_v57  ;;  %v15141_v16 = vld [vmem:[%s22820_s13 + $0x844] sm:$0xf]  ;;  %v11305_v57 = vld [vmem:[%s22820_s13 + $0x7c8] sm:$0xf] }
 0x274   :  { %3207 = vmatpush.bf16.msrb.mxu2 %v11161_v22  ;;  %3220 = vmatpush.bf16.msra.mxu0 %v11165_v12  ;;  %v1922_v22 = vpop.f32.mrf.mxu0  ;;  %v11032_v12 = vld [vmem:[%s22820_s13 + $0x610] sm:$0xf]  ;;  %v11299_v56 = vld [vmem:[%s22820_s13 + $0x7e0] sm:$0xf0] }
 0x275   :  { %3233 = vmatpush.bf16.msra.mxu1 %v11169_v17  ;;  %3246 = vmatpush.bf16.msrb.mxu3 %v11173_v18  ;;  %v15075_v17 = vld [vmem:[%s22820_s13 + $0x62c] sm:$0xf0]  ;;  %v15071_v18 = vld [vmem:[%s22820_s13 + $0x614] sm:$0xf]  ;;  %v1948_v52 = vpop.f32.mrf.mxu3 }
 0x276   :  { %v11037_v41 = vor.u32 %v15071_v18, %v11034_v20  ;;  %v11369_v18 = vld [vmem:[%s22820_s13 + $0x848] sm:$0xf]  ;;  %v11297_v52 = vld [vmem:[%s22820_s13 + $0x7c0] sm:$0xf] }
 0x277   :  { %v15146_v20 = vld [vmem:[%s22820_s13 + $0x864] sm:$0xf0] }
 0x278   :  { %3208 = vmatpush.bf16.msrb.mxu2 %v11129_v38  ;;  %3221 = vmatpush.bf16.msra.mxu0 %v11133_v39  ;;  %v11433_v38 = vld [vmem:[%s22820_s13 + $0x8c8] sm:$0xf]  ;;  %v11033_v39 = vor.u32 %v15075_v17, %v11032_v12  ;;  %v11361_v12 = vld [vmem:[%s22820_s13 + $0x840] sm:$0xf]  ;;  %v11363_v17 = vld [vmem:[%s22820_s13 + $0x860] sm:$0xf0]  ;;  %v11370_v36 = vor.u32 %v15146_v20, %v11369_v18 }
 0x279   :  { %3234 = vmatpush.bf16.msra.mxu1 %v11137_v43  ;;  %3247 = vmatpush.bf16.msrb.mxu3 %v11141_v44  ;;  %v11435_v43 = vld [vmem:[%s22820_s13 + $0x8e8] sm:$0xf0]  ;;  %v1164_v44 = vperm.slane %v17944_v26, 6  ;;  %v1909_v50 = vpop.f32.mrf.mxu2  ;;  %v1985_v22 = vpop.f32.mrf.mxu1  ;;  %v11366_v30 = vor.u32 %v15141_v16, %v11363_v17  ;;  %v3274_v16 = vunpack.c.h.bf16 %v17927_v15  ;;  %v11443_v15 = vld [vmem:[%s22820_s13 + $0x8f0] sm:$0xf0] }
 0x27a   :  { %v11438_v55 = vor.u32 %v15158_v42, %v11435_v43  ;;  %v15134_v42 = vld [vmem:[%s22820_s13 + $0x80c] sm:$0xf]  ;;  %v11330_v50 = vor.u32 %v15137_v6, %v11329_v33  ;;  %v15164_v6 = vld [vmem:[%s22820_s13 + $0x8f4] sm:$0xf0] }
 0x27b   :  { %v1590_v0 = vadd.f32 %v17897_v1, %v1164_v44  ;;  %v15145_v1 = vld [vmem:[%s22820_s13 + $0x85c] sm:$0xf0]  ;;  %v11339_v43 = vld [vmem:[%s22820_s13 + $0x828] sm:$0xf0]  ;;  %v3268_v44 = vpop.permute.xlu2 %3267 }
 0x27c   :  { %3209 = vmatpush.bf16.msrb.mxu2 %v11097_v53  ;;  %3222 = vmatpush.bf16.msra.mxu0 %v11101_v54  ;;  %v15153_v53 = vld [vmem:[%s22820_s13 + $0x89c] sm:$0xf0]  ;;  %v11434_v54 = vor.u32 %v15162_v62, %v11433_v38  ;;  %v11362_v29 = vor.u32 %v15145_v1, %v11361_v12  ;;  %v11331_v38 = vld [vmem:[%s22820_s13 + $0x820] sm:$0xf0]  ;;  %v15138_v62 = vld [vmem:[%s22820_s13 + $0x824] sm:$0xf0] }
 0x27d   :  { %3235 = vmatpush.bf16.msra.mxu1 %v11105_v58  ;;  %3248 = vmatpush.bf16.msrb.mxu3 %v11109_v59  ;;  %v11401_v58 = vld [vmem:[%s22820_s13 + $0x888] sm:$0xf]  ;;  %v1589_v59 = vadd.f32 %v17895_v61, %v1163_v9  ;;  %v1972_v61 = vpop.f32.mrf.mxu0  ;;  %v11394_v4 = vor.u32 %v15153_v53, %v11393_v34  ;;  %v18195_v26 = vadd.f32 %v1985_v22, %v1590_v0  ;;  %v1998_v23 = vpop.f32.mrf.mxu3  ;;  %v15129_v34 = vld [vmem:[%s22820_s13 + $0x7dc] sm:$0xf0]  ;;  %v11275_v20 = vld [vmem:[%s22820_s13 + $0x7a8] sm:$0xf0] }
 0x27e   :  { %v11298_v0 = vor.u32 %v15129_v34, %v11297_v52  ;;  %v11273_v1 = vld [vmem:[%s22820_s13 + $0x788] sm:$0xf]  ;;  %v11417_v52 = vld [vmem:[%s22820_s13 + $0x898] sm:$0xf] }
 0x27f   :  { %v18187_v9 = vadd.f32 %v1972_v61, %v1589_v59  ;;  %v15130_v59 = vld [vmem:[%s22820_s13 + $0x7e4] sm:$0xf0]  ;;  %v15121_v61 = vld [vmem:[%s22820_s13 + $0x79c] sm:$0xf0]  ;;  %v15156_v34 = vld [vmem:[%s22820_s13 + $0x8b4] sm:$0xf0] }
 0x280   :  { %3210 = vmatpush.bf16.msrb.mxu2 %v11065_v13  ;;  %3223 = vmatpush.bf16.msra.mxu0 %v11069_v14  ;;  %v11402_v13 = vor.u32 %v15154_v60, %v11401_v58  ;;  %v11406_v14 = vor.u32 %v15150_v27, %v11403_v63  ;;  %v3273_v58 = vperm.slane %v3268_v44, %v16835_v7  ;;  %v15126_v60 = vld [vmem:[%s22820_s13 + $0x7cc] sm:$0xf]  ;;  %v11265_v63 = vld [vmem:[%s22820_s13 + $0x780] sm:$0xf]  ;;  %v15155_v44 = vld [vmem:[%s22820_s13 + $0x8ac] sm:$0xf0] }
 0x281   :  { %3236 = vmatpush.bf16.msra.mxu1 %v11073_v24  ;;  %3249 = vmatpush.bf16.msrb.mxu3 %v11077_v25  ;;  %v15142_v24 = vld [vmem:[%s22820_s13 + $0x84c] sm:$0xf]  ;;  %v1959_v37 = vpop.f32.mrf.mxu2 }
 0x282   :  { %v11371_v25 = vld [vmem:[%s22820_s13 + $0x868] sm:$0xf0]  ;;  %v3275_v17 = vunpack.c.l.bf16 %v3273_v58  ;;  %v15147_v58 = vld [vmem:[%s22820_s13 + $0x86c] sm:$0xf0] }
 0x283   :  { %v11307_v27 = vld [vmem:[%s22820_s13 + $0x7e8] sm:$0xf0] }
 0x284   :  { %3211 = vmatpush.bf16.msrb.mxu2 %v11033_v39  ;;  %3224 = vmatpush.bf16.msra.mxu0 %v11037_v41  ;;  %v11337_v39 = vld [vmem:[%s22820_s13 + $0x808] sm:$0xf]  ;;  %v18240_v41 = vadd.f32 %v1959_v37, %v1588_v28  ;;  %v11310_v22 = vor.u32 %v15126_v60, %v11307_v27  ;;  %v15159_v28 = vld [vmem:[%s22820_s13 + $0x8d4] sm:$0xf] }
 0x285   :  { %3237 = vmatpush.bf16.msra.mxu1 %v11041_v47  ;;  %3250 = vmatpush.bf16.msrb.mxu3 %v11045_v49  ;;  %v18251_v47 = vadd.f32 %v1998_v23, %v1591_v19  ;;  %v1974_v49 = vpop.f32.mrf.mxu0  ;;  %v11338_v53 = vor.u32 %v15138_v62, %v11337_v39  ;;  %v2000_v18 = vpop.f32.mrf.mxu3  ;;  %v15160_v19 = vld [vmem:[%s22820_s13 + $0x8dc] sm:$0xf]  ;;  %v11446_v23 = vor.u32 %v15159_v28, %v11443_v15  ;;  %v15140_v28 = vld [vmem:[%s22820_s13 + $0x834] sm:$0xf0] }
 0x286   :  { %v15136_v15 = vld [vmem:[%s22820_s13 + $0x81c] sm:$0xf] }
 0x287   :  { %11210 = vmatmul.msk.bf16.vlgmr.msrb.gmra.mxu2 %vm1476_vm1, %v18013_v11  ;;  %11211 = vmatmul.msk.bf16.vlgmr.msra.gmra.mxu0 %vm1476_vm1, %v18013_v11 }
 0x288   :  { %3572 = vmatpush.bf16.msra.mxu2 %v11426_v51  ;;  %3585 = vmatpush.bf16.msrb.mxu0 %v11430_v45  ;;  %v11334_v51 = vor.u32 %v15133_v35, %v11331_v38  ;;  %v1987_v45 = vpop.f32.mrf.mxu1  ;;  %v3276_v38 = vmul.f32 %v3275_v17, %v3274_v16  ;;  %v11345_v16 = vld [vmem:[%s22820_s13 + $0x810] sm:$0xf] }
 0x289   :  { %3598 = vmatpush.bf16.msrb.mxu1 %v11434_v54  ;;  %3611 = vmatpush.bf16.msra.mxu3 %v11438_v55  ;;  %v11342_v54 = vor.u32 %v15134_v42, %v11339_v43  ;;  %v15125_v55 = vld [vmem:[%s22820_s13 + $0x7c4] sm:$0xf]  ;;  %v1961_v12 = vpop.f32.mrf.mxu2  ;;  %v11409_v43 = vld [vmem:[%s22820_s13 + $0x890] sm:$0xf]  ;;  %v15151_v45 = vld [vmem:[%s22820_s13 + $0x894] sm:$0xf] }
 0x28a   :  { %11212 = vmatmul.msk.bf16.vlgmr.msra.gmra.mxu1 %vm1476_vm1, %v18013_v11  ;;  %11213 = vmatmul.msk.bf16.vlgmr.msrb.gmra.mxu3 %vm1476_vm1, %v18013_v11  ;;  %v11374_v11 = vor.u32 %v15142_v24, %v11371_v25  ;;  %v11302_v31 = vor.u32 %v15125_v55, %v11299_v56  ;;  %v11441_v24 = vld [vmem:[%s22820_s13 + $0x8d0] sm:$0xf]  ;;  %v11410_v55 = vor.u32 %v15155_v44, %v11409_v43  ;;  %v15128_v43 = vld [vmem:[%s22820_s13 + $0x7dc] sm:$0xf] }
 0x28b   :  { %v15163_v25 = vld [vmem:[%s22820_s13 + $0x8ec] sm:$0xf0]  ;;  %v11323_v44 = vld [vmem:[%s22820_s13 + $0x7f8] sm:$0xf0] }
 0x28c   :  { %3573 = vmatpush.bf16.msra.mxu2 %v11394_v4  ;;  %3586 = vmatpush.bf16.msrb.mxu0 %v11398_v8  ;;  %v11267_v4 = vld [vmem:[%s22820_s13 + $0x7a0] sm:$0xf0]  ;;  %v11306_v8 = vor.u32 %v15130_v59, %v11305_v57  ;;  %v11442_v39 = vor.u32 %v15163_v25, %v11441_v24  ;;  %v11377_v57 = vld [vmem:[%s22820_s13 + $0x850] sm:$0xf]  ;;  %v11418_v59 = vor.u32 %v15156_v34, %v11417_v52  ;;  %v11347_v24 = vld [vmem:[%s22820_s13 + $0x830] sm:$0xf0] }
 0x28d   :  { %3599 = vmatpush.bf16.msrb.mxu1 %v11402_v13  ;;  %3612 = vmatpush.bf16.msra.mxu3 %v11406_v14  ;;  %v15122_v13 = vld [vmem:[%s22820_s13 + $0x7a4] sm:$0xf0]  ;;  %v15118_v14 = vld [vmem:[%s22820_s13 + $0x78c] sm:$0xf]  ;;  %v11270_v33 = vor.u32 %v15117_v3, %v11267_v4  ;;  %v2338_v35 = vpop.f32.mrf.mxu0  ;;  %v15148_v4 = vld [vmem:[%s22820_s13 + $0x874] sm:$0xf0] }
 0x28e   :  { %v11278_v37 = vor.u32 %v15118_v14, %v11275_v20  ;;  %v18328_v62 = vadd.f32 %v2338_v35, %v18051_v40  ;;  %v11411_v40 = vld [vmem:[%s22820_s13 + $0x8b0] sm:$0xf0]  ;;  %v15139_v17 = vld [vmem:[%s22820_s13 + $0x82c] sm:$0xf0]  ;;  %v11353_v25 = vld [vmem:[%s22820_s13 + $0x818] sm:$0xf] }
 0x28f   :  { %v11414_v56 = vor.u32 %v15151_v45, %v11411_v40  ;;  %v15127_v35 = vld [vmem:[%s22820_s13 + $0x7d4] sm:$0xf]  ;;  %v15123_v40 = vld [vmem:[%s22820_s13 + $0x7ac] sm:$0xf0] }
 0x290   :  { %3574 = vmatpush.bf16.msra.mxu2 %v11362_v29  ;;  %3587 = vmatpush.bf16.msrb.mxu0 %v11366_v30  ;;  %v11449_v29 = vld [vmem:[%s22820_s13 + $0x8d8] sm:$0xf]  ;;  %v11266_v30 = vor.u32 %v15121_v61, %v11265_v63  ;;  %v2351_v42 = vpop.f32.mrf.mxu1  ;;  %v15143_v63 = vld [vmem:[%s22820_s13 + $0x854] sm:$0xf] }
 0x291   :  { %3600 = vmatpush.bf16.msrb.mxu1 %v11370_v36  ;;  %3613 = vmatpush.bf16.msra.mxu3 %v11374_v11  ;;  %v11451_v36 = vld [vmem:[%s22820_s13 + $0x8f8] sm:$0xf0]  ;;  %v11274_v11 = vor.u32 %v15122_v13, %v11273_v1  ;;  %v11450_v49 = vor.u32 %v15164_v6, %v11449_v29  ;;  %v11378_v1 = vor.u32 %v15147_v58, %v11377_v57  ;;  %v11313_v6 = vld [vmem:[%s22820_s13 + $0x7d0] sm:$0xf]  ;;  %v15119_v52 = vld [vmem:[%s22820_s13 + $0x794] sm:$0xf] }
 0x292   :  { %v2325_v27 = vpop.f32.mrf.mxu2  ;;  %v11355_v29 = vld [vmem:[%s22820_s13 + $0x838] sm:$0xf0]  ;;  %v11283_v34 = vld [vmem:[%s22820_s13 + $0x7b0] sm:$0xf0] }
 0x293   :  { %v18379_v61 = vadd.f32 %v2325_v27, %v18096_v2  ;;  %v15120_v57 = vld [vmem:[%s22820_s13 + $0x79c] sm:$0xf]  ;;  %v15205_v27 = vld [vmem:[%s22820_s13 + $0xa44] sm:$0xf] }
 0x294   :  { %3575 = vmatpush.bf16.msra.mxu2 %v11330_v50  ;;  %3588 = vmatpush.bf16.msrb.mxu0 %v11334_v51  ;;  %v11454_v50 = vor.u32 %v15160_v19, %v11451_v36  ;;  %v18337_v51 = vadd.f32 %v2351_v42, %v18059_v46  ;;  %v15152_v46 = vld [vmem:[%s22820_s13 + $0x89c] sm:$0xf]  ;;  %v15131_v19 = vld [vmem:[%s22820_s13 + $0x7ec] sm:$0xf0]  ;;  %v11354_v36 = vor.u32 %v15140_v28, %v11353_v25  ;;  %v15132_v42 = vld [vmem:[%s22820_s13 + $0x7f4] sm:$0xf0] }
 0x295   :  { %3601 = vmatpush.bf16.msrb.mxu1 %v11338_v53  ;;  %3614 = vmatpush.bf16.msra.mxu3 %v11342_v54  ;;  %v11419_v53 = vld [vmem:[%s22820_s13 + $0x8b8] sm:$0xf0]  ;;  %v18357_v54 = vpack.c.bf16 %v3276_v38, %v3276_v38  ;;  %v2364_v3 = vpop.f32.mrf.mxu3  ;;  %v2340_v12 = vpop.f32.mrf.mxu0  ;;  %v11315_v38 = vld [vmem:[%s22820_s13 + $0x7f0] sm:$0xf0] }
 0x296   :  { %v11422_v60 = vor.u32 %v15152_v46, %v11419_v53  ;;  %v18395_v2 = vadd.f32 %v2364_v3, %v18108_v10  ;;  %v15135_v10 = vld [vmem:[%s22820_s13 + $0x814] sm:$0xf]  ;;  %v11318_v45 = vor.u32 %v15127_v35, %v11315_v38  ;;  %v11326_v53 = vor.u32 %v15128_v43, %v11323_v44  ;;  %v11291_v58 = vld [vmem:[%s22820_s13 + $0x7b8] sm:$0xf0] }
 0x297   :  { %v11286_v3 = vor.u32 %v15119_v52, %v11283_v34 }
 0x298   :  { %3576 = vmatpush.bf16.msra.mxu2 %v11298_v0  ;;  %3589 = vmatpush.bf16.msrb.mxu0 %v11302_v31  ;;  %v11379_v0 = vld [vmem:[%s22820_s13 + $0x870] sm:$0xf0]  ;;  %v11385_v31 = vld [vmem:[%s22820_s13 + $0x858] sm:$0xf]  ;;  %v2353_v14 = vpop.f32.mrf.mxu1 }
 0x299   :  { %3602 = vmatpush.bf16.msrb.mxu1 %v11306_v8  ;;  %3615 = vmatpush.bf16.msra.mxu3 %v11310_v22  ;;  %v15144_v8 = vld [vmem:[%s22820_s13 + $0x85c] sm:$0xf]  ;;  %v11382_v13 = vor.u32 %v15143_v63, %v11379_v0  ;;  %v11386_v18 = vor.u32 %v15148_v4, %v11385_v31  ;;  %v11676_v63 = vld [vmem:[%s22820_s13 + $0xa60] sm:$0xf0]  ;;  %v11682_v0 = vld [vmem:[%s22820_s13 + $0xa48] sm:$0xf] }
 0x29a   :  { %v11387_v22 = vld [vmem:[%s22820_s13 + $0x878] sm:$0xf0]  ;;  %v15210_v4 = vld [vmem:[%s22820_s13 + $0xa64] sm:$0xf0] }
 0x29b   :  { %v11390_v20 = vor.u32 %v15144_v8, %v11387_v22  ;;  %v15206_v8 = vld [vmem:[%s22820_s13 + $0xa4c] sm:$0xf] }
 0x29c   :  { %3577 = vmatpush.bf16.msra.mxu2 %v11266_v30  ;;  %3590 = vmatpush.bf16.msrb.mxu0 %v11270_v33  ;;  %v11346_v30 = vor.u32 %v15139_v17, %v11345_v16  ;;  %v11350_v33 = vor.u32 %v15135_v10, %v11347_v24  ;;  %v11684_v22 = vld [vmem:[%s22820_s13 + $0xa68] sm:$0xf0]  ;;  %v11679_v16 = vor.u32 %v15205_v27, %v11676_v63  ;;  %v15201_v10 = vld [vmem:[%s22820_s13 + $0xa1c] sm:$0xf0]  ;;  %v3686_v63 = vpop.permute.xlu1 %3685 }
 0x29d   :  { %3603 = vmatpush.bf16.msrb.mxu1 %v11274_v11  ;;  %3616 = vmatpush.bf16.msra.mxu3 %v11278_v37  ;;  %v11358_v11 = vor.u32 %v15136_v15, %v11355_v29  ;;  %v2327_v37 = vpop.f32.mrf.mxu2  ;;  %v11683_v24 = vor.u32 %v15210_v4, %v11682_v0  ;;  %v11687_v25 = vor.u32 %v15206_v8, %v11684_v22  ;;  %v15197_v15 = vld [vmem:[%s22820_s13 + $0xa04] sm:$0xf]  ;;  %v11650_v29 = vld [vmem:[%s22820_s13 + $0xa08] sm:$0xf]  ;;  %v11588_v27 = vld [vmem:[%s22820_s13 + $0x9a8] sm:$0xf0] }
 0x29e   :  { %v15177_v4 = vld [vmem:[%s22820_s13 + $0x95c] sm:$0xf0] }
 0x29f   :  { %11455 = vmatmul.msk.bf16.vlgmr.msra.gmra.mxu2 %vm1476_vm1, %v18357_v54  ;;  %11456 = vmatmul.msk.bf16.vlgmr.msrb.gmra.mxu0 %vm1476_vm1, %v18357_v54 }
 0x2a0   :  { %3624 = vmatpush.bf16.msrb.mxu2 %v11442_v39  ;;  %3637 = vmatpush.bf16.msra.mxu0 %v11446_v23  ;;  %v11321_v39 = vld [vmem:[%s22820_s13 + $0x7d8] sm:$0xf]  ;;  %v2366_v23 = vpop.f32.mrf.mxu3 }
 0x2a1   :  { %3650 = vmatpush.bf16.msra.mxu1 %v11450_v49  ;;  %3663 = vmatpush.bf16.msrb.mxu3 %v11454_v50  ;;  %v11281_v49 = vld [vmem:[%s22820_s13 + $0x790] sm:$0xf]  ;;  %v11314_v50 = vor.u32 %v15131_v19, %v11313_v6  ;;  %v11322_v46 = vor.u32 %v15132_v42, %v11321_v39  ;;  %v15189_v39 = vld [vmem:[%s22820_s13 + $0x9c4] sm:$0xf]  ;;  %v11618_v42 = vld [vmem:[%s22820_s13 + $0x9c8] sm:$0xf] }
 0x2a2   :  { %11457 = vmatmul.msk.bf16.vlgmr.msrb.gmra.mxu1 %vm1476_vm1, %v18357_v54  ;;  %11458 = vmatmul.msk.bf16.vlgmr.msra.gmra.mxu3 %vm1476_vm1, %v18357_v54  ;;  %v11282_v31 = vor.u32 %v15123_v40, %v11281_v49  ;;  %v11612_v23 = vld [vmem:[%s22820_s13 + $0x9e0] sm:$0xf0]  ;;  %v15194_v49 = vld [vmem:[%s22820_s13 + $0x9e4] sm:$0xf0] }
 0x2a3   :  { %v11615_v34 = vor.u32 %v15189_v39, %v11612_v23  ;;  %v11524_v39 = vld [vmem:[%s22820_s13 + $0x928] sm:$0xf0]  ;;  %v11690_v23 = vld [vmem:[%s22820_s13 + $0xa50] sm:$0xf] }
 0x2a4   :  { %3625 = vmatpush.bf16.msrb.mxu2 %v11410_v55  ;;  %3638 = vmatpush.bf16.msra.mxu0 %v11414_v56  ;;  %v11289_v55 = vld [vmem:[%s22820_s13 + $0x798] sm:$0xf] }
 0x2a5   :  { %3651 = vmatpush.bf16.msra.mxu1 %v11418_v59  ;;  %3664 = vmatpush.bf16.msrb.mxu3 %v11422_v60  ;;  %v15124_v56 = vld [vmem:[%s22820_s13 + $0x7b4] sm:$0xf0]  ;;  %v11674_v59 = vld [vmem:[%s22820_s13 + $0xa40] sm:$0xf] }
 0x2a6   :  { %v15209_v60 = vld [vmem:[%s22820_s13 + $0xa5c] sm:$0xf0]  ;;  %v11290_v12 = vor.u32 %v15124_v56, %v11289_v55 }
 0x2a7   :  { %v11675_v14 = vor.u32 %v15209_v60, %v11674_v59  ;;  %v15185_v55 = vld [vmem:[%s22820_s13 + $0x99c] sm:$0xf0]  ;;  %v15186_v59 = vld [vmem:[%s22820_s13 + $0x9a4] sm:$0xf0]  ;;  %v15182_v60 = vld [vmem:[%s22820_s13 + $0x98c] sm:$0xf] }
 0x2a8   :  { %3626 = vmatpush.bf16.msrb.mxu2 %v11378_v1  ;;  %3639 = vmatpush.bf16.msra.mxu0 %v11382_v13  ;;  %v11294_v1 = vor.u32 %v15120_v57, %v11291_v58  ;;  %v2390_v13 = vpop.f32.mrf.mxu0  ;;  %v11580_v57 = vld [vmem:[%s22820_s13 + $0x9a0] sm:$0xf0]  ;;  %v11586_v58 = vld [vmem:[%s22820_s13 + $0x988] sm:$0xf]  ;;  %v11591_v22 = vor.u32 %v15182_v60, %v11588_v27  ;;  %v11658_v60 = vld [vmem:[%s22820_s13 + $0xa10] sm:$0xf] }
 0x2a9   :  { %3652 = vmatpush.bf16.msra.mxu1 %v11386_v18  ;;  %3665 = vmatpush.bf16.msrb.mxu3 %v11390_v20  ;;  %v18494_v17 = vadd.f32 %v2390_v13, %v18187_v9  ;;  %v2403_v18 = vpop.f32.mrf.mxu1  ;;  %v11642_v20 = vld [vmem:[%s22820_s13 + $0xa00] sm:$0xf]  ;;  %v11644_v9 = vld [vmem:[%s22820_s13 + $0xa20] sm:$0xf0]  ;;  %v11587_v8 = vor.u32 %v15186_v59, %v11586_v58  ;;  %v15203_v27 = vld [vmem:[%s22820_s13 + $0xa2c] sm:$0xf0] }
 0x2aa   :  { %v18503_v28 = vadd.f32 %v2403_v18, %v18195_v26  ;;  %v15198_v26 = vld [vmem:[%s22820_s13 + $0xa0c] sm:$0xf]  ;;  %v11643_v6 = vor.u32 %v15201_v10, %v11642_v20  ;;  %v11647_v19 = vor.u32 %v15197_v15, %v11644_v9  ;;  %v2377_v38 = vpop.f32.mrf.mxu2  ;;  %v11548_v13 = vld [vmem:[%s22820_s13 + $0x960] sm:$0xf0]  ;;  %v15178_v20 = vld [vmem:[%s22820_s13 + $0x964] sm:$0xf0] }
 0x2ab   :  { %v18543_v43 = vadd.f32 %v2377_v38, %v18240_v41  ;;  %v15174_v10 = vld [vmem:[%s22820_s13 + $0x94c] sm:$0xf]  ;;  %v11514_v15 = vld [vmem:[%s22820_s13 + $0x900] sm:$0xf] }
 0x2ac   :  { %3627 = vmatpush.bf16.msrb.mxu2 %v11346_v30  ;;  %3640 = vmatpush.bf16.msra.mxu0 %v11350_v33  ;;  %v15202_v30 = vld [vmem:[%s22820_s13 + $0xa24] sm:$0xf0]  ;;  %v11652_v33 = vld [vmem:[%s22820_s13 + $0xa28] sm:$0xf0] }
 0x2ad   :  { %3653 = vmatpush.bf16.msra.mxu1 %v11354_v36  ;;  %3666 = vmatpush.bf16.msrb.mxu3 %v11358_v11  ;;  %v11610_v36 = vld [vmem:[%s22820_s13 + $0x9c0] sm:$0xf]  ;;  %v11651_v37 = vor.u32 %v15202_v30, %v11650_v29  ;;  %v11655_v35 = vor.u32 %v15198_v26, %v11652_v33  ;;  %v2416_v44 = vpop.f32.mrf.mxu3  ;;  %v15165_v26 = vld [vmem:[%s22820_s13 + $0x904] sm:$0xf] }
 0x2ae   :  { %v15193_v11 = vld [vmem:[%s22820_s13 + $0x9dc] sm:$0xf0]  ;;  %v18559_v41 = vadd.f32 %v2416_v44, %v18251_v47  ;;  %v15181_v47 = vld [vmem:[%s22820_s13 + $0x984] sm:$0xf]  ;;  %v15207_v44 = vld [vmem:[%s22820_s13 + $0xa54] sm:$0xf] }
 0x2af   :  { %v11611_v52 = vor.u32 %v15193_v11, %v11610_v36  ;;  %v15169_v30 = vld [vmem:[%s22820_s13 + $0x91c] sm:$0xf0]  ;;  %v11516_v33 = vld [vmem:[%s22820_s13 + $0x920] sm:$0xf0]  ;;  %v11522_v36 = vld [vmem:[%s22820_s13 + $0x908] sm:$0xf] }
 0x2b0   :  { %3628 = vmatpush.bf16.msrb.mxu2 %v11314_v50  ;;  %3641 = vmatpush.bf16.msra.mxu0 %v11318_v45  ;;  %v15190_v50 = vld [vmem:[%s22820_s13 + $0x9cc] sm:$0xf]  ;;  %v2392_v40 = vpop.f32.mrf.mxu0  ;;  %v15170_v11 = vld [vmem:[%s22820_s13 + $0x924] sm:$0xf0] }
 0x2b1   :  { %3654 = vmatpush.bf16.msra.mxu1 %v11322_v46  ;;  %3667 = vmatpush.bf16.msrb.mxu3 %v11326_v53  ;;  %v11620_v45 = vld [vmem:[%s22820_s13 + $0x9e8] sm:$0xf0]  ;;  %v2405_v46 = vpop.f32.mrf.mxu1  ;;  %v11578_v53 = vld [vmem:[%s22820_s13 + $0x980] sm:$0xf]  ;;  %v11519_v40 = vor.u32 %v15165_v26, %v11516_v33  ;;  %v15192_v26 = vld [vmem:[%s22820_s13 + $0x9dc] sm:$0xf] }
 0x2b2   :  { %v11623_v56 = vor.u32 %v15190_v50, %v11620_v45  ;;  %v11579_v0 = vor.u32 %v15185_v55, %v11578_v53  ;;  %v11698_v50 = vld [vmem:[%s22820_s13 + $0xa58] sm:$0xf]  ;;  %v11515_v45 = vor.u32 %v15169_v30, %v11514_v15  ;;  %v11700_v46 = vld [vmem:[%s22820_s13 + $0xa78] sm:$0xf0]  ;;  %v11523_v53 = vor.u32 %v15170_v11, %v11522_v36 }
 0x2b3   :  { %v11634_v15 = vld [vmem:[%s22820_s13 + $0x9d8] sm:$0xf]  ;;  %v11636_v33 = vld [vmem:[%s22820_s13 + $0x9f8] sm:$0xf0] }
 0x2b4   :  { %3629 = vmatpush.bf16.msrb.mxu2 %v11282_v31  ;;  %3642 = vmatpush.bf16.msra.mxu0 %v11286_v3  ;;  %v11583_v31 = vor.u32 %v15181_v47, %v11580_v57  ;;  %v11546_v3 = vld [vmem:[%s22820_s13 + $0x940] sm:$0xf]  ;;  %v15196_v30 = vld [vmem:[%s22820_s13 + $0x9f4] sm:$0xf0] }
 0x2b5   :  { %3655 = vmatpush.bf16.msra.mxu1 %v11290_v12  ;;  %3668 = vmatpush.bf16.msrb.mxu3 %v11294_v1  ;;  %v2379_v12 = vpop.f32.mrf.mxu2  ;;  %v15173_v1 = vld [vmem:[%s22820_s13 + $0x944] sm:$0xf]  ;;  %v2418_v18 = vpop.f32.mrf.mxu3  ;;  %v11547_v9 = vor.u32 %v15177_v4, %v11546_v3  ;;  %v15199_v3 = vld [vmem:[%s22820_s13 + $0xa14] sm:$0xf]  ;;  %v11666_v4 = vld [vmem:[%s22820_s13 + $0xa18] sm:$0xf] }
 0x2b6   :  { %v11551_v29 = vor.u32 %v15173_v1, %v11548_v13  ;;  %v11659_v1 = vor.u32 %v15203_v27, %v11658_v60  ;;  %v15176_v60 = vld [vmem:[%s22820_s13 + $0x95c] sm:$0xf] }
 0x2b7   :  { %11459 = vmatmul.msk.bf16.vlgmr.msrb.gmra.mxu2 %vm1476_vm1, %v18357_v54  ;;  %11460 = vmatmul.msk.bf16.vlgmr.msra.gmra.mxu0 %vm1476_vm1, %v18357_v54  ;;  %v11572_v27 = vld [vmem:[%s22820_s13 + $0x978] sm:$0xf0] }
 0x2b8   :  { %3990 = vmatpush.bf16.msra.mxu2 %v11675_v14  ;;  %4003 = vmatpush.bf16.msrb.mxu0 %v11679_v16  ;;  %v11554_v14 = vld [vmem:[%s22820_s13 + $0x948] sm:$0xf]  ;;  %v3691_v16 = vperm.slane %v3686_v63, %v16835_v7 }
 0x2b9   :  { %4016 = vmatpush.bf16.msrb.mxu1 %v11683_v24  ;;  %4029 = vmatpush.bf16.msra.mxu3 %v11687_v25  ;;  %v11556_v24 = vld [vmem:[%s22820_s13 + $0x968] sm:$0xf0]  ;;  %v11463_v25 = vld [vmem:[%s22822_s2 + $0x18] sm:$0xf] }
 0x2ba   :  { %11461 = vmatmul.msk.bf16.vlgmr.msra.gmra.mxu1 %vm1476_vm1, %v18357_v54  ;;  %11462 = vmatmul.msk.bf16.vlgmr.msrb.gmra.mxu3 %vm1476_vm1, %v18357_v54  ;;  %v11619_v54 = vor.u32 %v15194_v49, %v11618_v42  ;;  %v3693_v38 = vunpack.c.l.bf16 %v3691_v16  ;;  %v15211_v42 = vld [vmem:[%s22820_s13 + $0xa6c] sm:$0xf0]  ;;  %v11692_v49 = vld [vmem:[%s22820_s13 + $0xa70] sm:$0xf0] }
 0x2bb   :  { %v11691_v47 = vor.u32 %v15211_v42, %v11690_v23  ;;  %v11695_v57 = vor.u32 %v15207_v44, %v11692_v49  ;;  %v15195_v16 = vld [vmem:[%s22820_s13 + $0x9ec] sm:$0xf0]  ;;  %v11596_v23 = vld [vmem:[%s22820_s13 + $0x9b0] sm:$0xf0]  ;;  %v11602_v42 = vld [vmem:[%s22820_s13 + $0x998] sm:$0xf] }
 0x2bc   :  { %3991 = vmatpush.bf16.msra.mxu2 %v11643_v6  ;;  %4004 = vmatpush.bf16.msrb.mxu0 %v11647_v19  ;;  %v11555_v6 = vor.u32 %v15178_v20, %v11554_v14  ;;  %v11559_v19 = vor.u32 %v15174_v10, %v11556_v24  ;;  %v11626_v14 = vld [vmem:[%s22820_s13 + $0x9d0] sm:$0xf]  ;;  %v15191_v24 = vld [vmem:[%s22820_s13 + $0x9d4] sm:$0xf]  ;;  %v15188_v44 = vld [vmem:[%s22820_s13 + $0x9b4] sm:$0xf0] }
 0x2bd   :  { %4017 = vmatpush.bf16.msrb.mxu1 %v11651_v37  ;;  %4030 = vmatpush.bf16.msra.mxu3 %v11655_v35  ;;  %v15166_v37 = vld [vmem:[%s22820_s13 + $0x90c] sm:$0xf]  ;;  %v3692_v35 = vunpack.c.l.bf16 %v11463_v25  ;;  %v11628_v25 = vld [vmem:[%s22820_s13 + $0x9f0] sm:$0xf0]  ;;  %v15184_v49 = vld [vmem:[%s22820_s13 + $0x99c] sm:$0xf] }
 0x2be   :  { %v11527_v55 = vor.u32 %v15166_v37, %v11524_v39  ;;  %v11631_v36 = vor.u32 %v15191_v24, %v11628_v25  ;;  %v11594_v37 = vld [vmem:[%s22820_s13 + $0x990] sm:$0xf]  ;;  %v11639_v39 = vor.u32 %v15192_v26, %v11636_v33  ;;  %v11925_v24 = vld [vmem:[%s22820_s13 + $0xbe0] sm:$0xf0]  ;;  %v11931_v25 = vld [vmem:[%s22820_s13 + $0xbc8] sm:$0xf] }
 0x2bf   :  { %v2769_v59 = vpop.f32.mrf.mxu1  ;;  %v15254_v26 = vld [vmem:[%s22820_s13 + $0xbcc] sm:$0xf] }
 0x2c0   :  { %3992 = vmatpush.bf16.msra.mxu2 %v11611_v52  ;;  %4005 = vmatpush.bf16.msrb.mxu0 %v11615_v34  ;;  %v15212_v52 = vld [vmem:[%s22820_s13 + $0xa74] sm:$0xf0]  ;;  %v15208_v34 = vld [vmem:[%s22820_s13 + $0xa5c] sm:$0xf]  ;;  %v11933_v33 = vld [vmem:[%s22820_s13 + $0xbe8] sm:$0xf0] }
 0x2c1   :  { %4018 = vmatpush.bf16.msrb.mxu1 %v11619_v54  ;;  %4031 = vmatpush.bf16.msra.mxu3 %v11623_v56  ;;  %v2756_v54 = vpop.f32.mrf.mxu0  ;;  %v3694_v56 = vmul.f32 %v3693_v38, %v3692_v35  ;;  %v11699_v63 = vor.u32 %v15212_v52, %v11698_v50  ;;  %v15187_v35 = vld [vmem:[%s22820_s13 + $0x9ac] sm:$0xf0]  ;;  %v11635_v38 = vor.u32 %v15196_v30, %v11634_v15  ;;  %v11604_v50 = vld [vmem:[%s22820_s13 + $0x9b8] sm:$0xf0]  ;;  %v15258_v30 = vld [vmem:[%s22820_s13 + $0xbe4] sm:$0xf0] }
 0x2c2   :  { %v18662_v58 = vadd.f32 %v2756_v54, %v18328_v62  ;;  %v11660_v62 = vld [vmem:[%s22820_s13 + $0xa30] sm:$0xf0]  ;;  %v2743_v10 = vpop.f32.mrf.mxu2  ;;  %v11562_v52 = vld [vmem:[%s22820_s13 + $0x950] sm:$0xf] }
 0x2c3   :  { %v18691_v12 = vpack.c.bf16 %v3694_v56, %v3694_v56  ;;  %v11663_v13 = vor.u32 %v15199_v3, %v11660_v62  ;;  %v15175_v54 = vld [vmem:[%s22820_s13 + $0x954] sm:$0xf]  ;;  %v15171_v62 = vld [vmem:[%s22820_s13 + $0x92c] sm:$0xf0] }
 0x2c4   :  { %3993 = vmatpush.bf16.msra.mxu2 %v11579_v0  ;;  %4006 = vmatpush.bf16.msrb.mxu0 %v11583_v31  ;;  %v11703_v0 = vor.u32 %v15208_v34, %v11700_v46  ;;  %v18671_v31 = vadd.f32 %v2769_v59, %v18337_v51  ;;  %v15200_v51 = vld [vmem:[%s22820_s13 + $0xa1c] sm:$0xf]  ;;  %v15179_v34 = vld [vmem:[%s22820_s13 + $0x96c] sm:$0xf0]  ;;  %v11603_v46 = vor.u32 %v15188_v44, %v11602_v42  ;;  %v11564_v56 = vld [vmem:[%s22820_s13 + $0x970] sm:$0xf0] }
 0x2c5   :  { %4019 = vmatpush.bf16.msrb.mxu1 %v11587_v8  ;;  %4032 = vmatpush.bf16.msra.mxu3 %v11591_v22  ;;  %v15204_v8 = vld [vmem:[%s22820_s13 + $0xa34] sm:$0xf0]  ;;  %v11668_v22 = vld [vmem:[%s22820_s13 + $0xa38] sm:$0xf0]  ;;  %v11567_v3 = vor.u32 %v15175_v54, %v11564_v56  ;;  %v11936_v42 = vor.u32 %v15254_v26, %v11933_v33 }
 0x2c6   :  { %v11667_v18 = vor.u32 %v15204_v8, %v11666_v4  ;;  %v11671_v20 = vor.u32 %v15200_v51, %v11668_v22  ;;  %v15180_v59 = vld [vmem:[%s22820_s13 + $0x974] sm:$0xf0]  ;;  %v15167_v4 = vld [vmem:[%s22820_s13 + $0x914] sm:$0xf]  ;;  %v11575_v22 = vor.u32 %v15176_v60, %v11572_v27 }
 0x2c7   :  { %v2771_v11 = vpop.f32.mrf.mxu1  ;;  %v11532_v8 = vld [vmem:[%s22820_s13 + $0x930] sm:$0xf0] }
 0x2c8   :  { %3994 = vmatpush.bf16.msra.mxu2 %v11547_v9  ;;  %4007 = vmatpush.bf16.msrb.mxu0 %v11551_v29  ;;  %v18713_v9 = vadd.f32 %v2743_v10, %v18379_v61  ;;  %v2782_v29 = vpop.f32.mrf.mxu3  ;;  %v15253_v10 = vld [vmem:[%s22820_s13 + $0xbc4] sm:$0xf] }
 0x2c9   :  { %4020 = vmatpush.bf16.msrb.mxu1 %v11555_v6  ;;  %4033 = vmatpush.bf16.msra.mxu3 %v11559_v19  ;;  %v18729_v61 = vadd.f32 %v2782_v29, %v18395_v2  ;;  %v2758_v6 = vpop.f32.mrf.mxu0  ;;  %v11627_v19 = vor.u32 %v15195_v16, %v11626_v14  ;;  %v15183_v2 = vld [vmem:[%s22820_s13 + $0x994] sm:$0xf]  ;;  %v15168_v14 = vld [vmem:[%s22820_s13 + $0x91c] sm:$0xf]  ;;  %v11535_v29 = vor.u32 %v15167_v4, %v11532_v8 }
 0x2ca   :  { %v11540_v16 = vld [vmem:[%s22820_s13 + $0x938] sm:$0xf0] }
 0x2cc   :  { %3995 = vmatpush.bf16.msra.mxu2 %v11515_v45  ;;  %4008 = vmatpush.bf16.msrb.mxu0 %v11519_v40  ;;  %v11595_v45 = vor.u32 %v15187_v35, %v11594_v37  ;;  %v11599_v40 = vor.u32 %v15183_v2, %v11596_v23  ;;  %v11928_v37 = vor.u32 %v15253_v10, %v11925_v24  ;;  %v15249_v2 = vld [vmem:[%s22820_s13 + $0xb9c] sm:$0xf0]  ;;  %v11837_v10 = vld [vmem:[%s22820_s13 + $0xb28] sm:$0xf0]  ;;  %v4104_v24 = vpop.permute.xlu2 %4103 }
 0x2cd   :  { %4021 = vmatpush.bf16.msrb.mxu1 %v11523_v53  ;;  %4034 = vmatpush.bf16.msra.mxu3 %v11527_v55  ;;  %v11607_v53 = vor.u32 %v15184_v49, %v11604_v50  ;;  %v2745_v55 = vpop.f32.mrf.mxu2  ;;  %v11932_v23 = vor.u32 %v15258_v30, %v11931_v25  ;;  %v15245_v49 = vld [vmem:[%s22820_s13 + $0xb84] sm:$0xf]  ;;  %v11899_v50 = vld [vmem:[%s22820_s13 + $0xb88] sm:$0xf]  ;;  %v15225_v30 = vld [vmem:[%s22820_s13 + $0xadc] sm:$0xf0] }
 0x2cf   :  { %11704 = vmatmul.msk.bf16.vlgmr.msra.gmra.mxu2 %vm1476_vm1, %v18691_v12  ;;  %11705 = vmatmul.msk.bf16.vlgmr.msrb.gmra.mxu0 %vm1476_vm1, %v18691_v12 }
 0x2d0   :  { %4042 = vmatpush.bf16.msrb.mxu2 %v11691_v47  ;;  %4055 = vmatpush.bf16.msra.mxu0 %v11695_v57  ;;  %v11570_v47 = vld [vmem:[%s22820_s13 + $0x958] sm:$0xf]  ;;  %v2784_v57 = vpop.f32.mrf.mxu3 }
 0x2d1   :  { %4068 = vmatpush.bf16.msra.mxu1 %v11699_v63  ;;  %4081 = vmatpush.bf16.msrb.mxu3 %v11703_v0  ;;  %v11530_v63 = vld [vmem:[%s22820_s13 + $0x910] sm:$0xf]  ;;  %v11563_v0 = vor.u32 %v15179_v34, %v11562_v52  ;;  %v11571_v51 = vor.u32 %v15180_v59, %v11570_v47  ;;  %v15237_v47 = vld [vmem:[%s22820_s13 + $0xb44] sm:$0xf]  ;;  %v11867_v59 = vld [vmem:[%s22820_s13 + $0xb48] sm:$0xf] }
 0x2d2   :  { %11706 = vmatmul.msk.bf16.vlgmr.msrb.gmra.mxu1 %vm1476_vm1, %v18691_v12  ;;  %11707 = vmatmul.msk.bf16.vlgmr.msra.gmra.mxu3 %vm1476_vm1, %v18691_v12  ;;  %v11531_v15 = vor.u32 %v15171_v62, %v11530_v63  ;;  %v11861_v57 = vld [vmem:[%s22820_s13 + $0xb60] sm:$0xf0]  ;;  %v15242_v63 = vld [vmem:[%s22820_s13 + $0xb64] sm:$0xf0] }
 0x2d3   :  { %v11864_v8 = vor.u32 %v15237_v47, %v11861_v57  ;;  %v11773_v47 = vld [vmem:[%s22820_s13 + $0xaa8] sm:$0xf0]  ;;  %v11939_v57 = vld [vmem:[%s22820_s13 + $0xbd0] sm:$0xf] }
 0x2d4   :  { %4043 = vmatpush.bf16.msrb.mxu2 %v11659_v1  ;;  %4056 = vmatpush.bf16.msra.mxu0 %v11663_v13  ;;  %v11538_v1 = vld [vmem:[%s22820_s13 + $0x918] sm:$0xf] }
 0x2d5   :  { %4069 = vmatpush.bf16.msra.mxu1 %v11667_v18  ;;  %4082 = vmatpush.bf16.msrb.mxu3 %v11671_v20  ;;  %v15172_v13 = vld [vmem:[%s22820_s13 + $0x934] sm:$0xf0]  ;;  %v11923_v18 = vld [vmem:[%s22820_s13 + $0xbc0] sm:$0xf] }
 0x2d6   :  { %v15257_v20 = vld [vmem:[%s22820_s13 + $0xbdc] sm:$0xf0]  ;;  %v11539_v6 = vor.u32 %v15172_v13, %v11538_v1 }
 0x2d7   :  { %v11924_v11 = vor.u32 %v15257_v20, %v11923_v18  ;;  %v15233_v1 = vld [vmem:[%s22820_s13 + $0xb1c] sm:$0xf0]  ;;  %v15234_v18 = vld [vmem:[%s22820_s13 + $0xb24] sm:$0xf0]  ;;  %v15230_v20 = vld [vmem:[%s22820_s13 + $0xb0c] sm:$0xf] }
 0x2d8   :  { %4044 = vmatpush.bf16.msrb.mxu2 %v11627_v19  ;;  %4057 = vmatpush.bf16.msra.mxu0 %v11631_v36  ;;  %v11543_v19 = vor.u32 %v15168_v14, %v11540_v16  ;;  %v2808_v36 = vpop.f32.mrf.mxu0  ;;  %v11829_v14 = vld [vmem:[%s22820_s13 + $0xb20] sm:$0xf0]  ;;  %v11835_v16 = vld [vmem:[%s22820_s13 + $0xb08] sm:$0xf]  ;;  %v11840_v33 = vor.u32 %v15230_v20, %v11837_v10  ;;  %v11907_v20 = vld [vmem:[%s22820_s13 + $0xb90] sm:$0xf] }
 0x2d9   :  { %4070 = vmatpush.bf16.msra.mxu1 %v11635_v38  ;;  %4083 = vmatpush.bf16.msrb.mxu3 %v11639_v39  ;;  %v18828_v35 = vadd.f32 %v2808_v36, %v18494_v17  ;;  %v2821_v38 = vpop.f32.mrf.mxu1  ;;  %v11891_v39 = vld [vmem:[%s22820_s13 + $0xb80] sm:$0xf]  ;;  %v11893_v17 = vld [vmem:[%s22820_s13 + $0xba0] sm:$0xf0]  ;;  %v11836_v26 = vor.u32 %v15234_v18, %v11835_v16  ;;  %v15251_v10 = vld [vmem:[%s22820_s13 + $0xbac] sm:$0xf0] }
 0x2da   :  { %v18837_v44 = vadd.f32 %v2821_v38, %v18503_v28  ;;  %v15246_v28 = vld [vmem:[%s22820_s13 + $0xb8c] sm:$0xf]  ;;  %v11892_v52 = vor.u32 %v15249_v2, %v11891_v39  ;;  %v11896_v34 = vor.u32 %v15245_v49, %v11893_v17  ;;  %v2795_v56 = vpop.f32.mrf.mxu2  ;;  %v11797_v36 = vld [vmem:[%s22820_s13 + $0xae0] sm:$0xf0]  ;;  %v15226_v39 = vld [vmem:[%s22820_s13 + $0xae4] sm:$0xf0] }
 0x2db   :  { %v18877_v60 = vadd.f32 %v2795_v56, %v18543_v43  ;;  %v15222_v2 = vld [vmem:[%s22820_s13 + $0xacc] sm:$0xf]  ;;  %v11763_v49 = vld [vmem:[%s22820_s13 + $0xa80] sm:$0xf] }
 0x2dc   :  { %4045 = vmatpush.bf16.msrb.mxu2 %v11595_v45  ;;  %4058 = vmatpush.bf16.msra.mxu0 %v11599_v40  ;;  %v15250_v45 = vld [vmem:[%s22820_s13 + $0xba4] sm:$0xf0]  ;;  %v11901_v40 = vld [vmem:[%s22820_s13 + $0xba8] sm:$0xf0] }
 0x2dd   :  { %4071 = vmatpush.bf16.msra.mxu1 %v11603_v46  ;;  %4084 = vmatpush.bf16.msrb.mxu3 %v11607_v53  ;;  %v11859_v46 = vld [vmem:[%s22820_s13 + $0xb40] sm:$0xf]  ;;  %v11900_v55 = vor.u32 %v15250_v45, %v11899_v50  ;;  %v11904_v54 = vor.u32 %v15246_v28, %v11901_v40  ;;  %v2834_v27 = vpop.f32.mrf.mxu3  ;;  %v15213_v28 = vld [vmem:[%s22820_s13 + $0xa84] sm:$0xf] }
 0x2de   :  { %v15241_v53 = vld [vmem:[%s22820_s13 + $0xb5c] sm:$0xf0]  ;;  %v18893_v43 = vadd.f32 %v2834_v27, %v18559_v41  ;;  %v15229_v41 = vld [vmem:[%s22820_s13 + $0xb04] sm:$0xf]  ;;  %v15255_v27 = vld [vmem:[%s22820_s13 + $0xbd4] sm:$0xf] }
 0x2df   :  { %v11860_v4 = vor.u32 %v15241_v53, %v11859_v46  ;;  %v15217_v45 = vld [vmem:[%s22820_s13 + $0xa9c] sm:$0xf0]  ;;  %v11765_v40 = vld [vmem:[%s22820_s13 + $0xaa0] sm:$0xf0]  ;;  %v11771_v46 = vld [vmem:[%s22820_s13 + $0xa88] sm:$0xf] }
 0x2e0   :  { %4046 = vmatpush.bf16.msrb.mxu2 %v11563_v0  ;;  %4059 = vmatpush.bf16.msra.mxu0 %v11567_v3  ;;  %v15238_v0 = vld [vmem:[%s22820_s13 + $0xb4c] sm:$0xf]  ;;  %v2810_v62 = vpop.f32.mrf.mxu0  ;;  %v15218_v53 = vld [vmem:[%s22820_s13 + $0xaa4] sm:$0xf0] }
 0x2e1   :  { %4072 = vmatpush.bf16.msra.mxu1 %v11571_v51  ;;  %4085 = vmatpush.bf16.msrb.mxu3 %v11575_v22  ;;  %v11869_v3 = vld [vmem:[%s22820_s13 + $0xb68] sm:$0xf0]  ;;  %v2823_v51 = vpop.f32.mrf.mxu1  ;;  %v11827_v22 = vld [vmem:[%s22820_s13 + $0xb00] sm:$0xf]  ;;  %v11768_v62 = vor.u32 %v15213_v28, %v11765_v40  ;;  %v15244_v28 = vld [vmem:[%s22820_s13 + $0xb74] sm:$0xf0] }
 0x2e2   :  { %v11872_v13 = vor.u32 %v15238_v0, %v11869_v3  ;;  %v11828_v25 = vor.u32 %v15233_v1, %v11827_v22  ;;  %v11947_v0 = vld [vmem:[%s22820_s13 + $0xbd8] sm:$0xf]  ;;  %v11764_v3 = vor.u32 %v15217_v45, %v11763_v49  ;;  %v11949_v51 = vld [vmem:[%s22820_s13 + $0xbf8] sm:$0xf0]  ;;  %v11772_v22 = vor.u32 %v15218_v53, %v11771_v46  ;;  %v11877_v49 = vld [vmem:[%s22820_s13 + $0xb70] sm:$0xf0] }
 0x2e3   :  { %v15240_v40 = vld [vmem:[%s22820_s13 + $0xb5c] sm:$0xf] }
 0x2e4   :  { %4047 = vmatpush.bf16.msrb.mxu2 %v11531_v15  ;;  %4060 = vmatpush.bf16.msra.mxu0 %v11535_v29  ;;  %v11832_v15 = vor.u32 %v15229_v41, %v11829_v14  ;;  %v11795_v29 = vld [vmem:[%s22820_s13 + $0xac0] sm:$0xf] }
 0x2e5   :  { %4073 = vmatpush.bf16.msra.mxu1 %v11539_v6  ;;  %4086 = vmatpush.bf16.msrb.mxu3 %v11543_v19  ;;  %v2797_v6 = vpop.f32.mrf.mxu2  ;;  %v15221_v19 = vld [vmem:[%s22820_s13 + $0xac4] sm:$0xf]  ;;  %v2836_v38 = vpop.f32.mrf.mxu3  ;;  %v11796_v17 = vor.u32 %v15225_v30, %v11795_v29  ;;  %v15247_v29 = vld [vmem:[%s22820_s13 + $0xb94] sm:$0xf]  ;;  %v11915_v30 = vld [vmem:[%s22820_s13 + $0xb98] sm:$0xf] }
 0x2e6   :  { %v11800_v50 = vor.u32 %v15221_v19, %v11797_v36  ;;  %v11908_v19 = vor.u32 %v15251_v10, %v11907_v20  ;;  %v15228_v20 = vld [vmem:[%s22820_s13 + $0xaf4] sm:$0xf0]  ;;  %v15224_v10 = vld [vmem:[%s22820_s13 + $0xadc] sm:$0xf] }
 0x2e7   :  { %11708 = vmatmul.msk.bf16.vlgmr.msrb.gmra.mxu2 %vm1476_vm1, %v18691_v12  ;;  %11709 = vmatmul.msk.bf16.vlgmr.msra.gmra.mxu0 %vm1476_vm1, %v18691_v12 }
 0x2e8   :  { %4408 = vmatpush.bf16.msra.mxu2 %v11924_v11  ;;  %4421 = vmatpush.bf16.msrb.mxu0 %v11928_v37  ;;  %v11803_v11 = vld [vmem:[%s22820_s13 + $0xac8] sm:$0xf]  ;;  %v4109_v37 = vperm.slane %v4104_v24, %v16835_v7 }
 0x2e9   :  { %4434 = vmatpush.bf16.msrb.mxu1 %v11932_v23  ;;  %4447 = vmatpush.bf16.msra.mxu3 %v11936_v42  ;;  %v11805_v23 = vld [vmem:[%s22820_s13 + $0xae8] sm:$0xf0]  ;;  %v18947_v42 = vld [vmem:[%s22822_s2 + $0x1c] sm:$0xff]  }
 0x2ea   :  { %11710 = vmatmul.msk.bf16.vlgmr.msra.gmra.mxu1 %vm1476_vm1, %v18691_v12  ;;  %11711 = vmatmul.msk.bf16.vlgmr.msrb.gmra.mxu3 %vm1476_vm1, %v18691_v12  ;;  %v11868_v12 = vor.u32 %v15242_v63, %v11867_v59  ;;  %v4111_v56 = vunpack.c.l.bf16 %v4109_v37  ;;  %v15259_v59 = vld [vmem:[%s22820_s13 + $0xbec] sm:$0xf0]  ;;  %v11941_v63 = vld [vmem:[%s22820_s13 + $0xbf0] sm:$0xf0] }
 0x2eb   :  { %v11940_v41 = vor.u32 %v15259_v59, %v11939_v57  ;;  %v11944_v14 = vor.u32 %v15255_v27, %v11941_v63  ;;  %v15243_v37 = vld [vmem:[%s22820_s13 + $0xb6c] sm:$0xf0]  ;;  %v11845_v59 = vld [vmem:[%s22820_s13 + $0xb30] sm:$0xf0]  ;;  %v11851_v27 = vld [vmem:[%s22820_s13 + $0xb18] sm:$0xf] }
 0x2ec   :  { %4409 = vmatpush.bf16.msra.mxu2 %v11892_v52  ;;  %4422 = vmatpush.bf16.msrb.mxu0 %v11896_v34  ;;  %v11804_v52 = vor.u32 %v15226_v39, %v11803_v11  ;;  %v11808_v34 = vor.u32 %v15222_v2, %v11805_v23  ;;  %v11875_v11 = vld [vmem:[%s22820_s13 + $0xb50] sm:$0xf]  ;;  %v15239_v23 = vld [vmem:[%s22820_s13 + $0xb54] sm:$0xf]  ;;  %v15236_v63 = vld [vmem:[%s22820_s13 + $0xb34] sm:$0xf0] }
 0x2ed   :  { %4435 = vmatpush.bf16.msrb.mxu1 %v11900_v55  ;;  %4448 = vmatpush.bf16.msra.mxu3 %v11904_v54  ;;  %v15214_v55 = vld [vmem:[%s22820_s13 + $0xa8c] sm:$0xf]  ;;  %v4110_v54 = vunpack.c.l.bf16 %v18947_v42  ;;  %v11876_v46 = vor.u32 %v15243_v37, %v11875_v11  ;;  %v11880_v53 = vor.u32 %v15239_v23, %v11877_v49  ;;  %v15220_v11 = vld [vmem:[%s22820_s13 + $0xab4] sm:$0xf0]  ;;  %v15216_v37 = vld [vmem:[%s22820_s13 + $0xa9c] sm:$0xf] }
 0x2ee   :  { %v11776_v1 = vor.u32 %v15214_v55, %v11773_v47  ;;  %v15301_v23 = vld [vmem:[%s22820_s13 + $0xd44] sm:$0xf] }
 0x2ef   :  { %v3187_v18 = vpop.f32.mrf.mxu1  ;;  %v12174_v49 = vld [vmem:[%s22820_s13 + $0xd60] sm:$0xf0] }
 0x2f0   :  { %4410 = vmatpush.bf16.msra.mxu2 %v11860_v4  ;;  %4423 = vmatpush.bf16.msrb.mxu0 %v11864_v8  ;;  %v15260_v4 = vld [vmem:[%s22820_s13 + $0xbf4] sm:$0xf0]  ;;  %v15256_v8 = vld [vmem:[%s22820_s13 + $0xbdc] sm:$0xf] }
 0x2f1   :  { %4436 = vmatpush.bf16.msrb.mxu1 %v11868_v12  ;;  %4449 = vmatpush.bf16.msra.mxu3 %v11872_v13  ;;  %v3174_v12 = vpop.f32.mrf.mxu0  ;;  %v4112_v13 = vmul.f32 %v4111_v56, %v4110_v54  ;;  %v11948_v24 = vor.u32 %v15260_v4, %v11947_v0  ;;  %v11843_v54 = vld [vmem:[%s22820_s13 + $0xb10] sm:$0xf]  ;;  %v15232_v0 = vld [vmem:[%s22820_s13 + $0xb1c] sm:$0xf] }
 0x2f2   :  { %v18999_v16 = vadd.f32 %v3174_v12, %v18662_v58  ;;  %v11909_v58 = vld [vmem:[%s22820_s13 + $0xbb0] sm:$0xf0]  ;;  %v3161_v2 = vpop.f32.mrf.mxu2  ;;  %v15235_v56 = vld [vmem:[%s22820_s13 + $0xb2c] sm:$0xf0] }
 0x2f3   :  { %v19028_v6 = vpack.c.bf16 %v4112_v13, %v4112_v13  ;;  %v11912_v36 = vor.u32 %v15247_v29, %v11909_v58  ;;  %v15223_v13 = vld [vmem:[%s22820_s13 + $0xad4] sm:$0xf] }
 0x2f4   :  { %4411 = vmatpush.bf16.msra.mxu2 %v11828_v25  ;;  %4424 = vmatpush.bf16.msrb.mxu0 %v11832_v15  ;;  %v11952_v25 = vor.u32 %v15256_v8, %v11949_v51  ;;  %v19008_v15 = vadd.f32 %v3187_v18, %v18671_v31  ;;  %v15248_v31 = vld [vmem:[%s22820_s13 + $0xb9c] sm:$0xf]  ;;  %v11811_v8 = vld [vmem:[%s22820_s13 + $0xad0] sm:$0xf] }
 0x2f5   :  { %4437 = vmatpush.bf16.msrb.mxu1 %v11836_v26  ;;  %4450 = vmatpush.bf16.msra.mxu3 %v11840_v33  ;;  %v15252_v26 = vld [vmem:[%s22820_s13 + $0xbb4] sm:$0xf0]  ;;  %v11917_v33 = vld [vmem:[%s22820_s13 + $0xbb8] sm:$0xf0]  ;;  %v3200_v45 = vpop.f32.mrf.mxu3  ;;  %v15227_v51 = vld [vmem:[%s22820_s13 + $0xaec] sm:$0xf0] }
 0x2f6   :  { %v11916_v38 = vor.u32 %v15252_v26, %v11915_v30  ;;  %v11920_v39 = vor.u32 %v15248_v31, %v11917_v33  ;;  %v11812_v29 = vor.u32 %v15227_v51, %v11811_v8  ;;  %v15219_v30 = vld [vmem:[%s22820_s13 + $0xaac] sm:$0xf0]  ;;  %v15215_v26 = vld [vmem:[%s22820_s13 + $0xa94] sm:$0xf]  ;;  %v12150_v8 = vld [vmem:[%s22820_s13 + $0xd28] sm:$0xf0] }
 0x2f7   :  { %v3189_v55 = vpop.f32.mrf.mxu1  ;;  %v11781_v31 = vld [vmem:[%s22820_s13 + $0xab0] sm:$0xf0] }
 0x2f8   :  { %4412 = vmatpush.bf16.msra.mxu2 %v11796_v17  ;;  %4425 = vmatpush.bf16.msrb.mxu0 %v11800_v50  ;;  %v11883_v17 = vld [vmem:[%s22820_s13 + $0xb58] sm:$0xf]  ;;  %v19050_v50 = vadd.f32 %v3161_v2, %v18713_v9  ;;  %v19066_v9 = vadd.f32 %v3200_v45, %v18729_v61  ;;  %v15231_v61 = vld [vmem:[%s22820_s13 + $0xb14] sm:$0xf]  ;;  %v15305_v2 = vld [vmem:[%s22820_s13 + $0xd5c] sm:$0xf0] }
 0x2f9   :  { %4438 = vmatpush.bf16.msrb.mxu1 %v11804_v52  ;;  %4451 = vmatpush.bf16.msra.mxu3 %v11808_v34  ;;  %v11885_v52 = vld [vmem:[%s22820_s13 + $0xb78] sm:$0xf0]  ;;  %v3176_v34 = vpop.f32.mrf.mxu0  ;;  %v11884_v47 = vor.u32 %v15244_v28, %v11883_v17  ;;  %v11848_v4 = vor.u32 %v15231_v61, %v11845_v59  ;;  %v12180_v17 = vld [vmem:[%s22820_s13 + $0xd48] sm:$0xf]  ;;  %v11784_v28 = vor.u32 %v15215_v26, %v11781_v31  ;;  %v12140_v61 = vld [vmem:[%s22820_s13 + $0xd00] sm:$0xf] }
 0x2fa   :  { %v11888_v57 = vor.u32 %v15240_v40, %v11885_v52  ;;  %v3163_v12 = vpop.f32.mrf.mxu2  ;;  %v15306_v40 = vld [vmem:[%s22820_s13 + $0xd64] sm:$0xf0]  ;;  %v15302_v52 = vld [vmem:[%s22820_s13 + $0xd4c] sm:$0xf]  ;;  %v15297_v59 = vld [vmem:[%s22820_s13 + $0xd1c] sm:$0xf0] }
 0x2fb   :  { %v12182_v34 = vld [vmem:[%s22820_s13 + $0xd68] sm:$0xf0]  ;;  %v12141_v51 = vor.u32 %v15297_v59, %v12140_v61  ;;  %v15289_v12 = vld [vmem:[%s22820_s13 + $0xcdc] sm:$0xf0]  ;;  %v15274_v59 = vld [vmem:[%s22820_s13 + $0xc64] sm:$0xf0] }
 0x2fc   :  { %4413 = vmatpush.bf16.msra.mxu2 %v11764_v3  ;;  %4426 = vmatpush.bf16.msrb.mxu0 %v11768_v62  ;;  %v11853_v3 = vld [vmem:[%s22820_s13 + $0xb38] sm:$0xf0]  ;;  %v11844_v62 = vor.u32 %v15235_v56, %v11843_v54  ;;  %v12177_v56 = vor.u32 %v15301_v23, %v12174_v49  ;;  %v15278_v23 = vld [vmem:[%s22820_s13 + $0xc8c] sm:$0xf] }
 0x2fd   :  { %4439 = vmatpush.bf16.msrb.mxu1 %v11772_v22  ;;  %4452 = vmatpush.bf16.msra.mxu3 %v11776_v1  ;;  %v11852_v22 = vor.u32 %v15236_v63, %v11851_v27  ;;  %v11856_v1 = vor.u32 %v15232_v0, %v11853_v3  ;;  %v3202_v18 = vpop.f32.mrf.mxu3  ;;  %v12181_v27 = vor.u32 %v15306_v40, %v12180_v17  ;;  %v15293_v3 = vld [vmem:[%s22820_s13 + $0xd04] sm:$0xf]  ;;  %v12086_v49 = vld [vmem:[%s22820_s13 + $0xca8] sm:$0xf0]  ;;  %v4522_v17 = vpop.permute.xlu0 %4521  ;;  %v12044_v40 = vld [vmem:[%s22820_s13 + $0xc40] sm:$0xf] }
 0x2fe   :  { %v12185_v63 = vor.u32 %v15302_v52, %v12182_v34  ;;  %v15285_v18 = vld [vmem:[%s22820_s13 + $0xcc4] sm:$0xf]  ;;  %v15273_v52 = vld [vmem:[%s22820_s13 + $0xc5c] sm:$0xf0] }
 0x2ff   :  { %11953 = vmatmul.msk.bf16.vlgmr.msra.gmra.mxu2 %vm1476_vm1, %v19028_v6  ;;  %11954 = vmatmul.msk.bf16.vlgmr.msrb.gmra.mxu0 %vm1476_vm1, %v19028_v6 }
 0x300   :  { %4460 = vmatpush.bf16.msrb.mxu2 %v11940_v41  ;;  %4473 = vmatpush.bf16.msra.mxu0 %v11944_v14  ;;  %v11813_v41 = vld [vmem:[%s22820_s13 + $0xaf0] sm:$0xf0]  ;;  %v11819_v14 = vld [vmem:[%s22820_s13 + $0xad8] sm:$0xf] }
 0x301   :  { %4486 = vmatpush.bf16.msra.mxu1 %v11948_v24  ;;  %4499 = vmatpush.bf16.msrb.mxu3 %v11952_v25  ;;  %v11821_v24 = vld [vmem:[%s22820_s13 + $0xaf8] sm:$0xf0]  ;;  %v11779_v25 = vld [vmem:[%s22820_s13 + $0xa90] sm:$0xf]  ;;  %v11816_v58 = vor.u32 %v15223_v13, %v11813_v41  ;;  %v11820_v33 = vor.u32 %v15228_v20, %v11819_v14  ;;  %v12110_v20 = vld [vmem:[%s22820_s13 + $0xce0] sm:$0xf0] }
 0x302   :  { %11955 = vmatmul.msk.bf16.vlgmr.msrb.gmra.mxu1 %vm1476_vm1, %v19028_v6  ;;  %11956 = vmatmul.msk.bf16.vlgmr.msra.gmra.mxu3 %vm1476_vm1, %v19028_v6  ;;  %v11780_v45 = vor.u32 %v15219_v30, %v11779_v25  ;;  %v12118_v30 = vld [vmem:[%s22820_s13 + $0xce8] sm:$0xf0] }
 0x304   :  { %4461 = vmatpush.bf16.msrb.mxu2 %v11908_v19  ;;  %4474 = vmatpush.bf16.msra.mxu0 %v11912_v36  ;;  %v11824_v19 = vor.u32 %v15224_v10, %v11821_v24  ;;  %v11787_v36 = vld [vmem:[%s22820_s13 + $0xa98] sm:$0xf]  ;;  %v3226_v55 = vpop.f32.mrf.mxu0  ;;  %v12116_v10 = vld [vmem:[%s22820_s13 + $0xcc8] sm:$0xf] }
 0x305   :  { %4487 = vmatpush.bf16.msra.mxu1 %v11916_v38  ;;  %4500 = vmatpush.bf16.msrb.mxu3 %v11920_v39  ;;  %v11789_v38 = vld [vmem:[%s22820_s13 + $0xab8] sm:$0xf0]  ;;  %v12172_v39 = vld [vmem:[%s22820_s13 + $0xd40] sm:$0xf] }
 0x306   :  { %v12173_v54 = vor.u32 %v15305_v2, %v12172_v39  ;;  %v12084_v39 = vld [vmem:[%s22820_s13 + $0xc88] sm:$0xf] }
 0x307   :  { %v15282_v2 = vld [vmem:[%s22820_s13 + $0xca4] sm:$0xf0] }
 0x308   :  { %4462 = vmatpush.bf16.msrb.mxu2 %v11876_v46  ;;  %4475 = vmatpush.bf16.msra.mxu0 %v11880_v53  ;;  %v11788_v46 = vor.u32 %v15220_v11, %v11787_v36  ;;  %v11792_v53 = vor.u32 %v15216_v37, %v11789_v38  ;;  %v12076_v36 = vld [vmem:[%s22820_s13 + $0xc80] sm:$0xf]  ;;  %v12078_v38 = vld [vmem:[%s22820_s13 + $0xca0] sm:$0xf0]  ;;  %v12085_v34 = vor.u32 %v15282_v2, %v12084_v39  ;;  %v12156_v2 = vld [vmem:[%s22820_s13 + $0xd10] sm:$0xf] }
 0x309   :  { %4488 = vmatpush.bf16.msra.mxu1 %v11884_v47  ;;  %4501 = vmatpush.bf16.msrb.mxu3 %v11888_v57  ;;  %v19165_v47 = vadd.f32 %v3226_v55, %v18828_v35  ;;  %v3239_v57 = vpop.f32.mrf.mxu1  ;;  %v12142_v35 = vld [vmem:[%s22820_s13 + $0xd20] sm:$0xf0]  ;;  %v15281_v11 = vld [vmem:[%s22820_s13 + $0xc9c] sm:$0xf0] }
 0x30a   :  { %v19174_v0 = vadd.f32 %v3239_v57, %v18837_v44  ;;  %v15294_v44 = vld [vmem:[%s22820_s13 + $0xd0c] sm:$0xf]  ;;  %v3213_v14 = vpop.f32.mrf.mxu2  ;;  %v15269_v55 = vld [vmem:[%s22820_s13 + $0xc44] sm:$0xf]  ;;  %v4527_v57 = vperm.slane %v4522_v17, %v16835_v7 }
 0x30b   :  { %v12153_v41 = vor.u32 %v15294_v44, %v12150_v8  ;;  %v19214_v24 = vadd.f32 %v3213_v14, %v18877_v60  ;;  %v15261_v44 = vld [vmem:[%s22820_s13 + $0xc04] sm:$0xf] }
 0x30c   :  { %4463 = vmatpush.bf16.msrb.mxu2 %v11844_v62  ;;  %4476 = vmatpush.bf16.msra.mxu0 %v11848_v4  ;;  %v12148_v62 = vld [vmem:[%s22820_s13 + $0xd08] sm:$0xf]  ;;  %v3228_v26 = vpop.f32.mrf.mxu0  ;;  %v12014_v8 = vld [vmem:[%s22820_s13 + $0xc20] sm:$0xf0]  ;;  %v4529_v14 = vunpack.c.l.bf16 %v4527_v57 }
 0x30d   :  { %4489 = vmatpush.bf16.msra.mxu1 %v11852_v22  ;;  %4502 = vmatpush.bf16.msrb.mxu3 %v11856_v1  ;;  %v15298_v4 = vld [vmem:[%s22820_s13 + $0xd24] sm:$0xf0]  ;;  %v12145_v22 = vor.u32 %v15293_v3, %v12142_v35  ;;  %v12108_v1 = vld [vmem:[%s22820_s13 + $0xcc0] sm:$0xf]  ;;  %v3252_v25 = vpop.f32.mrf.mxu3  ;;  %v12045_v35 = vor.u32 %v15273_v52, %v12044_v40  ;;  %v15308_v26 = vld [vmem:[%s22820_s13 + $0xd74] sm:$0xf0] }
 0x30e   :  { %v12149_v13 = vor.u32 %v15298_v4, %v12148_v62  ;;  %v19230_v60 = vadd.f32 %v3252_v25, %v18893_v43  ;;  %v12109_v31 = vor.u32 %v15289_v12, %v12108_v1  ;;  %v15277_v43 = vld [vmem:[%s22820_s13 + $0xc84] sm:$0xf]  ;;  %v12012_v3 = vld [vmem:[%s22820_s13 + $0xc00] sm:$0xf]  ;;  %v12020_v1 = vld [vmem:[%s22820_s13 + $0xc08] sm:$0xf] }
 0x30f   :  { %v15265_v4 = vld [vmem:[%s22820_s13 + $0xc1c] sm:$0xf0]  ;;  %v15266_v12 = vld [vmem:[%s22820_s13 + $0xc24] sm:$0xf0]  ;;  %v15303_v25 = vld [vmem:[%s22820_s13 + $0xd54] sm:$0xf] }
 0x310   :  { %4464 = vmatpush.bf16.msrb.mxu2 %v11812_v29  ;;  %4477 = vmatpush.bf16.msra.mxu0 %v11816_v58  ;;  %v15290_v29 = vld [vmem:[%s22820_s13 + $0xce4] sm:$0xf0]  ;;  %v15286_v58 = vld [vmem:[%s22820_s13 + $0xccc] sm:$0xf]  ;;  %v12164_v40 = vld [vmem:[%s22820_s13 + $0xd18] sm:$0xf] }
 0x311   :  { %4490 = vmatpush.bf16.msra.mxu1 %v11820_v33  ;;  %4503 = vmatpush.bf16.msrb.mxu3 %v11824_v19  ;;  %v12113_v33 = vor.u32 %v15285_v18, %v12110_v20  ;;  %v3241_v19 = vpop.f32.mrf.mxu1  ;;  %v12121_v37 = vor.u32 %v15286_v58, %v12118_v30  ;;  %v12022_v18 = vld [vmem:[%s22820_s13 + $0xc28] sm:$0xf0]  ;;  %v12188_v20 = vld [vmem:[%s22820_s13 + $0xd50] sm:$0xf]  ;;  %v12013_v58 = vor.u32 %v15265_v4, %v12012_v3  ;;  %v15300_v52 = vld [vmem:[%s22820_s13 + $0xd34] sm:$0xf0] }
 0x312   :  { %v12017_v30 = vor.u32 %v15261_v44, %v12014_v8  ;;  %v12021_v19 = vor.u32 %v15266_v12, %v12020_v1  ;;  %v12165_v57 = vor.u32 %v15300_v52, %v12164_v40  ;;  %v12132_v3 = vld [vmem:[%s22820_s13 + $0xcd8] sm:$0xf]  ;;  %v15288_v44 = vld [vmem:[%s22820_s13 + $0xcdc] sm:$0xf]  ;;  %v15263_v40 = vld [vmem:[%s22820_s13 + $0xc14] sm:$0xf] }
 0x313   :  { %v15292_v4 = vld [vmem:[%s22820_s13 + $0xcf4] sm:$0xf0]  ;;  %v12134_v8 = vld [vmem:[%s22820_s13 + $0xcf8] sm:$0xf0]  ;;  %v12030_v52 = vld [vmem:[%s22820_s13 + $0xc30] sm:$0xf0] }
 0x314   :  { %4465 = vmatpush.bf16.msrb.mxu2 %v11780_v45  ;;  %4478 = vmatpush.bf16.msra.mxu0 %v11784_v28  ;;  %v12077_v45 = vor.u32 %v15281_v11, %v12076_v36  ;;  %v12081_v28 = vor.u32 %v15277_v43, %v12078_v38 }
 0x315   :  { %4491 = vmatpush.bf16.msra.mxu1 %v11788_v46  ;;  %4504 = vmatpush.bf16.msrb.mxu3 %v11792_v53  ;;  %v12089_v46 = vor.u32 %v15278_v23, %v12086_v49  ;;  %v3215_v53 = vpop.f32.mrf.mxu2  ;;  %v3254_v61 = vpop.f32.mrf.mxu3  ;;  %v15299_v23 = vld [vmem:[%s22820_s13 + $0xd2c] sm:$0xf0] }
 0x316   :  { %v12157_v53 = vor.u32 %v15299_v23, %v12156_v2  ;;  %v15272_v2 = vld [vmem:[%s22820_s13 + $0xc5c] sm:$0xf] }
 0x317   :  { %11957 = vmatmul.msk.bf16.vlgmr.msrb.gmra.mxu2 %vm1476_vm1, %v19028_v6  ;;  %11958 = vmatmul.msk.bf16.vlgmr.msra.gmra.mxu0 %vm1476_vm1, %v19028_v6  ;;  %v12070_v23 = vld [vmem:[%s22820_s13 + $0xc78] sm:$0xf0] }
 0x318   :  { %4826 = vmatpush.bf16.msra.mxu2 %v12173_v54  ;;  %4839 = vmatpush.bf16.msrb.mxu0 %v12177_v56  ;;  %v12046_v54 = vld [vmem:[%s22820_s13 + $0xc60] sm:$0xf0]  ;;  %v12052_v56 = vld [vmem:[%s22820_s13 + $0xc48] sm:$0xf] }
 0x319   :  { %4852 = vmatpush.bf16.msrb.mxu1 %v12181_v27  ;;  %4865 = vmatpush.bf16.msra.mxu3 %v12185_v63  ;;  %v15270_v27 = vld [vmem:[%s22820_s13 + $0xc4c] sm:$0xf]  ;;  %v12049_v62 = vor.u32 %v15269_v55, %v12046_v54  ;;  %v12124_v54 = vld [vmem:[%s22820_s13 + $0xcd0] sm:$0xf] }
 0x31a   :  { %11959 = vmatmul.msk.bf16.vlgmr.msra.gmra.mxu1 %vm1476_vm1, %v19028_v6  ;;  %11960 = vmatmul.msk.bf16.vlgmr.msrb.gmra.mxu3 %vm1476_vm1, %v19028_v6  ;;  %v12117_v6 = vor.u32 %v15290_v29, %v12116_v10  ;;  %v12054_v63 = vld [vmem:[%s22820_s13 + $0xc68] sm:$0xf0]  ;;  %v15307_v10 = vld [vmem:[%s22820_s13 + $0xd6c] sm:$0xf0]  ;;  %v12196_v29 = vld [vmem:[%s22820_s13 + $0xd58] sm:$0xf] }
 0x31b   :  { %v12197_v49 = vor.u32 %v15308_v26, %v12196_v29  ;;  %v12102_v29 = vld [vmem:[%s22820_s13 + $0xcb8] sm:$0xf0]  ;;  %v12060_v26 = vld [vmem:[%s22820_s13 + $0xc50] sm:$0xf] }
 0x31c   :  { %4827 = vmatpush.bf16.msra.mxu2 %v12141_v51  ;;  %4840 = vmatpush.bf16.msrb.mxu0 %v12145_v22  ;;  %v12053_v51 = vor.u32 %v15274_v59, %v12052_v56  ;;  %v12057_v22 = vor.u32 %v15270_v27, %v12054_v63  ;;  %v3592_v11 = vpop.f32.mrf.mxu0  ;;  %v15291_v56 = vld [vmem:[%s22820_s13 + $0xcec] sm:$0xf0]  ;;  %v15287_v27 = vld [vmem:[%s22820_s13 + $0xcd4] sm:$0xf] }
 0x31d   :  { %4853 = vmatpush.bf16.msrb.mxu1 %v12149_v13  ;;  %4866 = vmatpush.bf16.msra.mxu3 %v12153_v41  ;;  %v15262_v13 = vld [vmem:[%s22820_s13 + $0xc0c] sm:$0xf]  ;;  %v4528_v41 = vunpack.c.h.bf16 %v18947_v42  ;;  %v12190_v42 = vld [vmem:[%s22820_s13 + $0xd70] sm:$0xf0]  ;;  %v19331_v38 = vadd.f32 %v3592_v11, %v18999_v16 }
 0x31e   :  { %v12025_v36 = vor.u32 %v15262_v13, %v12022_v18  ;;  %v12193_v43 = vor.u32 %v15303_v25, %v12190_v42  ;;  %v12158_v16 = vld [vmem:[%s22820_s13 + $0xd30] sm:$0xf0]  ;;  %v12092_v13 = vld [vmem:[%s22820_s13 + $0xc90] sm:$0xf]  ;;  %v12137_v18 = vor.u32 %v15288_v44, %v12134_v8  ;;  %v15284_v25 = vld [vmem:[%s22820_s13 + $0xcb4] sm:$0xf0] }
 0x31f   :  { %v3605_v39 = vpop.f32.mrf.mxu1  ;;  %v12126_v63 = vld [vmem:[%s22820_s13 + $0xcf0] sm:$0xf0]  ;;  %v15280_v42 = vld [vmem:[%s22820_s13 + $0xc9c] sm:$0xf]  ;;  %v15350_v44 = vld [vmem:[%s22820_s13 + $0xecc] sm:$0xf] }
 0x320   :  { %4828 = vmatpush.bf16.msra.mxu2 %v12109_v31  ;;  %4841 = vmatpush.bf16.msrb.mxu0 %v12113_v33  ;;  %v15304_v31 = vld [vmem:[%s22820_s13 + $0xd5c] sm:$0xf]  ;;  %v12129_v1 = vor.u32 %v15287_v27, %v12126_v63  ;;  %v15271_v11 = vld [vmem:[%s22820_s13 + $0xc54] sm:$0xf]  ;;  %v12423_v27 = vld [vmem:[%s22820_s13 + $0xee0] sm:$0xf0] }
 0x321   :  { %4854 = vmatpush.bf16.msrb.mxu1 %v12117_v6  ;;  %4867 = vmatpush.bf16.msra.mxu3 %v12121_v37  ;;  %v12198_v33 = vld [vmem:[%s22820_s13 + $0xd78] sm:$0xf0]  ;;  %v4530_v6 = vmul.f32 %v4529_v14, %v4528_v41  ;;  %v12189_v37 = vor.u32 %v15307_v10, %v12188_v20  ;;  %v15283_v41 = vld [vmem:[%s22820_s13 + $0xcac] sm:$0xf0]  ;;  %v12133_v14 = vor.u32 %v15292_v4, %v12132_v3  ;;  %v12094_v20 = vld [vmem:[%s22820_s13 + $0xcb0] sm:$0xf0] }
 0x322   :  { %v12201_v17 = vor.u32 %v15304_v31, %v12198_v33  ;;  %v3579_v59 = vpop.f32.mrf.mxu2  ;;  %v12100_v10 = vld [vmem:[%s22820_s13 + $0xc98] sm:$0xf]  ;;  %v15275_v31 = vld [vmem:[%s22820_s13 + $0xc6c] sm:$0xf0]  ;;  %v12429_v63 = vld [vmem:[%s22820_s13 + $0xec8] sm:$0xf] }
 0x323   :  { %v12101_v33 = vor.u32 %v15284_v25, %v12100_v10  ;;  %v15354_v4 = vld [vmem:[%s22820_s13 + $0xee4] sm:$0xf0]  ;;  %v12431_v8 = vld [vmem:[%s22820_s13 + $0xee8] sm:$0xf0] }
 0x324   :  { %4829 = vmatpush.bf16.msra.mxu2 %v12077_v45  ;;  %4842 = vmatpush.bf16.msrb.mxu0 %v12081_v28  ;;  %v19340_v45 = vadd.f32 %v3605_v39, %v19008_v15  ;;  %v15295_v28 = vld [vmem:[%s22820_s13 + $0xd14] sm:$0xf]  ;;  %v15296_v15 = vld [vmem:[%s22820_s13 + $0xd1c] sm:$0xf]  ;;  %v15276_v39 = vld [vmem:[%s22820_s13 + $0xc74] sm:$0xf0]  ;;  %v12434_v10 = vor.u32 %v15350_v44, %v12431_v8 }
 0x325   :  { %4855 = vmatpush.bf16.msrb.mxu1 %v12085_v34  ;;  %4868 = vmatpush.bf16.msra.mxu3 %v12089_v46  ;;  %v12166_v34 = vld [vmem:[%s22820_s13 + $0xd38] sm:$0xf0]  ;;  %v19360_v46 = vpack.c.bf16 %v4530_v6, %v4530_v6  ;;  %v12161_v55 = vor.u32 %v15295_v28, %v12158_v16  ;;  %v12062_v6 = vld [vmem:[%s22820_s13 + $0xc70] sm:$0xf0]  ;;  %v15267_v16 = vld [vmem:[%s22820_s13 + $0xc2c] sm:$0xf0] }
 0x326   :  { %v12169_v61 = vor.u32 %v15296_v15, %v12166_v34  ;;  %v12065_v28 = vor.u32 %v15271_v11, %v12062_v6  ;;  %v12073_v34 = vor.u32 %v15272_v2, %v12070_v23 }
 0x327   :  { %v3607_v12 = vpop.f32.mrf.mxu1 }
 0x328   :  { %4830 = vmatpush.bf16.msra.mxu2 %v12045_v35  ;;  %4843 = vmatpush.bf16.msrb.mxu0 %v12049_v62  ;;  %v19382_v35 = vadd.f32 %v3579_v59, %v19050_v50  ;;  %v3618_v62 = vpop.f32.mrf.mxu3  ;;  %v15349_v59 = vld [vmem:[%s22820_s13 + $0xec4] sm:$0xf] }
 0x329   :  { %4856 = vmatpush.bf16.msrb.mxu1 %v12053_v51  ;;  %4869 = vmatpush.bf16.msra.mxu3 %v12057_v22  ;;  %v19398_v50 = vadd.f32 %v3618_v62, %v19066_v9  ;;  %v3594_v51 = vpop.f32.mrf.mxu0  ;;  %v12125_v22 = vor.u32 %v15291_v56, %v12124_v54  ;;  %v15279_v9 = vld [vmem:[%s22820_s13 + $0xc94] sm:$0xf]  ;;  %v15264_v54 = vld [vmem:[%s22820_s13 + $0xc1c] sm:$0xf]  ;;  %v12033_v62 = vor.u32 %v15263_v40, %v12030_v52 }
 0x32a   :  { %v12038_v56 = vld [vmem:[%s22820_s13 + $0xc38] sm:$0xf0] }
 0x32c   :  { %4831 = vmatpush.bf16.msra.mxu2 %v12013_v58  ;;  %4844 = vmatpush.bf16.msrb.mxu0 %v12017_v30  ;;  %v12093_v58 = vor.u32 %v15283_v41, %v12092_v13  ;;  %v12097_v30 = vor.u32 %v15279_v9, %v12094_v20  ;;  %v12426_v13 = vor.u32 %v15349_v59, %v12423_v27  ;;  %v15345_v9 = vld [vmem:[%s22820_s13 + $0xe9c] sm:$0xf0]  ;;  %v12335_v59 = vld [vmem:[%s22820_s13 + $0xe28] sm:$0xf0]  ;;  %v4940_v27 = vpop.permute.xlu1 %4939 }
 0x32d   :  { %4857 = vmatpush.bf16.msrb.mxu1 %v12021_v19  ;;  %4870 = vmatpush.bf16.msra.mxu3 %v12025_v36  ;;  %v12105_v19 = vor.u32 %v15280_v42, %v12102_v29  ;;  %v3581_v36 = vpop.f32.mrf.mxu2  ;;  %v12430_v20 = vor.u32 %v15354_v4, %v12429_v63  ;;  %v15341_v42 = vld [vmem:[%s22820_s13 + $0xe84] sm:$0xf]  ;;  %v12397_v29 = vld [vmem:[%s22820_s13 + $0xe88] sm:$0xf]  ;;  %v15321_v4 = vld [vmem:[%s22820_s13 + $0xddc] sm:$0xf0] }
 0x32f   :  { %12202 = vmatmul.msk.bf16.vlgmr.msra.gmra.mxu2 %vm1476_vm1, %v19360_v46  ;;  %12203 = vmatmul.msk.bf16.vlgmr.msrb.gmra.mxu0 %vm1476_vm1, %v19360_v46 }
 0x330   :  { %4878 = vmatpush.bf16.msrb.mxu2 %v12189_v37  ;;  %4891 = vmatpush.bf16.msra.mxu0 %v12193_v43  ;;  %v12068_v37 = vld [vmem:[%s22820_s13 + $0xc58] sm:$0xf]  ;;  %v3620_v43 = vpop.f32.mrf.mxu3 }
 0x331   :  { %4904 = vmatpush.bf16.msra.mxu1 %v12197_v49  ;;  %4917 = vmatpush.bf16.msrb.mxu3 %v12201_v17  ;;  %v12028_v49 = vld [vmem:[%s22820_s13 + $0xc10] sm:$0xf]  ;;  %v12061_v17 = vor.u32 %v15275_v31, %v12060_v26  ;;  %v12069_v15 = vor.u32 %v15276_v39, %v12068_v37  ;;  %v15333_v37 = vld [vmem:[%s22820_s13 + $0xe44] sm:$0xf]  ;;  %v12365_v39 = vld [vmem:[%s22820_s13 + $0xe48] sm:$0xf] }
 0x332   :  { %12204 = vmatmul.msk.bf16.vlgmr.msrb.gmra.mxu1 %vm1476_vm1, %v19360_v46  ;;  %12205 = vmatmul.msk.bf16.vlgmr.msra.gmra.mxu3 %vm1476_vm1, %v19360_v46  ;;  %v12029_v3 = vor.u32 %v15267_v16, %v12028_v49  ;;  %v12359_v43 = vld [vmem:[%s22820_s13 + $0xe60] sm:$0xf0]  ;;  %v15338_v49 = vld [vmem:[%s22820_s13 + $0xe64] sm:$0xf0] }
 0x333   :  { %v12362_v52 = vor.u32 %v15333_v37, %v12359_v43  ;;  %v12271_v37 = vld [vmem:[%s22820_s13 + $0xda8] sm:$0xf0]  ;;  %v12437_v43 = vld [vmem:[%s22820_s13 + $0xed0] sm:$0xf] }
 0x334   :  { %4879 = vmatpush.bf16.msrb.mxu2 %v12157_v53  ;;  %4892 = vmatpush.bf16.msra.mxu0 %v12161_v55  ;;  %v12036_v53 = vld [vmem:[%s22820_s13 + $0xc18] sm:$0xf] }
 0x335   :  { %4905 = vmatpush.bf16.msra.mxu1 %v12165_v57  ;;  %4918 = vmatpush.bf16.msrb.mxu3 %v12169_v61  ;;  %v15268_v55 = vld [vmem:[%s22820_s13 + $0xc34] sm:$0xf0]  ;;  %v12421_v57 = vld [vmem:[%s22820_s13 + $0xec0] sm:$0xf] }
 0x336   :  { %v15353_v61 = vld [vmem:[%s22820_s13 + $0xedc] sm:$0xf0]  ;;  %v12037_v51 = vor.u32 %v15268_v55, %v12036_v53 }
 0x337   :  { %v12422_v12 = vor.u32 %v15353_v61, %v12421_v57  ;;  %v15329_v53 = vld [vmem:[%s22820_s13 + $0xe1c] sm:$0xf0]  ;;  %v15330_v57 = vld [vmem:[%s22820_s13 + $0xe24] sm:$0xf0]  ;;  %v15326_v61 = vld [vmem:[%s22820_s13 + $0xe0c] sm:$0xf] }
 0x338   :  { %4880 = vmatpush.bf16.msrb.mxu2 %v12125_v22  ;;  %4893 = vmatpush.bf16.msra.mxu0 %v12129_v1  ;;  %v12041_v22 = vor.u32 %v15264_v54, %v12038_v56  ;;  %v3644_v1 = vpop.f32.mrf.mxu0  ;;  %v12327_v54 = vld [vmem:[%s22820_s13 + $0xe20] sm:$0xf0]  ;;  %v12333_v56 = vld [vmem:[%s22820_s13 + $0xe08] sm:$0xf]  ;;  %v12338_v8 = vor.u32 %v15326_v61, %v12335_v59  ;;  %v12405_v61 = vld [vmem:[%s22820_s13 + $0xe90] sm:$0xf] }
 0x339   :  { %4906 = vmatpush.bf16.msra.mxu1 %v12133_v14  ;;  %4919 = vmatpush.bf16.msrb.mxu3 %v12137_v18  ;;  %v19497_v41 = vadd.f32 %v3644_v1, %v19165_v47  ;;  %v3657_v14 = vpop.f32.mrf.mxu1  ;;  %v12389_v18 = vld [vmem:[%s22820_s13 + $0xe80] sm:$0xf]  ;;  %v12391_v47 = vld [vmem:[%s22820_s13 + $0xea0] sm:$0xf0]  ;;  %v12334_v44 = vor.u32 %v15330_v57, %v12333_v56  ;;  %v15347_v59 = vld [vmem:[%s22820_s13 + $0xeac] sm:$0xf0] }
 0x33a   :  { %v19506_v25 = vadd.f32 %v3657_v14, %v19174_v0  ;;  %v15342_v0 = vld [vmem:[%s22820_s13 + $0xe8c] sm:$0xf]  ;;  %v12390_v26 = vor.u32 %v15345_v9, %v12389_v18  ;;  %v12394_v31 = vor.u32 %v15341_v42, %v12391_v47  ;;  %v3631_v6 = vpop.f32.mrf.mxu2  ;;  %v12295_v1 = vld [vmem:[%s22820_s13 + $0xde0] sm:$0xf0]  ;;  %v15322_v18 = vld [vmem:[%s22820_s13 + $0xde4] sm:$0xf0] }
 0x33b   :  { %v19546_v2 = vadd.f32 %v3631_v6, %v19214_v24  ;;  %v15318_v9 = vld [vmem:[%s22820_s13 + $0xdcc] sm:$0xf]  ;;  %v12261_v42 = vld [vmem:[%s22820_s13 + $0xd80] sm:$0xf] }
 0x33c   :  { %4881 = vmatpush.bf16.msrb.mxu2 %v12093_v58  ;;  %4894 = vmatpush.bf16.msra.mxu0 %v12097_v30  ;;  %v15346_v58 = vld [vmem:[%s22820_s13 + $0xea4] sm:$0xf0]  ;;  %v12399_v30 = vld [vmem:[%s22820_s13 + $0xea8] sm:$0xf0] }
 0x33d   :  { %4907 = vmatpush.bf16.msra.mxu1 %v12101_v33  ;;  %4920 = vmatpush.bf16.msrb.mxu3 %v12105_v19  ;;  %v12357_v33 = vld [vmem:[%s22820_s13 + $0xe40] sm:$0xf]  ;;  %v12398_v36 = vor.u32 %v15346_v58, %v12397_v29  ;;  %v12402_v11 = vor.u32 %v15342_v0, %v12399_v30  ;;  %v3670_v23 = vpop.f32.mrf.mxu3  ;;  %v15309_v0 = vld [vmem:[%s22820_s13 + $0xd84] sm:$0xf] }
 0x33e   :  { %v15337_v19 = vld [vmem:[%s22820_s13 + $0xe5c] sm:$0xf0]  ;;  %v19562_v24 = vadd.f32 %v3670_v23, %v19230_v60  ;;  %v15325_v60 = vld [vmem:[%s22820_s13 + $0xe04] sm:$0xf]  ;;  %v15351_v23 = vld [vmem:[%s22820_s13 + $0xed4] sm:$0xf] }
 0x33f   :  { %v12358_v40 = vor.u32 %v15337_v19, %v12357_v33  ;;  %v15313_v58 = vld [vmem:[%s22820_s13 + $0xd9c] sm:$0xf0]  ;;  %v12263_v30 = vld [vmem:[%s22820_s13 + $0xda0] sm:$0xf0]  ;;  %v12269_v33 = vld [vmem:[%s22820_s13 + $0xd88] sm:$0xf] }
 0x340   :  { %4882 = vmatpush.bf16.msrb.mxu2 %v12061_v17  ;;  %4895 = vmatpush.bf16.msra.mxu0 %v12065_v28  ;;  %v15334_v17 = vld [vmem:[%s22820_s13 + $0xe4c] sm:$0xf]  ;;  %v3646_v16 = vpop.f32.mrf.mxu0  ;;  %v15314_v19 = vld [vmem:[%s22820_s13 + $0xda4] sm:$0xf0] }
 0x341   :  { %4908 = vmatpush.bf16.msra.mxu1 %v12069_v15  ;;  %4921 = vmatpush.bf16.msrb.mxu3 %v12073_v34  ;;  %v12367_v28 = vld [vmem:[%s22820_s13 + $0xe68] sm:$0xf0]  ;;  %v3659_v15 = vpop.f32.mrf.mxu1  ;;  %v12325_v34 = vld [vmem:[%s22820_s13 + $0xe00] sm:$0xf]  ;;  %v12266_v16 = vor.u32 %v15309_v0, %v12263_v30  ;;  %v15336_v0 = vld [vmem:[%s22820_s13 + $0xe5c] sm:$0xf] }
 0x342   :  { %v12370_v55 = vor.u32 %v15334_v17, %v12367_v28  ;;  %v12326_v63 = vor.u32 %v15329_v53, %v12325_v34  ;;  %v12445_v17 = vld [vmem:[%s22820_s13 + $0xed8] sm:$0xf]  ;;  %v12262_v28 = vor.u32 %v15313_v58, %v12261_v42  ;;  %v12447_v15 = vld [vmem:[%s22820_s13 + $0xef8] sm:$0xf0]  ;;  %v12270_v34 = vor.u32 %v15314_v19, %v12269_v33 }
 0x343   :  { %v12381_v42 = vld [vmem:[%s22820_s13 + $0xe58] sm:$0xf]  ;;  %v12383_v30 = vld [vmem:[%s22820_s13 + $0xe78] sm:$0xf0] }
 0x344   :  { %4883 = vmatpush.bf16.msrb.mxu2 %v12029_v3  ;;  %4896 = vmatpush.bf16.msra.mxu0 %v12033_v62  ;;  %v12330_v3 = vor.u32 %v15325_v60, %v12327_v54  ;;  %v12293_v62 = vld [vmem:[%s22820_s13 + $0xdc0] sm:$0xf]  ;;  %v15340_v58 = vld [vmem:[%s22820_s13 + $0xe74] sm:$0xf0] }
 0x345   :  { %4909 = vmatpush.bf16.msra.mxu1 %v12037_v51  ;;  %4922 = vmatpush.bf16.msrb.mxu3 %v12041_v22  ;;  %v3633_v51 = vpop.f32.mrf.mxu2  ;;  %v15317_v22 = vld [vmem:[%s22820_s13 + $0xdc4] sm:$0xf]  ;;  %v3672_v14 = vpop.f32.mrf.mxu3  ;;  %v12294_v47 = vor.u32 %v15321_v4, %v12293_v62  ;;  %v15343_v62 = vld [vmem:[%s22820_s13 + $0xe94] sm:$0xf]  ;;  %v12413_v4 = vld [vmem:[%s22820_s13 + $0xe98] sm:$0xf] }
 0x346   :  { %v12298_v29 = vor.u32 %v15317_v22, %v12295_v1  ;;  %v12406_v22 = vor.u32 %v15347_v59, %v12405_v61  ;;  %v15320_v61 = vld [vmem:[%s22820_s13 + $0xddc] sm:$0xf] }
 0x347   :  { %12206 = vmatmul.msk.bf16.vlgmr.msrb.gmra.mxu2 %vm1476_vm1, %v19360_v46  ;;  %12207 = vmatmul.msk.bf16.vlgmr.msra.gmra.mxu0 %vm1476_vm1, %v19360_v46  ;;  %v12319_v59 = vld [vmem:[%s22820_s13 + $0xdf8] sm:$0xf0] }
 0x348   :  { %5244 = vmatpush.bf16.msra.mxu2 %v12422_v12  ;;  %5257 = vmatpush.bf16.msrb.mxu0 %v12426_v13  ;;  %v12301_v12 = vld [vmem:[%s22820_s13 + $0xdc8] sm:$0xf]  ;;  %v4945_v13 = vperm.slane %v4940_v27, %v16835_v7 }
 0x349   :  { %5270 = vmatpush.bf16.msrb.mxu1 %v12430_v20  ;;  %5283 = vmatpush.bf16.msra.mxu3 %v12434_v10  ;;  %v12303_v20 = vld [vmem:[%s22820_s13 + $0xde8] sm:$0xf0]  ;;  %v12210_v10 = vld [vmem:[%s22822_s2 + $0x24] sm:$0xf] }
 0x34a   :  { %12208 = vmatmul.msk.bf16.vlgmr.msra.gmra.mxu1 %vm1476_vm1, %v19360_v46  ;;  %12209 = vmatmul.msk.bf16.vlgmr.msrb.gmra.mxu3 %vm1476_vm1, %v19360_v46  ;;  %v12366_v46 = vor.u32 %v15338_v49, %v12365_v39  ;;  %v4947_v6 = vunpack.c.l.bf16 %v4945_v13  ;;  %v15355_v39 = vld [vmem:[%s22820_s13 + $0xeec] sm:$0xf0]  ;;  %v12439_v49 = vld [vmem:[%s22820_s13 + $0xef0] sm:$0xf0] }
 0x34b   :  { %v12438_v60 = vor.u32 %v15355_v39, %v12437_v43  ;;  %v12442_v54 = vor.u32 %v15351_v23, %v12439_v49  ;;  %v15339_v13 = vld [vmem:[%s22820_s13 + $0xe6c] sm:$0xf0]  ;;  %v12343_v43 = vld [vmem:[%s22820_s13 + $0xe30] sm:$0xf0]  ;;  %v12349_v39 = vld [vmem:[%s22820_s13 + $0xe18] sm:$0xf] }
 0x34c   :  { %5245 = vmatpush.bf16.msra.mxu2 %v12390_v26  ;;  %5258 = vmatpush.bf16.msrb.mxu0 %v12394_v31  ;;  %v12302_v26 = vor.u32 %v15322_v18, %v12301_v12  ;;  %v12306_v31 = vor.u32 %v15318_v9, %v12303_v20  ;;  %v12373_v12 = vld [vmem:[%s22820_s13 + $0xe50] sm:$0xf]  ;;  %v15335_v20 = vld [vmem:[%s22820_s13 + $0xe54] sm:$0xf]  ;;  %v15332_v23 = vld [vmem:[%s22820_s13 + $0xe34] sm:$0xf0] }
 0x34d   :  { %5271 = vmatpush.bf16.msrb.mxu1 %v12398_v36  ;;  %5284 = vmatpush.bf16.msra.mxu3 %v12402_v11  ;;  %v15310_v36 = vld [vmem:[%s22820_s13 + $0xd8c] sm:$0xf]  ;;  %v4946_v11 = vunpack.c.l.bf16 %v12210_v10  ;;  %v12375_v10 = vld [vmem:[%s22820_s13 + $0xe70] sm:$0xf0]  ;;  %v15328_v49 = vld [vmem:[%s22820_s13 + $0xe1c] sm:$0xf] }
 0x34e   :  { %v12274_v53 = vor.u32 %v15310_v36, %v12271_v37  ;;  %v12378_v33 = vor.u32 %v15335_v20, %v12375_v10  ;;  %v12341_v36 = vld [vmem:[%s22820_s13 + $0xe10] sm:$0xf]  ;;  %v12386_v37 = vor.u32 %v15336_v0, %v12383_v30  ;;  %v12672_v20 = vld [vmem:[%s22820_s13 + $0x1060] sm:$0xf0]  ;;  %v12678_v10 = vld [vmem:[%s22820_s13 + $0x1048] sm:$0xf] }
 0x34f   :  { %v4023_v57 = vpop.f32.mrf.mxu1  ;;  %v15398_v0 = vld [vmem:[%s22820_s13 + $0x104c] sm:$0xf] }
 0x350   :  { %5246 = vmatpush.bf16.msra.mxu2 %v12358_v40  ;;  %5259 = vmatpush.bf16.msrb.mxu0 %v12362_v52  ;;  %v15356_v40 = vld [vmem:[%s22820_s13 + $0xef4] sm:$0xf0]  ;;  %v15352_v52 = vld [vmem:[%s22820_s13 + $0xedc] sm:$0xf]  ;;  %v12680_v30 = vld [vmem:[%s22820_s13 + $0x1068] sm:$0xf0] }
 0x351   :  { %5272 = vmatpush.bf16.msrb.mxu1 %v12366_v46  ;;  %5285 = vmatpush.bf16.msra.mxu3 %v12370_v55  ;;  %v4010_v46 = vpop.f32.mrf.mxu0  ;;  %v4948_v55 = vmul.f32 %v4947_v6, %v4946_v11  ;;  %v12446_v27 = vor.u32 %v15356_v40, %v12445_v17  ;;  %v15331_v11 = vld [vmem:[%s22820_s13 + $0xe2c] sm:$0xf0]  ;;  %v12382_v6 = vor.u32 %v15340_v58, %v12381_v42  ;;  %v12351_v17 = vld [vmem:[%s22820_s13 + $0xe38] sm:$0xf0]  ;;  %v15402_v58 = vld [vmem:[%s22820_s13 + $0x1064] sm:$0xf0] }
 0x352   :  { %v19665_v56 = vadd.f32 %v4010_v46, %v19331_v38  ;;  %v12407_v38 = vld [vmem:[%s22820_s13 + $0xeb0] sm:$0xf0]  ;;  %v3997_v9 = vpop.f32.mrf.mxu2  ;;  %v12309_v40 = vld [vmem:[%s22820_s13 + $0xdd0] sm:$0xf] }
 0x353   :  { %v19694_v51 = vpack.c.bf16 %v4948_v55, %v4948_v55  ;;  %v12410_v1 = vor.u32 %v15343_v62, %v12407_v38  ;;  %v15319_v46 = vld [vmem:[%s22820_s13 + $0xdd4] sm:$0xf]  ;;  %v15315_v38 = vld [vmem:[%s22820_s13 + $0xdac] sm:$0xf0] }
 0x354   :  { %5247 = vmatpush.bf16.msra.mxu2 %v12326_v63  ;;  %5260 = vmatpush.bf16.msrb.mxu0 %v12330_v3  ;;  %v12450_v63 = vor.u32 %v15352_v52, %v12447_v15  ;;  %v19674_v3 = vadd.f32 %v4023_v57, %v19340_v45  ;;  %v15344_v45 = vld [vmem:[%s22820_s13 + $0xe9c] sm:$0xf]  ;;  %v15323_v52 = vld [vmem:[%s22820_s13 + $0xdec] sm:$0xf0]  ;;  %v12350_v15 = vor.u32 %v15332_v23, %v12349_v39  ;;  %v12311_v55 = vld [vmem:[%s22820_s13 + $0xdf0] sm:$0xf0] }
 0x355   :  { %5273 = vmatpush.bf16.msrb.mxu1 %v12334_v44  ;;  %5286 = vmatpush.bf16.msra.mxu3 %v12338_v8  ;;  %v15348_v44 = vld [vmem:[%s22820_s13 + $0xeb4] sm:$0xf0]  ;;  %v12415_v8 = vld [vmem:[%s22820_s13 + $0xeb8] sm:$0xf0]  ;;  %v12314_v62 = vor.u32 %v15319_v46, %v12311_v55  ;;  %v12683_v39 = vor.u32 %v15398_v0, %v12680_v30 }
 0x356   :  { %v12414_v14 = vor.u32 %v15348_v44, %v12413_v4  ;;  %v12418_v18 = vor.u32 %v15344_v45, %v12415_v8  ;;  %v15324_v57 = vld [vmem:[%s22820_s13 + $0xdf4] sm:$0xf0]  ;;  %v15311_v4 = vld [vmem:[%s22820_s13 + $0xd94] sm:$0xf]  ;;  %v12322_v8 = vor.u32 %v15320_v61, %v12319_v59 }
 0x357   :  { %v4025_v19 = vpop.f32.mrf.mxu1  ;;  %v12279_v44 = vld [vmem:[%s22820_s13 + $0xdb0] sm:$0xf0] }
 0x358   :  { %5248 = vmatpush.bf16.msra.mxu2 %v12294_v47  ;;  %5261 = vmatpush.bf16.msrb.mxu0 %v12298_v29  ;;  %v19716_v47 = vadd.f32 %v3997_v9, %v19382_v35  ;;  %v4036_v29 = vpop.f32.mrf.mxu3  ;;  %v15397_v9 = vld [vmem:[%s22820_s13 + $0x1044] sm:$0xf] }
 0x359   :  { %5274 = vmatpush.bf16.msrb.mxu1 %v12302_v26  ;;  %5287 = vmatpush.bf16.msra.mxu3 %v12306_v31  ;;  %v19732_v35 = vadd.f32 %v4036_v29, %v19398_v50  ;;  %v4012_v26 = vpop.f32.mrf.mxu0  ;;  %v12374_v31 = vor.u32 %v15339_v13, %v12373_v12  ;;  %v15327_v50 = vld [vmem:[%s22820_s13 + $0xe14] sm:$0xf]  ;;  %v15312_v12 = vld [vmem:[%s22820_s13 + $0xd9c] sm:$0xf]  ;;  %v12282_v29 = vor.u32 %v15311_v4, %v12279_v44 }
 0x35a   :  { %v12287_v13 = vld [vmem:[%s22820_s13 + $0xdb8] sm:$0xf0] }
 0x35c   :  { %5249 = vmatpush.bf16.msra.mxu2 %v12262_v28  ;;  %5262 = vmatpush.bf16.msrb.mxu0 %v12266_v16  ;;  %v12342_v28 = vor.u32 %v15331_v11, %v12341_v36  ;;  %v12346_v16 = vor.u32 %v15327_v50, %v12343_v43  ;;  %v12675_v36 = vor.u32 %v15397_v9, %v12672_v20  ;;  %v15393_v50 = vld [vmem:[%s22820_s13 + $0x101c] sm:$0xf0]  ;;  %v12584_v9 = vld [vmem:[%s22820_s13 + $0xfa8] sm:$0xf0]  ;;  %v5358_v20 = vpop.permute.xlu2 %5357 }
 0x35d   :  { %5275 = vmatpush.bf16.msrb.mxu1 %v12270_v34  ;;  %5288 = vmatpush.bf16.msra.mxu3 %v12274_v53  ;;  %v12354_v34 = vor.u32 %v15328_v49, %v12351_v17  ;;  %v3999_v53 = vpop.f32.mrf.mxu2  ;;  %v12679_v43 = vor.u32 %v15402_v58, %v12678_v10  ;;  %v15389_v49 = vld [vmem:[%s22820_s13 + $0x1004] sm:$0xf]  ;;  %v12646_v17 = vld [vmem:[%s22820_s13 + $0x1008] sm:$0xf]  ;;  %v15369_v58 = vld [vmem:[%s22820_s13 + $0xf5c] sm:$0xf0] }
 0x35f   :  { %12451 = vmatmul.msk.bf16.vlgmr.msra.gmra.mxu2 %vm1476_vm1, %v19694_v51  ;;  %12452 = vmatmul.msk.bf16.vlgmr.msrb.gmra.mxu0 %vm1476_vm1, %v19694_v51 }
 0x360   :  { %5296 = vmatpush.bf16.msrb.mxu2 %v12438_v60  ;;  %5309 = vmatpush.bf16.msra.mxu0 %v12442_v54  ;;  %v12317_v60 = vld [vmem:[%s22820_s13 + $0xdd8] sm:$0xf]  ;;  %v4038_v54 = vpop.f32.mrf.mxu3 }
 0x361   :  { %5322 = vmatpush.bf16.msra.mxu1 %v12446_v27  ;;  %5335 = vmatpush.bf16.msrb.mxu3 %v12450_v63  ;;  %v12277_v27 = vld [vmem:[%s22820_s13 + $0xd90] sm:$0xf]  ;;  %v12310_v63 = vor.u32 %v15323_v52, %v12309_v40  ;;  %v12318_v45 = vor.u32 %v15324_v57, %v12317_v60  ;;  %v15381_v60 = vld [vmem:[%s22820_s13 + $0xfc4] sm:$0xf]  ;;  %v12614_v57 = vld [vmem:[%s22820_s13 + $0xfc8] sm:$0xf] }
 0x362   :  { %12453 = vmatmul.msk.bf16.vlgmr.msrb.gmra.mxu1 %vm1476_vm1, %v19694_v51  ;;  %12454 = vmatmul.msk.bf16.vlgmr.msra.gmra.mxu3 %vm1476_vm1, %v19694_v51  ;;  %v12278_v42 = vor.u32 %v15315_v38, %v12277_v27  ;;  %v12608_v54 = vld [vmem:[%s22820_s13 + $0xfe0] sm:$0xf0]  ;;  %v15386_v27 = vld [vmem:[%s22820_s13 + $0xfe4] sm:$0xf0] }
 0x363   :  { %v12611_v44 = vor.u32 %v15381_v60, %v12608_v54  ;;  %v12520_v60 = vld [vmem:[%s22820_s13 + $0xf28] sm:$0xf0]  ;;  %v12686_v54 = vld [vmem:[%s22820_s13 + $0x1050] sm:$0xf] }
 0x364   :  { %5297 = vmatpush.bf16.msrb.mxu2 %v12406_v22  ;;  %5310 = vmatpush.bf16.msra.mxu0 %v12410_v1  ;;  %v12285_v22 = vld [vmem:[%s22820_s13 + $0xd98] sm:$0xf] }
 0x365   :  { %5323 = vmatpush.bf16.msra.mxu1 %v12414_v14  ;;  %5336 = vmatpush.bf16.msrb.mxu3 %v12418_v18  ;;  %v15316_v1 = vld [vmem:[%s22820_s13 + $0xdb4] sm:$0xf0]  ;;  %v12670_v14 = vld [vmem:[%s22820_s13 + $0x1040] sm:$0xf] }
 0x366   :  { %v15401_v18 = vld [vmem:[%s22820_s13 + $0x105c] sm:$0xf0]  ;;  %v12286_v26 = vor.u32 %v15316_v1, %v12285_v22 }
 0x367   :  { %v12671_v19 = vor.u32 %v15401_v18, %v12670_v14  ;;  %v15377_v22 = vld [vmem:[%s22820_s13 + $0xf9c] sm:$0xf0]  ;;  %v15378_v14 = vld [vmem:[%s22820_s13 + $0xfa4] sm:$0xf0]  ;;  %v15374_v18 = vld [vmem:[%s22820_s13 + $0xf8c] sm:$0xf] }
 0x368   :  { %5298 = vmatpush.bf16.msrb.mxu2 %v12374_v31  ;;  %5311 = vmatpush.bf16.msra.mxu0 %v12378_v33  ;;  %v12290_v31 = vor.u32 %v15312_v12, %v12287_v13  ;;  %v4062_v33 = vpop.f32.mrf.mxu0  ;;  %v12576_v12 = vld [vmem:[%s22820_s13 + $0xfa0] sm:$0xf0]  ;;  %v12582_v13 = vld [vmem:[%s22820_s13 + $0xf88] sm:$0xf]  ;;  %v12587_v30 = vor.u32 %v15374_v18, %v12584_v9  ;;  %v12654_v18 = vld [vmem:[%s22820_s13 + $0x1010] sm:$0xf] }
 0x369   :  { %5324 = vmatpush.bf16.msra.mxu1 %v12382_v6  ;;  %5337 = vmatpush.bf16.msrb.mxu3 %v12386_v37  ;;  %v19831_v11 = vadd.f32 %v4062_v33, %v19497_v41  ;;  %v4075_v6 = vpop.f32.mrf.mxu1  ;;  %v12638_v37 = vld [vmem:[%s22820_s13 + $0x1000] sm:$0xf]  ;;  %v12640_v41 = vld [vmem:[%s22820_s13 + $0x1020] sm:$0xf0]  ;;  %v12583_v0 = vor.u32 %v15378_v14, %v12582_v13  ;;  %v15395_v9 = vld [vmem:[%s22820_s13 + $0x102c] sm:$0xf0] }
 0x36a   :  { %v19840_v23 = vadd.f32 %v4075_v6, %v19506_v25  ;;  %v15390_v25 = vld [vmem:[%s22820_s13 + $0x100c] sm:$0xf]  ;;  %v12639_v40 = vor.u32 %v15393_v50, %v12638_v37  ;;  %v12643_v52 = vor.u32 %v15389_v49, %v12640_v41  ;;  %v4049_v55 = vpop.f32.mrf.mxu2  ;;  %v12544_v33 = vld [vmem:[%s22820_s13 + $0xf60] sm:$0xf0]  ;;  %v15370_v37 = vld [vmem:[%s22820_s13 + $0xf64] sm:$0xf0] }
 0x36b   :  { %v19880_v61 = vadd.f32 %v4049_v55, %v19546_v2  ;;  %v15366_v50 = vld [vmem:[%s22820_s13 + $0xf4c] sm:$0xf]  ;;  %v12510_v49 = vld [vmem:[%s22820_s13 + $0xf00] sm:$0xf] }
 0x36c   :  { %5299 = vmatpush.bf16.msrb.mxu2 %v12342_v28  ;;  %5312 = vmatpush.bf16.msra.mxu0 %v12346_v16  ;;  %v15394_v28 = vld [vmem:[%s22820_s13 + $0x1024] sm:$0xf0]  ;;  %v12648_v16 = vld [vmem:[%s22820_s13 + $0x1028] sm:$0xf0] }
 0x36d   :  { %5325 = vmatpush.bf16.msra.mxu1 %v12350_v15  ;;  %5338 = vmatpush.bf16.msrb.mxu3 %v12354_v34  ;;  %v12606_v15 = vld [vmem:[%s22820_s13 + $0xfc0] sm:$0xf]  ;;  %v12647_v53 = vor.u32 %v15394_v28, %v12646_v17  ;;  %v12651_v46 = vor.u32 %v15390_v25, %v12648_v16  ;;  %v4088_v59 = vpop.f32.mrf.mxu3  ;;  %v15357_v25 = vld [vmem:[%s22820_s13 + $0xf04] sm:$0xf] }
 0x36e   :  { %v15385_v34 = vld [vmem:[%s22820_s13 + $0xfdc] sm:$0xf0]  ;;  %v19896_v2 = vadd.f32 %v4088_v59, %v19562_v24  ;;  %v15373_v24 = vld [vmem:[%s22820_s13 + $0xf84] sm:$0xf]  ;;  %v15399_v59 = vld [vmem:[%s22820_s13 + $0x1054] sm:$0xf] }
 0x36f   :  { %v12607_v4 = vor.u32 %v15385_v34, %v12606_v15  ;;  %v15361_v28 = vld [vmem:[%s22820_s13 + $0xf1c] sm:$0xf0]  ;;  %v12512_v16 = vld [vmem:[%s22820_s13 + $0xf20] sm:$0xf0]  ;;  %v12518_v15 = vld [vmem:[%s22820_s13 + $0xf08] sm:$0xf] }
 0x370   :  { %5300 = vmatpush.bf16.msrb.mxu2 %v12310_v63  ;;  %5313 = vmatpush.bf16.msra.mxu0 %v12314_v62  ;;  %v15382_v63 = vld [vmem:[%s22820_s13 + $0xfcc] sm:$0xf]  ;;  %v4064_v38 = vpop.f32.mrf.mxu0  ;;  %v15362_v34 = vld [vmem:[%s22820_s13 + $0xf24] sm:$0xf0] }
 0x371   :  { %5326 = vmatpush.bf16.msra.mxu1 %v12318_v45  ;;  %5339 = vmatpush.bf16.msrb.mxu3 %v12322_v8  ;;  %v12616_v62 = vld [vmem:[%s22820_s13 + $0xfe8] sm:$0xf0]  ;;  %v4077_v45 = vpop.f32.mrf.mxu1  ;;  %v12574_v8 = vld [vmem:[%s22820_s13 + $0xf80] sm:$0xf]  ;;  %v12515_v38 = vor.u32 %v15357_v25, %v12512_v16  ;;  %v15388_v25 = vld [vmem:[%s22820_s13 + $0xff4] sm:$0xf0] }
 0x372   :  { %v12619_v1 = vor.u32 %v15382_v63, %v12616_v62  ;;  %v12575_v10 = vor.u32 %v15377_v22, %v12574_v8  ;;  %v12694_v63 = vld [vmem:[%s22820_s13 + $0x1058] sm:$0xf]  ;;  %v12511_v62 = vor.u32 %v15361_v28, %v12510_v49  ;;  %v12696_v45 = vld [vmem:[%s22820_s13 + $0x1078] sm:$0xf0]  ;;  %v12519_v8 = vor.u32 %v15362_v34, %v12518_v15  ;;  %v12624_v49 = vld [vmem:[%s22820_s13 + $0xff0] sm:$0xf0] }
 0x373   :  { %v15384_v16 = vld [vmem:[%s22820_s13 + $0xfdc] sm:$0xf] }
 0x374   :  { %5301 = vmatpush.bf16.msrb.mxu2 %v12278_v42  ;;  %5314 = vmatpush.bf16.msra.mxu0 %v12282_v29  ;;  %v12579_v42 = vor.u32 %v15373_v24, %v12576_v12  ;;  %v12542_v29 = vld [vmem:[%s22820_s13 + $0xf40] sm:$0xf] }
 0x375   :  { %5327 = vmatpush.bf16.msra.mxu1 %v12286_v26  ;;  %5340 = vmatpush.bf16.msrb.mxu3 %v12290_v31  ;;  %v4051_v26 = vpop.f32.mrf.mxu2  ;;  %v15365_v31 = vld [vmem:[%s22820_s13 + $0xf44] sm:$0xf]  ;;  %v4090_v6 = vpop.f32.mrf.mxu3  ;;  %v12543_v41 = vor.u32 %v15369_v58, %v12542_v29  ;;  %v15391_v29 = vld [vmem:[%s22820_s13 + $0x1014] sm:$0xf]  ;;  %v12662_v58 = vld [vmem:[%s22820_s13 + $0x1018] sm:$0xf] }
 0x376   :  { %v12547_v17 = vor.u32 %v15365_v31, %v12544_v33  ;;  %v12655_v31 = vor.u32 %v15395_v9, %v12654_v18  ;;  %v15372_v18 = vld [vmem:[%s22820_s13 + $0xf74] sm:$0xf0]  ;;  %v15368_v9 = vld [vmem:[%s22820_s13 + $0xf5c] sm:$0xf] }
 0x377   :  { %12455 = vmatmul.msk.bf16.vlgmr.msrb.gmra.mxu2 %vm1476_vm1, %v19694_v51  ;;  %12456 = vmatmul.msk.bf16.vlgmr.msra.gmra.mxu0 %vm1476_vm1, %v19694_v51 }
 0x378   :  { %5662 = vmatpush.bf16.msra.mxu2 %v12671_v19  ;;  %5675 = vmatpush.bf16.msrb.mxu0 %v12675_v36  ;;  %v12550_v19 = vld [vmem:[%s22820_s13 + $0xf48] sm:$0xf]  ;;  %v5363_v36 = vperm.slane %v5358_v20, %v16835_v7 }
 0x379   :  { %5688 = vmatpush.bf16.msrb.mxu1 %v12679_v43  ;;  %5701 = vmatpush.bf16.msra.mxu3 %v12683_v39  ;;  %v12552_v43 = vld [vmem:[%s22820_s13 + $0xf68] sm:$0xf0] }
 0x37a   :  { %12457 = vmatmul.msk.bf16.vlgmr.msra.gmra.mxu1 %vm1476_vm1, %v19694_v51  ;;  %12458 = vmatmul.msk.bf16.vlgmr.msrb.gmra.mxu3 %vm1476_vm1, %v19694_v51  ;;  %v12615_v51 = vor.u32 %v15386_v27, %v12614_v57  ;;  %v19950_v39 = vld [vmem:[%s22822_s2 + $0x28] sm:$0xff]   ;;  %v5365_v55 = vunpack.c.l.bf16 %v5363_v36  ;;  %v15403_v57 = vld [vmem:[%s22820_s13 + $0x106c] sm:$0xf0]  ;;  %v12688_v27 = vld [vmem:[%s22820_s13 + $0x1070] sm:$0xf0] }
 0x37b   :  { %v12687_v24 = vor.u32 %v15403_v57, %v12686_v54  ;;  %v12691_v12 = vor.u32 %v15399_v59, %v12688_v27  ;;  %v15387_v36 = vld [vmem:[%s22820_s13 + $0xfec] sm:$0xf0]  ;;  %v12592_v57 = vld [vmem:[%s22820_s13 + $0xfb0] sm:$0xf0]  ;;  %v12598_v59 = vld [vmem:[%s22820_s13 + $0xf98] sm:$0xf] }
 0x37c   :  { %5663 = vmatpush.bf16.msra.mxu2 %v12639_v40  ;;  %5676 = vmatpush.bf16.msrb.mxu0 %v12643_v52  ;;  %v12551_v40 = vor.u32 %v15370_v37, %v12550_v19  ;;  %v12555_v52 = vor.u32 %v15366_v50, %v12552_v43  ;;  %v12622_v19 = vld [vmem:[%s22820_s13 + $0xfd0] sm:$0xf]  ;;  %v15383_v43 = vld [vmem:[%s22820_s13 + $0xfd4] sm:$0xf]  ;;  %v15380_v27 = vld [vmem:[%s22820_s13 + $0xfb4] sm:$0xf0] }
 0x37d   :  { %5689 = vmatpush.bf16.msrb.mxu1 %v12647_v53  ;;  %5702 = vmatpush.bf16.msra.mxu3 %v12651_v46  ;;  %v15358_v53 = vld [vmem:[%s22820_s13 + $0xf0c] sm:$0xf]  ;;  %v5364_v46 = vunpack.c.l.bf16 %v19950_v39  ;;  %v12623_v15 = vor.u32 %v15387_v36, %v12622_v19  ;;  %v12627_v34 = vor.u32 %v15383_v43, %v12624_v49  ;;  %v15364_v19 = vld [vmem:[%s22820_s13 + $0xf34] sm:$0xf0]  ;;  %v15360_v36 = vld [vmem:[%s22820_s13 + $0xf1c] sm:$0xf] }
 0x37e   :  { %v12523_v22 = vor.u32 %v15358_v53, %v12520_v60  ;;  %v15445_v43 = vld [vmem:[%s22820_s13 + $0x11c4] sm:$0xf] }
 0x37f   :  { %v4441_v14 = vpop.f32.mrf.mxu1  ;;  %v12921_v49 = vld [vmem:[%s22820_s13 + $0x11e0] sm:$0xf0] }
 0x380   :  { %5664 = vmatpush.bf16.msra.mxu2 %v12607_v4  ;;  %5677 = vmatpush.bf16.msrb.mxu0 %v12611_v44  ;;  %v15404_v4 = vld [vmem:[%s22820_s13 + $0x1074] sm:$0xf0]  ;;  %v15400_v44 = vld [vmem:[%s22820_s13 + $0x105c] sm:$0xf] }
 0x381   :  { %5690 = vmatpush.bf16.msrb.mxu1 %v12615_v51  ;;  %5703 = vmatpush.bf16.msra.mxu3 %v12619_v1  ;;  %v4428_v51 = vpop.f32.mrf.mxu0  ;;  %v5366_v1 = vmul.f32 %v5365_v55, %v5364_v46  ;;  %v12695_v20 = vor.u32 %v15404_v4, %v12694_v63  ;;  %v12590_v46 = vld [vmem:[%s22820_s13 + $0xf90] sm:$0xf]  ;;  %v15376_v63 = vld [vmem:[%s22820_s13 + $0xf9c] sm:$0xf] }
 0x382   :  { %v20002_v13 = vadd.f32 %v4428_v51, %v19665_v56  ;;  %v12656_v56 = vld [vmem:[%s22820_s13 + $0x1030] sm:$0xf0]  ;;  %v4415_v50 = vpop.f32.mrf.mxu2  ;;  %v15379_v55 = vld [vmem:[%s22820_s13 + $0xfac] sm:$0xf0] }
 0x383   :  { %v20031_v26 = vpack.c.bf16 %v5366_v1, %v5366_v1  ;;  %v12659_v33 = vor.u32 %v15391_v29, %v12656_v56  ;;  %v15367_v1 = vld [vmem:[%s22820_s13 + $0xf54] sm:$0xf] }
 0x384   :  { %5665 = vmatpush.bf16.msra.mxu2 %v12575_v10  ;;  %5678 = vmatpush.bf16.msrb.mxu0 %v12579_v42  ;;  %v12699_v10 = vor.u32 %v15400_v44, %v12696_v45  ;;  %v20011_v42 = vadd.f32 %v4441_v14, %v19674_v3  ;;  %v15392_v3 = vld [vmem:[%s22820_s13 + $0x101c] sm:$0xf]  ;;  %v12558_v44 = vld [vmem:[%s22820_s13 + $0xf50] sm:$0xf] }
 0x385   :  { %5691 = vmatpush.bf16.msrb.mxu1 %v12583_v0  ;;  %5704 = vmatpush.bf16.msra.mxu3 %v12587_v30  ;;  %v15396_v0 = vld [vmem:[%s22820_s13 + $0x1034] sm:$0xf0]  ;;  %v12664_v30 = vld [vmem:[%s22820_s13 + $0x1038] sm:$0xf0]  ;;  %v4454_v28 = vpop.f32.mrf.mxu3  ;;  %v15371_v45 = vld [vmem:[%s22820_s13 + $0xf6c] sm:$0xf0] }
 0x386   :  { %v12663_v6 = vor.u32 %v15396_v0, %v12662_v58  ;;  %v12667_v37 = vor.u32 %v15392_v3, %v12664_v30  ;;  %v12559_v29 = vor.u32 %v15371_v45, %v12558_v44  ;;  %v15363_v58 = vld [vmem:[%s22820_s13 + $0xf2c] sm:$0xf0]  ;;  %v15359_v0 = vld [vmem:[%s22820_s13 + $0xf14] sm:$0xf]  ;;  %v12897_v44 = vld [vmem:[%s22820_s13 + $0x11a8] sm:$0xf0] }
 0x387   :  { %v4443_v53 = vpop.f32.mrf.mxu1  ;;  %v12528_v3 = vld [vmem:[%s22820_s13 + $0xf30] sm:$0xf0] }
 0x388   :  { %5666 = vmatpush.bf16.msra.mxu2 %v12543_v41  ;;  %5679 = vmatpush.bf16.msrb.mxu0 %v12547_v17  ;;  %v12630_v41 = vld [vmem:[%s22820_s13 + $0xfd8] sm:$0xf]  ;;  %v20053_v17 = vadd.f32 %v4415_v50, %v19716_v47  ;;  %v20069_v47 = vadd.f32 %v4454_v28, %v19732_v35  ;;  %v15375_v35 = vld [vmem:[%s22820_s13 + $0xf94] sm:$0xf]  ;;  %v15449_v50 = vld [vmem:[%s22820_s13 + $0x11dc] sm:$0xf0] }
 0x389   :  { %5692 = vmatpush.bf16.msrb.mxu1 %v12551_v40  ;;  %5705 = vmatpush.bf16.msra.mxu3 %v12555_v52  ;;  %v12632_v40 = vld [vmem:[%s22820_s13 + $0xff8] sm:$0xf0]  ;;  %v4430_v52 = vpop.f32.mrf.mxu0  ;;  %v12631_v60 = vor.u32 %v15388_v25, %v12630_v41  ;;  %v12595_v4 = vor.u32 %v15375_v35, %v12592_v57  ;;  %v12927_v41 = vld [vmem:[%s22820_s13 + $0x11c8] sm:$0xf]  ;;  %v12531_v25 = vor.u32 %v15359_v0, %v12528_v3  ;;  %v12887_v35 = vld [vmem:[%s22820_s13 + $0x1180] sm:$0xf] }
 0x38a   :  { %v12635_v54 = vor.u32 %v15384_v16, %v12632_v40  ;;  %v4417_v51 = vpop.f32.mrf.mxu2  ;;  %v15450_v16 = vld [vmem:[%s22820_s13 + $0x11e4] sm:$0xf0]  ;;  %v15446_v40 = vld [vmem:[%s22820_s13 + $0x11cc] sm:$0xf]  ;;  %v15441_v57 = vld [vmem:[%s22820_s13 + $0x119c] sm:$0xf0] }
 0x38b   :  { %v12929_v52 = vld [vmem:[%s22820_s13 + $0x11e8] sm:$0xf0]  ;;  %v12888_v45 = vor.u32 %v15441_v57, %v12887_v35  ;;  %v15433_v51 = vld [vmem:[%s22820_s13 + $0x115c] sm:$0xf0]  ;;  %v15418_v57 = vld [vmem:[%s22820_s13 + $0x10e4] sm:$0xf0] }
 0x38c   :  { %5667 = vmatpush.bf16.msra.mxu2 %v12511_v62  ;;  %5680 = vmatpush.bf16.msrb.mxu0 %v12515_v38  ;;  %v12600_v62 = vld [vmem:[%s22820_s13 + $0xfb8] sm:$0xf0]  ;;  %v12591_v38 = vor.u32 %v15379_v55, %v12590_v46  ;;  %v12924_v55 = vor.u32 %v15445_v43, %v12921_v49  ;;  %v15422_v43 = vld [vmem:[%s22820_s13 + $0x110c] sm:$0xf] }
 0x38d   :  { %5693 = vmatpush.bf16.msrb.mxu1 %v12519_v8  ;;  %5706 = vmatpush.bf16.msra.mxu3 %v12523_v22  ;;  %v12599_v8 = vor.u32 %v15380_v27, %v12598_v59  ;;  %v12603_v22 = vor.u32 %v15376_v63, %v12600_v62  ;;  %v4456_v14 = vpop.f32.mrf.mxu3  ;;  %v12928_v59 = vor.u32 %v15450_v16, %v12927_v41  ;;  %v15437_v62 = vld [vmem:[%s22820_s13 + $0x1184] sm:$0xf]  ;;  %v12833_v49 = vld [vmem:[%s22820_s13 + $0x1128] sm:$0xf0]  ;;  %v5776_v41 = vpop.permute.xlu1 %5775  ;;  %v12791_v16 = vld [vmem:[%s22820_s13 + $0x10c0] sm:$0xf] }
 0x38e   :  { %v12932_v27 = vor.u32 %v15446_v40, %v12929_v52  ;;  %v15429_v14 = vld [vmem:[%s22820_s13 + $0x1144] sm:$0xf]  ;;  %v15417_v40 = vld [vmem:[%s22820_s13 + $0x10dc] sm:$0xf0] }
 0x38f   :  { %12700 = vmatmul.msk.bf16.vlgmr.msra.gmra.mxu2 %vm1476_vm1, %v20031_v26  ;;  %12701 = vmatmul.msk.bf16.vlgmr.msrb.gmra.mxu0 %vm1476_vm1, %v20031_v26 }
 0x390   :  { %5714 = vmatpush.bf16.msrb.mxu2 %v12687_v24  ;;  %5727 = vmatpush.bf16.msra.mxu0 %v12691_v12  ;;  %v12560_v24 = vld [vmem:[%s22820_s13 + $0xf70] sm:$0xf0]  ;;  %v12566_v12 = vld [vmem:[%s22820_s13 + $0xf58] sm:$0xf] }
 0x391   :  { %5740 = vmatpush.bf16.msra.mxu1 %v12695_v20  ;;  %5753 = vmatpush.bf16.msrb.mxu3 %v12699_v10  ;;  %v12568_v20 = vld [vmem:[%s22820_s13 + $0xf78] sm:$0xf0]  ;;  %v12526_v10 = vld [vmem:[%s22820_s13 + $0xf10] sm:$0xf]  ;;  %v12563_v56 = vor.u32 %v15367_v1, %v12560_v24  ;;  %v12567_v30 = vor.u32 %v15372_v18, %v12566_v12  ;;  %v12857_v18 = vld [vmem:[%s22820_s13 + $0x1160] sm:$0xf0] }
 0x392   :  { %12702 = vmatmul.msk.bf16.vlgmr.msrb.gmra.mxu1 %vm1476_vm1, %v20031_v26  ;;  %12703 = vmatmul.msk.bf16.vlgmr.msra.gmra.mxu3 %vm1476_vm1, %v20031_v26  ;;  %v12527_v28 = vor.u32 %v15363_v58, %v12526_v10  ;;  %v12865_v58 = vld [vmem:[%s22820_s13 + $0x1168] sm:$0xf0] }
 0x394   :  { %5715 = vmatpush.bf16.msrb.mxu2 %v12655_v31  ;;  %5728 = vmatpush.bf16.msra.mxu0 %v12659_v33  ;;  %v12571_v31 = vor.u32 %v15368_v9, %v12568_v20  ;;  %v12534_v33 = vld [vmem:[%s22820_s13 + $0xf18] sm:$0xf]  ;;  %v4480_v53 = vpop.f32.mrf.mxu0  ;;  %v12863_v9 = vld [vmem:[%s22820_s13 + $0x1148] sm:$0xf] }
 0x395   :  { %5741 = vmatpush.bf16.msra.mxu1 %v12663_v6  ;;  %5754 = vmatpush.bf16.msrb.mxu3 %v12667_v37  ;;  %v12536_v6 = vld [vmem:[%s22820_s13 + $0xf38] sm:$0xf0]  ;;  %v12919_v37 = vld [vmem:[%s22820_s13 + $0x11c0] sm:$0xf] }
 0x396   :  { %v12920_v46 = vor.u32 %v15449_v50, %v12919_v37  ;;  %v12831_v37 = vld [vmem:[%s22820_s13 + $0x1108] sm:$0xf] }
 0x397   :  { %v15426_v50 = vld [vmem:[%s22820_s13 + $0x1124] sm:$0xf0] }
 0x398   :  { %5716 = vmatpush.bf16.msrb.mxu2 %v12623_v15  ;;  %5729 = vmatpush.bf16.msra.mxu0 %v12627_v34  ;;  %v12535_v15 = vor.u32 %v15364_v19, %v12534_v33  ;;  %v12539_v34 = vor.u32 %v15360_v36, %v12536_v6  ;;  %v12823_v33 = vld [vmem:[%s22820_s13 + $0x1100] sm:$0xf]  ;;  %v12825_v6 = vld [vmem:[%s22820_s13 + $0x1120] sm:$0xf0]  ;;  %v12832_v52 = vor.u32 %v15426_v50, %v12831_v37  ;;  %v12903_v50 = vld [vmem:[%s22820_s13 + $0x1190] sm:$0xf] }
 0x399   :  { %5742 = vmatpush.bf16.msra.mxu1 %v12631_v60  ;;  %5755 = vmatpush.bf16.msrb.mxu3 %v12635_v54  ;;  %v20168_v60 = vadd.f32 %v4480_v53, %v19831_v11  ;;  %v4493_v54 = vpop.f32.mrf.mxu1  ;;  %v12889_v11 = vld [vmem:[%s22820_s13 + $0x11a0] sm:$0xf0]  ;;  %v15425_v19 = vld [vmem:[%s22820_s13 + $0x111c] sm:$0xf0] }
 0x39a   :  { %v20177_v63 = vadd.f32 %v4493_v54, %v19840_v23  ;;  %v15438_v23 = vld [vmem:[%s22820_s13 + $0x118c] sm:$0xf]  ;;  %v4467_v12 = vpop.f32.mrf.mxu2  ;;  %v15413_v53 = vld [vmem:[%s22820_s13 + $0x10c4] sm:$0xf]  ;;  %v5781_v54 = vperm.slane %v5776_v41, %v16835_v7 }
 0x39b   :  { %v12900_v24 = vor.u32 %v15438_v23, %v12897_v44  ;;  %v20217_v20 = vadd.f32 %v4467_v12, %v19880_v61  ;;  %v15405_v23 = vld [vmem:[%s22820_s13 + $0x1084] sm:$0xf] }
 0x39c   :  { %5717 = vmatpush.bf16.msrb.mxu2 %v12591_v38  ;;  %5730 = vmatpush.bf16.msra.mxu0 %v12595_v4  ;;  %v12895_v38 = vld [vmem:[%s22820_s13 + $0x1188] sm:$0xf]  ;;  %v4482_v0 = vpop.f32.mrf.mxu0  ;;  %v12761_v44 = vld [vmem:[%s22820_s13 + $0x10a0] sm:$0xf0]  ;;  %v5783_v12 = vunpack.c.l.bf16 %v5781_v54 }
 0x39d   :  { %5743 = vmatpush.bf16.msra.mxu1 %v12599_v8  ;;  %5756 = vmatpush.bf16.msrb.mxu3 %v12603_v22  ;;  %v15442_v4 = vld [vmem:[%s22820_s13 + $0x11a4] sm:$0xf0]  ;;  %v12892_v8 = vor.u32 %v15437_v62, %v12889_v11  ;;  %v12855_v22 = vld [vmem:[%s22820_s13 + $0x1140] sm:$0xf]  ;;  %v4506_v10 = vpop.f32.mrf.mxu3  ;;  %v12792_v11 = vor.u32 %v15417_v40, %v12791_v16  ;;  %v15452_v0 = vld [vmem:[%s22820_s13 + $0x11f4] sm:$0xf0] }
 0x39e   :  { %v12896_v1 = vor.u32 %v15442_v4, %v12895_v38  ;;  %v20233_v61 = vadd.f32 %v4506_v10, %v19896_v2  ;;  %v12856_v3 = vor.u32 %v15433_v51, %v12855_v22  ;;  %v15421_v2 = vld [vmem:[%s22820_s13 + $0x1104] sm:$0xf]  ;;  %v12759_v62 = vld [vmem:[%s22820_s13 + $0x1080] sm:$0xf]  ;;  %v12767_v22 = vld [vmem:[%s22820_s13 + $0x1088] sm:$0xf] }
 0x39f   :  { %v15409_v4 = vld [vmem:[%s22820_s13 + $0x109c] sm:$0xf0]  ;;  %v15410_v51 = vld [vmem:[%s22820_s13 + $0x10a4] sm:$0xf0]  ;;  %v15447_v10 = vld [vmem:[%s22820_s13 + $0x11d4] sm:$0xf] }
 0x3a0   :  { %5718 = vmatpush.bf16.msrb.mxu2 %v12559_v29  ;;  %5731 = vmatpush.bf16.msra.mxu0 %v12563_v56  ;;  %v15434_v29 = vld [vmem:[%s22820_s13 + $0x1164] sm:$0xf0]  ;;  %v15430_v56 = vld [vmem:[%s22820_s13 + $0x114c] sm:$0xf]  ;;  %v12911_v16 = vld [vmem:[%s22820_s13 + $0x1198] sm:$0xf] }
 0x3a1   :  { %5744 = vmatpush.bf16.msra.mxu1 %v12567_v30  ;;  %5757 = vmatpush.bf16.msrb.mxu3 %v12571_v31  ;;  %v12860_v30 = vor.u32 %v15429_v14, %v12857_v18  ;;  %v4495_v31 = vpop.f32.mrf.mxu1  ;;  %v12868_v36 = vor.u32 %v15430_v56, %v12865_v58  ;;  %v12769_v14 = vld [vmem:[%s22820_s13 + $0x10a8] sm:$0xf0]  ;;  %v12935_v18 = vld [vmem:[%s22820_s13 + $0x11d0] sm:$0xf]  ;;  %v12760_v56 = vor.u32 %v15409_v4, %v12759_v62  ;;  %v15444_v40 = vld [vmem:[%s22820_s13 + $0x11b4] sm:$0xf0] }
 0x3a2   :  { %v12764_v58 = vor.u32 %v15405_v23, %v12761_v44  ;;  %v12768_v31 = vor.u32 %v15410_v51, %v12767_v22  ;;  %v12912_v54 = vor.u32 %v15444_v40, %v12911_v16  ;;  %v12879_v62 = vld [vmem:[%s22820_s13 + $0x1158] sm:$0xf]  ;;  %v15432_v23 = vld [vmem:[%s22820_s13 + $0x115c] sm:$0xf]  ;;  %v15407_v16 = vld [vmem:[%s22820_s13 + $0x1094] sm:$0xf] }
 0x3a3   :  { %v15436_v4 = vld [vmem:[%s22820_s13 + $0x1174] sm:$0xf0]  ;;  %v12881_v44 = vld [vmem:[%s22820_s13 + $0x1178] sm:$0xf0]  ;;  %v12777_v40 = vld [vmem:[%s22820_s13 + $0x10b0] sm:$0xf0] }
 0x3a4   :  { %5719 = vmatpush.bf16.msrb.mxu2 %v12527_v28  ;;  %5732 = vmatpush.bf16.msra.mxu0 %v12531_v25  ;;  %v12824_v28 = vor.u32 %v15425_v19, %v12823_v33  ;;  %v12828_v25 = vor.u32 %v15421_v2, %v12825_v6 }
 0x3a5   :  { %5745 = vmatpush.bf16.msra.mxu1 %v12535_v15  ;;  %5758 = vmatpush.bf16.msrb.mxu3 %v12539_v34  ;;  %v12836_v15 = vor.u32 %v15422_v43, %v12833_v49  ;;  %v4469_v34 = vpop.f32.mrf.mxu2  ;;  %v4508_v35 = vpop.f32.mrf.mxu3  ;;  %v15443_v43 = vld [vmem:[%s22820_s13 + $0x11ac] sm:$0xf0] }
 0x3a6   :  { %v12904_v34 = vor.u32 %v15443_v43, %v12903_v50  ;;  %v15416_v50 = vld [vmem:[%s22820_s13 + $0x10dc] sm:$0xf] }
 0x3a7   :  { %12704 = vmatmul.msk.bf16.vlgmr.msrb.gmra.mxu2 %vm1476_vm1, %v20031_v26  ;;  %12705 = vmatmul.msk.bf16.vlgmr.msra.gmra.mxu0 %vm1476_vm1, %v20031_v26  ;;  %v12817_v43 = vld [vmem:[%s22820_s13 + $0x10f8] sm:$0xf0] }
 0x3a8   :  { %6080 = vmatpush.bf16.msra.mxu2 %v12920_v46  ;;  %6093 = vmatpush.bf16.msrb.mxu0 %v12924_v55  ;;  %v12793_v46 = vld [vmem:[%s22820_s13 + $0x10e0] sm:$0xf0]  ;;  %v12799_v55 = vld [vmem:[%s22820_s13 + $0x10c8] sm:$0xf] }
 0x3a9   :  { %6106 = vmatpush.bf16.msrb.mxu1 %v12928_v59  ;;  %6119 = vmatpush.bf16.msra.mxu3 %v12932_v27  ;;  %v15414_v59 = vld [vmem:[%s22820_s13 + $0x10cc] sm:$0xf]  ;;  %v12796_v38 = vor.u32 %v15413_v53, %v12793_v46  ;;  %v12871_v46 = vld [vmem:[%s22820_s13 + $0x1150] sm:$0xf] }
 0x3aa   :  { %12706 = vmatmul.msk.bf16.vlgmr.msra.gmra.mxu1 %vm1476_vm1, %v20031_v26  ;;  %12707 = vmatmul.msk.bf16.vlgmr.msrb.gmra.mxu3 %vm1476_vm1, %v20031_v26  ;;  %v12864_v26 = vor.u32 %v15434_v29, %v12863_v9  ;;  %v12801_v27 = vld [vmem:[%s22820_s13 + $0x10e8] sm:$0xf0]  ;;  %v15451_v9 = vld [vmem:[%s22820_s13 + $0x11ec] sm:$0xf0]  ;;  %v12943_v29 = vld [vmem:[%s22820_s13 + $0x11d8] sm:$0xf] }
 0x3ab   :  { %v12944_v49 = vor.u32 %v15452_v0, %v12943_v29  ;;  %v12849_v29 = vld [vmem:[%s22820_s13 + $0x1138] sm:$0xf0]  ;;  %v12807_v0 = vld [vmem:[%s22820_s13 + $0x10d0] sm:$0xf] }
 0x3ac   :  { %6081 = vmatpush.bf16.msra.mxu2 %v12888_v45  ;;  %6094 = vmatpush.bf16.msrb.mxu0 %v12892_v8  ;;  %v12800_v45 = vor.u32 %v15418_v57, %v12799_v55  ;;  %v12804_v8 = vor.u32 %v15414_v59, %v12801_v27  ;;  %v4846_v19 = vpop.f32.mrf.mxu0  ;;  %v15435_v55 = vld [vmem:[%s22820_s13 + $0x116c] sm:$0xf0]  ;;  %v15431_v59 = vld [vmem:[%s22820_s13 + $0x1154] sm:$0xf] }
 0x3ad   :  { %6107 = vmatpush.bf16.msrb.mxu1 %v12896_v1  ;;  %6120 = vmatpush.bf16.msra.mxu3 %v12900_v24  ;;  %v15406_v1 = vld [vmem:[%s22820_s13 + $0x108c] sm:$0xf]  ;;  %v5782_v24 = vunpack.c.h.bf16 %v19950_v39  ;;  %v12937_v39 = vld [vmem:[%s22820_s13 + $0x11f0] sm:$0xf0]  ;;  %v20334_v6 = vadd.f32 %v4846_v19, %v20002_v13 }
 0x3ae   :  { %v12772_v33 = vor.u32 %v15406_v1, %v12769_v14  ;;  %v12940_v2 = vor.u32 %v15447_v10, %v12937_v39  ;;  %v12905_v13 = vld [vmem:[%s22820_s13 + $0x11b0] sm:$0xf0]  ;;  %v12839_v1 = vld [vmem:[%s22820_s13 + $0x1110] sm:$0xf]  ;;  %v12884_v14 = vor.u32 %v15432_v23, %v12881_v44  ;;  %v15428_v10 = vld [vmem:[%s22820_s13 + $0x1134] sm:$0xf0] }
 0x3af   :  { %v4859_v37 = vpop.f32.mrf.mxu1  ;;  %v12873_v27 = vld [vmem:[%s22820_s13 + $0x1170] sm:$0xf0]  ;;  %v15424_v39 = vld [vmem:[%s22820_s13 + $0x111c] sm:$0xf]  ;;  %v15494_v23 = vld [vmem:[%s22820_s13 + $0x134c] sm:$0xf] }
 0x3b0   :  { %6082 = vmatpush.bf16.msra.mxu2 %v12856_v3  ;;  %6095 = vmatpush.bf16.msrb.mxu0 %v12860_v30  ;;  %v15448_v3 = vld [vmem:[%s22820_s13 + $0x11dc] sm:$0xf]  ;;  %v12876_v22 = vor.u32 %v15431_v59, %v12873_v27  ;;  %v15415_v19 = vld [vmem:[%s22820_s13 + $0x10d4] sm:$0xf]  ;;  %v13170_v59 = vld [vmem:[%s22820_s13 + $0x1360] sm:$0xf0] }
 0x3b1   :  { %6108 = vmatpush.bf16.msrb.mxu1 %v12864_v26  ;;  %6121 = vmatpush.bf16.msra.mxu3 %v12868_v36  ;;  %v12945_v30 = vld [vmem:[%s22820_s13 + $0x11f8] sm:$0xf0]  ;;  %v5784_v26 = vmul.f32 %v5783_v12, %v5782_v24  ;;  %v12936_v36 = vor.u32 %v15451_v9, %v12935_v18  ;;  %v15427_v24 = vld [vmem:[%s22820_s13 + $0x112c] sm:$0xf0]  ;;  %v12880_v12 = vor.u32 %v15436_v4, %v12879_v62  ;;  %v12841_v18 = vld [vmem:[%s22820_s13 + $0x1130] sm:$0xf0] }
 0x3b2   :  { %v12948_v41 = vor.u32 %v15448_v3, %v12945_v30  ;;  %v4833_v57 = vpop.f32.mrf.mxu2  ;;  %v12847_v9 = vld [vmem:[%s22820_s13 + $0x1118] sm:$0xf]  ;;  %v15419_v3 = vld [vmem:[%s22820_s13 + $0x10ec] sm:$0xf0]  ;;  %v13176_v27 = vld [vmem:[%s22820_s13 + $0x1348] sm:$0xf] }
 0x3b3   :  { %v12848_v30 = vor.u32 %v15428_v10, %v12847_v9  ;;  %v15498_v4 = vld [vmem:[%s22820_s13 + $0x1364] sm:$0xf0]  ;;  %v13178_v44 = vld [vmem:[%s22820_s13 + $0x1368] sm:$0xf0] }
 0x3b4   :  { %6083 = vmatpush.bf16.msra.mxu2 %v12824_v28  ;;  %6096 = vmatpush.bf16.msrb.mxu0 %v12828_v25  ;;  %v20343_v28 = vadd.f32 %v4859_v37, %v20011_v42  ;;  %v15439_v25 = vld [vmem:[%s22820_s13 + $0x1194] sm:$0xf]  ;;  %v15440_v42 = vld [vmem:[%s22820_s13 + $0x119c] sm:$0xf]  ;;  %v15420_v37 = vld [vmem:[%s22820_s13 + $0x10f4] sm:$0xf0]  ;;  %v13181_v9 = vor.u32 %v15494_v23, %v13178_v44 }
 0x3b5   :  { %6109 = vmatpush.bf16.msrb.mxu1 %v12832_v52  ;;  %6122 = vmatpush.bf16.msra.mxu3 %v12836_v15  ;;  %v12913_v52 = vld [vmem:[%s22820_s13 + $0x11b8] sm:$0xf0]  ;;  %v20363_v15 = vpack.c.bf16 %v5784_v26, %v5784_v26  ;;  %v12908_v53 = vor.u32 %v15439_v25, %v12905_v13  ;;  %v12809_v26 = vld [vmem:[%s22820_s13 + $0x10f0] sm:$0xf0]  ;;  %v15411_v13 = vld [vmem:[%s22820_s13 + $0x10ac] sm:$0xf0] }
 0x3b6   :  { %v12916_v35 = vor.u32 %v15440_v42, %v12913_v52  ;;  %v12812_v25 = vor.u32 %v15415_v19, %v12809_v26  ;;  %v12820_v52 = vor.u32 %v15416_v50, %v12817_v43 }
 0x3b7   :  { %v4861_v51 = vpop.f32.mrf.mxu1 }
 0x3b8   :  { %6084 = vmatpush.bf16.msra.mxu2 %v12792_v11  ;;  %6097 = vmatpush.bf16.msrb.mxu0 %v12796_v38  ;;  %v20385_v11 = vadd.f32 %v4833_v57, %v20053_v17  ;;  %v4872_v38 = vpop.f32.mrf.mxu3  ;;  %v15493_v57 = vld [vmem:[%s22820_s13 + $0x1344] sm:$0xf] }
 0x3b9   :  { %6110 = vmatpush.bf16.msrb.mxu1 %v12800_v45  ;;  %6123 = vmatpush.bf16.msra.mxu3 %v12804_v8  ;;  %v20401_v17 = vadd.f32 %v4872_v38, %v20069_v47  ;;  %v4848_v45 = vpop.f32.mrf.mxu0  ;;  %v12872_v8 = vor.u32 %v15435_v55, %v12871_v46  ;;  %v15423_v47 = vld [vmem:[%s22820_s13 + $0x1114] sm:$0xf]  ;;  %v15408_v46 = vld [vmem:[%s22820_s13 + $0x109c] sm:$0xf]  ;;  %v12780_v38 = vor.u32 %v15407_v16, %v12777_v40 }
 0x3ba   :  { %v12785_v55 = vld [vmem:[%s22820_s13 + $0x10b8] sm:$0xf0] }
 0x3bc   :  { %6085 = vmatpush.bf16.msra.mxu2 %v12760_v56  ;;  %6098 = vmatpush.bf16.msrb.mxu0 %v12764_v58  ;;  %v12840_v56 = vor.u32 %v15427_v24, %v12839_v1  ;;  %v12844_v58 = vor.u32 %v15423_v47, %v12841_v18  ;;  %v13173_v1 = vor.u32 %v15493_v57, %v13170_v59  ;;  %v15489_v47 = vld [vmem:[%s22820_s13 + $0x131c] sm:$0xf0]  ;;  %v13082_v57 = vld [vmem:[%s22820_s13 + $0x12a8] sm:$0xf0]  ;;  %v6194_v59 = vpop.permute.xlu2 %6193 }
 0x3bd   :  { %6111 = vmatpush.bf16.msrb.mxu1 %v12768_v31  ;;  %6124 = vmatpush.bf16.msra.mxu3 %v12772_v33  ;;  %v12852_v31 = vor.u32 %v15424_v39, %v12849_v29  ;;  %v4835_v33 = vpop.f32.mrf.mxu2  ;;  %v13177_v18 = vor.u32 %v15498_v4, %v13176_v27  ;;  %v15485_v39 = vld [vmem:[%s22820_s13 + $0x1304] sm:$0xf]  ;;  %v13144_v29 = vld [vmem:[%s22820_s13 + $0x1308] sm:$0xf]  ;;  %v15465_v4 = vld [vmem:[%s22820_s13 + $0x125c] sm:$0xf0] }
 0x3bf   :  { %12949 = vmatmul.msk.bf16.vlgmr.msra.gmra.mxu2 %vm1476_vm1, %v20363_v15  ;;  %12950 = vmatmul.msk.bf16.vlgmr.msrb.gmra.mxu0 %vm1476_vm1, %v20363_v15 }
 0x3c0   :  { %6132 = vmatpush.bf16.msrb.mxu2 %v12936_v36  ;;  %6145 = vmatpush.bf16.msra.mxu0 %v12940_v2  ;;  %v12815_v36 = vld [vmem:[%s22820_s13 + $0x10d8] sm:$0xf]  ;;  %v4874_v2 = vpop.f32.mrf.mxu3 }
 0x3c1   :  { %6158 = vmatpush.bf16.msra.mxu1 %v12944_v49  ;;  %6171 = vmatpush.bf16.msrb.mxu3 %v12948_v41  ;;  %v12775_v49 = vld [vmem:[%s22820_s13 + $0x1090] sm:$0xf]  ;;  %v12808_v41 = vor.u32 %v15419_v3, %v12807_v0  ;;  %v12816_v42 = vor.u32 %v15420_v37, %v12815_v36  ;;  %v15477_v36 = vld [vmem:[%s22820_s13 + $0x12c4] sm:$0xf]  ;;  %v13112_v37 = vld [vmem:[%s22820_s13 + $0x12c8] sm:$0xf] }
 0x3c2   :  { %12951 = vmatmul.msk.bf16.vlgmr.msrb.gmra.mxu1 %vm1476_vm1, %v20363_v15  ;;  %12952 = vmatmul.msk.bf16.vlgmr.msra.gmra.mxu3 %vm1476_vm1, %v20363_v15  ;;  %v12776_v62 = vor.u32 %v15411_v13, %v12775_v49  ;;  %v13106_v2 = vld [vmem:[%s22820_s13 + $0x12e0] sm:$0xf0]  ;;  %v15482_v49 = vld [vmem:[%s22820_s13 + $0x12e4] sm:$0xf0] }
 0x3c3   :  { %v13109_v40 = vor.u32 %v15477_v36, %v13106_v2  ;;  %v13018_v36 = vld [vmem:[%s22820_s13 + $0x1228] sm:$0xf0]  ;;  %v13184_v2 = vld [vmem:[%s22820_s13 + $0x1350] sm:$0xf] }
 0x3c4   :  { %6133 = vmatpush.bf16.msrb.mxu2 %v12904_v34  ;;  %6146 = vmatpush.bf16.msra.mxu0 %v12908_v53  ;;  %v12783_v34 = vld [vmem:[%s22820_s13 + $0x1098] sm:$0xf] }
 0x3c5   :  { %6159 = vmatpush.bf16.msra.mxu1 %v12912_v54  ;;  %6172 = vmatpush.bf16.msrb.mxu3 %v12916_v35  ;;  %v15412_v53 = vld [vmem:[%s22820_s13 + $0x10b4] sm:$0xf0]  ;;  %v13168_v54 = vld [vmem:[%s22820_s13 + $0x1340] sm:$0xf] }
 0x3c6   :  { %v15497_v35 = vld [vmem:[%s22820_s13 + $0x135c] sm:$0xf0]  ;;  %v12784_v45 = vor.u32 %v15412_v53, %v12783_v34 }
 0x3c7   :  { %v13169_v51 = vor.u32 %v15497_v35, %v13168_v54  ;;  %v15473_v34 = vld [vmem:[%s22820_s13 + $0x129c] sm:$0xf0]  ;;  %v15474_v54 = vld [vmem:[%s22820_s13 + $0x12a4] sm:$0xf0]  ;;  %v15470_v35 = vld [vmem:[%s22820_s13 + $0x128c] sm:$0xf] }
 0x3c8   :  { %6134 = vmatpush.bf16.msrb.mxu2 %v12872_v8  ;;  %6147 = vmatpush.bf16.msra.mxu0 %v12876_v22  ;;  %v12788_v8 = vor.u32 %v15408_v46, %v12785_v55  ;;  %v4898_v22 = vpop.f32.mrf.mxu0  ;;  %v13074_v46 = vld [vmem:[%s22820_s13 + $0x12a0] sm:$0xf0]  ;;  %v13080_v55 = vld [vmem:[%s22820_s13 + $0x1288] sm:$0xf]  ;;  %v13085_v44 = vor.u32 %v15470_v35, %v13082_v57  ;;  %v13152_v35 = vld [vmem:[%s22820_s13 + $0x1310] sm:$0xf] }
 0x3c9   :  { %6160 = vmatpush.bf16.msra.mxu1 %v12880_v12  ;;  %6173 = vmatpush.bf16.msrb.mxu3 %v12884_v14  ;;  %v20500_v24 = vadd.f32 %v4898_v22, %v20168_v60  ;;  %v4911_v12 = vpop.f32.mrf.mxu1  ;;  %v13136_v14 = vld [vmem:[%s22820_s13 + $0x1300] sm:$0xf]  ;;  %v13138_v60 = vld [vmem:[%s22820_s13 + $0x1320] sm:$0xf0]  ;;  %v13081_v23 = vor.u32 %v15474_v54, %v13080_v55  ;;  %v15491_v57 = vld [vmem:[%s22820_s13 + $0x132c] sm:$0xf0] }
 0x3ca   :  { %v20509_v10 = vadd.f32 %v4911_v12, %v20177_v63  ;;  %v15486_v63 = vld [vmem:[%s22820_s13 + $0x130c] sm:$0xf]  ;;  %v13137_v0 = vor.u32 %v15489_v47, %v13136_v14  ;;  %v13141_v3 = vor.u32 %v15485_v39, %v13138_v60  ;;  %v4885_v26 = vpop.f32.mrf.mxu2  ;;  %v13042_v22 = vld [vmem:[%s22820_s13 + $0x1260] sm:$0xf0]  ;;  %v15466_v14 = vld [vmem:[%s22820_s13 + $0x1264] sm:$0xf0] }
 0x3cb   :  { %v20549_v50 = vadd.f32 %v4885_v26, %v20217_v20  ;;  %v15462_v47 = vld [vmem:[%s22820_s13 + $0x124c] sm:$0xf]  ;;  %v13008_v39 = vld [vmem:[%s22820_s13 + $0x1200] sm:$0xf] }
 0x3cc   :  { %6135 = vmatpush.bf16.msrb.mxu2 %v12840_v56  ;;  %6148 = vmatpush.bf16.msra.mxu0 %v12844_v58  ;;  %v15490_v56 = vld [vmem:[%s22820_s13 + $0x1324] sm:$0xf0]  ;;  %v13146_v58 = vld [vmem:[%s22820_s13 + $0x1328] sm:$0xf0] }
 0x3cd   :  { %6161 = vmatpush.bf16.msra.mxu1 %v12848_v30  ;;  %6174 = vmatpush.bf16.msrb.mxu3 %v12852_v31  ;;  %v13104_v30 = vld [vmem:[%s22820_s13 + $0x12c0] sm:$0xf]  ;;  %v13145_v33 = vor.u32 %v15490_v56, %v13144_v29  ;;  %v13149_v19 = vor.u32 %v15486_v63, %v13146_v58  ;;  %v4924_v43 = vpop.f32.mrf.mxu3  ;;  %v15453_v63 = vld [vmem:[%s22820_s13 + $0x1204] sm:$0xf] }
 0x3ce   :  { %v15481_v31 = vld [vmem:[%s22820_s13 + $0x12dc] sm:$0xf0]  ;;  %v20565_v20 = vadd.f32 %v4924_v43, %v20233_v61  ;;  %v15469_v61 = vld [vmem:[%s22820_s13 + $0x1284] sm:$0xf]  ;;  %v15495_v43 = vld [vmem:[%s22820_s13 + $0x1354] sm:$0xf] }
 0x3cf   :  { %v13105_v16 = vor.u32 %v15481_v31, %v13104_v30  ;;  %v15457_v56 = vld [vmem:[%s22820_s13 + $0x121c] sm:$0xf0]  ;;  %v13010_v58 = vld [vmem:[%s22820_s13 + $0x1220] sm:$0xf0]  ;;  %v13016_v30 = vld [vmem:[%s22820_s13 + $0x1208] sm:$0xf] }
 0x3d0   :  { %6136 = vmatpush.bf16.msrb.mxu2 %v12808_v41  ;;  %6149 = vmatpush.bf16.msra.mxu0 %v12812_v25  ;;  %v15478_v41 = vld [vmem:[%s22820_s13 + $0x12cc] sm:$0xf]  ;;  %v4900_v13 = vpop.f32.mrf.mxu0  ;;  %v15458_v31 = vld [vmem:[%s22820_s13 + $0x1224] sm:$0xf0] }
 0x3d1   :  { %6162 = vmatpush.bf16.msra.mxu1 %v12816_v42  ;;  %6175 = vmatpush.bf16.msrb.mxu3 %v12820_v52  ;;  %v13114_v25 = vld [vmem:[%s22820_s13 + $0x12e8] sm:$0xf0]  ;;  %v4913_v42 = vpop.f32.mrf.mxu1  ;;  %v13072_v52 = vld [vmem:[%s22820_s13 + $0x1280] sm:$0xf]  ;;  %v13013_v13 = vor.u32 %v15453_v63, %v13010_v58  ;;  %v15484_v63 = vld [vmem:[%s22820_s13 + $0x12f4] sm:$0xf0] }
 0x3d2   :  { %v13117_v53 = vor.u32 %v15478_v41, %v13114_v25  ;;  %v13073_v27 = vor.u32 %v15473_v34, %v13072_v52  ;;  %v13192_v41 = vld [vmem:[%s22820_s13 + $0x1358] sm:$0xf]  ;;  %v13009_v25 = vor.u32 %v15457_v56, %v13008_v39  ;;  %v13194_v42 = vld [vmem:[%s22820_s13 + $0x1378] sm:$0xf0]  ;;  %v13017_v52 = vor.u32 %v15458_v31, %v13016_v30  ;;  %v13122_v39 = vld [vmem:[%s22820_s13 + $0x12f0] sm:$0xf0] }
 0x3d3   :  { %v15480_v58 = vld [vmem:[%s22820_s13 + $0x12dc] sm:$0xf] }
 0x3d4   :  { %6137 = vmatpush.bf16.msrb.mxu2 %v12776_v62  ;;  %6150 = vmatpush.bf16.msra.mxu0 %v12780_v38  ;;  %v13077_v62 = vor.u32 %v15469_v61, %v13074_v46  ;;  %v13040_v38 = vld [vmem:[%s22820_s13 + $0x1240] sm:$0xf] }
 0x3d5   :  { %6163 = vmatpush.bf16.msra.mxu1 %v12784_v45  ;;  %6176 = vmatpush.bf16.msrb.mxu3 %v12788_v8  ;;  %v4887_v45 = vpop.f32.mrf.mxu2  ;;  %v15461_v8 = vld [vmem:[%s22820_s13 + $0x1244] sm:$0xf]  ;;  %v4926_v12 = vpop.f32.mrf.mxu3  ;;  %v13041_v60 = vor.u32 %v15465_v4, %v13040_v38  ;;  %v15487_v38 = vld [vmem:[%s22820_s13 + $0x1314] sm:$0xf]  ;;  %v13160_v4 = vld [vmem:[%s22820_s13 + $0x1318] sm:$0xf] }
 0x3d6   :  { %v13045_v29 = vor.u32 %v15461_v8, %v13042_v22  ;;  %v13153_v8 = vor.u32 %v15491_v57, %v13152_v35  ;;  %v15468_v35 = vld [vmem:[%s22820_s13 + $0x1274] sm:$0xf0]  ;;  %v15464_v57 = vld [vmem:[%s22820_s13 + $0x125c] sm:$0xf] }
 0x3d7   :  { %12953 = vmatmul.msk.bf16.vlgmr.msrb.gmra.mxu2 %vm1476_vm1, %v20363_v15  ;;  %12954 = vmatmul.msk.bf16.vlgmr.msra.gmra.mxu0 %vm1476_vm1, %v20363_v15 }
 0x3d8   :  { %6498 = vmatpush.bf16.msra.mxu2 %v13169_v51  ;;  %6511 = vmatpush.bf16.msrb.mxu0 %v13173_v1  ;;  %v13048_v51 = vld [vmem:[%s22820_s13 + $0x1248] sm:$0xf]  ;;  %v6199_v1 = vperm.slane %v6194_v59, %v16835_v7 }
 0x3d9   :  { %6524 = vmatpush.bf16.msrb.mxu1 %v13177_v18  ;;  %6537 = vmatpush.bf16.msra.mxu3 %v13181_v9  ;;  %v13050_v18 = vld [vmem:[%s22820_s13 + $0x1268] sm:$0xf0]  ;;  %v20619_v9 = vld [vmem:[%s22822_s2 + $0x30] sm:$0xff]  }
 0x3da   :  { %12955 = vmatmul.msk.bf16.vlgmr.msra.gmra.mxu1 %vm1476_vm1, %v20363_v15  ;;  %12956 = vmatmul.msk.bf16.vlgmr.msrb.gmra.mxu3 %vm1476_vm1, %v20363_v15  ;;  %v13113_v15 = vor.u32 %v15482_v49, %v13112_v37  ;;  %v6201_v26 = vunpack.c.l.bf16 %v6199_v1  ;;  %v15499_v37 = vld [vmem:[%s22820_s13 + $0x136c] sm:$0xf0]  ;;  %v13186_v49 = vld [vmem:[%s22820_s13 + $0x1370] sm:$0xf0] }
 0x3db   :  { %v13185_v61 = vor.u32 %v15499_v37, %v13184_v2  ;;  %v13189_v46 = vor.u32 %v15495_v43, %v13186_v49  ;;  %v15483_v1 = vld [vmem:[%s22820_s13 + $0x12ec] sm:$0xf0]  ;;  %v13090_v37 = vld [vmem:[%s22820_s13 + $0x12b0] sm:$0xf0]  ;;  %v13096_v43 = vld [vmem:[%s22820_s13 + $0x1298] sm:$0xf] }
 0x3dc   :  { %6499 = vmatpush.bf16.msra.mxu2 %v13137_v0  ;;  %6512 = vmatpush.bf16.msrb.mxu0 %v13141_v3  ;;  %v13049_v0 = vor.u32 %v15466_v14, %v13048_v51  ;;  %v13053_v3 = vor.u32 %v15462_v47, %v13050_v18  ;;  %v13120_v51 = vld [vmem:[%s22820_s13 + $0x12d0] sm:$0xf]  ;;  %v15479_v18 = vld [vmem:[%s22820_s13 + $0x12d4] sm:$0xf]  ;;  %v15476_v49 = vld [vmem:[%s22820_s13 + $0x12b4] sm:$0xf0] }
 0x3dd   :  { %6525 = vmatpush.bf16.msrb.mxu1 %v13145_v33  ;;  %6538 = vmatpush.bf16.msra.mxu3 %v13149_v19  ;;  %v15454_v33 = vld [vmem:[%s22820_s13 + $0x120c] sm:$0xf]  ;;  %v6200_v19 = vunpack.c.l.bf16 %v20619_v9  ;;  %v13121_v30 = vor.u32 %v15483_v1, %v13120_v51  ;;  %v13125_v31 = vor.u32 %v15479_v18, %v13122_v39  ;;  %v15460_v51 = vld [vmem:[%s22820_s13 + $0x1234] sm:$0xf0]  ;;  %v15456_v1 = vld [vmem:[%s22820_s13 + $0x121c] sm:$0xf] }
 0x3de   :  { %v13021_v34 = vor.u32 %v15454_v33, %v13018_v36  ;;  %v15541_v18 = vld [vmem:[%s22820_s13 + $0x14c4] sm:$0xf] }
 0x3df   :  { %v5277_v54 = vpop.f32.mrf.mxu1  ;;  %v13419_v39 = vld [vmem:[%s22820_s13 + $0x14e0] sm:$0xf0] }
 0x3e0   :  { %6500 = vmatpush.bf16.msra.mxu2 %v13105_v16  ;;  %6513 = vmatpush.bf16.msrb.mxu0 %v13109_v40  ;;  %v15500_v16 = vld [vmem:[%s22820_s13 + $0x1374] sm:$0xf0]  ;;  %v15496_v40 = vld [vmem:[%s22820_s13 + $0x135c] sm:$0xf] }
 0x3e1   :  { %6526 = vmatpush.bf16.msrb.mxu1 %v13113_v15  ;;  %6539 = vmatpush.bf16.msra.mxu3 %v13117_v53  ;;  %v5264_v15 = vpop.f32.mrf.mxu0  ;;  %v6202_v53 = vmul.f32 %v6201_v26, %v6200_v19  ;;  %v13193_v59 = vor.u32 %v15500_v16, %v13192_v41  ;;  %v13088_v19 = vld [vmem:[%s22820_s13 + $0x1290] sm:$0xf]  ;;  %v15472_v41 = vld [vmem:[%s22820_s13 + $0x129c] sm:$0xf] }
 0x3e2   :  { %v20671_v55 = vadd.f32 %v5264_v15, %v20334_v6  ;;  %v13154_v6 = vld [vmem:[%s22820_s13 + $0x1330] sm:$0xf0]  ;;  %v5251_v47 = vpop.f32.mrf.mxu2  ;;  %v15475_v26 = vld [vmem:[%s22820_s13 + $0x12ac] sm:$0xf0] }
 0x3e3   :  { %v20700_v45 = vpack.c.bf16 %v6202_v53, %v6202_v53  ;;  %v13157_v22 = vor.u32 %v15487_v38, %v13154_v6  ;;  %v15463_v53 = vld [vmem:[%s22820_s13 + $0x1254] sm:$0xf] }
 0x3e4   :  { %6501 = vmatpush.bf16.msra.mxu2 %v13073_v27  ;;  %6514 = vmatpush.bf16.msrb.mxu0 %v13077_v62  ;;  %v13197_v27 = vor.u32 %v15496_v40, %v13194_v42  ;;  %v20680_v62 = vadd.f32 %v5277_v54, %v20343_v28  ;;  %v15488_v28 = vld [vmem:[%s22820_s13 + $0x131c] sm:$0xf]  ;;  %v13056_v40 = vld [vmem:[%s22820_s13 + $0x1250] sm:$0xf] }
 0x3e5   :  { %6527 = vmatpush.bf16.msrb.mxu1 %v13081_v23  ;;  %6540 = vmatpush.bf16.msra.mxu3 %v13085_v44  ;;  %v15492_v23 = vld [vmem:[%s22820_s13 + $0x1334] sm:$0xf0]  ;;  %v13162_v44 = vld [vmem:[%s22820_s13 + $0x1338] sm:$0xf0]  ;;  %v5290_v56 = vpop.f32.mrf.mxu3  ;;  %v15467_v42 = vld [vmem:[%s22820_s13 + $0x126c] sm:$0xf0] }
 0x3e6   :  { %v13161_v12 = vor.u32 %v15492_v23, %v13160_v4  ;;  %v13165_v14 = vor.u32 %v15488_v28, %v13162_v44  ;;  %v13057_v38 = vor.u32 %v15467_v42, %v13056_v40  ;;  %v15459_v4 = vld [vmem:[%s22820_s13 + $0x122c] sm:$0xf0]  ;;  %v15455_v23 = vld [vmem:[%s22820_s13 + $0x1214] sm:$0xf]  ;;  %v13395_v40 = vld [vmem:[%s22820_s13 + $0x14a8] sm:$0xf0] }
 0x3e7   :  { %v5279_v33 = vpop.f32.mrf.mxu1  ;;  %v13026_v28 = vld [vmem:[%s22820_s13 + $0x1230] sm:$0xf0] }
 0x3e8   :  { %6502 = vmatpush.bf16.msra.mxu2 %v13041_v60  ;;  %6515 = vmatpush.bf16.msrb.mxu0 %v13045_v29  ;;  %v13128_v60 = vld [vmem:[%s22820_s13 + $0x12d8] sm:$0xf]  ;;  %v20722_v29 = vadd.f32 %v5251_v47, %v20385_v11  ;;  %v20738_v11 = vadd.f32 %v5290_v56, %v20401_v17  ;;  %v15471_v17 = vld [vmem:[%s22820_s13 + $0x1294] sm:$0xf]  ;;  %v15545_v47 = vld [vmem:[%s22820_s13 + $0x14dc] sm:$0xf0] }
 0x3e9   :  { %6528 = vmatpush.bf16.msrb.mxu1 %v13049_v0  ;;  %6541 = vmatpush.bf16.msra.mxu3 %v13053_v3  ;;  %v13130_v0 = vld [vmem:[%s22820_s13 + $0x12f8] sm:$0xf0]  ;;  %v5266_v3 = vpop.f32.mrf.mxu0  ;;  %v13129_v36 = vor.u32 %v15484_v63, %v13128_v60  ;;  %v13093_v16 = vor.u32 %v15471_v17, %v13090_v37  ;;  %v13425_v60 = vld [vmem:[%s22820_s13 + $0x14c8] sm:$0xf]  ;;  %v13029_v63 = vor.u32 %v15455_v23, %v13026_v28  ;;  %v13385_v17 = vld [vmem:[%s22820_s13 + $0x1480] sm:$0xf] }
 0x3ea   :  { %v13133_v2 = vor.u32 %v15480_v58, %v13130_v0  ;;  %v5253_v15 = vpop.f32.mrf.mxu2  ;;  %v15546_v58 = vld [vmem:[%s22820_s13 + $0x14e4] sm:$0xf0]  ;;  %v15542_v0 = vld [vmem:[%s22820_s13 + $0x14cc] sm:$0xf]  ;;  %v15537_v37 = vld [vmem:[%s22820_s13 + $0x149c] sm:$0xf0] }
 0x3eb   :  { %v13427_v3 = vld [vmem:[%s22820_s13 + $0x14e8] sm:$0xf0]  ;;  %v13386_v42 = vor.u32 %v15537_v37, %v13385_v17  ;;  %v15529_v15 = vld [vmem:[%s22820_s13 + $0x145c] sm:$0xf0]  ;;  %v15514_v37 = vld [vmem:[%s22820_s13 + $0x13e4] sm:$0xf0] }
 0x3ec   :  { %6503 = vmatpush.bf16.msra.mxu2 %v13009_v25  ;;  %6516 = vmatpush.bf16.msrb.mxu0 %v13013_v13  ;;  %v13098_v25 = vld [vmem:[%s22820_s13 + $0x12b8] sm:$0xf0]  ;;  %v13089_v13 = vor.u32 %v15475_v26, %v13088_v19  ;;  %v13422_v26 = vor.u32 %v15541_v18, %v13419_v39  ;;  %v15518_v18 = vld [vmem:[%s22820_s13 + $0x140c] sm:$0xf] }
 0x3ed   :  { %6529 = vmatpush.bf16.msrb.mxu1 %v13017_v52  ;;  %6542 = vmatpush.bf16.msra.mxu3 %v13021_v34  ;;  %v13097_v52 = vor.u32 %v15476_v49, %v13096_v43  ;;  %v13101_v34 = vor.u32 %v15472_v41, %v13098_v25  ;;  %v5292_v54 = vpop.f32.mrf.mxu3  ;;  %v13426_v43 = vor.u32 %v15546_v58, %v13425_v60  ;;  %v15533_v25 = vld [vmem:[%s22820_s13 + $0x1484] sm:$0xf]  ;;  %v13331_v39 = vld [vmem:[%s22820_s13 + $0x1428] sm:$0xf0]  ;;  %v6612_v60 = vpop.permute.xlu0 %6611  ;;  %v13289_v58 = vld [vmem:[%s22820_s13 + $0x13c0] sm:$0xf] }
 0x3ee   :  { %v13430_v49 = vor.u32 %v15542_v0, %v13427_v3  ;;  %v15525_v54 = vld [vmem:[%s22820_s13 + $0x1444] sm:$0xf]  ;;  %v15513_v0 = vld [vmem:[%s22820_s13 + $0x13dc] sm:$0xf0] }
 0x3ef   :  { %13198 = vmatmul.msk.bf16.vlgmr.msra.gmra.mxu2 %vm1476_vm1, %v20700_v45  ;;  %13199 = vmatmul.msk.bf16.vlgmr.msrb.gmra.mxu0 %vm1476_vm1, %v20700_v45 }
 0x3f0   :  { %6550 = vmatpush.bf16.msrb.mxu2 %v13185_v61  ;;  %6563 = vmatpush.bf16.msra.mxu0 %v13189_v46  ;;  %v13058_v61 = vld [vmem:[%s22820_s13 + $0x1270] sm:$0xf0]  ;;  %v13064_v46 = vld [vmem:[%s22820_s13 + $0x1258] sm:$0xf] }
 0x3f1   :  { %6576 = vmatpush.bf16.msra.mxu1 %v13193_v59  ;;  %6589 = vmatpush.bf16.msrb.mxu3 %v13197_v27  ;;  %v13066_v59 = vld [vmem:[%s22820_s13 + $0x1278] sm:$0xf0]  ;;  %v13024_v27 = vld [vmem:[%s22820_s13 + $0x1210] sm:$0xf]  ;;  %v13061_v6 = vor.u32 %v15463_v53, %v13058_v61  ;;  %v13065_v44 = vor.u32 %v15468_v35, %v13064_v46  ;;  %v13355_v35 = vld [vmem:[%s22820_s13 + $0x1460] sm:$0xf0] }
 0x3f2   :  { %13200 = vmatmul.msk.bf16.vlgmr.msrb.gmra.mxu1 %vm1476_vm1, %v20700_v45  ;;  %13201 = vmatmul.msk.bf16.vlgmr.msra.gmra.mxu3 %vm1476_vm1, %v20700_v45  ;;  %v13025_v56 = vor.u32 %v15459_v4, %v13024_v27  ;;  %v13363_v4 = vld [vmem:[%s22820_s13 + $0x1468] sm:$0xf0] }
 0x3f4   :  { %6551 = vmatpush.bf16.msrb.mxu2 %v13153_v8  ;;  %6564 = vmatpush.bf16.msra.mxu0 %v13157_v22  ;;  %v13069_v8 = vor.u32 %v15464_v57, %v13066_v59  ;;  %v13032_v22 = vld [vmem:[%s22820_s13 + $0x1218] sm:$0xf]  ;;  %v5316_v33 = vpop.f32.mrf.mxu0  ;;  %v13361_v57 = vld [vmem:[%s22820_s13 + $0x1448] sm:$0xf] }
 0x3f5   :  { %6577 = vmatpush.bf16.msra.mxu1 %v13161_v12  ;;  %6590 = vmatpush.bf16.msrb.mxu3 %v13165_v14  ;;  %v13034_v12 = vld [vmem:[%s22820_s13 + $0x1238] sm:$0xf0]  ;;  %v13417_v14 = vld [vmem:[%s22820_s13 + $0x14c0] sm:$0xf] }
 0x3f6   :  { %v13418_v19 = vor.u32 %v15545_v47, %v13417_v14  ;;  %v13329_v14 = vld [vmem:[%s22820_s13 + $0x1408] sm:$0xf] }
 0x3f7   :  { %v15522_v47 = vld [vmem:[%s22820_s13 + $0x1424] sm:$0xf0] }
 0x3f8   :  { %6552 = vmatpush.bf16.msrb.mxu2 %v13121_v30  ;;  %6565 = vmatpush.bf16.msra.mxu0 %v13125_v31  ;;  %v13033_v30 = vor.u32 %v15460_v51, %v13032_v22  ;;  %v13037_v31 = vor.u32 %v15456_v1, %v13034_v12  ;;  %v13321_v22 = vld [vmem:[%s22820_s13 + $0x1400] sm:$0xf]  ;;  %v13323_v12 = vld [vmem:[%s22820_s13 + $0x1420] sm:$0xf0]  ;;  %v13330_v3 = vor.u32 %v15522_v47, %v13329_v14  ;;  %v13401_v47 = vld [vmem:[%s22820_s13 + $0x1490] sm:$0xf] }
 0x3f9   :  { %6578 = vmatpush.bf16.msra.mxu1 %v13129_v36  ;;  %6591 = vmatpush.bf16.msrb.mxu3 %v13133_v2  ;;  %v20837_v36 = vadd.f32 %v5316_v33, %v20500_v24  ;;  %v5329_v2 = vpop.f32.mrf.mxu1  ;;  %v13387_v24 = vld [vmem:[%s22820_s13 + $0x14a0] sm:$0xf0]  ;;  %v15521_v51 = vld [vmem:[%s22820_s13 + $0x141c] sm:$0xf0] }
 0x3fa   :  { %v20846_v41 = vadd.f32 %v5329_v2, %v20509_v10  ;;  %v15534_v10 = vld [vmem:[%s22820_s13 + $0x148c] sm:$0xf]  ;;  %v5303_v46 = vpop.f32.mrf.mxu2  ;;  %v15509_v33 = vld [vmem:[%s22820_s13 + $0x13c4] sm:$0xf]  ;;  %v6617_v2 = vperm.slane %v6612_v60, %v16835_v7 }
 0x3fb   :  { %v13398_v61 = vor.u32 %v15534_v10, %v13395_v40  ;;  %v20886_v59 = vadd.f32 %v5303_v46, %v20549_v50  ;;  %v15501_v10 = vld [vmem:[%s22820_s13 + $0x1384] sm:$0xf] }
 0x3fc   :  { %6553 = vmatpush.bf16.msrb.mxu2 %v13089_v13  ;;  %6566 = vmatpush.bf16.msra.mxu0 %v13093_v16  ;;  %v13393_v13 = vld [vmem:[%s22820_s13 + $0x1488] sm:$0xf]  ;;  %v5318_v23 = vpop.f32.mrf.mxu0  ;;  %v13259_v40 = vld [vmem:[%s22820_s13 + $0x13a0] sm:$0xf0]  ;;  %v6619_v46 = vunpack.c.l.bf16 %v6617_v2 }
 0x3fd   :  { %6579 = vmatpush.bf16.msra.mxu1 %v13097_v52  ;;  %6592 = vmatpush.bf16.msrb.mxu3 %v13101_v34  ;;  %v15538_v16 = vld [vmem:[%s22820_s13 + $0x14a4] sm:$0xf0]  ;;  %v13390_v52 = vor.u32 %v15533_v25, %v13387_v24  ;;  %v13353_v34 = vld [vmem:[%s22820_s13 + $0x1440] sm:$0xf]  ;;  %v5342_v27 = vpop.f32.mrf.mxu3  ;;  %v13290_v24 = vor.u32 %v15513_v0, %v13289_v58  ;;  %v15548_v23 = vld [vmem:[%s22820_s13 + $0x14f4] sm:$0xf0] }
 0x3fe   :  { %v13394_v53 = vor.u32 %v15538_v16, %v13393_v13  ;;  %v20902_v50 = vadd.f32 %v5342_v27, %v20565_v20  ;;  %v13354_v28 = vor.u32 %v15529_v15, %v13353_v34  ;;  %v15517_v20 = vld [vmem:[%s22820_s13 + $0x1404] sm:$0xf]  ;;  %v13257_v25 = vld [vmem:[%s22820_s13 + $0x1380] sm:$0xf]  ;;  %v13265_v34 = vld [vmem:[%s22820_s13 + $0x1388] sm:$0xf] }
 0x3ff   :  { %v15505_v16 = vld [vmem:[%s22820_s13 + $0x139c] sm:$0xf0]  ;;  %v15506_v15 = vld [vmem:[%s22820_s13 + $0x13a4] sm:$0xf0]  ;;  %v15543_v27 = vld [vmem:[%s22820_s13 + $0x14d4] sm:$0xf] }
 0x400   :  { %6554 = vmatpush.bf16.msrb.mxu2 %v13057_v38  ;;  %6567 = vmatpush.bf16.msra.mxu0 %v13061_v6  ;;  %v15530_v38 = vld [vmem:[%s22820_s13 + $0x1464] sm:$0xf0]  ;;  %v15526_v6 = vld [vmem:[%s22820_s13 + $0x144c] sm:$0xf]  ;;  %v13409_v58 = vld [vmem:[%s22820_s13 + $0x1498] sm:$0xf] }
 0x401   :  { %6580 = vmatpush.bf16.msra.mxu1 %v13065_v44  ;;  %6593 = vmatpush.bf16.msrb.mxu3 %v13069_v8  ;;  %v13358_v44 = vor.u32 %v15525_v54, %v13355_v35  ;;  %v5331_v8 = vpop.f32.mrf.mxu1  ;;  %v13366_v1 = vor.u32 %v15526_v6, %v13363_v4  ;;  %v13267_v54 = vld [vmem:[%s22820_s13 + $0x13a8] sm:$0xf0]  ;;  %v13433_v35 = vld [vmem:[%s22820_s13 + $0x14d0] sm:$0xf]  ;;  %v13258_v6 = vor.u32 %v15505_v16, %v13257_v25  ;;  %v15540_v0 = vld [vmem:[%s22820_s13 + $0x14b4] sm:$0xf0] }
 0x402   :  { %v13262_v4 = vor.u32 %v15501_v10, %v13259_v40  ;;  %v13266_v8 = vor.u32 %v15506_v15, %v13265_v34  ;;  %v13410_v2 = vor.u32 %v15540_v0, %v13409_v58  ;;  %v13377_v25 = vld [vmem:[%s22820_s13 + $0x1458] sm:$0xf]  ;;  %v15528_v10 = vld [vmem:[%s22820_s13 + $0x145c] sm:$0xf]  ;;  %v15503_v58 = vld [vmem:[%s22820_s13 + $0x1394] sm:$0xf] }
 0x403   :  { %v15532_v16 = vld [vmem:[%s22820_s13 + $0x1474] sm:$0xf0]  ;;  %v13379_v40 = vld [vmem:[%s22820_s13 + $0x1478] sm:$0xf0]  ;;  %v13275_v0 = vld [vmem:[%s22820_s13 + $0x13b0] sm:$0xf0] }
 0x404   :  { %6555 = vmatpush.bf16.msrb.mxu2 %v13025_v56  ;;  %6568 = vmatpush.bf16.msra.mxu0 %v13029_v63  ;;  %v13322_v56 = vor.u32 %v15521_v51, %v13321_v22  ;;  %v13326_v63 = vor.u32 %v15517_v20, %v13323_v12 }
 0x405   :  { %6581 = vmatpush.bf16.msra.mxu1 %v13033_v30  ;;  %6594 = vmatpush.bf16.msrb.mxu3 %v13037_v31  ;;  %v13334_v30 = vor.u32 %v15518_v18, %v13331_v39  ;;  %v5305_v31 = vpop.f32.mrf.mxu2  ;;  %v5344_v17 = vpop.f32.mrf.mxu3  ;;  %v15539_v18 = vld [vmem:[%s22820_s13 + $0x14ac] sm:$0xf0] }
 0x406   :  { %v13402_v31 = vor.u32 %v15539_v18, %v13401_v47  ;;  %v15512_v47 = vld [vmem:[%s22820_s13 + $0x13dc] sm:$0xf] }
 0x407   :  { %13202 = vmatmul.msk.bf16.vlgmr.msrb.gmra.mxu2 %vm1476_vm1, %v20700_v45  ;;  %13203 = vmatmul.msk.bf16.vlgmr.msra.gmra.mxu0 %vm1476_vm1, %v20700_v45  ;;  %v13315_v18 = vld [vmem:[%s22820_s13 + $0x13f8] sm:$0xf0] }
 0x408   :  { %6916 = vmatpush.bf16.msra.mxu2 %v13418_v19  ;;  %6929 = vmatpush.bf16.msrb.mxu0 %v13422_v26  ;;  %v13291_v19 = vld [vmem:[%s22820_s13 + $0x13e0] sm:$0xf0]  ;;  %v13297_v26 = vld [vmem:[%s22820_s13 + $0x13c8] sm:$0xf] }
 0x409   :  { %6942 = vmatpush.bf16.msrb.mxu1 %v13426_v43  ;;  %6955 = vmatpush.bf16.msra.mxu3 %v13430_v49  ;;  %v15510_v43 = vld [vmem:[%s22820_s13 + $0x13cc] sm:$0xf]  ;;  %v13294_v13 = vor.u32 %v15509_v33, %v13291_v19  ;;  %v13369_v19 = vld [vmem:[%s22820_s13 + $0x1450] sm:$0xf] }
 0x40a   :  { %13204 = vmatmul.msk.bf16.vlgmr.msra.gmra.mxu1 %vm1476_vm1, %v20700_v45  ;;  %13205 = vmatmul.msk.bf16.vlgmr.msrb.gmra.mxu3 %vm1476_vm1, %v20700_v45  ;;  %v13362_v45 = vor.u32 %v15530_v38, %v13361_v57  ;;  %v13299_v49 = vld [vmem:[%s22820_s13 + $0x13e8] sm:$0xf0]  ;;  %v15547_v57 = vld [vmem:[%s22820_s13 + $0x14ec] sm:$0xf0]  ;;  %v13441_v38 = vld [vmem:[%s22820_s13 + $0x14d8] sm:$0xf] }
 0x40b   :  { %v13442_v39 = vor.u32 %v15548_v23, %v13441_v38  ;;  %v13347_v38 = vld [vmem:[%s22820_s13 + $0x1438] sm:$0xf0]  ;;  %v13305_v23 = vld [vmem:[%s22820_s13 + $0x13d0] sm:$0xf] }
 0x40c   :  { %6917 = vmatpush.bf16.msra.mxu2 %v13386_v42  ;;  %6930 = vmatpush.bf16.msrb.mxu0 %v13390_v52  ;;  %v13298_v42 = vor.u32 %v15514_v37, %v13297_v26  ;;  %v13302_v52 = vor.u32 %v15510_v43, %v13299_v49  ;;  %v5682_v51 = vpop.f32.mrf.mxu0  ;;  %v15531_v26 = vld [vmem:[%s22820_s13 + $0x146c] sm:$0xf0]  ;;  %v15527_v43 = vld [vmem:[%s22820_s13 + $0x1454] sm:$0xf] }
 0x40d   :  { %6943 = vmatpush.bf16.msrb.mxu1 %v13394_v53  ;;  %6956 = vmatpush.bf16.msra.mxu3 %v13398_v61  ;;  %v15502_v53 = vld [vmem:[%s22820_s13 + $0x138c] sm:$0xf]  ;;  %v6618_v61 = vunpack.c.h.bf16 %v20619_v9  ;;  %v13435_v9 = vld [vmem:[%s22820_s13 + $0x14f0] sm:$0xf0]  ;;  %v21003_v12 = vadd.f32 %v5682_v51, %v20671_v55 }
 0x40e   :  { %v13270_v22 = vor.u32 %v15502_v53, %v13267_v54  ;;  %v13438_v20 = vor.u32 %v15543_v27, %v13435_v9  ;;  %v13403_v55 = vld [vmem:[%s22820_s13 + $0x14b0] sm:$0xf0]  ;;  %v13337_v53 = vld [vmem:[%s22820_s13 + $0x1410] sm:$0xf]  ;;  %v13382_v54 = vor.u32 %v15528_v10, %v13379_v40  ;;  %v15524_v27 = vld [vmem:[%s22820_s13 + $0x1434] sm:$0xf0] }
 0x40f   :  { %v5695_v14 = vpop.f32.mrf.mxu1  ;;  %v13371_v49 = vld [vmem:[%s22820_s13 + $0x1470] sm:$0xf0]  ;;  %v15520_v9 = vld [vmem:[%s22820_s13 + $0x141c] sm:$0xf]  ;;  %v15590_v10 = vld [vmem:[%s22820_s13 + $0x164c] sm:$0xf] }
 0x410   :  { %6918 = vmatpush.bf16.msra.mxu2 %v13354_v28  ;;  %6931 = vmatpush.bf16.msrb.mxu0 %v13358_v44  ;;  %v15544_v28 = vld [vmem:[%s22820_s13 + $0x14dc] sm:$0xf]  ;;  %v13374_v34 = vor.u32 %v15527_v43, %v13371_v49  ;;  %v15511_v51 = vld [vmem:[%s22820_s13 + $0x13d4] sm:$0xf]  ;;  %v13668_v43 = vld [vmem:[%s22820_s13 + $0x1660] sm:$0xf0] }
 0x411   :  { %6944 = vmatpush.bf16.msrb.mxu1 %v13362_v45  ;;  %6957 = vmatpush.bf16.msra.mxu3 %v13366_v1  ;;  %v13443_v44 = vld [vmem:[%s22820_s13 + $0x14f8] sm:$0xf0]  ;;  %v6620_v45 = vmul.f32 %v6619_v46, %v6618_v61  ;;  %v13434_v1 = vor.u32 %v15547_v57, %v13433_v35  ;;  %v15523_v61 = vld [vmem:[%s22820_s13 + $0x142c] sm:$0xf0]  ;;  %v13378_v46 = vor.u32 %v15532_v16, %v13377_v25  ;;  %v13339_v35 = vld [vmem:[%s22820_s13 + $0x1430] sm:$0xf0] }
 0x412   :  { %v13446_v60 = vor.u32 %v15544_v28, %v13443_v44  ;;  %v5669_v37 = vpop.f32.mrf.mxu2  ;;  %v13345_v57 = vld [vmem:[%s22820_s13 + $0x1418] sm:$0xf]  ;;  %v15515_v28 = vld [vmem:[%s22820_s13 + $0x13ec] sm:$0xf0]  ;;  %v13674_v49 = vld [vmem:[%s22820_s13 + $0x1648] sm:$0xf] }
 0x413   :  { %v13346_v44 = vor.u32 %v15524_v27, %v13345_v57  ;;  %v15594_v16 = vld [vmem:[%s22820_s13 + $0x1664] sm:$0xf0]  ;;  %v13676_v40 = vld [vmem:[%s22820_s13 + $0x1668] sm:$0xf0] }
 0x414   :  { %6919 = vmatpush.bf16.msra.mxu2 %v13322_v56  ;;  %6932 = vmatpush.bf16.msrb.mxu0 %v13326_v63  ;;  %v21012_v56 = vadd.f32 %v5695_v14, %v20680_v62  ;;  %v15535_v63 = vld [vmem:[%s22820_s13 + $0x1494] sm:$0xf]  ;;  %v15536_v62 = vld [vmem:[%s22820_s13 + $0x149c] sm:$0xf]  ;;  %v15516_v14 = vld [vmem:[%s22820_s13 + $0x13f4] sm:$0xf0]  ;;  %v13679_v57 = vor.u32 %v15590_v10, %v13676_v40 }
 0x415   :  { %6945 = vmatpush.bf16.msrb.mxu1 %v13330_v3  ;;  %6958 = vmatpush.bf16.msra.mxu3 %v13334_v30  ;;  %v13411_v3 = vld [vmem:[%s22820_s13 + $0x14b8] sm:$0xf0]  ;;  %v21032_v30 = vpack.c.bf16 %v6620_v45, %v6620_v45  ;;  %v13406_v33 = vor.u32 %v15535_v63, %v13403_v55  ;;  %v13307_v45 = vld [vmem:[%s22820_s13 + $0x13f0] sm:$0xf0]  ;;  %v15507_v55 = vld [vmem:[%s22820_s13 + $0x13ac] sm:$0xf0] }
 0x416   :  { %v13414_v17 = vor.u32 %v15536_v62, %v13411_v3  ;;  %v13310_v63 = vor.u32 %v15511_v51, %v13307_v45  ;;  %v13318_v3 = vor.u32 %v15512_v47, %v13315_v18 }
 0x417   :  { %v5697_v15 = vpop.f32.mrf.mxu1 }
 0x418   :  { %6920 = vmatpush.bf16.msra.mxu2 %v13290_v24  ;;  %6933 = vmatpush.bf16.msrb.mxu0 %v13294_v13  ;;  %v21054_v24 = vadd.f32 %v5669_v37, %v20722_v29  ;;  %v5708_v13 = vpop.f32.mrf.mxu3  ;;  %v15589_v37 = vld [vmem:[%s22820_s13 + $0x1644] sm:$0xf] }
 0x419   :  { %6946 = vmatpush.bf16.msrb.mxu1 %v13298_v42  ;;  %6959 = vmatpush.bf16.msra.mxu3 %v13302_v52  ;;  %v21070_v29 = vadd.f32 %v5708_v13, %v20738_v11  ;;  %v5684_v42 = vpop.f32.mrf.mxu0  ;;  %v13370_v52 = vor.u32 %v15531_v26, %v13369_v19  ;;  %v15519_v11 = vld [vmem:[%s22820_s13 + $0x1414] sm:$0xf]  ;;  %v15504_v19 = vld [vmem:[%s22820_s13 + $0x139c] sm:$0xf]  ;;  %v13278_v13 = vor.u32 %v15503_v58, %v13275_v0 }
 0x41a   :  { %v13283_v26 = vld [vmem:[%s22820_s13 + $0x13b8] sm:$0xf0] }
 0x41c   :  { %6921 = vmatpush.bf16.msra.mxu2 %v13258_v6  ;;  %6934 = vmatpush.bf16.msrb.mxu0 %v13262_v4  ;;  %v13338_v6 = vor.u32 %v15523_v61, %v13337_v53  ;;  %v13342_v4 = vor.u32 %v15519_v11, %v13339_v35  ;;  %v13671_v53 = vor.u32 %v15589_v37, %v13668_v43  ;;  %v15585_v11 = vld [vmem:[%s22820_s13 + $0x161c] sm:$0xf0]  ;;  %v13580_v37 = vld [vmem:[%s22820_s13 + $0x15a8] sm:$0xf0]  ;;  %v7030_v43 = vpop.permute.xlu1 %7029 }
 0x41d   :  { %6947 = vmatpush.bf16.msrb.mxu1 %v13266_v8  ;;  %6960 = vmatpush.bf16.msra.mxu3 %v13270_v22  ;;  %v13350_v8 = vor.u32 %v15520_v9, %v13347_v38  ;;  %v5671_v22 = vpop.f32.mrf.mxu2  ;;  %v13675_v35 = vor.u32 %v15594_v16, %v13674_v49  ;;  %v15581_v9 = vld [vmem:[%s22820_s13 + $0x1604] sm:$0xf]  ;;  %v13642_v38 = vld [vmem:[%s22820_s13 + $0x1608] sm:$0xf]  ;;  %v15561_v16 = vld [vmem:[%s22820_s13 + $0x155c] sm:$0xf0] }
 0x41f   :  { %13447 = vmatmul.msk.bf16.vlgmr.msra.gmra.mxu2 %vm1476_vm1, %v21032_v30  ;;  %13448 = vmatmul.msk.bf16.vlgmr.msrb.gmra.mxu0 %vm1476_vm1, %v21032_v30 }
 0x420   :  { %6968 = vmatpush.bf16.msrb.mxu2 %v13434_v1  ;;  %6981 = vmatpush.bf16.msra.mxu0 %v13438_v20  ;;  %v13313_v1 = vld [vmem:[%s22820_s13 + $0x13d8] sm:$0xf]  ;;  %v5710_v20 = vpop.f32.mrf.mxu3 }
 0x421   :  { %6994 = vmatpush.bf16.msra.mxu1 %v13442_v39  ;;  %7007 = vmatpush.bf16.msrb.mxu3 %v13446_v60  ;;  %v13273_v39 = vld [vmem:[%s22820_s13 + $0x1390] sm:$0xf]  ;;  %v13306_v60 = vor.u32 %v15515_v28, %v13305_v23  ;;  %v13314_v62 = vor.u32 %v15516_v14, %v13313_v1  ;;  %v15573_v1 = vld [vmem:[%s22820_s13 + $0x15c4] sm:$0xf]  ;;  %v13610_v14 = vld [vmem:[%s22820_s13 + $0x15c8] sm:$0xf] }
 0x422   :  { %13449 = vmatmul.msk.bf16.vlgmr.msrb.gmra.mxu1 %vm1476_vm1, %v21032_v30  ;;  %13450 = vmatmul.msk.bf16.vlgmr.msra.gmra.mxu3 %vm1476_vm1, %v21032_v30  ;;  %v13274_v25 = vor.u32 %v15507_v55, %v13273_v39  ;;  %v13604_v20 = vld [vmem:[%s22820_s13 + $0x15e0] sm:$0xf0]  ;;  %v15578_v39 = vld [vmem:[%s22820_s13 + $0x15e4] sm:$0xf0] }
 0x423   :  { %v13607_v0 = vor.u32 %v15573_v1, %v13604_v20  ;;  %v13516_v1 = vld [vmem:[%s22820_s13 + $0x1528] sm:$0xf0]  ;;  %v13682_v20 = vld [vmem:[%s22820_s13 + $0x1650] sm:$0xf] }
 0x424   :  { %6969 = vmatpush.bf16.msrb.mxu2 %v13402_v31  ;;  %6982 = vmatpush.bf16.msra.mxu0 %v13406_v33  ;;  %v13281_v31 = vld [vmem:[%s22820_s13 + $0x1398] sm:$0xf] }
 0x425   :  { %6995 = vmatpush.bf16.msra.mxu1 %v13410_v2  ;;  %7008 = vmatpush.bf16.msrb.mxu3 %v13414_v17  ;;  %v15508_v33 = vld [vmem:[%s22820_s13 + $0x13b4] sm:$0xf0]  ;;  %v13666_v2 = vld [vmem:[%s22820_s13 + $0x1640] sm:$0xf] }
 0x426   :  { %v15593_v17 = vld [vmem:[%s22820_s13 + $0x165c] sm:$0xf0]  ;;  %v13282_v42 = vor.u32 %v15508_v33, %v13281_v31 }
 0x427   :  { %v13667_v15 = vor.u32 %v15593_v17, %v13666_v2  ;;  %v15569_v31 = vld [vmem:[%s22820_s13 + $0x159c] sm:$0xf0]  ;;  %v15570_v2 = vld [vmem:[%s22820_s13 + $0x15a4] sm:$0xf0]  ;;  %v15566_v17 = vld [vmem:[%s22820_s13 + $0x158c] sm:$0xf] }
 0x428   :  { %6970 = vmatpush.bf16.msrb.mxu2 %v13370_v52  ;;  %6983 = vmatpush.bf16.msra.mxu0 %v13374_v34  ;;  %v13286_v52 = vor.u32 %v15504_v19, %v13283_v26  ;;  %v5734_v34 = vpop.f32.mrf.mxu0  ;;  %v13572_v19 = vld [vmem:[%s22820_s13 + $0x15a0] sm:$0xf0]  ;;  %v13578_v26 = vld [vmem:[%s22820_s13 + $0x1588] sm:$0xf]  ;;  %v13583_v40 = vor.u32 %v15566_v17, %v13580_v37  ;;  %v13650_v17 = vld [vmem:[%s22820_s13 + $0x1610] sm:$0xf] }
 0x429   :  { %6996 = vmatpush.bf16.msra.mxu1 %v13378_v46  ;;  %7009 = vmatpush.bf16.msrb.mxu3 %v13382_v54  ;;  %v21169_v61 = vadd.f32 %v5734_v34, %v20837_v36  ;;  %v5747_v46 = vpop.f32.mrf.mxu1  ;;  %v13634_v54 = vld [vmem:[%s22820_s13 + $0x1600] sm:$0xf]  ;;  %v13636_v36 = vld [vmem:[%s22820_s13 + $0x1620] sm:$0xf0]  ;;  %v13579_v10 = vor.u32 %v15570_v2, %v13578_v26  ;;  %v15587_v37 = vld [vmem:[%s22820_s13 + $0x162c] sm:$0xf0] }
 0x42a   :  { %v21178_v27 = vadd.f32 %v5747_v46, %v20846_v41  ;;  %v15582_v41 = vld [vmem:[%s22820_s13 + $0x160c] sm:$0xf]  ;;  %v13635_v23 = vor.u32 %v15585_v11, %v13634_v54  ;;  %v13639_v28 = vor.u32 %v15581_v9, %v13636_v36  ;;  %v5721_v45 = vpop.f32.mrf.mxu2  ;;  %v13540_v34 = vld [vmem:[%s22820_s13 + $0x1560] sm:$0xf0]  ;;  %v15562_v54 = vld [vmem:[%s22820_s13 + $0x1564] sm:$0xf0] }
 0x42b   :  { %v21218_v47 = vadd.f32 %v5721_v45, %v20886_v59  ;;  %v15558_v11 = vld [vmem:[%s22820_s13 + $0x154c] sm:$0xf]  ;;  %v13506_v9 = vld [vmem:[%s22820_s13 + $0x1500] sm:$0xf] }
 0x42c   :  { %6971 = vmatpush.bf16.msrb.mxu2 %v13338_v6  ;;  %6984 = vmatpush.bf16.msra.mxu0 %v13342_v4  ;;  %v15586_v6 = vld [vmem:[%s22820_s13 + $0x1624] sm:$0xf0]  ;;  %v13644_v4 = vld [vmem:[%s22820_s13 + $0x1628] sm:$0xf0] }
 0x42d   :  { %6997 = vmatpush.bf16.msra.mxu1 %v13346_v44  ;;  %7010 = vmatpush.bf16.msrb.mxu3 %v13350_v8  ;;  %v13602_v44 = vld [vmem:[%s22820_s13 + $0x15c0] sm:$0xf]  ;;  %v13643_v22 = vor.u32 %v15586_v6, %v13642_v38  ;;  %v13647_v51 = vor.u32 %v15582_v41, %v13644_v4  ;;  %v5760_v18 = vpop.f32.mrf.mxu3  ;;  %v15549_v41 = vld [vmem:[%s22820_s13 + $0x1504] sm:$0xf] }
 0x42e   :  { %v15577_v8 = vld [vmem:[%s22820_s13 + $0x15dc] sm:$0xf0]  ;;  %v21234_v59 = vadd.f32 %v5760_v18, %v20902_v50  ;;  %v15565_v50 = vld [vmem:[%s22820_s13 + $0x1584] sm:$0xf]  ;;  %v15591_v18 = vld [vmem:[%s22820_s13 + $0x1654] sm:$0xf] }
 0x42f   :  { %v13603_v58 = vor.u32 %v15577_v8, %v13602_v44  ;;  %v15553_v6 = vld [vmem:[%s22820_s13 + $0x151c] sm:$0xf0]  ;;  %v13508_v4 = vld [vmem:[%s22820_s13 + $0x1520] sm:$0xf0]  ;;  %v13514_v44 = vld [vmem:[%s22820_s13 + $0x1508] sm:$0xf] }
 0x430   :  { %6972 = vmatpush.bf16.msrb.mxu2 %v13306_v60  ;;  %6985 = vmatpush.bf16.msra.mxu0 %v13310_v63  ;;  %v15574_v60 = vld [vmem:[%s22820_s13 + $0x15cc] sm:$0xf]  ;;  %v5736_v55 = vpop.f32.mrf.mxu0  ;;  %v15554_v8 = vld [vmem:[%s22820_s13 + $0x1524] sm:$0xf0] }
 0x431   :  { %6998 = vmatpush.bf16.msra.mxu1 %v13314_v62  ;;  %7011 = vmatpush.bf16.msrb.mxu3 %v13318_v3  ;;  %v13612_v63 = vld [vmem:[%s22820_s13 + $0x15e8] sm:$0xf0]  ;;  %v5749_v62 = vpop.f32.mrf.mxu1  ;;  %v13570_v3 = vld [vmem:[%s22820_s13 + $0x1580] sm:$0xf]  ;;  %v13511_v55 = vor.u32 %v15549_v41, %v13508_v4  ;;  %v15576_v41 = vld [vmem:[%s22820_s13 + $0x15dc] sm:$0xf] }
 0x432   :  { %v13615_v33 = vor.u32 %v15574_v60, %v13612_v63  ;;  %v13571_v49 = vor.u32 %v15569_v31, %v13570_v3  ;;  %v13690_v60 = vld [vmem:[%s22820_s13 + $0x1658] sm:$0xf]  ;;  %v13507_v63 = vor.u32 %v15553_v6, %v13506_v9  ;;  %v13692_v62 = vld [vmem:[%s22820_s13 + $0x1678] sm:$0xf0]  ;;  %v13515_v3 = vor.u32 %v15554_v8, %v13514_v44 }
 0x433   :  { %v13626_v9 = vld [vmem:[%s22820_s13 + $0x15d8] sm:$0xf]  ;;  %v13628_v4 = vld [vmem:[%s22820_s13 + $0x15f8] sm:$0xf0] }
 0x434   :  { %6973 = vmatpush.bf16.msrb.mxu2 %v13274_v25  ;;  %6986 = vmatpush.bf16.msra.mxu0 %v13278_v13  ;;  %v13575_v25 = vor.u32 %v15565_v50, %v13572_v19  ;;  %v13538_v13 = vld [vmem:[%s22820_s13 + $0x1540] sm:$0xf]  ;;  %v15580_v6 = vld [vmem:[%s22820_s13 + $0x15f4] sm:$0xf0] }
 0x435   :  { %6999 = vmatpush.bf16.msra.mxu1 %v13282_v42  ;;  %7012 = vmatpush.bf16.msrb.mxu3 %v13286_v52  ;;  %v5723_v42 = vpop.f32.mrf.mxu2  ;;  %v15557_v52 = vld [vmem:[%s22820_s13 + $0x1544] sm:$0xf]  ;;  %v5762_v46 = vpop.f32.mrf.mxu3  ;;  %v13539_v36 = vor.u32 %v15561_v16, %v13538_v13  ;;  %v15583_v13 = vld [vmem:[%s22820_s13 + $0x1614] sm:$0xf]  ;;  %v13658_v16 = vld [vmem:[%s22820_s13 + $0x1618] sm:$0xf] }
 0x436   :  { %v13543_v38 = vor.u32 %v15557_v52, %v13540_v34  ;;  %v13651_v52 = vor.u32 %v15587_v37, %v13650_v17  ;;  %v15560_v17 = vld [vmem:[%s22820_s13 + $0x155c] sm:$0xf] }
 0x437   :  { %13451 = vmatmul.msk.bf16.vlgmr.msrb.gmra.mxu2 %vm1476_vm1, %v21032_v30  ;;  %13452 = vmatmul.msk.bf16.vlgmr.msra.gmra.mxu0 %vm1476_vm1, %v21032_v30  ;;  %v13564_v37 = vld [vmem:[%s22820_s13 + $0x1578] sm:$0xf0] }
 0x438   :  { %7334 = vmatpush.bf16.msra.mxu2 %v13667_v15  ;;  %7347 = vmatpush.bf16.msrb.mxu0 %v13671_v53  ;;  %v13546_v15 = vld [vmem:[%s22820_s13 + $0x1548] sm:$0xf]  ;;  %v7035_v53 = vperm.slane %v7030_v43, %v16835_v7 }
 0x439   :  { %7360 = vmatpush.bf16.msrb.mxu1 %v13675_v35  ;;  %7373 = vmatpush.bf16.msra.mxu3 %v13679_v57  ;;  %v13548_v35 = vld [vmem:[%s22820_s13 + $0x1568] sm:$0xf0]  ;;  %v13455_v57 = vld [vmem:[%s22822_s2 + $0x38] sm:$0xf] }
 0x43a   :  { %13453 = vmatmul.msk.bf16.vlgmr.msra.gmra.mxu1 %vm1476_vm1, %v21032_v30  ;;  %13454 = vmatmul.msk.bf16.vlgmr.msrb.gmra.mxu3 %vm1476_vm1, %v21032_v30  ;;  %v13611_v30 = vor.u32 %v15578_v39, %v13610_v14  ;;  %v7037_v45 = vunpack.c.l.bf16 %v7035_v53  ;;  %v15595_v14 = vld [vmem:[%s22820_s13 + $0x166c] sm:$0xf0]  ;;  %v13684_v39 = vld [vmem:[%s22820_s13 + $0x1670] sm:$0xf0] }
 0x43b   :  { %v13683_v50 = vor.u32 %v15595_v14, %v13682_v20  ;;  %v13687_v19 = vor.u32 %v15591_v18, %v13684_v39  ;;  %v15579_v53 = vld [vmem:[%s22820_s13 + $0x15ec] sm:$0xf0]  ;;  %v13588_v20 = vld [vmem:[%s22820_s13 + $0x15b0] sm:$0xf0]  ;;  %v13594_v14 = vld [vmem:[%s22820_s13 + $0x1598] sm:$0xf] }
 0x43c   :  { %7335 = vmatpush.bf16.msra.mxu2 %v13635_v23  ;;  %7348 = vmatpush.bf16.msrb.mxu0 %v13639_v28  ;;  %v13547_v23 = vor.u32 %v15562_v54, %v13546_v15  ;;  %v13551_v28 = vor.u32 %v15558_v11, %v13548_v35  ;;  %v13618_v15 = vld [vmem:[%s22820_s13 + $0x15d0] sm:$0xf]  ;;  %v15575_v35 = vld [vmem:[%s22820_s13 + $0x15d4] sm:$0xf]  ;;  %v15572_v18 = vld [vmem:[%s22820_s13 + $0x15b4] sm:$0xf0] }
 0x43d   :  { %7361 = vmatpush.bf16.msrb.mxu1 %v13643_v22  ;;  %7374 = vmatpush.bf16.msra.mxu3 %v13647_v51  ;;  %v15550_v22 = vld [vmem:[%s22820_s13 + $0x150c] sm:$0xf]  ;;  %v7036_v51 = vunpack.c.l.bf16 %v13455_v57  ;;  %v13620_v57 = vld [vmem:[%s22820_s13 + $0x15f0] sm:$0xf0]  ;;  %v15568_v39 = vld [vmem:[%s22820_s13 + $0x159c] sm:$0xf] }
 0x43e   :  { %v13519_v31 = vor.u32 %v15550_v22, %v13516_v1  ;;  %v13623_v44 = vor.u32 %v15575_v35, %v13620_v57  ;;  %v13586_v22 = vld [vmem:[%s22820_s13 + $0x1590] sm:$0xf]  ;;  %v13631_v1 = vor.u32 %v15576_v41, %v13628_v4  ;;  %v13917_v35 = vld [vmem:[%s22820_s13 + $0x17e0] sm:$0xf0]  ;;  %v13923_v57 = vld [vmem:[%s22820_s13 + $0x17c8] sm:$0xf] }
 0x43f   :  { %v6113_v2 = vpop.f32.mrf.mxu1  ;;  %v15638_v41 = vld [vmem:[%s22820_s13 + $0x17cc] sm:$0xf] }
 0x440   :  { %7336 = vmatpush.bf16.msra.mxu2 %v13603_v58  ;;  %7349 = vmatpush.bf16.msrb.mxu0 %v13607_v0  ;;  %v15596_v58 = vld [vmem:[%s22820_s13 + $0x1674] sm:$0xf0]  ;;  %v15592_v0 = vld [vmem:[%s22820_s13 + $0x165c] sm:$0xf]  ;;  %v13925_v4 = vld [vmem:[%s22820_s13 + $0x17e8] sm:$0xf0] }
 0x441   :  { %7362 = vmatpush.bf16.msrb.mxu1 %v13611_v30  ;;  %7375 = vmatpush.bf16.msra.mxu3 %v13615_v33  ;;  %v6100_v30 = vpop.f32.mrf.mxu0  ;;  %v7038_v33 = vmul.f32 %v7037_v45, %v7036_v51  ;;  %v13691_v43 = vor.u32 %v15596_v58, %v13690_v60  ;;  %v15571_v51 = vld [vmem:[%s22820_s13 + $0x15ac] sm:$0xf0]  ;;  %v13627_v45 = vor.u32 %v15580_v6, %v13626_v9  ;;  %v13596_v60 = vld [vmem:[%s22820_s13 + $0x15b8] sm:$0xf0]  ;;  %v15642_v6 = vld [vmem:[%s22820_s13 + $0x17e4] sm:$0xf0] }
 0x442   :  { %v21337_v26 = vadd.f32 %v6100_v30, %v21003_v12  ;;  %v13652_v12 = vld [vmem:[%s22820_s13 + $0x1630] sm:$0xf0]  ;;  %v6087_v11 = vpop.f32.mrf.mxu2  ;;  %v13554_v58 = vld [vmem:[%s22820_s13 + $0x1550] sm:$0xf] }
 0x443   :  { %v21366_v42 = vpack.c.bf16 %v7038_v33, %v7038_v33  ;;  %v13655_v34 = vor.u32 %v15583_v13, %v13652_v12  ;;  %v15559_v30 = vld [vmem:[%s22820_s13 + $0x1554] sm:$0xf]  ;;  %v15555_v12 = vld [vmem:[%s22820_s13 + $0x152c] sm:$0xf0] }
 0x444   :  { %7337 = vmatpush.bf16.msra.mxu2 %v13571_v49  ;;  %7350 = vmatpush.bf16.msrb.mxu0 %v13575_v25  ;;  %v13695_v49 = vor.u32 %v15592_v0, %v13692_v62  ;;  %v21346_v25 = vadd.f32 %v6113_v2, %v21012_v56  ;;  %v15584_v56 = vld [vmem:[%s22820_s13 + $0x161c] sm:$0xf]  ;;  %v15563_v0 = vld [vmem:[%s22820_s13 + $0x156c] sm:$0xf0]  ;;  %v13595_v62 = vor.u32 %v15572_v18, %v13594_v14  ;;  %v13556_v33 = vld [vmem:[%s22820_s13 + $0x1570] sm:$0xf0] }
 0x445   :  { %7363 = vmatpush.bf16.msrb.mxu1 %v13579_v10  ;;  %7376 = vmatpush.bf16.msra.mxu3 %v13583_v40  ;;  %v15588_v10 = vld [vmem:[%s22820_s13 + $0x1634] sm:$0xf0]  ;;  %v13660_v40 = vld [vmem:[%s22820_s13 + $0x1638] sm:$0xf0]  ;;  %v13559_v13 = vor.u32 %v15559_v30, %v13556_v33  ;;  %v13928_v14 = vor.u32 %v15638_v41, %v13925_v4 }
 0x446   :  { %v13659_v46 = vor.u32 %v15588_v10, %v13658_v16  ;;  %v13663_v54 = vor.u32 %v15584_v56, %v13660_v40  ;;  %v15564_v2 = vld [vmem:[%s22820_s13 + $0x1574] sm:$0xf0]  ;;  %v15551_v16 = vld [vmem:[%s22820_s13 + $0x1514] sm:$0xf]  ;;  %v13567_v40 = vor.u32 %v15560_v17, %v13564_v37 }
 0x447   :  { %v6115_v8 = vpop.f32.mrf.mxu1  ;;  %v13524_v10 = vld [vmem:[%s22820_s13 + $0x1530] sm:$0xf0] }
 0x448   :  { %7338 = vmatpush.bf16.msra.mxu2 %v13539_v36  ;;  %7351 = vmatpush.bf16.msrb.mxu0 %v13543_v38  ;;  %v21388_v36 = vadd.f32 %v6087_v11, %v21054_v24  ;;  %v6126_v38 = vpop.f32.mrf.mxu3  ;;  %v15637_v11 = vld [vmem:[%s22820_s13 + $0x17c4] sm:$0xf] }
 0x449   :  { %7364 = vmatpush.bf16.msrb.mxu1 %v13547_v23  ;;  %7377 = vmatpush.bf16.msra.mxu3 %v13551_v28  ;;  %v21404_v24 = vadd.f32 %v6126_v38, %v21070_v29  ;;  %v6102_v23 = vpop.f32.mrf.mxu0  ;;  %v13619_v28 = vor.u32 %v15579_v53, %v13618_v15  ;;  %v15567_v29 = vld [vmem:[%s22820_s13 + $0x1594] sm:$0xf]  ;;  %v15552_v15 = vld [vmem:[%s22820_s13 + $0x151c] sm:$0xf]  ;;  %v13527_v38 = vor.u32 %v15551_v16, %v13524_v10 }
 0x44a   :  { %v13532_v53 = vld [vmem:[%s22820_s13 + $0x1538] sm:$0xf0] }
 0x44c   :  { %7339 = vmatpush.bf16.msra.mxu2 %v13507_v63  ;;  %7352 = vmatpush.bf16.msrb.mxu0 %v13511_v55  ;;  %v13587_v63 = vor.u32 %v15571_v51, %v13586_v22  ;;  %v13591_v55 = vor.u32 %v15567_v29, %v13588_v20  ;;  %v13920_v22 = vor.u32 %v15637_v11, %v13917_v35  ;;  %v15633_v29 = vld [vmem:[%s22820_s13 + $0x179c] sm:$0xf0]  ;;  %v13829_v11 = vld [vmem:[%s22820_s13 + $0x1728] sm:$0xf0]  ;;  %v7448_v35 = vpop.permute.xlu2 %7447 }
 0x44d   :  { %7365 = vmatpush.bf16.msrb.mxu1 %v13515_v3  ;;  %7378 = vmatpush.bf16.msra.mxu3 %v13519_v31  ;;  %v13599_v3 = vor.u32 %v15568_v39, %v13596_v60  ;;  %v6089_v31 = vpop.f32.mrf.mxu2  ;;  %v13924_v20 = vor.u32 %v15642_v6, %v13923_v57  ;;  %v15629_v39 = vld [vmem:[%s22820_s13 + $0x1784] sm:$0xf]  ;;  %v13891_v60 = vld [vmem:[%s22820_s13 + $0x1788] sm:$0xf]  ;;  %v15609_v6 = vld [vmem:[%s22820_s13 + $0x16dc] sm:$0xf0] }
 0x44f   :  { %13696 = vmatmul.msk.bf16.vlgmr.msra.gmra.mxu2 %vm1476_vm1, %v21366_v42  ;;  %13697 = vmatmul.msk.bf16.vlgmr.msrb.gmra.mxu0 %vm1476_vm1, %v21366_v42 }
 0x450   :  { %7386 = vmatpush.bf16.msrb.mxu2 %v13683_v50  ;;  %7399 = vmatpush.bf16.msra.mxu0 %v13687_v19  ;;  %v13562_v50 = vld [vmem:[%s22820_s13 + $0x1558] sm:$0xf]  ;;  %v6128_v19 = vpop.f32.mrf.mxu3 }
 0x451   :  { %7412 = vmatpush.bf16.msra.mxu1 %v13691_v43  ;;  %7425 = vmatpush.bf16.msrb.mxu3 %v13695_v49  ;;  %v13522_v43 = vld [vmem:[%s22820_s13 + $0x1510] sm:$0xf]  ;;  %v13555_v49 = vor.u32 %v15563_v0, %v13554_v58  ;;  %v13563_v56 = vor.u32 %v15564_v2, %v13562_v50  ;;  %v15621_v50 = vld [vmem:[%s22820_s13 + $0x1744] sm:$0xf]  ;;  %v13859_v2 = vld [vmem:[%s22820_s13 + $0x1748] sm:$0xf] }
 0x452   :  { %13698 = vmatmul.msk.bf16.vlgmr.msrb.gmra.mxu1 %vm1476_vm1, %v21366_v42  ;;  %13699 = vmatmul.msk.bf16.vlgmr.msra.gmra.mxu3 %vm1476_vm1, %v21366_v42  ;;  %v13523_v9 = vor.u32 %v15555_v12, %v13522_v43  ;;  %v13853_v19 = vld [vmem:[%s22820_s13 + $0x1760] sm:$0xf0]  ;;  %v15626_v43 = vld [vmem:[%s22820_s13 + $0x1764] sm:$0xf0] }
 0x453   :  { %v13856_v10 = vor.u32 %v15621_v50, %v13853_v19  ;;  %v13765_v50 = vld [vmem:[%s22820_s13 + $0x16a8] sm:$0xf0]  ;;  %v13931_v19 = vld [vmem:[%s22820_s13 + $0x17d0] sm:$0xf] }
 0x454   :  { %7387 = vmatpush.bf16.msrb.mxu2 %v13651_v52  ;;  %7400 = vmatpush.bf16.msra.mxu0 %v13655_v34  ;;  %v13530_v52 = vld [vmem:[%s22820_s13 + $0x1518] sm:$0xf] }
 0x455   :  { %7413 = vmatpush.bf16.msra.mxu1 %v13659_v46  ;;  %7426 = vmatpush.bf16.msrb.mxu3 %v13663_v54  ;;  %v15556_v34 = vld [vmem:[%s22820_s13 + $0x1534] sm:$0xf0]  ;;  %v13915_v46 = vld [vmem:[%s22820_s13 + $0x17c0] sm:$0xf] }
 0x456   :  { %v15641_v54 = vld [vmem:[%s22820_s13 + $0x17dc] sm:$0xf0]  ;;  %v13531_v23 = vor.u32 %v15556_v34, %v13530_v52 }
 0x457   :  { %v13916_v8 = vor.u32 %v15641_v54, %v13915_v46  ;;  %v15617_v52 = vld [vmem:[%s22820_s13 + $0x171c] sm:$0xf0]  ;;  %v15618_v46 = vld [vmem:[%s22820_s13 + $0x1724] sm:$0xf0]  ;;  %v15614_v54 = vld [vmem:[%s22820_s13 + $0x170c] sm:$0xf] }
 0x458   :  { %7388 = vmatpush.bf16.msrb.mxu2 %v13619_v28  ;;  %7401 = vmatpush.bf16.msra.mxu0 %v13623_v44  ;;  %v13535_v28 = vor.u32 %v15552_v15, %v13532_v53  ;;  %v6152_v44 = vpop.f32.mrf.mxu0  ;;  %v13821_v15 = vld [vmem:[%s22820_s13 + $0x1720] sm:$0xf0]  ;;  %v13827_v53 = vld [vmem:[%s22820_s13 + $0x1708] sm:$0xf]  ;;  %v13832_v4 = vor.u32 %v15614_v54, %v13829_v11  ;;  %v13899_v54 = vld [vmem:[%s22820_s13 + $0x1790] sm:$0xf] }
 0x459   :  { %7414 = vmatpush.bf16.msra.mxu1 %v13627_v45  ;;  %7427 = vmatpush.bf16.msrb.mxu3 %v13631_v1  ;;  %v21503_v51 = vadd.f32 %v6152_v44, %v21169_v61  ;;  %v6165_v45 = vpop.f32.mrf.mxu1  ;;  %v13883_v1 = vld [vmem:[%s22820_s13 + $0x1780] sm:$0xf]  ;;  %v13885_v61 = vld [vmem:[%s22820_s13 + $0x17a0] sm:$0xf0]  ;;  %v13828_v41 = vor.u32 %v15618_v46, %v13827_v53  ;;  %v15635_v11 = vld [vmem:[%s22820_s13 + $0x17ac] sm:$0xf0] }
 0x45a   :  { %v21512_v18 = vadd.f32 %v6165_v45, %v21178_v27  ;;  %v15630_v27 = vld [vmem:[%s22820_s13 + $0x178c] sm:$0xf]  ;;  %v13884_v58 = vor.u32 %v15633_v29, %v13883_v1  ;;  %v13888_v0 = vor.u32 %v15629_v39, %v13885_v61  ;;  %v6139_v33 = vpop.f32.mrf.mxu2  ;;  %v13789_v44 = vld [vmem:[%s22820_s13 + $0x16e0] sm:$0xf0]  ;;  %v15610_v1 = vld [vmem:[%s22820_s13 + $0x16e4] sm:$0xf0] }
 0x45b   :  { %v21552_v17 = vadd.f32 %v6139_v33, %v21218_v47  ;;  %v15606_v29 = vld [vmem:[%s22820_s13 + $0x16cc] sm:$0xf]  ;;  %v13755_v39 = vld [vmem:[%s22820_s13 + $0x1680] sm:$0xf] }
 0x45c   :  { %7389 = vmatpush.bf16.msrb.mxu2 %v13587_v63  ;;  %7402 = vmatpush.bf16.msra.mxu0 %v13591_v55  ;;  %v15634_v63 = vld [vmem:[%s22820_s13 + $0x17a4] sm:$0xf0]  ;;  %v13893_v55 = vld [vmem:[%s22820_s13 + $0x17a8] sm:$0xf0] }
 0x45d   :  { %7415 = vmatpush.bf16.msra.mxu1 %v13595_v62  ;;  %7428 = vmatpush.bf16.msrb.mxu3 %v13599_v3  ;;  %v13851_v62 = vld [vmem:[%s22820_s13 + $0x1740] sm:$0xf]  ;;  %v13892_v31 = vor.u32 %v15634_v63, %v13891_v60  ;;  %v13896_v30 = vor.u32 %v15630_v27, %v13893_v55  ;;  %v6178_v37 = vpop.f32.mrf.mxu3  ;;  %v15597_v27 = vld [vmem:[%s22820_s13 + $0x1684] sm:$0xf] }
 0x45e   :  { %v15625_v3 = vld [vmem:[%s22820_s13 + $0x175c] sm:$0xf0]  ;;  %v21568_v47 = vadd.f32 %v6178_v37, %v21234_v59  ;;  %v15613_v59 = vld [vmem:[%s22820_s13 + $0x1704] sm:$0xf]  ;;  %v15639_v37 = vld [vmem:[%s22820_s13 + $0x17d4] sm:$0xf] }
 0x45f   :  { %v13852_v16 = vor.u32 %v15625_v3, %v13851_v62  ;;  %v15601_v63 = vld [vmem:[%s22820_s13 + $0x169c] sm:$0xf0]  ;;  %v13757_v55 = vld [vmem:[%s22820_s13 + $0x16a0] sm:$0xf0]  ;;  %v13763_v62 = vld [vmem:[%s22820_s13 + $0x1688] sm:$0xf] }
 0x460   :  { %7390 = vmatpush.bf16.msrb.mxu2 %v13555_v49  ;;  %7403 = vmatpush.bf16.msra.mxu0 %v13559_v13  ;;  %v15622_v49 = vld [vmem:[%s22820_s13 + $0x174c] sm:$0xf]  ;;  %v6154_v12 = vpop.f32.mrf.mxu0  ;;  %v15602_v3 = vld [vmem:[%s22820_s13 + $0x16a4] sm:$0xf0] }
 0x461   :  { %7416 = vmatpush.bf16.msra.mxu1 %v13563_v56  ;;  %7429 = vmatpush.bf16.msrb.mxu3 %v13567_v40  ;;  %v13861_v13 = vld [vmem:[%s22820_s13 + $0x1768] sm:$0xf0]  ;;  %v6167_v56 = vpop.f32.mrf.mxu1  ;;  %v13819_v40 = vld [vmem:[%s22820_s13 + $0x1700] sm:$0xf]  ;;  %v13760_v12 = vor.u32 %v15597_v27, %v13757_v55  ;;  %v15628_v27 = vld [vmem:[%s22820_s13 + $0x1774] sm:$0xf0] }
 0x462   :  { %v13864_v34 = vor.u32 %v15622_v49, %v13861_v13  ;;  %v13820_v57 = vor.u32 %v15617_v52, %v13819_v40  ;;  %v13939_v49 = vld [vmem:[%s22820_s13 + $0x17d8] sm:$0xf]  ;;  %v13756_v13 = vor.u32 %v15601_v63, %v13755_v39  ;;  %v13941_v56 = vld [vmem:[%s22820_s13 + $0x17f8] sm:$0xf0]  ;;  %v13764_v40 = vor.u32 %v15602_v3, %v13763_v62  ;;  %v13869_v39 = vld [vmem:[%s22820_s13 + $0x1770] sm:$0xf0] }
 0x463   :  { %v15624_v55 = vld [vmem:[%s22820_s13 + $0x175c] sm:$0xf] }
 0x464   :  { %7391 = vmatpush.bf16.msrb.mxu2 %v13523_v9  ;;  %7404 = vmatpush.bf16.msra.mxu0 %v13527_v38  ;;  %v13824_v9 = vor.u32 %v15613_v59, %v13821_v15  ;;  %v13787_v38 = vld [vmem:[%s22820_s13 + $0x16c0] sm:$0xf] }
 0x465   :  { %7417 = vmatpush.bf16.msra.mxu1 %v13531_v23  ;;  %7430 = vmatpush.bf16.msrb.mxu3 %v13535_v28  ;;  %v6141_v23 = vpop.f32.mrf.mxu2  ;;  %v15605_v28 = vld [vmem:[%s22820_s13 + $0x16c4] sm:$0xf]  ;;  %v6180_v45 = vpop.f32.mrf.mxu3  ;;  %v13788_v61 = vor.u32 %v15609_v6, %v13787_v38  ;;  %v15631_v38 = vld [vmem:[%s22820_s13 + $0x1794] sm:$0xf]  ;;  %v13907_v6 = vld [vmem:[%s22820_s13 + $0x1798] sm:$0xf] }
 0x466   :  { %v13792_v60 = vor.u32 %v15605_v28, %v13789_v44  ;;  %v13900_v28 = vor.u32 %v15635_v11, %v13899_v54  ;;  %v15612_v54 = vld [vmem:[%s22820_s13 + $0x16f4] sm:$0xf0]  ;;  %v15608_v11 = vld [vmem:[%s22820_s13 + $0x16dc] sm:$0xf] }
 0x467   :  { %13700 = vmatmul.msk.bf16.vlgmr.msrb.gmra.mxu2 %vm1476_vm1, %v21366_v42  ;;  %13701 = vmatmul.msk.bf16.vlgmr.msra.gmra.mxu0 %vm1476_vm1, %v21366_v42 }
 0x468   :  { %7752 = vmatpush.bf16.msra.mxu2 %v13916_v8  ;;  %7765 = vmatpush.bf16.msrb.mxu0 %v13920_v22  ;;  %v13795_v8 = vld [vmem:[%s22820_s13 + $0x16c8] sm:$0xf]  ;;  %v7453_v22 = vperm.slane %v7448_v35, %v16835_v7 }
 0x469   :  { %7778 = vmatpush.bf16.msrb.mxu1 %v13924_v20  ;;  %7791 = vmatpush.bf16.msra.mxu3 %v13928_v14  ;;  %v13797_v20 = vld [vmem:[%s22820_s13 + $0x16e8] sm:$0xf0]  ;;  %v21622_v14 = vld [vmem:[%s22822_s2 + $0x3c] sm:$0xff]  }
 0x46a   :  { %13702 = vmatmul.msk.bf16.vlgmr.msra.gmra.mxu1 %vm1476_vm1, %v21366_v42  ;;  %13703 = vmatmul.msk.bf16.vlgmr.msrb.gmra.mxu3 %vm1476_vm1, %v21366_v42  ;;  %v13860_v42 = vor.u32 %v15626_v43, %v13859_v2  ;;  %v7455_v33 = vunpack.c.l.bf16 %v7453_v22  ;;  %v15643_v2 = vld [vmem:[%s22820_s13 + $0x17ec] sm:$0xf0]  ;;  %v13933_v43 = vld [vmem:[%s22820_s13 + $0x17f0] sm:$0xf0] }
 0x46b   :  { %v13932_v59 = vor.u32 %v15643_v2, %v13931_v19  ;;  %v13936_v15 = vor.u32 %v15639_v37, %v13933_v43  ;;  %v15627_v22 = vld [vmem:[%s22820_s13 + $0x176c] sm:$0xf0]  ;;  %v13837_v2 = vld [vmem:[%s22820_s13 + $0x1730] sm:$0xf0]  ;;  %v13843_v37 = vld [vmem:[%s22820_s13 + $0x1718] sm:$0xf] }
 0x46c   :  { %7753 = vmatpush.bf16.msra.mxu2 %v13884_v58  ;;  %7766 = vmatpush.bf16.msrb.mxu0 %v13888_v0  ;;  %v13796_v58 = vor.u32 %v15610_v1, %v13795_v8  ;;  %v13800_v0 = vor.u32 %v15606_v29, %v13797_v20  ;;  %v13867_v8 = vld [vmem:[%s22820_s13 + $0x1750] sm:$0xf]  ;;  %v15623_v20 = vld [vmem:[%s22820_s13 + $0x1754] sm:$0xf]  ;;  %v15620_v43 = vld [vmem:[%s22820_s13 + $0x1734] sm:$0xf0] }
 0x46d   :  { %7779 = vmatpush.bf16.msrb.mxu1 %v13892_v31  ;;  %7792 = vmatpush.bf16.msra.mxu3 %v13896_v30  ;;  %v15598_v31 = vld [vmem:[%s22820_s13 + $0x168c] sm:$0xf]  ;;  %v7454_v30 = vunpack.c.l.bf16 %v21622_v14  ;;  %v13868_v62 = vor.u32 %v15627_v22, %v13867_v8  ;;  %v13872_v3 = vor.u32 %v15623_v20, %v13869_v39  ;;  %v15604_v8 = vld [vmem:[%s22820_s13 + $0x16b4] sm:$0xf0]  ;;  %v15600_v22 = vld [vmem:[%s22820_s13 + $0x169c] sm:$0xf] }
 0x46e   :  { %v13768_v52 = vor.u32 %v15598_v31, %v13765_v50  ;;  %v15685_v20 = vld [vmem:[%s22820_s13 + $0x1944] sm:$0xf] }
 0x46f   :  { %v6531_v46 = vpop.f32.mrf.mxu1  ;;  %v14166_v39 = vld [vmem:[%s22820_s13 + $0x1960] sm:$0xf0] }
 0x470   :  { %7754 = vmatpush.bf16.msra.mxu2 %v13852_v16  ;;  %7767 = vmatpush.bf16.msrb.mxu0 %v13856_v10  ;;  %v15644_v16 = vld [vmem:[%s22820_s13 + $0x17f4] sm:$0xf0]  ;;  %v15640_v10 = vld [vmem:[%s22820_s13 + $0x17dc] sm:$0xf] }
 0x471   :  { %7780 = vmatpush.bf16.msrb.mxu1 %v13860_v42  ;;  %7793 = vmatpush.bf16.msra.mxu3 %v13864_v34  ;;  %v6518_v42 = vpop.f32.mrf.mxu0  ;;  %v7456_v34 = vmul.f32 %v7455_v33, %v7454_v30  ;;  %v13940_v35 = vor.u32 %v15644_v16, %v13939_v49  ;;  %v13835_v30 = vld [vmem:[%s22820_s13 + $0x1710] sm:$0xf]  ;;  %v15616_v49 = vld [vmem:[%s22820_s13 + $0x171c] sm:$0xf] }
 0x472   :  { %v21674_v53 = vadd.f32 %v6518_v42, %v21337_v26  ;;  %v13901_v26 = vld [vmem:[%s22820_s13 + $0x17b0] sm:$0xf0]  ;;  %v6505_v29 = vpop.f32.mrf.mxu2  ;;  %v15619_v33 = vld [vmem:[%s22820_s13 + $0x172c] sm:$0xf0] }
 0x473   :  { %v21703_v23 = vpack.c.bf16 %v7456_v34, %v7456_v34  ;;  %v13904_v44 = vor.u32 %v15631_v38, %v13901_v26  ;;  %v15607_v34 = vld [vmem:[%s22820_s13 + $0x16d4] sm:$0xf] }
 0x474   :  { %7755 = vmatpush.bf16.msra.mxu2 %v13820_v57  ;;  %7768 = vmatpush.bf16.msrb.mxu0 %v13824_v9  ;;  %v13944_v57 = vor.u32 %v15640_v10, %v13941_v56  ;;  %v21683_v9 = vadd.f32 %v6531_v46, %v21346_v25  ;;  %v15632_v25 = vld [vmem:[%s22820_s13 + $0x179c] sm:$0xf]  ;;  %v13803_v10 = vld [vmem:[%s22820_s13 + $0x16d0] sm:$0xf] }
 0x475   :  { %7781 = vmatpush.bf16.msrb.mxu1 %v13828_v41  ;;  %7794 = vmatpush.bf16.msra.mxu3 %v13832_v4  ;;  %v15636_v41 = vld [vmem:[%s22820_s13 + $0x17b4] sm:$0xf0]  ;;  %v13909_v4 = vld [vmem:[%s22820_s13 + $0x17b8] sm:$0xf0]  ;;  %v6544_v63 = vpop.f32.mrf.mxu3  ;;  %v15611_v56 = vld [vmem:[%s22820_s13 + $0x16ec] sm:$0xf0] }
 0x476   :  { %v13908_v45 = vor.u32 %v15636_v41, %v13907_v6  ;;  %v13912_v1 = vor.u32 %v15632_v25, %v13909_v4  ;;  %v13804_v38 = vor.u32 %v15611_v56, %v13803_v10  ;;  %v15603_v6 = vld [vmem:[%s22820_s13 + $0x16ac] sm:$0xf0]  ;;  %v15599_v41 = vld [vmem:[%s22820_s13 + $0x1694] sm:$0xf]  ;;  %v14142_v10 = vld [vmem:[%s22820_s13 + $0x1928] sm:$0xf0] }
 0x477   :  { %v6533_v31 = vpop.f32.mrf.mxu1  ;;  %v13773_v25 = vld [vmem:[%s22820_s13 + $0x16b0] sm:$0xf0] }
 0x478   :  { %7756 = vmatpush.bf16.msra.mxu2 %v13788_v61  ;;  %7769 = vmatpush.bf16.msrb.mxu0 %v13792_v60  ;;  %v13875_v61 = vld [vmem:[%s22820_s13 + $0x1758] sm:$0xf]  ;;  %v21725_v60 = vadd.f32 %v6505_v29, %v21388_v36  ;;  %v21741_v36 = vadd.f32 %v6544_v63, %v21404_v24  ;;  %v15615_v24 = vld [vmem:[%s22820_s13 + $0x1714] sm:$0xf]  ;;  %v15689_v29 = vld [vmem:[%s22820_s13 + $0x195c] sm:$0xf0] }
 0x479   :  { %7782 = vmatpush.bf16.msrb.mxu1 %v13796_v58  ;;  %7795 = vmatpush.bf16.msra.mxu3 %v13800_v0  ;;  %v13877_v58 = vld [vmem:[%s22820_s13 + $0x1778] sm:$0xf0]  ;;  %v6520_v0 = vpop.f32.mrf.mxu0  ;;  %v13876_v50 = vor.u32 %v15628_v27, %v13875_v61  ;;  %v13840_v16 = vor.u32 %v15615_v24, %v13837_v2  ;;  %v14172_v61 = vld [vmem:[%s22820_s13 + $0x1948] sm:$0xf]  ;;  %v13776_v27 = vor.u32 %v15599_v41, %v13773_v25  ;;  %v14132_v24 = vld [vmem:[%s22820_s13 + $0x1900] sm:$0xf] }
 0x47a   :  { %v13880_v19 = vor.u32 %v15624_v55, %v13877_v58  ;;  %v6507_v42 = vpop.f32.mrf.mxu2  ;;  %v15690_v55 = vld [vmem:[%s22820_s13 + $0x1964] sm:$0xf0]  ;;  %v15686_v58 = vld [vmem:[%s22820_s13 + $0x194c] sm:$0xf]  ;;  %v15681_v2 = vld [vmem:[%s22820_s13 + $0x191c] sm:$0xf0] }
 0x47b   :  { %v14174_v0 = vld [vmem:[%s22820_s13 + $0x1968] sm:$0xf0]  ;;  %v14133_v56 = vor.u32 %v15681_v2, %v14132_v24  ;;  %v15673_v42 = vld [vmem:[%s22820_s13 + $0x18dc] sm:$0xf0]  ;;  %v15658_v2 = vld [vmem:[%s22820_s13 + $0x1864] sm:$0xf0] }
 0x47c   :  { %7757 = vmatpush.bf16.msra.mxu2 %v13756_v13  ;;  %7770 = vmatpush.bf16.msrb.mxu0 %v13760_v12  ;;  %v13845_v13 = vld [vmem:[%s22820_s13 + $0x1738] sm:$0xf0]  ;;  %v13836_v12 = vor.u32 %v15619_v33, %v13835_v30  ;;  %v14169_v33 = vor.u32 %v15685_v20, %v14166_v39  ;;  %v15662_v20 = vld [vmem:[%s22820_s13 + $0x188c] sm:$0xf] }
 0x47d   :  { %7783 = vmatpush.bf16.msrb.mxu1 %v13764_v40  ;;  %7796 = vmatpush.bf16.msra.mxu3 %v13768_v52  ;;  %v13844_v40 = vor.u32 %v15620_v43, %v13843_v37  ;;  %v13848_v52 = vor.u32 %v15616_v49, %v13845_v13  ;;  %v6546_v46 = vpop.f32.mrf.mxu3  ;;  %v14173_v37 = vor.u32 %v15690_v55, %v14172_v61  ;;  %v15677_v13 = vld [vmem:[%s22820_s13 + $0x1904] sm:$0xf]  ;;  %v14078_v39 = vld [vmem:[%s22820_s13 + $0x18a8] sm:$0xf0]  ;;  %v7866_v61 = vpop.permute.xlu1 %7865  ;;  %v14036_v55 = vld [vmem:[%s22820_s13 + $0x1840] sm:$0xf] }
 0x47e   :  { %v14177_v43 = vor.u32 %v15686_v58, %v14174_v0  ;;  %v15669_v46 = vld [vmem:[%s22820_s13 + $0x18c4] sm:$0xf]  ;;  %v15657_v58 = vld [vmem:[%s22820_s13 + $0x185c] sm:$0xf0] }
 0x47f   :  { %13945 = vmatmul.msk.bf16.vlgmr.msra.gmra.mxu2 %vm1476_vm1, %v21703_v23  ;;  %13946 = vmatmul.msk.bf16.vlgmr.msrb.gmra.mxu0 %vm1476_vm1, %v21703_v23 }
 0x480   :  { %7804 = vmatpush.bf16.msrb.mxu2 %v13932_v59  ;;  %7817 = vmatpush.bf16.msra.mxu0 %v13936_v15  ;;  %v13805_v59 = vld [vmem:[%s22820_s13 + $0x16f0] sm:$0xf0]  ;;  %v13811_v15 = vld [vmem:[%s22820_s13 + $0x16d8] sm:$0xf] }
 0x481   :  { %7830 = vmatpush.bf16.msra.mxu1 %v13940_v35  ;;  %7843 = vmatpush.bf16.msrb.mxu3 %v13944_v57  ;;  %v13813_v35 = vld [vmem:[%s22820_s13 + $0x16f8] sm:$0xf0]  ;;  %v13771_v57 = vld [vmem:[%s22820_s13 + $0x1690] sm:$0xf]  ;;  %v13808_v26 = vor.u32 %v15607_v34, %v13805_v59  ;;  %v13812_v4 = vor.u32 %v15612_v54, %v13811_v15  ;;  %v14102_v54 = vld [vmem:[%s22820_s13 + $0x18e0] sm:$0xf0] }
 0x482   :  { %13947 = vmatmul.msk.bf16.vlgmr.msrb.gmra.mxu1 %vm1476_vm1, %v21703_v23  ;;  %13948 = vmatmul.msk.bf16.vlgmr.msra.gmra.mxu3 %vm1476_vm1, %v21703_v23  ;;  %v13772_v63 = vor.u32 %v15603_v6, %v13771_v57  ;;  %v14110_v6 = vld [vmem:[%s22820_s13 + $0x18e8] sm:$0xf0] }
 0x484   :  { %7805 = vmatpush.bf16.msrb.mxu2 %v13900_v28  ;;  %7818 = vmatpush.bf16.msra.mxu0 %v13904_v44  ;;  %v13816_v28 = vor.u32 %v15608_v11, %v13813_v35  ;;  %v13779_v44 = vld [vmem:[%s22820_s13 + $0x1698] sm:$0xf]  ;;  %v6570_v31 = vpop.f32.mrf.mxu0  ;;  %v14108_v11 = vld [vmem:[%s22820_s13 + $0x18c8] sm:$0xf] }
 0x485   :  { %7831 = vmatpush.bf16.msra.mxu1 %v13908_v45  ;;  %7844 = vmatpush.bf16.msrb.mxu3 %v13912_v1  ;;  %v13781_v45 = vld [vmem:[%s22820_s13 + $0x16b8] sm:$0xf0]  ;;  %v14164_v1 = vld [vmem:[%s22820_s13 + $0x1940] sm:$0xf] }
 0x486   :  { %v14165_v30 = vor.u32 %v15689_v29, %v14164_v1  ;;  %v14076_v1 = vld [vmem:[%s22820_s13 + $0x1888] sm:$0xf] }
 0x487   :  { %v15666_v29 = vld [vmem:[%s22820_s13 + $0x18a4] sm:$0xf0] }
 0x488   :  { %7806 = vmatpush.bf16.msrb.mxu2 %v13868_v62  ;;  %7819 = vmatpush.bf16.msra.mxu0 %v13872_v3  ;;  %v13780_v62 = vor.u32 %v15604_v8, %v13779_v44  ;;  %v13784_v3 = vor.u32 %v15600_v22, %v13781_v45  ;;  %v14068_v44 = vld [vmem:[%s22820_s13 + $0x1880] sm:$0xf]  ;;  %v14070_v45 = vld [vmem:[%s22820_s13 + $0x18a0] sm:$0xf0]  ;;  %v14077_v0 = vor.u32 %v15666_v29, %v14076_v1  ;;  %v14148_v1 = vld [vmem:[%s22820_s13 + $0x1910] sm:$0xf] }
 0x489   :  { %7832 = vmatpush.bf16.msra.mxu1 %v13876_v50  ;;  %7845 = vmatpush.bf16.msrb.mxu3 %v13880_v19  ;;  %v21840_v50 = vadd.f32 %v6570_v31, %v21503_v51  ;;  %v6583_v19 = vpop.f32.mrf.mxu1  ;;  %v14134_v51 = vld [vmem:[%s22820_s13 + $0x1920] sm:$0xf0]  ;;  %v15665_v8 = vld [vmem:[%s22820_s13 + $0x189c] sm:$0xf0]  ;;  %v15683_v29 = vld [vmem:[%s22820_s13 + $0x192c] sm:$0xf0] }
 0x48a   :  { %v21849_v49 = vadd.f32 %v6583_v19, %v21512_v18  ;;  %v15678_v18 = vld [vmem:[%s22820_s13 + $0x190c] sm:$0xf]  ;;  %v6557_v15 = vpop.f32.mrf.mxu2  ;;  %v15653_v31 = vld [vmem:[%s22820_s13 + $0x1844] sm:$0xf]  ;;  %v7871_v19 = vperm.slane %v7866_v61, %v16835_v7  ;;  %v14037_v7 = vor.u32 %v15657_v58, %v14036_v55  ;;  %v15684_v55 = vld [vmem:[%s22820_s13 + $0x1934] sm:$0xf0] }
 0x48b   :  { %v14145_v59 = vor.u32 %v15678_v18, %v14142_v10  ;;  %v21889_v35 = vadd.f32 %v6557_v15, %v21552_v17  ;;  %v14006_v18 = vld [vmem:[%s22820_s13 + $0x1820] sm:$0xf0]  ;;  %v14014_v15 = vld [vmem:[%s22820_s13 + $0x1828] sm:$0xf0]  ;;  %v14158_v58 = vld [vmem:[%s22820_s13 + $0x1938] sm:$0xf0] }
 0x48c   :  { %7807 = vmatpush.bf16.msrb.mxu2 %v13836_v12  ;;  %7820 = vmatpush.bf16.msra.mxu0 %v13840_v16  ;;  %v14140_v12 = vld [vmem:[%s22820_s13 + $0x1908] sm:$0xf]  ;;  %v6572_v41 = vpop.f32.mrf.mxu0 }
 0x48d   :  { %7833 = vmatpush.bf16.msra.mxu1 %v13844_v40  ;;  %7846 = vmatpush.bf16.msrb.mxu3 %v13848_v52  ;;  %v15682_v16 = vld [vmem:[%s22820_s13 + $0x1924] sm:$0xf0]  ;;  %v14137_v40 = vor.u32 %v15677_v13, %v14134_v51  ;;  %v14100_v52 = vld [vmem:[%s22820_s13 + $0x18c0] sm:$0xf]  ;;  %v6596_v57 = vpop.f32.mrf.mxu3  ;;  %v15688_v41 = vld [vmem:[%s22820_s13 + $0x195c] sm:$0xf] }
 0x48e   :  { %v14141_v34 = vor.u32 %v15682_v16, %v14140_v12  ;;  %v21905_v17 = vadd.f32 %v6596_v57, %v21568_v47  ;;  %v14101_v25 = vor.u32 %v15673_v42, %v14100_v52  ;;  %v15661_v47 = vld [vmem:[%s22820_s13 + $0x1884] sm:$0xf]  ;;  %v14004_v13 = vld [vmem:[%s22820_s13 + $0x1800] sm:$0xf]  ;;  %v15650_v52 = vld [vmem:[%s22820_s13 + $0x1824] sm:$0xf0] }
 0x48f   :  { %v15649_v12 = vld [vmem:[%s22820_s13 + $0x181c] sm:$0xf0]  ;;  %v15645_v16 = vld [vmem:[%s22820_s13 + $0x1804] sm:$0xf]  ;;  %v15646_v42 = vld [vmem:[%s22820_s13 + $0x180c] sm:$0xf] }
 0x490   :  { %7808 = vmatpush.bf16.msrb.mxu2 %v13804_v38  ;;  %7821 = vmatpush.bf16.msra.mxu0 %v13808_v26  ;;  %v15674_v38 = vld [vmem:[%s22820_s13 + $0x18e4] sm:$0xf0]  ;;  %v15670_v26 = vld [vmem:[%s22820_s13 + $0x18cc] sm:$0xf]  ;;  %v14188_v57 = vld [vmem:[%s22820_s13 + $0x1958] sm:$0xf] }
 0x491   :  { %7834 = vmatpush.bf16.msra.mxu1 %v13812_v4  ;;  %7847 = vmatpush.bf16.msrb.mxu3 %v13816_v28  ;;  %v14105_v4 = vor.u32 %v15669_v46, %v14102_v54  ;;  %v6585_v28 = vpop.f32.mrf.mxu1  ;;  %v14113_v22 = vor.u32 %v15670_v26, %v14110_v6  ;;  %v14180_v46 = vld [vmem:[%s22820_s13 + $0x1950] sm:$0xf]  ;;  %v14009_v26 = vor.u32 %v15645_v16, %v14006_v18  ;;  %v15692_v6 = vld [vmem:[%s22820_s13 + $0x1974] sm:$0xf0]  ;;  %v14126_v16 = vld [vmem:[%s22820_s13 + $0x18f8] sm:$0xf0] }
 0x492   :  { %v15691_v54 = vld [vmem:[%s22820_s13 + $0x196c] sm:$0xf0]  ;;  %v14017_v28 = vor.u32 %v15646_v42, %v14014_v15  ;;  %v14086_v15 = vld [vmem:[%s22820_s13 + $0x18b0] sm:$0xf0] }
 0x493   :  { %v15667_v42 = vld [vmem:[%s22820_s13 + $0x18ac] sm:$0xf0] }
 0x494   :  { %7809 = vmatpush.bf16.msrb.mxu2 %v13772_v63  ;;  %7822 = vmatpush.bf16.msra.mxu0 %v13776_v27  ;;  %v14069_v63 = vor.u32 %v15665_v8, %v14068_v44  ;;  %v14073_v27 = vor.u32 %v15661_v47, %v14070_v45 }
 0x495   :  { %7835 = vmatpush.bf16.msra.mxu1 %v13780_v62  ;;  %7848 = vmatpush.bf16.msrb.mxu3 %v13784_v3  ;;  %v14081_v62 = vor.u32 %v15662_v20, %v14078_v39  ;;  %v6559_v3 = vpop.f32.mrf.mxu2  ;;  %v6598_v24 = vpop.f32.mrf.mxu3  ;;  %v14189_v20 = vor.u32 %v15692_v6, %v14188_v57  ;;  %v15659_v6 = vld [vmem:[%s22820_s13 + $0x186c] sm:$0xf0] }
 0x497   :  { %13949 = vmatmul.msk.bf16.vlgmr.msrb.gmra.mxu2 %vm1476_vm1, %v21703_v23  ;;  %13950 = vmatmul.msk.bf16.vlgmr.msra.gmra.mxu0 %vm1476_vm1, %v21703_v23 }
 0x498   :  { %8170 = vmatpush.bf16.msra.mxu2 %v14165_v30  ;;  %8183 = vmatpush.bf16.msrb.mxu0 %v14169_v33  ;;  %v14038_v30 = vld [vmem:[%s22820_s13 + $0x1860] sm:$0xf0]  ;;  %v14044_v33 = vld [vmem:[%s22820_s13 + $0x1848] sm:$0xf] }
 0x499   :  { %8196 = vmatpush.bf16.msrb.mxu1 %v14173_v37  ;;  %8209 = vmatpush.bf16.msra.mxu3 %v14177_v43  ;;  %v15654_v37 = vld [vmem:[%s22820_s13 + $0x184c] sm:$0xf]  ;;  %v14041_v51 = vor.u32 %v15653_v31, %v14038_v30  ;;  %v14045_v10 = vor.u32 %v15658_v2, %v14044_v33  ;;  %v14116_v31 = vld [vmem:[%s22820_s13 + $0x18d0] sm:$0xf]  ;;  %v15671_v2 = vld [vmem:[%s22820_s13 + $0x18d4] sm:$0xf] }
 0x49a   :  { %13951 = vmatmul.msk.bf16.vlgmr.msra.gmra.mxu1 %vm1476_vm1, %v21703_v23  ;;  %13952 = vmatmul.msk.bf16.vlgmr.msrb.gmra.mxu3 %vm1476_vm1, %v21703_v23  ;;  %v14109_v23 = vor.u32 %v15674_v38, %v14108_v11  ;;  %v14046_v43 = vld [vmem:[%s22820_s13 + $0x1868] sm:$0xf0]  ;;  %v15687_v11 = vld [vmem:[%s22820_s13 + $0x1954] sm:$0xf]  ;;  %v14005_v38 = vor.u32 %v15649_v12, %v14004_v13  ;;  %v15675_v30 = vld [vmem:[%s22820_s13 + $0x18ec] sm:$0xf0] }
 0x49b   :  { %v15672_v12 = vld [vmem:[%s22820_s13 + $0x18dc] sm:$0xf] }
 0x49c   :  { %8171 = vmatpush.bf16.msra.mxu2 %v14133_v56  ;;  %8184 = vmatpush.bf16.msrb.mxu0 %v14137_v40  ;;  %v14049_v56 = vor.u32 %v15654_v37, %v14046_v43  ;;  %v14012_v40 = vld [vmem:[%s22820_s13 + $0x1808] sm:$0xf]  ;;  %v6936_v44 = vpop.f32.mrf.mxu0  ;;  %v14118_v37 = vld [vmem:[%s22820_s13 + $0x18f0] sm:$0xf0]  ;;  %v14124_v43 = vld [vmem:[%s22820_s13 + $0x18d8] sm:$0xf] }
 0x49d   :  { %8197 = vmatpush.bf16.msrb.mxu1 %v14141_v34  ;;  %8210 = vmatpush.bf16.msra.mxu3 %v14145_v59  ;;  %v7872_v34 = vunpack.c.h.bf16 %v21622_v14  ;;  %v7873_v59 = vunpack.c.l.bf16 %v7871_v19  ;;  %v14182_v14 = vld [vmem:[%s22820_s13 + $0x1970] sm:$0xf0]  ;;  %v22006_v47 = vadd.f32 %v6936_v44, %v21674_v53 }
 0x49e   :  { %v14150_v53 = vld [vmem:[%s22820_s13 + $0x1930] sm:$0xf0] }
 0x49f   :  { %v7874_v8 = vmul.f32 %v7873_v59, %v7872_v34  ;;  %v6949_v45 = vpop.f32.mrf.mxu1  ;;  %v14129_v59 = vor.u32 %v15672_v12, %v14126_v16  ;;  %v14054_v44 = vld [vmem:[%s22820_s13 + $0x1870] sm:$0xf0]  ;;  %v14423_v12 = vld [vmem:[%s22820_s13 + $0x1ae8] sm:$0xf0] }
 0x4a0   :  { %8172 = vmatpush.bf16.msra.mxu2 %v14101_v25  ;;  %8185 = vmatpush.bf16.msrb.mxu0 %v14105_v4  ;;  %v14190_v25 = vld [vmem:[%s22820_s13 + $0x1978] sm:$0xf0]  ;;  %v14013_v4 = vor.u32 %v15650_v52, %v14012_v40  ;;  %v22015_v61 = vadd.f32 %v6949_v45, %v21683_v9  ;;  %v14084_v52 = vld [vmem:[%s22820_s13 + $0x1890] sm:$0xf] }
 0x4a1   :  { %8198 = vmatpush.bf16.msrb.mxu1 %v14109_v23  ;;  %8211 = vmatpush.bf16.msra.mxu3 %v14113_v22  ;;  %v14181_v23 = vor.u32 %v15691_v54, %v14180_v46  ;;  %v14185_v22 = vor.u32 %v15687_v11, %v14182_v14  ;;  %v14193_v39 = vor.u32 %v15688_v41, %v14190_v25  ;;  %v15680_v9 = vld [vmem:[%s22820_s13 + $0x191c] sm:$0xf]  ;;  %v14092_v46 = vld [vmem:[%s22820_s13 + $0x1898] sm:$0xf] }
 0x4a2   :  { %v14161_v19 = vor.u32 %v15680_v9, %v14158_v58  ;;  %v6923_v24 = vpop.f32.mrf.mxu2  ;;  %v15668_v54 = vld [vmem:[%s22820_s13 + $0x18b4] sm:$0xf0]  ;;  %v15664_v11 = vld [vmem:[%s22820_s13 + $0x189c] sm:$0xf]  ;;  %v14085_v57 = vor.u32 %v15667_v42, %v14084_v52 }
 0x4a3   :  { %v22057_v13 = vadd.f32 %v6923_v24, %v21725_v60  ;;  %v14094_v14 = vld [vmem:[%s22820_s13 + $0x18b8] sm:$0xf0]  ;;  %v14093_v41 = vor.u32 %v15668_v54, %v14092_v46  ;;  %v14028_v58 = vld [vmem:[%s22820_s13 + $0x1818] sm:$0xf]  ;;  %v14415_v24 = vld [vmem:[%s22820_s13 + $0x1ae0] sm:$0xf0] }
 0x4a4   :  { %8173 = vmatpush.bf16.msra.mxu2 %v14069_v63  ;;  %8186 = vmatpush.bf16.msrb.mxu0 %v14073_v27  ;;  %v15679_v63 = vld [vmem:[%s22820_s13 + $0x1914] sm:$0xf]  ;;  %v14156_v27 = vld [vmem:[%s22820_s13 + $0x1918] sm:$0xf]  ;;  %v6938_v18 = vpop.f32.mrf.mxu0  ;;  %v14097_v25 = vor.u32 %v15664_v11, %v14094_v14  ;;  %v15656_v45 = vld [vmem:[%s22820_s13 + $0x185c] sm:$0xf] }
 0x4a5   :  { %8199 = vmatpush.bf16.msrb.mxu1 %v14077_v0  ;;  %8212 = vmatpush.bf16.msra.mxu3 %v14081_v62  ;;  %v22035_v0 = vpack.c.bf16 %v7874_v8, %v7874_v8  ;;  %v14149_v62 = vor.u32 %v15683_v29, %v14148_v1  ;;  %v14153_v3 = vor.u32 %v15679_v63, %v14150_v53  ;;  %v14060_v8 = vld [vmem:[%s22820_s13 + $0x1858] sm:$0xf]  ;;  %v14062_v1 = vld [vmem:[%s22820_s13 + $0x1878] sm:$0xf0]  ;;  %v14020_v29 = vld [vmem:[%s22820_s13 + $0x1810] sm:$0xf] }
 0x4a6   :  { %v14157_v33 = vor.u32 %v15684_v55, %v14156_v27  ;;  %v15651_v63 = vld [vmem:[%s22820_s13 + $0x182c] sm:$0xf0]  ;;  %v15647_v53 = vld [vmem:[%s22820_s13 + $0x1814] sm:$0xf]  ;;  %v14065_v9 = vor.u32 %v15656_v45, %v14062_v1  ;;  %v15725_v54 = vld [vmem:[%s22820_s13 + $0x1a84] sm:$0xf] }
 0x4a7   :  { %v6951_v40 = vpop.f32.mrf.mxu1  ;;  %v14022_v27 = vld [vmem:[%s22820_s13 + $0x1830] sm:$0xf0]  ;;  %v14389_v11 = vld [vmem:[%s22820_s13 + $0x1a88] sm:$0xf] }
 0x4a8   :  { %8174 = vmatpush.bf16.msra.mxu2 %v14037_v7  ;;  %8187 = vmatpush.bf16.msrb.mxu0 %v14041_v51  ;;  %v6962_v7 = vpop.f32.mrf.mxu3  ;;  %v15676_v51 = vld [vmem:[%s22820_s13 + $0x18f4] sm:$0xf0]  ;;  %v15730_v14 = vld [vmem:[%s22820_s13 + $0x1aa4] sm:$0xf0] }
 0x4a9   :  { %8200 = vmatpush.bf16.msrb.mxu1 %v14045_v10  ;;  %8213 = vmatpush.bf16.msra.mxu3 %v14049_v56  ;;  %v22073_v60 = vadd.f32 %v6962_v7, %v21741_v36  ;;  %v14117_v10 = vor.u32 %v15675_v30, %v14116_v31  ;;  %v14121_v56 = vor.u32 %v15671_v2, %v14118_v37  ;;  %v15663_v36 = vld [vmem:[%s22820_s13 + $0x1894] sm:$0xf]  ;;  %v14030_v31 = vld [vmem:[%s22820_s13 + $0x1838] sm:$0xf0]  ;;  %v14413_v30 = vld [vmem:[%s22820_s13 + $0x1ac0] sm:$0xf] }
 0x4aa   :  { %v14125_v34 = vor.u32 %v15676_v51, %v14124_v43  ;;  %v14421_v2 = vld [vmem:[%s22820_s13 + $0x1ac8] sm:$0xf]  ;;  %v14021_v37 = vor.u32 %v15651_v63, %v14020_v29  ;;  %v14025_v43 = vor.u32 %v15647_v53, %v14022_v27  ;;  %v15734_v51 = vld [vmem:[%s22820_s13 + $0x1acc] sm:$0xf] }
 0x4ab   :  { %v15738_v7 = vld [vmem:[%s22820_s13 + $0x1ae4] sm:$0xf0]  ;;  %v15718_v29 = vld [vmem:[%s22820_s13 + $0x1a4c] sm:$0xf] }
 0x4ac   :  { %8175 = vmatpush.bf16.msra.mxu2 %v14005_v38  ;;  %8188 = vmatpush.bf16.msrb.mxu0 %v14009_v26  ;;  %v14089_v38 = vor.u32 %v15663_v36, %v14086_v15  ;;  %v14052_v26 = vld [vmem:[%s22820_s13 + $0x1850] sm:$0xf]  ;;  %v14422_v36 = vor.u32 %v15738_v7, %v14421_v2  ;;  %v14426_v15 = vor.u32 %v15734_v51, %v14423_v12  ;;  %v15722_v1 = vld [vmem:[%s22820_s13 + $0x1a64] sm:$0xf0]  ;;  %v14285_v2 = vld [vmem:[%s22820_s13 + $0x19c0] sm:$0xf] }
 0x4ad   :  { %8201 = vmatpush.bf16.msrb.mxu1 %v14013_v4  ;;  %8214 = vmatpush.bf16.msra.mxu3 %v14017_v28  ;;  %v6925_v4 = vpop.f32.mrf.mxu2  ;;  %v15655_v28 = vld [vmem:[%s22820_s13 + $0x1854] sm:$0xf]  ;;  %v15701_v12 = vld [vmem:[%s22820_s13 + $0x19c4] sm:$0xf] }
 0x4af   :  { %14194 = vmatmul.msk.bf16.vlgmr.msra.gmra.mxu2 %vm1476_vm1, %v22035_v0  ;;  %14195 = vmatmul.msk.bf16.vlgmr.msrb.gmra.mxu0 %vm1476_vm1, %v22035_v0 }
 0x4b0   :  { %8222 = vmatpush.bf16.msrb.mxu2 %v14181_v23  ;;  %8235 = vmatpush.bf16.msra.mxu0 %v14185_v22  ;;  %v6964_v23 = vpop.f32.mrf.mxu3  ;;  %v15660_v22 = vld [vmem:[%s22820_s13 + $0x1874] sm:$0xf0] }
 0x4b1   :  { %8248 = vmatpush.bf16.msra.mxu1 %v14189_v20  ;;  %8261 = vmatpush.bf16.msrb.mxu3 %v14193_v39  ;;  %v14053_v20 = vor.u32 %v15659_v6, %v14052_v26  ;;  %v14057_v39 = vor.u32 %v15655_v28, %v14054_v44  ;;  %v14061_v55 = vor.u32 %v15660_v22, %v14060_v8  ;;  %v14349_v6 = vld [vmem:[%s22820_s13 + $0x1a40] sm:$0xf]  ;;  %v15717_v44 = vld [vmem:[%s22820_s13 + $0x1a44] sm:$0xf]  ;;  %v14357_v23 = vld [vmem:[%s22820_s13 + $0x1a48] sm:$0xf] }
 0x4b2   :  { %14196 = vmatmul.msk.bf16.vlgmr.msrb.gmra.mxu1 %vm1476_vm1, %v22035_v0  ;;  %14197 = vmatmul.msk.bf16.vlgmr.msra.gmra.mxu3 %vm1476_vm1, %v22035_v0  ;;  %v14351_v8 = vld [vmem:[%s22820_s13 + $0x1a60] sm:$0xf0] }
 0x4b3   :  { %v14354_v53 = vor.u32 %v15717_v44, %v14351_v8 }
 0x4b4   :  { %8223 = vmatpush.bf16.msrb.mxu2 %v14149_v62  ;;  %8236 = vmatpush.bf16.msra.mxu0 %v14153_v3  ;;  %v15652_v62 = vld [vmem:[%s22820_s13 + $0x1834] sm:$0xf0]  ;;  %v15648_v3 = vld [vmem:[%s22820_s13 + $0x181c] sm:$0xf] }
 0x4b5   :  { %8249 = vmatpush.bf16.msra.mxu1 %v14157_v33  ;;  %8262 = vmatpush.bf16.msrb.mxu3 %v14161_v19  ;;  %v15737_v33 = vld [vmem:[%s22820_s13 + $0x1adc] sm:$0xf0]  ;;  %v15733_v19 = vld [vmem:[%s22820_s13 + $0x1ac4] sm:$0xf]  ;;  %v14029_v16 = vor.u32 %v15652_v62, %v14028_v58  ;;  %v14033_v18 = vor.u32 %v15648_v3, %v14030_v31  ;;  %v14325_v3 = vld [vmem:[%s22820_s13 + $0x1a08] sm:$0xf] }
 0x4b6   :  { %v14418_v40 = vor.u32 %v15733_v19, %v14415_v24  ;;  %v14319_v62 = vld [vmem:[%s22820_s13 + $0x1a20] sm:$0xf0]  ;;  %v15714_v31 = vld [vmem:[%s22820_s13 + $0x1a24] sm:$0xf0] }
 0x4b7   :  { %v7001_v42 = vpop.f32.mrf.mxu1 }
 0x4b8   :  { %8224 = vmatpush.bf16.msrb.mxu2 %v14117_v10  ;;  %8237 = vmatpush.bf16.msra.mxu0 %v14121_v56  ;;  %v6988_v10 = vpop.f32.mrf.mxu0  ;;  %v14414_v56 = vor.u32 %v15737_v33, %v14413_v30  ;;  %v22181_v46 = vadd.f32 %v7001_v42, %v21849_v49  ;;  %v15726_v49 = vld [vmem:[%s22820_s13 + $0x1a8c] sm:$0xf] }
 0x4b9   :  { %8250 = vmatpush.bf16.msra.mxu1 %v14125_v34  ;;  %8263 = vmatpush.bf16.msrb.mxu3 %v14129_v59  ;;  %v22172_v52 = vadd.f32 %v6988_v10, %v21840_v50  ;;  %v14381_v34 = vld [vmem:[%s22820_s13 + $0x1a80] sm:$0xf]  ;;  %v14383_v50 = vld [vmem:[%s22820_s13 + $0x1aa0] sm:$0xf0]  ;;  %v15710_v30 = vld [vmem:[%s22820_s13 + $0x1a0c] sm:$0xf] }
 0x4ba   :  { %v15729_v59 = vld [vmem:[%s22820_s13 + $0x1a9c] sm:$0xf0]  ;;  %v14386_v26 = vor.u32 %v15725_v54, %v14383_v50  ;;  %v6975_v28 = vpop.f32.mrf.mxu2  ;;  %v14327_v33 = vld [vmem:[%s22820_s13 + $0x1a28] sm:$0xf0]  ;;  %v15693_v54 = vld [vmem:[%s22820_s13 + $0x1984] sm:$0xf] }
 0x4bb   :  { %v22221_v22 = vadd.f32 %v6975_v28, %v21889_v35  ;;  %v14330_v7 = vor.u32 %v15710_v30, %v14327_v33  ;;  %v14295_v42 = vld [vmem:[%s22820_s13 + $0x19e8] sm:$0xf0]  ;;  %v14255_v50 = vld [vmem:[%s22820_s13 + $0x19a0] sm:$0xf0]  ;;  %v14437_v28 = vld [vmem:[%s22820_s13 + $0x1ad8] sm:$0xf] }
 0x4bc   :  { %8225 = vmatpush.bf16.msrb.mxu2 %v14085_v57  ;;  %8238 = vmatpush.bf16.msra.mxu0 %v14089_v38  ;;  %v14391_v57 = vld [vmem:[%s22820_s13 + $0x1aa8] sm:$0xf0]  ;;  %v14382_v38 = vor.u32 %v15729_v59, %v14381_v34  ;;  %v14253_v34 = vld [vmem:[%s22820_s13 + $0x1980] sm:$0xf]  ;;  %v14258_v8 = vor.u32 %v15693_v54, %v14255_v50  ;;  %v15732_v30 = vld [vmem:[%s22820_s13 + $0x1ab4] sm:$0xf0] }
 0x4bd   :  { %8251 = vmatpush.bf16.msra.mxu1 %v14093_v41  ;;  %8264 = vmatpush.bf16.msrb.mxu3 %v14097_v25  ;;  %v15721_v41 = vld [vmem:[%s22820_s13 + $0x1a5c] sm:$0xf0]  ;;  %v14390_v25 = vor.u32 %v15730_v14, %v14389_v11  ;;  %v14394_v4 = vor.u32 %v15726_v49, %v14391_v57  ;;  %v7014_v45 = vpop.f32.mrf.mxu3  ;;  %v14261_v49 = vld [vmem:[%s22820_s13 + $0x1988] sm:$0xf]  ;;  %v14407_v33 = vld [vmem:[%s22820_s13 + $0x1ab8] sm:$0xf0] }
 0x4be   :  { %v22237_v35 = vadd.f32 %v7014_v45, %v21905_v17  ;;  %v14350_v63 = vor.u32 %v15721_v41, %v14349_v6  ;;  %v15709_v17 = vld [vmem:[%s22820_s13 + $0x1a04] sm:$0xf]  ;;  %v15698_v57 = vld [vmem:[%s22820_s13 + $0x19a4] sm:$0xf0]  ;;  %v14429_v6 = vld [vmem:[%s22820_s13 + $0x1ad0] sm:$0xf] }
 0x4bf   :  { %v7003_v27 = vpop.f32.mrf.mxu1  ;;  %v14322_v24 = vor.u32 %v15709_v17, %v14319_v62  ;;  %v15739_v41 = vld [vmem:[%s22820_s13 + $0x1aec] sm:$0xf0]  ;;  %v15736_v45 = vld [vmem:[%s22820_s13 + $0x1adc] sm:$0xf] }
 0x4c0   :  { %8226 = vmatpush.bf16.msrb.mxu2 %v14053_v20  ;;  %8239 = vmatpush.bf16.msra.mxu0 %v14057_v39  ;;  %v14359_v20 = vld [vmem:[%s22820_s13 + $0x1a68] sm:$0xf0]  ;;  %v6990_v39 = vpop.f32.mrf.mxu0 }
 0x4c1   :  { %8252 = vmatpush.bf16.msra.mxu1 %v14061_v55  ;;  %8265 = vmatpush.bf16.msrb.mxu3 %v14065_v9  ;;  %v14317_v55 = vld [vmem:[%s22820_s13 + $0x1a00] sm:$0xf]  ;;  %v14362_v58 = vor.u32 %v15718_v29, %v14359_v20  ;;  %v14262_v29 = vor.u32 %v15698_v57, %v14261_v49 }
 0x4c2   :  { %v15713_v9 = vld [vmem:[%s22820_s13 + $0x1a1c] sm:$0xf0]  ;;  %v6977_v51 = vpop.f32.mrf.mxu2 }
 0x4c3   :  { %v14318_v19 = vor.u32 %v15713_v9, %v14317_v55  ;;  %v14397_v9 = vld [vmem:[%s22820_s13 + $0x1a90] sm:$0xf] }
 0x4c4   :  { %8227 = vmatpush.bf16.msrb.mxu2 %v14021_v37  ;;  %8240 = vmatpush.bf16.msra.mxu0 %v14025_v43  ;;  %v15705_v37 = vld [vmem:[%s22820_s13 + $0x19dc] sm:$0xf0]  ;;  %v14326_v43 = vor.u32 %v15714_v31, %v14325_v3  ;;  %v15727_v3 = vld [vmem:[%s22820_s13 + $0x1a94] sm:$0xf]  ;;  %v14405_v31 = vld [vmem:[%s22820_s13 + $0x1a98] sm:$0xf] }
 0x4c5   :  { %8253 = vmatpush.bf16.msra.mxu1 %v14029_v16  ;;  %8266 = vmatpush.bf16.msrb.mxu3 %v14033_v18  ;;  %v14287_v16 = vld [vmem:[%s22820_s13 + $0x19e0] sm:$0xf0]  ;;  %v14293_v18 = vld [vmem:[%s22820_s13 + $0x19c8] sm:$0xf]  ;;  %v7016_v10 = vpop.f32.mrf.mxu3  ;;  %v14286_v59 = vor.u32 %v15705_v37, %v14285_v2  ;;  %v14365_v37 = vld [vmem:[%s22820_s13 + $0x1a50] sm:$0xf] }
 0x4c6   :  { %v14373_v10 = vld [vmem:[%s22820_s13 + $0x1a58] sm:$0xf] }
 0x4c7   :  { %14198 = vmatmul.msk.bf16.vlgmr.msrb.gmra.mxu2 %vm1476_vm1, %v22035_v0  ;;  %14199 = vmatmul.msk.bf16.vlgmr.msra.gmra.mxu0 %vm1476_vm1, %v22035_v0 }
 0x4c8   :  { %8576 = vmatpush.bf16.msra.mxu2 %v14414_v56  ;;  %8589 = vmatpush.bf16.msrb.mxu0 %v14418_v40  ;;  %v15706_v56 = vld [vmem:[%s22820_s13 + $0x19e4] sm:$0xf0]  ;;  %v15702_v40 = vld [vmem:[%s22820_s13 + $0x19cc] sm:$0xf] }
 0x4c9   :  { %8602 = vmatpush.bf16.msrb.mxu1 %v14422_v36  ;;  %8615 = vmatpush.bf16.msra.mxu3 %v14426_v15  ;;  %v14290_v36 = vor.u32 %v15701_v12, %v14287_v16  ;;  %v15697_v15 = vld [vmem:[%s22820_s13 + $0x199c] sm:$0xf0]  ;;  %v14294_v11 = vor.u32 %v15706_v56, %v14293_v18  ;;  %v14298_v14 = vor.u32 %v15702_v40, %v14295_v42  ;;  %v15719_v16 = vld [vmem:[%s22820_s13 + $0x1a54] sm:$0xf]  ;;  %v15724_v42 = vld [vmem:[%s22820_s13 + $0x1a74] sm:$0xf0] }
 0x4ca   :  { %14200 = vmatmul.msk.bf16.vlgmr.msra.gmra.mxu1 %vm1476_vm1, %v22035_v0  ;;  %14201 = vmatmul.msk.bf16.vlgmr.msrb.gmra.mxu3 %vm1476_vm1, %v22035_v0  ;;  %v14358_v0 = vor.u32 %v15722_v1, %v14357_v23  ;;  %v14254_v44 = vor.u32 %v15697_v15, %v14253_v34  ;;  %v15740_v23 = vld [vmem:[%s22820_s13 + $0x1af4] sm:$0xf0]  ;;  %v14439_v1 = vld [vmem:[%s22820_s13 + $0x1af8] sm:$0xf0]  ;;  %v14367_v18 = vld [vmem:[%s22820_s13 + $0x1a70] sm:$0xf0]  ;;  %v14374_v49 = vor.u32 %v15724_v42, %v14373_v10 }
 0x4cb   :  { %v14442_v17 = vor.u32 %v15736_v45, %v14439_v1  ;;  %v15720_v34 = vld [vmem:[%s22820_s13 + $0x1a5c] sm:$0xf]  ;;  %v14370_v54 = vor.u32 %v15719_v16, %v14367_v18 }
 0x4cc   :  { %8577 = vmatpush.bf16.msra.mxu2 %v14382_v38  ;;  %8590 = vmatpush.bf16.msrb.mxu0 %v14386_v26  ;;  %v15694_v38 = vld [vmem:[%s22820_s13 + $0x198c] sm:$0xf]  ;;  %v7354_v39 = vpop.f32.mrf.mxu0 }
 0x4cd   :  { %8603 = vmatpush.bf16.msrb.mxu1 %v14390_v25  ;;  %8616 = vmatpush.bf16.msra.mxu3 %v14394_v4  ;;  %v14263_v26 = vld [vmem:[%s22820_s13 + $0x19a8] sm:$0xf0]  ;;  %v15735_v25 = vld [vmem:[%s22820_s13 + $0x1ad4] sm:$0xf]  ;;  %v22336_v27 = vadd.f32 %v7354_v39, %v22006_v47  ;;  %v14309_v39 = vld [vmem:[%s22820_s13 + $0x19d8] sm:$0xf] }
 0x4ce   :  { %v14431_v4 = vld [vmem:[%s22820_s13 + $0x1af0] sm:$0xf0]  ;;  %v14266_v20 = vor.u32 %v15694_v38, %v14263_v26  ;;  %v14341_v26 = vld [vmem:[%s22820_s13 + $0x1a18] sm:$0xf] }
 0x4cf   :  { %v7367_v55 = vpop.f32.mrf.mxu1  ;;  %v14399_v47 = vld [vmem:[%s22820_s13 + $0x1ab0] sm:$0xf0] }
 0x4d0   :  { %8578 = vmatpush.bf16.msra.mxu2 %v14350_v63  ;;  %8591 = vmatpush.bf16.msrb.mxu0 %v14354_v53  ;;  %v14430_v63 = vor.u32 %v15739_v41, %v14429_v6  ;;  %v14434_v53 = vor.u32 %v15735_v25, %v14431_v4  ;;  %v22345_v62 = vadd.f32 %v7367_v55, %v22015_v61  ;;  %v15728_v61 = vld [vmem:[%s22820_s13 + $0x1a9c] sm:$0xf]  ;;  %v14335_v38 = vld [vmem:[%s22820_s13 + $0x1a30] sm:$0xf0]  ;;  %v15716_v6 = vld [vmem:[%s22820_s13 + $0x1a34] sm:$0xf0] }
 0x4d1   :  { %8604 = vmatpush.bf16.msrb.mxu1 %v14358_v0  ;;  %8617 = vmatpush.bf16.msra.mxu3 %v14362_v58  ;;  %v15731_v0 = vld [vmem:[%s22820_s13 + $0x1aac] sm:$0xf0]  ;;  %v14438_v58 = vor.u32 %v15740_v23, %v14437_v28  ;;  %v14402_v2 = vor.u32 %v15727_v3, %v14399_v47  ;;  %v14410_v51 = vor.u32 %v15728_v61, %v14407_v33  ;;  %v15712_v41 = vld [vmem:[%s22820_s13 + $0x1a1c] sm:$0xf]  ;;  %v14271_v61 = vld [vmem:[%s22820_s13 + $0x19b0] sm:$0xf0] }
 0x4d2   :  { %v7341_v12 = vpop.f32.mrf.mxu2  ;;  %v14343_v25 = vld [vmem:[%s22820_s13 + $0x1a38] sm:$0xf0]  ;;  %v14342_v23 = vor.u32 %v15716_v6, %v14341_v26  ;;  %v15699_v3 = vld [vmem:[%s22820_s13 + $0x19ac] sm:$0xf0]  ;;  %v14277_v33 = vld [vmem:[%s22820_s13 + $0x1998] sm:$0xf] }
 0x4d3   :  { %v22390_v56 = vadd.f32 %v7341_v12, %v22057_v13  ;;  %v14346_v45 = vor.u32 %v15712_v41, %v14343_v25  ;;  %v15704_v55 = vld [vmem:[%s22820_s13 + $0x19dc] sm:$0xf] }
 0x4d4   :  { %8579 = vmatpush.bf16.msra.mxu2 %v14318_v19  ;;  %8592 = vmatpush.bf16.msrb.mxu0 %v14322_v24  ;;  %v22368_v19 = vld [vmem:[%s22822_s2 + $0x44] sm:$0xf]  ;;  %v14398_v24 = vor.u32 %v15731_v0, %v14397_v9  ;;  %v14311_v9 = vld [vmem:[%s22820_s13 + $0x19f8] sm:$0xf0] }
 0x4d5   :  { %8605 = vmatpush.bf16.msrb.mxu1 %v14326_v43  ;;  %8618 = vmatpush.bf16.msra.mxu3 %v14330_v7  ;;  %v15723_v43 = vld [vmem:[%s22820_s13 + $0x1a6c] sm:$0xf0]  ;;  %v14406_v7 = vor.u32 %v15732_v30, %v14405_v31  ;;  %v7380_v40 = vpop.f32.mrf.mxu3  ;;  %v14314_v31 = vor.u32 %v15704_v55, %v14311_v9  ;;  %v15695_v30 = vld [vmem:[%s22820_s13 + $0x1994] sm:$0xf] }
 0x4d6   :  { %v22406_v13 = vadd.f32 %v7380_v40, %v22073_v60  ;;  %v14366_v15 = vor.u32 %v15723_v43, %v14365_v37  ;;  %v15711_v60 = vld [vmem:[%s22820_s13 + $0x1a14] sm:$0xf]  ;;  %v14279_v37 = vld [vmem:[%s22820_s13 + $0x19b8] sm:$0xf0] }
 0x4d7   :  { %v7369_v50 = vpop.f32.mrf.mxu1  ;;  %v14338_v28 = vor.u32 %v15711_v60, %v14335_v38  ;;  %v15771_v55 = vld [vmem:[%s22824_s15 + $0xf0] sm:$0xff] }
 0x4d8   :  { %8580 = vmatpush.bf16.msra.mxu2 %v14286_v59  ;;  %8593 = vmatpush.bf16.msrb.mxu0 %v14290_v36  ;;  %v14375_v59 = vld [vmem:[%s22820_s13 + $0x1a78] sm:$0xf0]  ;;  %v7356_v36 = vpop.f32.mrf.mxu0 }
 0x4d9   :  { %8606 = vmatpush.bf16.msrb.mxu1 %v14294_v11  ;;  %8619 = vmatpush.bf16.msra.mxu3 %v14298_v14  ;;  %v14333_v11 = vld [vmem:[%s22820_s13 + $0x1a10] sm:$0xf]  ;;  %v14378_v57 = vor.u32 %v15720_v34, %v14375_v59 }
 0x4da   :  { %v15715_v14 = vld [vmem:[%s22820_s13 + $0x1a2c] sm:$0xf0]  ;;  %v7343_v1 = vpop.f32.mrf.mxu2 }
 0x4db   :  { %v14334_v4 = vor.u32 %v15715_v14, %v14333_v11 }
 0x4dc   :  { %8581 = vmatpush.bf16.msra.mxu2 %v14254_v44  ;;  %8594 = vmatpush.bf16.msrb.mxu0 %v14258_v8  ;;  %v14301_v44 = vld [vmem:[%s22820_s13 + $0x19d0] sm:$0xf] }
 0x4dd   :  { %8607 = vmatpush.bf16.msrb.mxu1 %v14262_v29  ;;  %8620 = vmatpush.bf16.msra.mxu3 %v14266_v20  ;;  %v15707_v8 = vld [vmem:[%s22820_s13 + $0x19ec] sm:$0xf0]  ;;  %v15703_v29 = vld [vmem:[%s22820_s13 + $0x19d4] sm:$0xf] }
 0x4de   :  { %v14303_v20 = vld [vmem:[%s22820_s13 + $0x19f0] sm:$0xf0]  ;;  %v14302_v0 = vor.u32 %v15707_v8, %v14301_v44  ;;  %v15748_v44 = vld [vmem:[%s22824_s15 + $0x38] sm:$0xff] }
 0x4df   :  { %14443 = vmatmul.msk.bf16.vlgmr.msra.gmra.mxu2 %vm1476_vm1, %v22368_v19  ;;  %14444 = vmatmul.msk.bf16.vlgmr.msrb.gmra.mxu0 %vm1476_vm1, %v22368_v19 }
 0x4e0   :  { %8628 = vmatpush.bf16.msrb.mxu2 %v14430_v63  ;;  %8641 = vmatpush.bf16.msra.mxu0 %v14434_v53  ;;  %v7382_v63 = vpop.f32.mrf.mxu3  ;;  %v15708_v53 = vld [vmem:[%s22820_s13 + $0x19f4] sm:$0xf0] }
 0x4e1   :  { %8654 = vmatpush.bf16.msra.mxu1 %v14438_v58  ;;  %8667 = vmatpush.bf16.msrb.mxu3 %v14442_v17  ;;  %v14306_v58 = vor.u32 %v15703_v29, %v14303_v20  ;;  %v14269_v17 = vld [vmem:[%s22820_s13 + $0x1990] sm:$0xf]  ;;  %v14310_v47 = vor.u32 %v15708_v53, %v14309_v39  ;;  %v15754_v29 = vld [vmem:[%s22824_s15 + $0x68] sm:$0xff] }
 0x4e2   :  { %14445 = vmatmul.msk.bf16.vlgmr.msrb.gmra.mxu1 %vm1476_vm1, %v22368_v19  ;;  %14446 = vmatmul.msk.bf16.vlgmr.msra.gmra.mxu3 %vm1476_vm1, %v22368_v19  ;;  %v14270_v43 = vor.u32 %v15699_v3, %v14269_v17  ;;  %v15762_v20 = vld [vmem:[%s22824_s15 + $0xa8] sm:$0xff]  ;;  %v15747_v53 = vld [vmem:[%s22824_s15 + $0x30] sm:$0xff] }
 0x4e3   :  { %v15746_v3 = vld [vmem:[%s22824_s15 + $0x28] sm:$0xff] }
 0x4e4   :  { %8629 = vmatpush.bf16.msrb.mxu2 %v14398_v24  ;;  %8642 = vmatpush.bf16.msra.mxu0 %v14402_v2  ;;  %v15700_v24 = vld [vmem:[%s22820_s13 + $0x19b4] sm:$0xf0]  ;;  %v15696_v2 = vld [vmem:[%s22820_s13 + $0x199c] sm:$0xf]  ;;  %v7406_v16 = vpop.f32.mrf.mxu0 }
 0x4e5   :  { %8655 = vmatpush.bf16.msra.mxu1 %v14406_v7  ;;  %8668 = vmatpush.bf16.msrb.mxu3 %v14410_v51  ;;  %v14274_v7 = vor.u32 %v15695_v30, %v14271_v61  ;;  %v14278_v51 = vor.u32 %v15700_v24, %v14277_v33  ;;  %v14282_v12 = vor.u32 %v15696_v2, %v14279_v37  ;;  %v15752_v30 = vld [vmem:[%s22824_s15 + $0x58] sm:$0xff]  ;;  %v15745_v33 = vld [vmem:[%s22824_s15 + $0x20] sm:$0xff]  ;;  %v15751_v2 = vld [vmem:[%s22824_s15 + $0x50] sm:$0xff] }
 0x4e6   :  { %v7441_v18 = vadd.f32 %v7406_v16, %v22172_v52  ;;  %v15760_v61 = vld [vmem:[%s22824_s15 + $0x98] sm:$0xff]  ;;  %v15769_v24 = vld [vmem:[%s22824_s15 + $0xe0] sm:$0xff]  ;;  %v15759_v37 = vld [vmem:[%s22824_s15 + $0x90] sm:$0xff] }
 0x4e7   :  { %v7419_v10 = vpop.f32.mrf.mxu1  ;;  %v15750_v16 = vld [vmem:[%s22824_s15 + $0x48] sm:$0xff] }
 0x4e8   :  { %8630 = vmatpush.bf16.msrb.mxu2 %v14366_v15  ;;  %8643 = vmatpush.bf16.msra.mxu0 %v14370_v54  ;;  %v7442_v40 = vadd.f32 %v7419_v10, %v22181_v46  ;;  %v15743_v10 = vld [vmem:[%s22824_s15 + $0x10] sm:$0xff] }
 0x4e9   :  { %8656 = vmatpush.bf16.msra.mxu1 %v14374_v49  ;;  %8669 = vmatpush.bf16.msrb.mxu3 %v14378_v57 }
 0x4ea   :  { %v7393_v42 = vpop.f32.mrf.mxu2 }
 0x4eb   :  { %v7440_v52 = vadd.f32 %v7393_v42, %v22221_v22  ;;  %v15749_v42 = vld [vmem:[%s22824_s15 + $0x40] sm:$0xff] }
 0x4ec   :  { %8631 = vmatpush.bf16.msrb.mxu2 %v14334_v4  ;;  %8644 = vmatpush.bf16.msra.mxu0 %v14338_v28  ;;  %v7408_v59 = vpop.f32.mrf.mxu0  ;;  %v15755_v4 = vld [vmem:[%s22824_s15 + $0x70] sm:$0xff] }
 0x4ed   :  { %8657 = vmatpush.bf16.msra.mxu1 %v14342_v23  ;;  %8670 = vmatpush.bf16.msrb.mxu3 %v14346_v45  ;;  %v7432_v46 = vpop.f32.mrf.mxu3  ;;  %v15763_v28 = vld [vmem:[%s22824_s15 + $0xb0] sm:$0xff]  ;;  %v15772_v23 = vld [vmem:[%s22824_s15 + $0xf8] sm:$0xff] }
 0x4ee   :  { %v7443_v34 = vadd.f32 %v7432_v46, %v22237_v35  ;;  %v15757_v46 = vld [vmem:[%s22824_s15 + $0x80] sm:$0xff]  ;;  %v15796_v59 = vld [vmem:[%s22824_s15 + $0x1b8] sm:$0xff] }
 0x4ef   :  { %v7421_v36 = vpop.f32.mrf.mxu1 }
 0x4f0   :  { %8632 = vmatpush.bf16.msrb.mxu2 %v14302_v0  ;;  %8645 = vmatpush.bf16.msra.mxu0 %v14306_v58  ;;  %v15753_v0 = vld [vmem:[%s22824_s15 + $0x60] sm:$0xff] }
 0x4f1   :  { %8658 = vmatpush.bf16.msra.mxu1 %v14310_v47  ;;  %8671 = vmatpush.bf16.msrb.mxu3 %v14314_v31  ;;  %v15761_v58 = vld [vmem:[%s22824_s15 + $0xa0] sm:$0xff]  ;;  %v15770_v47 = vld [vmem:[%s22824_s15 + $0xe8] sm:$0xff] }
 0x4f2   :  { %v7395_v15 = vpop.f32.mrf.mxu2 }
 0x4f3   :  { %v15742_v15 = vld [vmem:[%s22824_s15 + $0x8] sm:$0xff] }
 0x4f4   :  { %8633 = vmatpush.bf16.msrb.mxu2 %v14270_v43  ;;  %8646 = vmatpush.bf16.msra.mxu0 %v14274_v7  ;;  %v15744_v43 = vld [vmem:[%s22824_s15 + $0x18] sm:$0xff] }
 0x4f5   :  { %8659 = vmatpush.bf16.msra.mxu1 %v14278_v51  ;;  %8672 = vmatpush.bf16.msrb.mxu3 %v14282_v12  ;;  %v7434_v54 = vpop.f32.mrf.mxu3  ;;  %v15768_v51 = vld [vmem:[%s22824_s15 + $0xd8] sm:$0xff] }
 0x4f6   :  { %v15766_v54 = vld [vmem:[%s22824_s15 + $0xc8] sm:$0xff] }
 0x4f7   :  { %14447 = vmatmul.msk.bf16.vlgmr.msrb.gmra.mxu2 %vm1476_vm1, %v22368_v19  ;;  %14448 = vmatmul.msk.bf16.vlgmr.msra.gmra.mxu0 %vm1476_vm1, %v22368_v19 }
 0x4f8   :  { %14449 = vmatmul.msk.bf16.vlgmr.msra.gmra.mxu1 %vm1476_vm1, %v22368_v19  ;;  %14450 = vmatmul.msk.bf16.vlgmr.msrb.gmra.mxu3 %vm1476_vm1, %v22368_v19 }
 0x4f9   :  { %9218 = vmatpush.bf16.msra.mxu2 %v15748_v44  ;;  %9257 = vmatpush.bf16.msra.mxu3 %v15772_v23  ;;  %v15785_v44 = vld [vmem:[%s22824_s15 + $0x160] sm:$0xff] }
 0x4fc   :  { %v7772_v50 = vpop.f32.mrf.mxu0 }
 0x4fd   :  { %v22493_v11 = vadd.f32 %v7772_v50, %v22336_v27  ;;  %v15756_v27 = vld [vmem:[%s22824_s15 + $0x78] sm:$0xff]  ;;  %9219 = vmatpush.bf16.msra.mxu2 %v15747_v53  ;;  %9258 = vmatpush.bf16.msra.mxu3 %v15771_v55  ;;  %v15777_v55 = vld [vmem:[%s22824_s15 + $0x120] sm:$0xff] }
 0x4fe   :  { %9231 = vmatpush.bf16.msrb.mxu0 %v15756_v27  ;;  %v15804_v27 = vld [vmem:[%s22824_s15 + $0x1f8] sm:$0xff] }
 0x4ff   :  { %v7785_v14 = vpop.f32.mrf.mxu1  ;;  %v15792_v53 = vld [vmem:[%s22824_s15 + $0x198] sm:$0xff] }
 0x500   :  { %v22496_v49 = vadd.f32 %v7785_v14, %v22345_v62  ;;  %v15764_v62 = vld [vmem:[%s22824_s15 + $0xb8] sm:$0xff] }
 0x501   :  { %9244 = vmatpush.bf16.msrb.mxu1 %v15764_v62  ;;  %9220 = vmatpush.bf16.msra.mxu2 %v15746_v3  ;;  %v15776_v3 = vld [vmem:[%s22824_s15 + $0x118] sm:$0xff] }
 0x502   :  { %v7759_v57 = vpop.f32.mrf.mxu2  ;;  %9232 = vmatpush.bf16.msrb.mxu0 %v15755_v4  ;;  %9259 = vmatpush.bf16.msra.mxu3 %v15770_v47  ;;  %v15779_v4 = vld [vmem:[%s22824_s15 + $0x130] sm:$0xff]  ;;  %v15800_v47 = vld [vmem:[%s22824_s15 + $0x1d8] sm:$0xff] }
 0x503   :  { %v22499_v19 = vadd.f32 %v7759_v57, %v22390_v56  ;;  %v15787_v57 = vld [vmem:[%s22824_s15 + $0x170] sm:$0xff] }
 0x504   :  { %v7774_v35 = vpop.f32.mrf.mxu0 }
 0x505   :  { %v7798_v22 = vpop.f32.mrf.mxu3  ;;  %9245 = vmatpush.bf16.msrb.mxu1 %v15763_v28  ;;  %9221 = vmatpush.bf16.msra.mxu2 %v15745_v33  ;;  %v15741_v35 = vld [vmem:[%s22824_s15] sm:$0xff]  ;;  %v15803_v28 = vld [vmem:[%s22824_s15 + $0x1f0] sm:$0xff]  ;;  %v15782_v33 = vld [vmem:[%s22824_s15 + $0x148] sm:$0xff] }
 0x506   :  { %v22502_v60 = vadd.f32 %v7798_v22, %v22406_v13  ;;  %9233 = vmatpush.bf16.msrb.mxu0 %v15754_v29  ;;  %9260 = vmatpush.bf16.msra.mxu3 %v15769_v24  ;;  %v15795_v22 = vld [vmem:[%s22824_s15 + $0x1b0] sm:$0xff]  ;;  %v15802_v29 = vld [vmem:[%s22824_s15 + $0x1e8] sm:$0xff] }
 0x507   :  { %v7787_v38 = vpop.f32.mrf.mxu1  ;;  %v15790_v24 = vld [vmem:[%s22824_s15 + $0x188] sm:$0xff] }
 0x508   :  { %v15765_v38 = vld [vmem:[%s22824_s15 + $0xc0] sm:$0xff] }
 0x509   :  { %9246 = vmatpush.bf16.msrb.mxu1 %v15762_v20  ;;  %9222 = vmatpush.bf16.msra.mxu2 %v15744_v43 }
 0x50a   :  { %v7761_v26 = vpop.f32.mrf.mxu2  ;;  %9234 = vmatpush.bf16.msrb.mxu0 %v15753_v0  ;;  %9261 = vmatpush.bf16.msra.mxu3 %v15768_v51  ;;  %v15783_v0 = vld [vmem:[%s22824_s15 + $0x150] sm:$0xff]  ;;  %v15781_v51 = vld [vmem:[%s22824_s15 + $0x140] sm:$0xff] }
 0x50d   :  { %v7800_v6 = vpop.f32.mrf.mxu3  ;;  %9247 = vmatpush.bf16.msrb.mxu1 %v15761_v58  ;;  %9223 = vmatpush.bf16.msra.mxu2 %v15743_v10  ;;  %v15791_v58 = vld [vmem:[%s22824_s15 + $0x190] sm:$0xff]  ;;  %v15774_v10 = vld [vmem:[%s22824_s15 + $0x108] sm:$0xff] }
 0x50e   :  { %9235 = vmatpush.bf16.msrb.mxu0 %v15752_v30  ;;  %v15780_v6 = vld [vmem:[%s22824_s15 + $0x138] sm:$0xff] }
 0x511   :  { %9248 = vmatpush.bf16.msrb.mxu1 %v15760_v61  ;;  %9224 = vmatpush.bf16.msra.mxu2 %v15742_v15 }
 0x512   :  { %9236 = vmatpush.bf16.msrb.mxu0 %v15751_v2  ;;  %v15775_v2 = vld [vmem:[%s22824_s15 + $0x110] sm:$0xff] }
 0x514   :  { %v7824_v41 = vpop.f32.mrf.mxu0 }
 0x515   :  { %v22510_v25 = vadd.f32 %v7824_v41, %v7441_v18  ;;  %9249 = vmatpush.bf16.msrb.mxu1 %v15759_v37  ;;  %v15758_v18 = vld [vmem:[%s22824_s15 + $0x88] sm:$0xff]  ;;  %9225 = vmatpush.bf16.msra.mxu2 %v15741_v35  ;;  %v15799_v37 = vld [vmem:[%s22824_s15 + $0x1d0] sm:$0xff] }
 0x516   :  { %9237 = vmatpush.bf16.msrb.mxu0 %v15750_v16  ;;  %v15786_v41 = vld [vmem:[%s22824_s15 + $0x168] sm:$0xff]  ;;  %v15789_v16 = vld [vmem:[%s22824_s15 + $0x180] sm:$0xff] }
 0x517   :  { %v7837_v56 = vpop.f32.mrf.mxu1  ;;  %v15806_v35 = vld [vmem:[%s22848_s12 + $0x8] sm:$0xff] }
 0x518   :  { %v22512_v13 = vadd.f32 %v7837_v56, %v7442_v40  ;;  %v15767_v40 = vld [vmem:[%s22824_s15 + $0xd0] sm:$0xff]  ;;  %v15794_v56 = vld [vmem:[%s22824_s15 + $0x1a8] sm:$0xff] }
 0x519   :  { %9250 = vmatpush.bf16.msrb.mxu1 %v15758_v18  ;;  %9262 = vmatpush.bf16.msra.mxu3 %v15767_v40  ;;  %v15798_v40 = vld [vmem:[%s22824_s15 + $0x1c8] sm:$0xff] }
 0x51a   :  { %v7811_v8 = vpop.f32.mrf.mxu2  ;;  %9238 = vmatpush.bf16.msrb.mxu0 %v15749_v42  ;;  %9270 = vmatpush.bf16.msrb.mxu2 %v15780_v6  ;;  %v15773_v42 = vld [vmem:[%s22824_s15 + $0x100] sm:$0xff] }
 0x51b   :  { %v22526_v45 = vadd.f32 %v7811_v8, %v7440_v52  ;;  %v15793_v8 = vld [vmem:[%s22824_s15 + $0x1a0] sm:$0xff] }
 0x51c   :  { %v7826_v63 = vpop.f32.mrf.mxu0 }
 0x51d   :  { %v7850_v1 = vpop.f32.mrf.mxu3  ;;  %9251 = vmatpush.bf16.msrb.mxu1 %v15757_v46  ;;  %9263 = vmatpush.bf16.msra.mxu3 %v15766_v54  ;;  %v15784_v63 = vld [vmem:[%s22824_s15 + $0x158] sm:$0xff]  ;;  %v15797_v46 = vld [vmem:[%s22824_s15 + $0x1c0] sm:$0xff] }
 0x51e   :  { %v22534_v39 = vadd.f32 %v7850_v1, %v7443_v34  ;;  %v15788_v34 = vld [vmem:[%s22824_s15 + $0x178] sm:$0xff]  ;;  %9271 = vmatpush.bf16.msrb.mxu2 %v15779_v4  ;;  %v15778_v1 = vld [vmem:[%s22824_s15 + $0x128] sm:$0xff] }
 0x51f   :  { %v7839_v9 = vpop.f32.mrf.mxu1  ;;  %9283 = vmatpush.bf16.msra.mxu0 %v15788_v34  ;;  %v15808_v4 = vld [vmem:[%s22848_s12 + $0x18] sm:$0xff] }
 0x520   :  { %v15801_v9 = vld [vmem:[%s22824_s15 + $0x1e0] sm:$0xff] }
 0x521   :  { %9296 = vmatpush.bf16.msra.mxu1 %v15796_v59  ;;  %9264 = vmatpush.bf16.msra.mxu3 %v15765_v38 }
 0x522   :  { %v7813_v17 = vpop.f32.mrf.mxu2  ;;  %9272 = vmatpush.bf16.msrb.mxu2 %v15778_v1 }
 0x523   :  { %9284 = vmatpush.bf16.msra.mxu0 %v15787_v57 }
 0x525   :  { %v7852_v31 = vpop.f32.mrf.mxu3  ;;  %9297 = vmatpush.bf16.msra.mxu1 %v15795_v22  ;;  %9309 = vmatpush.bf16.msrb.mxu3 %v15804_v27 }
 0x526   :  { %9273 = vmatpush.bf16.msrb.mxu2 %v15777_v55 }
 0x527   :  { %9285 = vmatpush.bf16.msra.mxu0 %v15786_v41 }
 0x529   :  { %9298 = vmatpush.bf16.msra.mxu1 %v15794_v56  ;;  %9310 = vmatpush.bf16.msrb.mxu3 %v15803_v28 }
 0x52a   :  { %9274 = vmatpush.bf16.msrb.mxu2 %v15776_v3 }
 0x52b   :  { %9286 = vmatpush.bf16.msra.mxu0 %v15785_v44  ;;  %v15816_v44 = vld [vmem:[%s22848_s12 + $0x58] sm:$0xff] }
 0x52c   :  { %v22575_v7 = vpop.f32.mrf.mxu0 }
 0x52d   :  { %9299 = vmatpush.bf16.msra.mxu1 %v15793_v8  ;;  %9311 = vmatpush.bf16.msrb.mxu3 %v15802_v29  ;;  %v8273_v34 = vadd.f32 %v22575_v7, %v22493_v11  ;;  %v15810_v11 = vld [vmem:[%s22848_s12 + $0x28] sm:$0xff]  ;;  %v15807_v29 = vld [vmem:[%s22848_s12 + $0x10] sm:$0xff] }
 0x52e   :  { %9275 = vmatpush.bf16.msrb.mxu2 %v15775_v2 }
 0x52f   :  { %v22580_v12 = vpop.f32.mrf.mxu1  ;;  %9287 = vmatpush.bf16.msra.mxu0 %v15784_v63 }
 0x530   :  { %v8274_v59 = vadd.f32 %v22580_v12, %v22496_v49 }
 0x531   :  { %9300 = vmatpush.bf16.msra.mxu1 %v15792_v53  ;;  %9312 = vmatpush.bf16.msrb.mxu3 %v15801_v9  ;;  %v15815_v53 = vld [vmem:[%s22848_s12 + $0x50] sm:$0xff] }
 0x532   :  { %v22597_v52 = vpop.f32.mrf.mxu2  ;;  %9276 = vmatpush.bf16.msrb.mxu2 %v15774_v10 }
 0x533   :  { %9288 = vmatpush.bf16.msra.mxu0 %v15783_v0  ;;  %v8272_v38 = vadd.f32 %v22597_v52, %v22499_v19  ;;  %v15805_v19 = vld [vmem:[%s22848_s12] sm:$0xff] }
 0x534   :  { %v8192_v50 = vpop.f32.mrf.mxu0 }
 0x535   :  { %v22608_v36 = vpop.f32.mrf.mxu3  ;;  %9301 = vmatpush.bf16.msra.mxu1 %v15791_v58  ;;  %9313 = vmatpush.bf16.msrb.mxu3 %v15800_v47 }
 0x536   :  { %9277 = vmatpush.bf16.msrb.mxu2 %v15773_v42  ;;  %v8275_v49 = vadd.f32 %v22608_v36, %v22502_v60  ;;  %v15809_v60 = vld [vmem:[%s22848_s12 + $0x20] sm:$0xff] }
 0x537   :  { %v8205_v14 = vpop.f32.mrf.mxu1  ;;  %9289 = vmatpush.bf16.msra.mxu0 %v15782_v33 }
 0x539   :  { %9302 = vmatpush.bf16.msra.mxu1 %v15790_v24  ;;  %9314 = vmatpush.bf16.msrb.mxu3 %v15799_v37 }
 0x53a   :  { %v8179_v26 = vpop.f32.mrf.mxu2 }
 0x53b   :  { %9290 = vmatpush.bf16.msra.mxu0 %v15781_v51 }
 0x53d   :  { %v8218_v62 = vpop.f32.mrf.mxu3  ;;  %9303 = vmatpush.bf16.msra.mxu1 %v15789_v16  ;;  %9315 = vmatpush.bf16.msrb.mxu3 %v15798_v40 }
 0x541   :  { %9316 = vmatpush.bf16.msrb.mxu3 %v15797_v46  ;;  %v15857_v46 = vld [vmem:[%s22849_s26 + $0x1] ss:$0 sm:$0xff] }
 0x544   :  { %v22652_v23 = vpop.f32.mrf.mxu0 }
 0x545   :  { %v8277_v55 = vadd.f32 %v22652_v23, %v22510_v25 }
 0x547   :  { %v22660_v20 = vpop.f32.mrf.mxu1 }
 0x548   :  { %v8278_v9 = vadd.f32 %v22660_v20, %v22512_v13  ;;  %v15855_v20 = vld [vmem:[%s22849_s26] ss:$0 sm:$0xff] }
 0x549   :  { %v120_v10 = vadd.f32 %v15855_v20, %v16087_v32  ;;  %v1154_v32 = vmax.f32 %v17401_v48, 0.0  ;;  %v15812_v48 = vld [vmem:[%s22848_s12 + $0x38] sm:$0xff] }
 0x54a   :  { %v22680_v17 = vpop.f32.mrf.mxu2 }
 0x54b   :  { %v8276_v33 = vadd.f32 %v22680_v17, %v22526_v45  ;;  %v15859_v45 = vld [vmem:[%s22849_s26 + $0x2] ss:$0 sm:$0xff] }
 0x54c   :  { %v8244_v30 = vpop.f32.mrf.mxu0  ;;  %v234_v40 = vadd.f32 %v15859_v45, %v16422_v21 }
 0x54d   :  { %v22688_v31 = vpop.f32.mrf.mxu3 }
 0x54e   :  { %v8279_v2 = vadd.f32 %v22688_v31, %v22534_v39 }
 0x54f   :  { %v8257_v61 = vpop.f32.mrf.mxu1 }
 0x552   :  { %v8231_v43 = vpop.f32.mrf.mxu2 }
 0x555   :  { %v8270_v18 = vpop.f32.mrf.mxu3 }
 0x55c   :  { %v8596_v15 = vpop.f32.mrf.mxu0 }
 0x55d   :  { %v8679_v54 = vadd.f32 %v8596_v15, %v8273_v34  ;;  %v237_v15 = vmax.f32 %v234_v40, 0.0  ;;  %v15863_v40 = vld [vmem:[%s22829_s20] ss:$0 sm:$0xff] }
 0x55f   :  { %v8609_v50 = vpop.f32.mrf.mxu1  ;;  %v8687_v57 = vmax.f32 %v8679_v54, 0.0  ;;  %v177_v54 = vadd.f32 %v15857_v46, %v16406_v5  ;;  %v15814_v5 = vld [vmem:[%s22848_s12 + $0x48] sm:$0xff] }
 0x560   :  { %v8680_v14 = vadd.f32 %v8609_v50, %v8274_v59  ;;  %v123_v59 = vmax.f32 %v120_v10, 0.0 }
 0x561   :  { %v8695_v26 = vpack.c.bf16 %v8687_v57, %v8687_v57  ;;  %v180_v57 = vmax.f32 %v177_v54, 0.0 }
 0x562   :  { %v8688_v22 = vmax.f32 %v8680_v14, 0.0  ;;  %v8583_v12 = vpop.f32.mrf.mxu2  ;;  %v9347_v50 = vpack.c.bf16 %v123_v59, %v123_v59  ;;  %v9406_v14 = vpack.c.bf16 %v237_v15, %v237_v15 }
 0x563   :  { %v8678_v6 = vadd.f32 %v8583_v12, %v8272_v38  ;;  %9239 = vmatmul.bf16.vlgmr.msrb.gmra.mxu0 %v8695_v26  ;;  %v9348_v21 = vpack.c.bf16 %v180_v57, %v180_v57  ;;  %v15813_v26 = vld [vmem:[%s22848_s12 + $0x40] sm:$0xff] }
 0x564   :  { %v8696_v7 = vpack.c.bf16 %v8688_v22, %v8688_v22  ;;  %v8598_v41 = vpop.f32.mrf.mxu0  ;;  %9399 = vmatpush.bf16.msrb.mxu0 %v15806_v35  ;;  %v9478_v22 = vpack.c.bf16 %v1154_v32, %v1154_v32 }
 0x565   :  { %v8622_v27 = vpop.f32.mrf.mxu3  ;;  %v8686_v52 = vmax.f32 %v8678_v6, 0.0 }
 0x566   :  { %v8681_v62 = vadd.f32 %v8622_v27, %v8275_v49  ;;  %9252 = vmatmul.bf16.vlgmr.msrb.gmra.mxu1 %v8696_v7  ;;  %v15811_v7 = vld [vmem:[%s22848_s12 + $0x30] sm:$0xff]  ;;  %v15861_v27 = vld [vmem:[%s22826_s16] ss:$0 sm:$0xff] }
 0x567   :  { %v8611_v56 = vpop.f32.mrf.mxu1  ;;  %9428 = vmatpush.bf16.msrb.mxu1 %v15810_v11  ;;  %v8694_v28 = vpack.c.bf16 %v8686_v52, %v8686_v52 }
 0x568   :  { %v8689_v36 = vmax.f32 %v8681_v62, 0.0  ;;  %9400 = vmatpush.bf16.msrb.mxu0 %v15805_v19 }
 0x569   :  { %9226 = vmatmul.bf16.vlgmr.msra.gmra.mxu2 %v8694_v28 }
 0x56a   :  { %v8697_v8 = vpack.c.bf16 %v8689_v36, %v8689_v36  ;;  %v8585_v1 = vpop.f32.mrf.mxu2  ;;  %9371 = vmatpush.bf16.msra.mxu2 %v15808_v4  ;;  %v15818_v36 = vld [vmem:[%s22828_s19 + $0x8] sm:$0xff] }
 0x56b   :  { %9429 = vmatpush.bf16.msrb.mxu1 %v15809_v60 }
 0x56c   :  { %9265 = vmatmul.bf16.vlgmr.msra.gmra.mxu3 %v8697_v8 }
 0x56d   :  { %v8624_v63 = vpop.f32.mrf.mxu3  ;;  %9500 = vmatpush.bf16.msra.mxu3 %v15816_v44 }
 0x56e   :  { %9372 = vmatpush.bf16.msra.mxu2 %v15807_v29 }
 0x571   :  { %9501 = vmatpush.bf16.msra.mxu3 %v15815_v53 }
 0x574   :  { %v8648_v0 = vpop.f32.mrf.mxu0 }
 0x575   :  { %v8683_v58 = vadd.f32 %v8648_v0, %v8277_v55  ;;  %v8661_v3 = vpop.f32.mrf.mxu1 }
 0x576   :  { %v8684_v47 = vadd.f32 %v8661_v3, %v8278_v9 }
 0x577   :  { %v8691_v30 = vmax.f32 %v8683_v58, 0.0 }
 0x578   :  { %v8692_v61 = vmax.f32 %v8684_v47, 0.0 }
 0x579   :  { %v8699_v24 = vpack.c.bf16 %v8691_v30, %v8691_v30 }
 0x57a   :  { %v8700_v37 = vpack.c.bf16 %v8692_v61, %v8692_v61  ;;  %v8635_v43 = vpop.f32.mrf.mxu2 }
 0x57b   :  { %v8682_v51 = vadd.f32 %v8635_v43, %v8276_v33  ;;  %v8674_v25 = vpop.f32.mrf.mxu3  ;;  %9291 = vmatmul.bf16.vlgmr.msra.gmra.mxu0 %v8699_v24 }
 0x57c   :  { %v8685_v23 = vadd.f32 %v8674_v25, %v8279_v2  ;;  %9304 = vmatmul.bf16.vlgmr.msra.gmra.mxu1 %v8700_v37  ;;  %v8650_v13 = vpop.f32.mrf.mxu0  ;;  %9544 = vmatpush.bf16.msra.mxu0 %v15818_v36 }
 0x57d   :  { %v8690_v16 = vmax.f32 %v8682_v51, 0.0  ;;  %v8663_v18 = vpop.f32.mrf.mxu1  ;;  %v15817_v13 = vld [vmem:[%s22828_s19] sm:$0xff] }
 0x57e   :  { %v8693_v17 = vmax.f32 %v8685_v23, 0.0  ;;  %v15862_v18 = vld [vmem:[%s22827_s18] ss:$0 sm:$0xff] }
 0x57f   :  { %v8698_v39 = vpack.c.bf16 %v8690_v16, %v8690_v16 }
 0x580   :  { %v8701_v31 = vpack.c.bf16 %v8693_v17, %v8693_v17  ;;  %9545 = vmatpush.bf16.msra.mxu0 %v15817_v13 }
 0x581   :  { %9278 = vmatmul.bf16.vlgmr.msrb.gmra.mxu2 %v8698_v39 }
 0x582   :  { %9317 = vmatmul.bf16.vlgmr.msrb.gmra.mxu3 %v8701_v31  ;;  %v8637_v42 = vpop.f32.mrf.mxu2  ;;  %9468 = vmatpush.bf16.msrb.mxu2 %v15814_v5 }
 0x583   :  { %v8676_v34 = vpop.f32.mrf.mxu3 }
 0x586   :  { %9469 = vmatpush.bf16.msrb.mxu2 %v15813_v26 }
 0x58a   :  { %9470 = vmatpush.bf16.msrb.mxu2 %v15812_v48 }
 0x58b   :  { %14724 = vmatmul.msk.bf16.vlgmr.msrb.gmra.mxu0 %vm9361_vm2, %v9347_v50 }
 0x58c   :  { %14733 = vmatmul.msk.bf16.vlgmr.msrb.gmra.mxu1 %vm9361_vm2, %v9406_v14 }
 0x58e   :  { %9471 = vmatpush.bf16.msrb.mxu2 %v15811_v7 }
 0x591   :  { %14715 = vmatmul.msk.bf16.vlgmr.msra.gmra.mxu2 %vm9361_vm2, %v9348_v21 }
 0x592   :  { %14759 = vmatmul.msk.bf16.vlgmr.msra.gmra.mxu3 %vm9361_vm2, %v9478_v22 }
 0x5e0   :  { %v9240_v35 = vpop.f32.mrf.mxu0 }
 0x5e3   :  { %v9253_v38 = vpop.f32.mrf.mxu1 }
 0x5e8   :  { %v9242_v11 = vpop.f32.mrf.mxu0 }
 0x5eb   :  { %v9255_v49 = vpop.f32.mrf.mxu1 }
 0x5ec   :  { %v9227_v12 = vpop.f32.mrf.mxu2 }
 0x5ed   :  { %v9228_v62 = vadd.f32 %v15861_v27, %v9227_v12 }
 0x5ef   :  { %v9266_v6 = vpop.f32.mrf.mxu3  ;;  %v9241_v60 = vadd.f32 %v9240_v35, %v9228_v62 }
 0x5f1   :  { %v9254_v4 = vadd.f32 %v9253_v38, %v9241_v60 }
 0x5f3   :  { %v9267_v8 = vadd.f32 %v9266_v6, %v9254_v4 }
 0x5f4   :  { %v9229_v41 = vpop.f32.mrf.mxu2 }
 0x5f7   :  { %v9268_v19 = vpop.f32.mrf.mxu3 }
 0x5f8   :  { %v9292_v52 = vpop.f32.mrf.mxu0 }
 0x5f9   :  { %v9305_v56 = vpop.f32.mrf.mxu1 }
 0x600   :  { %v9294_v28 = vpop.f32.mrf.mxu0 }
 0x601   :  { %v9307_v44 = vpop.f32.mrf.mxu1 }
 0x604   :  { %v9279_v1 = vpop.f32.mrf.mxu2 }
 0x605   :  { %v9280_v29 = vadd.f32 %v9279_v1, %v9267_v8  ;;  %v9318_v63 = vpop.f32.mrf.mxu3 }
 0x607   :  { %v9293_v53 = vadd.f32 %v9292_v52, %v9280_v29 }
 0x608   :  { %v9402_v55 = vpop.f32.mrf.mxu0 }
 0x609   :  { %v9306_v9 = vadd.f32 %v9305_v56, %v9293_v53  ;;  %v9431_v0 = vpop.f32.mrf.mxu1 }
 0x60b   :  { %v9319_v58 = vadd.f32 %v9318_v63, %v9306_v9 }
 0x60c   :  { %v9281_v3 = vpop.f32.mrf.mxu2 }
 0x60d   :  { %v9322_v47 = vmax.f32 %v9319_v58, 0.0  ;;  %v9320_v30 = vpop.f32.mrf.mxu3 }
 0x60f   :  { %v9436_v61 = vpack.c.bf16 %v9322_v47, %v9322_v47 }
 0x610   :  { %v9404_v33 = vpop.f32.mrf.mxu0 }
 0x611   :  { %v9433_v24 = vpop.f32.mrf.mxu1  ;;  %14750 = vmatmul.msk.bf16.vlgmr.msrb.gmra.mxu2 %vm106_vm0, %v9436_v61 }
 0x614   :  { %v9374_v2 = vpop.f32.mrf.mxu2 }
 0x615   :  { %v9403_v37 = vadd.f32 %v9402_v55, %v9374_v2  ;;  %v9503_v43 = vpop.f32.mrf.mxu3 }
 0x617   :  { %v9435_v51 = vadd.f32 %v9431_v0, %v9403_v37 }
 0x61c   :  { %v9376_v25 = vpop.f32.mrf.mxu2 }
 0x61d   :  { %v9505_v23 = vpop.f32.mrf.mxu3 }
 0x694   :  { %v9473_v20 = vpop.f32.mrf.mxu2 }
 0x695   :  { %v9477_v16 = vadd.f32 %v9473_v20, %v9435_v51 }
 0x697   :  { %v9507_v45 = vadd.f32 %v9503_v43, %v9477_v16 }
 0x699   :  { %v9512_v17 = vadd.f32 %v15862_v18, %v9507_v45 }
 0x69b   :  { %v9513_v39 = vmax.f32 %v9512_v17, 0.0 }
 0x69c   :  { %v9475_v31 = vpop.f32.mrf.mxu2 }
 0x69d   :  { %v9514_v10 = vpack.c.bf16 %v9513_v39, %v9513_v39 }
 0x69f   :  { %14768 = vmatmul.msk.bf16.vlgmr.msra.gmra.mxu0 %vm9361_vm2, %v9514_v10 }
 0x71c   :  { %v9547_v42 = vpop.f32.mrf.mxu0 }
 0x71d   :  { %v9548_v46 = vadd.f32 %v15863_v40, %v9547_v42 }
 0x71f   :  { %9552 = vst.msk [vmem:[%s22830_s21] sm:$0xff] %vm9551_vm3, %v9548_v46 }
 0x724   :  { %v9549_v34 = vpop.f32.mrf.mxu0 }

</bundles_post_ra>
